<compile_context>
chip_gen: v7x
topology: tpu7x:2x2x1
jax: 0.10.0
libtpu: 0.0.40
codegen_flags: <defaults>
</compile_context>

<pallas_src>
import functools

import jax
import jax.numpy as jnp
import numpy as np
from jax import lax
from jax.experimental import pallas as pl
from jax.experimental.pallas import tpu as pltpu

NUM_CLASSES = 2
ENC_SPECS = [(1, 8), (8, 16), (16, 32), (32, 64), (64, 128)]
UP_SPECS = [(128, 64), (64, 32), (32, 16), (16, 8)]
BIAS_LANES = 128  # each bias padded into one 128-lane row of the packed bias buffer


# ----------------------------- fused kernel -------------------------------------------
def _unet_fused_kernel(*refs, n_enc, n_up, m_rows, length):
    # refs = [x2d, w_enc0, w_enc1..w_enc{n_enc-1}, (dw_i, cw_i)*n_up, fw, bias_buf, out2d]
    x_ref = refs[0]
    w0_ref = refs[1]
    enc_w = refs[2:2 + (n_enc - 1)]
    idx = 2 + (n_enc - 1)
    up_w = []
    for _ in range(n_up):
        up_w.append((refs[idx], refs[idx + 1]))
        idx += 2
    fw_ref = refs[idx]
    bias_ref = refs[idx + 1]
    o_ref = refs[idx + 2]

    # Hoisted halo masks: one iota + two compares per invocation, reused by all convs.
    row = lax.broadcasted_iota(jnp.int32, (m_rows, 1), 0)
    keep_prev = (row % length != 0).astype(jnp.float32)            # zeros x[l-1] at l==0
    keep_next = (row % length != length - 1).astype(jnp.float32)   # zeros x[l+1] at l==L-1

    def shifted(h):
        hp = pltpu.roll(h, 1, 0) * keep_prev          # h[l-1] with per-sample zero halo
        hn = pltpu.roll(h, m_rows - 1, 0) * keep_next  # h[l+1] with per-sample zero halo
        return hp, hn

    def bias(row_idx, cout):
        return bias_ref[row_idx:row_idx + 1, 0:cout]   # (1, cout), static slice

    def conv3(h, w_ref, bias_row):
        """Conv1d(k=3,s=1,p=1)+bias+ReLU as ONE (M,3*Cin)@(3*Cin,Cout) bf16 MXU matmul."""
        cout = w_ref.shape[1]
        hp, hn = shifted(h)
        m = jnp.concatenate([hp, h, hn], axis=-1).astype(jnp.bfloat16)
        y = jnp.dot(m, w_ref[...], preferred_element_type=jnp.float32)
        return jnp.maximum(y + bias(bias_row, cout), 0.0)

    # ---- encoder ----------------------------------------------------------------
    # Stage 0 has Cin == 1: broadcast multiply-accumulate on the VPU instead of a
    # degenerate (M,1)@(1,8) MXU pass.
    x = x_ref[...]                                     # (M, 1) f32
    w0 = w0_ref[...]                                   # (3, C0) f32
    xp, xn = shifted(x)
    h = xp * w0[0:1, :] + x * w0[1:2, :] + xn * w0[2:3, :]
    h = jnp.maximum(h + bias(0, w0.shape[1]), 0.0)

    skips = [h]
    bias_row = 1
    for w_ref in enc_w:
        h = conv3(h, w_ref, bias_row)
        bias_row += 1
        skips.append(h)

    # ---- decoder ----------------------------------------------------------------
    for i, (dw_ref, cw_ref) in enumerate(up_w):
        # Deconv1D pre-folded into an equivalent Conv1d (taps flipped, channels swapped).
        x1 = conv3(h, dw_ref, bias_row)
        bias_row += 1
        x2 = skips[-2 - i]
        # All layers preserve L => Up's F.pad(diff) is a no-op; torch.cat([x2, x1], dim=1)
        # is a cheap lane-axis concat feeding one fused up-conv matmul.
        h = conv3(jnp.concatenate([x2, x1], axis=-1), cw_ref, bias_row)
        bias_row += 1

    # ---- final weight-normed 1x1 conv (tiny, kept f32), no ReLU ------------------
    out = jnp.dot(h, fw_ref[...], preferred_element_type=jnp.float32)
    out = out + bias(bias_row, fw_ref.shape[1])
    # TODO(synk): for production L/N, store lane-dense (classes on sublanes) to avoid the
    #             masked vst on a 2-lane minor dim; negligible at these sizes.
    o_ref[...] = out.astype(o_ref.dtype)


# ----------------------------- parameters ---------------------------------------------
def init_params(key):
    keys = jax.random.split(key, 64)
    ki = iter(range(64))

    def nrm(shape, scale=0.1):
        return scale * jax.random.normal(keys[next(ki)], shape, jnp.float32)

    params = {"enc": [], "up": []}
    for cin, cout in ENC_SPECS:
        params["enc"].append(dict(w=nrm((cout, cin, 3)), b=nrm((cout,))))
    for in_ch, out_ch in UP_SPECS:
        params["up"].append(dict(
            dw=nrm((in_ch, in_ch // 2, 3)),   # nn.ConvTranspose1d weight: (Cin, Cout, k)
            db=nrm((in_ch // 2,)),
            cw=nrm((out_ch, in_ch, 3)),       # nn.Conv1d weight: (Cout, Cin, k)
            cb=nrm((out_ch,)),
        ))
    params["final"] = dict(
        v=nrm((NUM_CLASSES, ENC_SPECS[0][1], 1)),
        g=1.0 + 0.1 * jax.random.normal(keys[next(ki)], (NUM_CLASSES,), jnp.float32),
        b=nrm((NUM_CLASSES,)),
    )
    return params


def prepare_params(params):
    """One-time weight-layout folding, OUTSIDE the jitted forward.

    Conv weights become tap-fused (3*Cin, Cout) bf16 matrices (one MXU matmul per layer);
    ConvTranspose1d is folded into an equivalent Conv1d; the Up concat is folded into the
    fused up-conv weight; weight_norm is folded into the final 1x1 weight; all 14 biases
    are packed into a single (14, 128) f32 buffer.
    """
    flat = []
    # enc0 (Cin == 1) stays f32 for the VPU broadcast-MAC path: (3, C0).
    w0 = params["enc"][0]["w"]                                    # (C0, 1, 3)
    flat.append(jnp.transpose(w0[:, 0, :], (1, 0)).astype(jnp.float32))

    def fuse_taps(w_oik):                                         # (Cout, Cin, 3)
        wt = jnp.transpose(w_oik, (2, 1, 0))                      # (3, Cin, Cout)
        return wt.reshape(-1, wt.shape[-1]).astype(jnp.bfloat16)  # (3*Cin, Cout)

    for p in params["enc"][1:]:
        flat.append(fuse_taps(p["w"]))
    for p in params["up"]:
        # ConvTranspose1d(k=3,s=1,p=1) == Conv1d(k=3,p=1) with taps flipped + ch swapped.
        # TODO(synk): validated against the JAX reference below; an independent torch
        #             parity check of this folding is advisable.
        dwc = jnp.transpose(p["dw"], (1, 0, 2))[:, :, ::-1]       # (Cout, Cin, k)
        flat.append(fuse_taps(dwc))
        flat.append(fuse_taps(p["cw"]))                           # [x2 | x1] concat folded in
    v, g, b = params["final"]["v"], params["final"]["g"], params["final"]["b"]
    w_eff = (g[:, None, None] * v /
             jnp.sqrt(jnp.sum(v * v, axis=(1, 2), keepdims=True)))[:, :, 0]
    flat.append(jnp.transpose(w_eff).astype(jnp.float32))         # (C_last, NUM_CLASSES)

    bias_rows = [p["b"] for p in params["enc"]]
    for p in params["up"]:
        bias_rows += [p["db"], p["cb"]]
    bias_rows.append(b)
    buf = np.zeros((len(bias_rows), BIAS_LANES), np.float32)
    for i, bv in enumerate(bias_rows):
        buf[i, :bv.shape[0]] = np.asarray(bv, np.float32)
    flat.append(jnp.asarray(buf))
    return flat


# ----------------------------- forward (Pallas) ---------------------------------------
def _choose_b_tile(n, length, target_rows=256):
    """Pick B_tile so each matmul has ~128-256 M rows while keeping >=2 grid steps
    (v7x has two TensorCores; v5e/v6e simply want fewer, fatter steps)."""
    divs = [d for d in range(1, n + 1) if n % d == 0]
    cap = max(1, target_rows // length)
    cands = [d for d in divs if d <= cap and n // d >= 2]
    if not cands:
        cands = [d for d in divs if d <= cap] or divs[:1]
    return max(cands)


def unet_forward(prep, x_ncl):
    n, cin0, length = x_ncl.shape
    n_enc, n_up = len(ENC_SPECS), len(UP_SPECS)
    b_tile = _choose_b_tile(n, length)
    m_rows = b_tile * length

    # Channels-last; batch*length folded into the matmul M dimension.
    x2d = jnp.transpose(x_ncl, (0, 2, 1)).reshape(n * length, cin0)

    in_specs = [pl.BlockSpec((m_rows, cin0), lambda g: (g, 0))]
    for arr in prep:
        in_specs.append(pl.BlockSpec(arr.shape, lambda g: (0, 0)))
    # TODO(synk): constant-index weight operands could be single-buffered
    #             (pipeline_mode=pl.Buffered(1)) to halve weight VMEM; negligible here.

    # Advisory cost for XLA's scheduler.
    flops = 2 * 3 * ENC_SPECS[0][0] * ENC_SPECS[0][1] * length
    for cin, cout in ENC_SPECS[1:]:
        flops += 2 * 3 * cin * cout * length
    for in_ch, out_ch in UP_SPECS:
        flops += 2 * 3 * in_ch * (in_ch // 2) * length            # deconv
        flops += 2 * 3 * in_ch * out_ch * length                  # fused up conv
    flops += 2 * UP_SPECS[-1][1] * NUM_CLASSES * length           # final 1x1
    flops *= n
    bytes_accessed = (int(x2d.size) * 4
                      + sum(int(a.size) * a.dtype.itemsize for a in prep)
                      + n * length * NUM_CLASSES * 4)

    kernel = functools.partial(_unet_fused_kernel, n_enc=n_enc, n_up=n_up,
                               m_rows=m_rows, length=length)
    out2d = pl.pallas_call(
        kernel,
        out_shape=jax.ShapeDtypeStruct((n * length, NUM_CLASSES), jnp.float32),
        grid=(n // b_tile,),
        in_specs=in_specs,
        out_specs=pl.BlockSpec((m_rows, NUM_CLASSES), lambda g: (g, 0)),
        compiler_params=pltpu.CompilerParams(dimension_semantics=("parallel",)),
        cost_estimate=pl.CostEstimate(flops=flops, transcendentals=0,
                                      bytes_accessed=bytes_accessed),
    )(x2d, *prep)
    # TODO(synk): fold this NLC->NCL transpose into a lane-dense kernel store for large L/N.
    return jnp.transpose(out2d.reshape(n, length, NUM_CLASSES), (0, 2, 1))


# ----------------------------- pure-JAX reference -------------------------------------
def _ref_conv1d(x_ncl, w, b, relu):
    y = lax.conv_general_dilated(x_ncl, w, (1,), ((1, 1),),
                                 dimension_numbers=("NCH", "OIH", "NCH"))
    y = y + b[None, :, None]
    return jnp.maximum(y, 0.0) if relu else y


def ref_forward(params, x_ncl):
    def deconv(x, w, b):
        wc = jnp.transpose(w, (1, 0, 2))[:, :, ::-1]
        return _ref_conv1d(x, wc, b, True)

    xi = [_ref_conv1d(x_ncl, params["enc"][0]["w"], params["enc"][0]["b"], True)]
    for p in params["enc"][1:]:
        xi.append(_ref_conv1d(xi[-1], p["w"], p["b"], True))
    for i, p in enumerate(params["up"]):
        x1 = deconv(xi[-1], p["dw"], p["db"])
        x2 = xi[-2 - i]
        diff = x2.shape[2] - x1.shape[2]
        l, r = diff // 2, diff - diff // 2
        x1 = x1[:, :, max(-l, 0):x1.shape[2] - max(-r, 0)]
        x1 = jnp.pad(x1, ((0, 0), (0, 0), (max(l, 0), max(r, 0))))
        xcat = jnp.concatenate([x2, x1], axis=1)
        xi[-1] = _ref_conv1d(xcat, p["cw"], p["cb"], True)
    v, g, b = params["final"]["v"], params["final"]["g"], params["final"]["b"]
    w_eff = g[:, None, None] * v / jnp.sqrt(jnp.sum(v * v, axis=(1, 2), keepdims=True))
    y = lax.conv_general_dilated(xi[-1], w_eff, (1,), ((0, 0),),
                                 dimension_numbers=("NCH", "OIH", "NCH"))
    return y + b[None, :, None]


if __name__ == "__main__":
    key = jax.random.PRNGKey(0)
    kx, kp = jax.random.split(key)
    N, L = 16, 16
    x = jax.random.normal(kx, (N, 1, L), jnp.float32)    # (batch, n_channels=1, length)
    params = init_params(kp)
    prep = prepare_params(params)                        # weight folding outside jit

    fwd = jax.jit(unet_forward)
    out = jax.block_until_ready(fwd(prep, x))

    assert out.shape == (N, NUM_CLASSES, L), out.shape
    ref = ref_forward(params, x)
    # bf16 MXU operands with f32 accumulation -> relaxed parity vs. the f32 reference.
    np.testing.assert_allclose(np.asarray(out), np.asarray(ref), rtol=5e-2, atol=2e-2)
    print("KERNEL_OK")
</pallas_src>

<mosaic_0001>
module attributes {stable_mosaic.version = 11 : i64} {
  func.func @_unet_fused_kernel(%arg0: i32, %arg1: memref<128x1xf32, #tpu.memory_space<vmem>>, %arg2: memref<3x8xf32, #tpu.memory_space<vmem>>, %arg3: memref<24x16xbf16, #tpu.memory_space<vmem>>, %arg4: memref<48x32xbf16, #tpu.memory_space<vmem>>, %arg5: memref<96x64xbf16, #tpu.memory_space<vmem>>, %arg6: memref<192x128xbf16, #tpu.memory_space<vmem>>, %arg7: memref<384x64xbf16, #tpu.memory_space<vmem>>, %arg8: memref<384x64xbf16, #tpu.memory_space<vmem>>, %arg9: memref<192x32xbf16, #tpu.memory_space<vmem>>, %arg10: memref<192x32xbf16, #tpu.memory_space<vmem>>, %arg11: memref<96x16xbf16, #tpu.memory_space<vmem>>, %arg12: memref<96x16xbf16, #tpu.memory_space<vmem>>, %arg13: memref<48x8xbf16, #tpu.memory_space<vmem>>, %arg14: memref<48x8xbf16, #tpu.memory_space<vmem>>, %arg15: memref<8x2xf32, #tpu.memory_space<vmem>>, %arg16: memref<14x128xf32, #tpu.memory_space<vmem>>, %arg17: memref<128x2xf32, #tpu.memory_space<vmem>>) attributes {dimension_semantics = [#tpu.dimension_semantics<parallel>], iteration_bounds = array<i64: 2>, scalar_prefetch = 0 : i64, scratch_operands = 0 : i64, tpu.core_type = #tpu.core_type<tc>, window_params = [{transform_indices = @transform_0, window_bounds = array<i64: 128, 1>}, {pipeline_mode = #tpu.pipeline_mode<synchronous>, transform_indices = @transform_1, window_bounds = array<i64: 3, 8>}, {pipeline_mode = #tpu.pipeline_mode<synchronous>, transform_indices = @transform_2, window_bounds = array<i64: 24, 16>}, {pipeline_mode = #tpu.pipeline_mode<synchronous>, transform_indices = @transform_3, window_bounds = array<i64: 48, 32>}, {pipeline_mode = #tpu.pipeline_mode<synchronous>, transform_indices = @transform_4, window_bounds = array<i64: 96, 64>}, {pipeline_mode = #tpu.pipeline_mode<synchronous>, transform_indices = @transform_5, window_bounds = array<i64: 192, 128>}, {pipeline_mode = #tpu.pipeline_mode<synchronous>, transform_indices = @transform_6, window_bounds = array<i64: 384, 64>}, {pipeline_mode = #tpu.pipeline_mode<synchronous>, transform_indices = @transform_7, window_bounds = array<i64: 384, 64>}, {pipeline_mode = #tpu.pipeline_mode<synchronous>, transform_indices = @transform_8, window_bounds = array<i64: 192, 32>}, {pipeline_mode = #tpu.pipeline_mode<synchronous>, transform_indices = @transform_9, window_bounds = array<i64: 192, 32>}, {pipeline_mode = #tpu.pipeline_mode<synchronous>, transform_indices = @transform_10, window_bounds = array<i64: 96, 16>}, {pipeline_mode = #tpu.pipeline_mode<synchronous>, transform_indices = @transform_11, window_bounds = array<i64: 96, 16>}, {pipeline_mode = #tpu.pipeline_mode<synchronous>, transform_indices = @transform_12, window_bounds = array<i64: 48, 8>}, {pipeline_mode = #tpu.pipeline_mode<synchronous>, transform_indices = @transform_13, window_bounds = array<i64: 48, 8>}, {pipeline_mode = #tpu.pipeline_mode<synchronous>, transform_indices = @transform_14, window_bounds = array<i64: 8, 2>}, {pipeline_mode = #tpu.pipeline_mode<synchronous>, transform_indices = @transform_15, window_bounds = array<i64: 14, 128>}, {transform_indices = @transform_16, window_bounds = array<i64: 128, 2>}]} {
    %0 = tpu.iota {dimensions = array<i32: 0>} : vector<128x1xi32>
    %c16_i32 = arith.constant 16 : i32
    %c0_i32 = arith.constant 0 : i32
    %1 = arith.cmpi eq, %c16_i32, %c0_i32 : i32
    %c1_i32 = arith.constant 1 : i32
    %2 = arith.select %1, %c1_i32, %c16_i32 : i32
    %3 = vector.broadcast %2 : i32 to vector<128x1xi32>
    %4 = arith.remsi %0, %3 : vector<128x1xi32>
    %c0_i32_0 = arith.constant 0 : i32
    %5 = vector.broadcast %c0_i32_0 : i32 to vector<128x1xi32>
    %6 = arith.cmpi ne, %4, %5 : vector<128x1xi32>
    %c0_i32_1 = arith.constant 0 : i32
    %7 = vector.broadcast %c0_i32_1 : i32 to vector<128x1xi32>
    %8 = arith.cmpi slt, %4, %7 : vector<128x1xi32>
    %c0_i32_2 = arith.constant 0 : i32
    %9 = arith.cmpi slt, %2, %c0_i32_2 : i32
    %10 = vector.broadcast %9 : i1 to vector<128x1xi1>
    %11 = vector.broadcast %10 : vector<128x1xi1> to vector<128x1xi1>
    %12 = arith.xori %8, %11 : vector<128x1xi1>
    %13 = arith.andi %12, %6 : vector<128x1xi1>
    %14 = vector.broadcast %2 : i32 to vector<128x1xi32>
    %15 = arith.addi %4, %14 : vector<128x1xi32>
    %16 = arith.select %13, %15, %4 : vector<128x1xi1>, vector<128x1xi32>
    %c0_i32_3 = arith.constant 0 : i32
    %17 = vector.broadcast %c0_i32_3 : i32 to vector<128x1xi32>
    %18 = arith.cmpi ne, %16, %17 : vector<128x1xi32>
    %19 = arith.extui %18 : vector<128x1xi1> to vector<128x1xi32>
    %20 = arith.sitofp %19 : vector<128x1xi32> to vector<128x1xf32>
    %c16_i32_4 = arith.constant 16 : i32
    %c0_i32_5 = arith.constant 0 : i32
    %21 = arith.cmpi eq, %c16_i32_4, %c0_i32_5 : i32
    %c1_i32_6 = arith.constant 1 : i32
    %22 = arith.select %21, %c1_i32_6, %c16_i32_4 : i32
    %23 = vector.broadcast %22 : i32 to vector<128x1xi32>
    %24 = arith.remsi %0, %23 : vector<128x1xi32>
    %c0_i32_7 = arith.constant 0 : i32
    %25 = vector.broadcast %c0_i32_7 : i32 to vector<128x1xi32>
    %26 = arith.cmpi ne, %24, %25 : vector<128x1xi32>
    %c0_i32_8 = arith.constant 0 : i32
    %27 = vector.broadcast %c0_i32_8 : i32 to vector<128x1xi32>
    %28 = arith.cmpi slt, %24, %27 : vector<128x1xi32>
    %c0_i32_9 = arith.constant 0 : i32
    %29 = arith.cmpi slt, %22, %c0_i32_9 : i32
    %30 = vector.broadcast %29 : i1 to vector<128x1xi1>
    %31 = vector.broadcast %30 : vector<128x1xi1> to vector<128x1xi1>
    %32 = arith.xori %28, %31 : vector<128x1xi1>
    %33 = arith.andi %32, %26 : vector<128x1xi1>
    %34 = vector.broadcast %22 : i32 to vector<128x1xi32>
    %35 = arith.addi %24, %34 : vector<128x1xi32>
    %36 = arith.select %33, %35, %24 : vector<128x1xi1>, vector<128x1xi32>
    %c15_i32 = arith.constant 15 : i32
    %37 = vector.broadcast %c15_i32 : i32 to vector<128x1xi32>
    %38 = arith.cmpi ne, %36, %37 : vector<128x1xi32>
    %39 = arith.extui %38 : vector<128x1xi1> to vector<128x1xi32>
    %40 = arith.sitofp %39 : vector<128x1xi32> to vector<128x1xf32>
    %c0 = arith.constant 0 : index
    %c0_10 = arith.constant 0 : index
    %41 = vector.load %arg1[%c0, %c0_10] : memref<128x1xf32, #tpu.memory_space<vmem>>, vector<128x1xf32>
    %c0_11 = arith.constant 0 : index
    %c0_12 = arith.constant 0 : index
    %42 = vector.load %arg2[%c0_11, %c0_12] : memref<3x8xf32, #tpu.memory_space<vmem>>, vector<3x8xf32>
    %c1_i32_13 = arith.constant 1 : i32
    %43 = tpu.dynamic_rotate %41 by %c1_i32_13 dim 0 : vector<128x1xf32>, i32 -> vector<128x1xf32>
    %44 = arith.mulf %43, %20 : vector<128x1xf32>
    %c127_i32 = arith.constant 127 : i32
    %45 = tpu.dynamic_rotate %41 by %c127_i32 dim 0 : vector<128x1xf32>, i32 -> vector<128x1xf32>
    %46 = arith.mulf %45, %40 : vector<128x1xf32>
    %47 = vector.extract_strided_slice %42 {offsets = [0, 0], sizes = [1, 8], strides = [1, 1]} : vector<3x8xf32> to vector<1x8xf32>
    %48 = vector.broadcast %44 : vector<128x1xf32> to vector<128x8xf32>
    %49 = vector.broadcast %47 : vector<1x8xf32> to vector<128x8xf32>
    %50 = arith.mulf %48, %49 : vector<128x8xf32>
    %51 = vector.extract_strided_slice %42 {offsets = [1, 0], sizes = [1, 8], strides = [1, 1]} : vector<3x8xf32> to vector<1x8xf32>
    %52 = vector.broadcast %41 : vector<128x1xf32> to vector<128x8xf32>
    %53 = vector.broadcast %51 : vector<1x8xf32> to vector<128x8xf32>
    %54 = arith.mulf %52, %53 : vector<128x8xf32>
    %55 = arith.addf %50, %54 : vector<128x8xf32>
    %56 = vector.extract_strided_slice %42 {offsets = [2, 0], sizes = [1, 8], strides = [1, 1]} : vector<3x8xf32> to vector<1x8xf32>
    %57 = vector.broadcast %46 : vector<128x1xf32> to vector<128x8xf32>
    %58 = vector.broadcast %56 : vector<1x8xf32> to vector<128x8xf32>
    %59 = arith.mulf %57, %58 : vector<128x8xf32>
    %60 = arith.addf %55, %59 : vector<128x8xf32>
    %c0_14 = arith.constant 0 : index
    %c0_15 = arith.constant 0 : index
    %61 = vector.load %arg16[%c0_14, %c0_15] : memref<14x128xf32, #tpu.memory_space<vmem>>, vector<1x8xf32>
    %62 = vector.broadcast %61 : vector<1x8xf32> to vector<128x8xf32>
    %63 = arith.addf %60, %62 : vector<128x8xf32>
    %cst = arith.constant 0.000000e+00 : f32
    %64 = vector.broadcast %cst : f32 to vector<128x8xf32>
    %65 = arith.maximumf %63, %64 : vector<128x8xf32>
    %c1_i32_16 = arith.constant 1 : i32
    %66 = tpu.dynamic_rotate %65 by %c1_i32_16 dim 0 : vector<128x8xf32>, i32 -> vector<128x8xf32>
    %67 = vector.broadcast %20 : vector<128x1xf32> to vector<128x8xf32>
    %68 = arith.mulf %66, %67 : vector<128x8xf32>
    %c127_i32_17 = arith.constant 127 : i32
    %69 = tpu.dynamic_rotate %65 by %c127_i32_17 dim 0 : vector<128x8xf32>, i32 -> vector<128x8xf32>
    %70 = vector.broadcast %40 : vector<128x1xf32> to vector<128x8xf32>
    %71 = arith.mulf %69, %70 : vector<128x8xf32>
    %72 = tpu.concatenate %68, %65, %71 in 1 : vector<128x8xf32>, vector<128x8xf32>, vector<128x8xf32> -> vector<128x24xf32>
    %73 = arith.truncf %72 : vector<128x24xf32> to vector<128x24xbf16>
    %c0_18 = arith.constant 0 : index
    %c0_19 = arith.constant 0 : index
    %74 = vector.load %arg3[%c0_18, %c0_19] : memref<24x16xbf16, #tpu.memory_space<vmem>>, vector<24x16xbf16>
    %cst_20 = arith.constant dense<0.000000e+00> : vector<128x16xf32>
    %75 = tpu.matmul %73, %74, %cst_20 {dimension_numbers = #tpu.dot_dimension_numbers<[1], [0], [0], [1], [0, 0, 1, 1], [], []>} : vector<128x24xbf16>, vector<24x16xbf16>, vector<128x16xf32> -> vector<128x16xf32>
    %c1 = arith.constant 1 : index
    %c0_21 = arith.constant 0 : index
    %76 = vector.load %arg16[%c1, %c0_21] : memref<14x128xf32, #tpu.memory_space<vmem>>, vector<1x16xf32>
    %77 = vector.broadcast %76 : vector<1x16xf32> to vector<128x16xf32>
    %78 = arith.addf %75, %77 : vector<128x16xf32>
    %cst_22 = arith.constant 0.000000e+00 : f32
    %79 = vector.broadcast %cst_22 : f32 to vector<128x16xf32>
    %80 = arith.maximumf %78, %79 : vector<128x16xf32>
    %c1_i32_23 = arith.constant 1 : i32
    %81 = tpu.dynamic_rotate %80 by %c1_i32_23 dim 0 : vector<128x16xf32>, i32 -> vector<128x16xf32>
    %82 = vector.broadcast %20 : vector<128x1xf32> to vector<128x16xf32>
    %83 = arith.mulf %81, %82 : vector<128x16xf32>
    %c127_i32_24 = arith.constant 127 : i32
    %84 = tpu.dynamic_rotate %80 by %c127_i32_24 dim 0 : vector<128x16xf32>, i32 -> vector<128x16xf32>
    %85 = vector.broadcast %40 : vector<128x1xf32> to vector<128x16xf32>
    %86 = arith.mulf %84, %85 : vector<128x16xf32>
    %87 = tpu.concatenate %83, %80, %86 in 1 : vector<128x16xf32>, vector<128x16xf32>, vector<128x16xf32> -> vector<128x48xf32>
    %88 = arith.truncf %87 : vector<128x48xf32> to vector<128x48xbf16>
    %c0_25 = arith.constant 0 : index
    %c0_26 = arith.constant 0 : index
    %89 = vector.load %arg4[%c0_25, %c0_26] : memref<48x32xbf16, #tpu.memory_space<vmem>>, vector<48x32xbf16>
    %cst_27 = arith.constant dense<0.000000e+00> : vector<128x32xf32>
    %90 = tpu.matmul %88, %89, %cst_27 {dimension_numbers = #tpu.dot_dimension_numbers<[1], [0], [0], [1], [0, 0, 1, 1], [], []>} : vector<128x48xbf16>, vector<48x32xbf16>, vector<128x32xf32> -> vector<128x32xf32>
    %c2 = arith.constant 2 : index
    %c0_28 = arith.constant 0 : index
    %91 = vector.load %arg16[%c2, %c0_28] : memref<14x128xf32, #tpu.memory_space<vmem>>, vector<1x32xf32>
    %92 = vector.broadcast %91 : vector<1x32xf32> to vector<128x32xf32>
    %93 = arith.addf %90, %92 : vector<128x32xf32>
    %cst_29 = arith.constant 0.000000e+00 : f32
    %94 = vector.broadcast %cst_29 : f32 to vector<128x32xf32>
    %95 = arith.maximumf %93, %94 : vector<128x32xf32>
    %c1_i32_30 = arith.constant 1 : i32
    %96 = tpu.dynamic_rotate %95 by %c1_i32_30 dim 0 : vector<128x32xf32>, i32 -> vector<128x32xf32>
    %97 = vector.broadcast %20 : vector<128x1xf32> to vector<128x32xf32>
    %98 = arith.mulf %96, %97 : vector<128x32xf32>
    %c127_i32_31 = arith.constant 127 : i32
    %99 = tpu.dynamic_rotate %95 by %c127_i32_31 dim 0 : vector<128x32xf32>, i32 -> vector<128x32xf32>
    %100 = vector.broadcast %40 : vector<128x1xf32> to vector<128x32xf32>
    %101 = arith.mulf %99, %100 : vector<128x32xf32>
    %102 = tpu.concatenate %98, %95, %101 in 1 : vector<128x32xf32>, vector<128x32xf32>, vector<128x32xf32> -> vector<128x96xf32>
    %103 = arith.truncf %102 : vector<128x96xf32> to vector<128x96xbf16>
    %c0_32 = arith.constant 0 : index
    %c0_33 = arith.constant 0 : index
    %104 = vector.load %arg5[%c0_32, %c0_33] : memref<96x64xbf16, #tpu.memory_space<vmem>>, vector<96x64xbf16>
    %cst_34 = arith.constant dense<0.000000e+00> : vector<128x64xf32>
    %105 = tpu.matmul %103, %104, %cst_34 {dimension_numbers = #tpu.dot_dimension_numbers<[1], [0], [0], [1], [0, 0, 1, 1], [], []>} : vector<128x96xbf16>, vector<96x64xbf16>, vector<128x64xf32> -> vector<128x64xf32>
    %c3 = arith.constant 3 : index
    %c0_35 = arith.constant 0 : index
    %106 = vector.load %arg16[%c3, %c0_35] : memref<14x128xf32, #tpu.memory_space<vmem>>, vector<1x64xf32>
    %107 = vector.broadcast %106 : vector<1x64xf32> to vector<128x64xf32>
    %108 = arith.addf %105, %107 : vector<128x64xf32>
    %cst_36 = arith.constant 0.000000e+00 : f32
    %109 = vector.broadcast %cst_36 : f32 to vector<128x64xf32>
    %110 = arith.maximumf %108, %109 : vector<128x64xf32>
    %c1_i32_37 = arith.constant 1 : i32
    %111 = tpu.dynamic_rotate %110 by %c1_i32_37 dim 0 : vector<128x64xf32>, i32 -> vector<128x64xf32>
    %112 = vector.broadcast %20 : vector<128x1xf32> to vector<128x64xf32>
    %113 = arith.mulf %111, %112 : vector<128x64xf32>
    %c127_i32_38 = arith.constant 127 : i32
    %114 = tpu.dynamic_rotate %110 by %c127_i32_38 dim 0 : vector<128x64xf32>, i32 -> vector<128x64xf32>
    %115 = vector.broadcast %40 : vector<128x1xf32> to vector<128x64xf32>
    %116 = arith.mulf %114, %115 : vector<128x64xf32>
    %117 = tpu.concatenate %113, %110, %116 in 1 : vector<128x64xf32>, vector<128x64xf32>, vector<128x64xf32> -> vector<128x192xf32>
    %118 = arith.truncf %117 : vector<128x192xf32> to vector<128x192xbf16>
    %c0_39 = arith.constant 0 : index
    %c0_40 = arith.constant 0 : index
    %119 = vector.load %arg6[%c0_39, %c0_40] : memref<192x128xbf16, #tpu.memory_space<vmem>>, vector<192x128xbf16>
    %cst_41 = arith.constant dense<0.000000e+00> : vector<128x128xf32>
    %120 = tpu.matmul %118, %119, %cst_41 {dimension_numbers = #tpu.dot_dimension_numbers<[1], [0], [0], [1], [0, 0, 1, 1], [], []>} : vector<128x192xbf16>, vector<192x128xbf16>, vector<128x128xf32> -> vector<128x128xf32>
    %c4 = arith.constant 4 : index
    %c0_42 = arith.constant 0 : index
    %121 = vector.load %arg16[%c4, %c0_42] : memref<14x128xf32, #tpu.memory_space<vmem>>, vector<1x128xf32>
    %122 = vector.broadcast %121 : vector<1x128xf32> to vector<128x128xf32>
    %123 = arith.addf %120, %122 : vector<128x128xf32>
    %cst_43 = arith.constant 0.000000e+00 : f32
    %124 = vector.broadcast %cst_43 : f32 to vector<128x128xf32>
    %125 = arith.maximumf %123, %124 : vector<128x128xf32>
    %c1_i32_44 = arith.constant 1 : i32
    %126 = tpu.dynamic_rotate %125 by %c1_i32_44 dim 0 : vector<128x128xf32>, i32 -> vector<128x128xf32>
    %127 = vector.broadcast %20 : vector<128x1xf32> to vector<128x128xf32>
    %128 = arith.mulf %126, %127 : vector<128x128xf32>
    %c127_i32_45 = arith.constant 127 : i32
    %129 = tpu.dynamic_rotate %125 by %c127_i32_45 dim 0 : vector<128x128xf32>, i32 -> vector<128x128xf32>
    %130 = vector.broadcast %40 : vector<128x1xf32> to vector<128x128xf32>
    %131 = arith.mulf %129, %130 : vector<128x128xf32>
    %132 = tpu.concatenate %128, %125, %131 in 1 : vector<128x128xf32>, vector<128x128xf32>, vector<128x128xf32> -> vector<128x384xf32>
    %133 = arith.truncf %132 : vector<128x384xf32> to vector<128x384xbf16>
    %c0_46 = arith.constant 0 : index
    %c0_47 = arith.constant 0 : index
    %134 = vector.load %arg7[%c0_46, %c0_47] : memref<384x64xbf16, #tpu.memory_space<vmem>>, vector<384x64xbf16>
    %cst_48 = arith.constant dense<0.000000e+00> : vector<128x64xf32>
    %135 = tpu.matmul %133, %134, %cst_48 {dimension_numbers = #tpu.dot_dimension_numbers<[1], [0], [0], [1], [0, 0, 1, 1], [], []>} : vector<128x384xbf16>, vector<384x64xbf16>, vector<128x64xf32> -> vector<128x64xf32>
    %c5 = arith.constant 5 : index
    %c0_49 = arith.constant 0 : index
    %136 = vector.load %arg16[%c5, %c0_49] : memref<14x128xf32, #tpu.memory_space<vmem>>, vector<1x64xf32>
    %137 = vector.broadcast %136 : vector<1x64xf32> to vector<128x64xf32>
    %138 = arith.addf %135, %137 : vector<128x64xf32>
    %cst_50 = arith.constant 0.000000e+00 : f32
    %139 = vector.broadcast %cst_50 : f32 to vector<128x64xf32>
    %140 = arith.maximumf %138, %139 : vector<128x64xf32>
    %141 = tpu.concatenate %110, %140 in 1 : vector<128x64xf32>, vector<128x64xf32> -> vector<128x128xf32>
    %c1_i32_51 = arith.constant 1 : i32
    %142 = tpu.dynamic_rotate %141 by %c1_i32_51 dim 0 : vector<128x128xf32>, i32 -> vector<128x128xf32>
    %143 = vector.broadcast %20 : vector<128x1xf32> to vector<128x128xf32>
    %144 = arith.mulf %142, %143 : vector<128x128xf32>
    %c127_i32_52 = arith.constant 127 : i32
    %145 = tpu.dynamic_rotate %141 by %c127_i32_52 dim 0 : vector<128x128xf32>, i32 -> vector<128x128xf32>
    %146 = vector.broadcast %40 : vector<128x1xf32> to vector<128x128xf32>
    %147 = arith.mulf %145, %146 : vector<128x128xf32>
    %148 = tpu.concatenate %144, %141, %147 in 1 : vector<128x128xf32>, vector<128x128xf32>, vector<128x128xf32> -> vector<128x384xf32>
    %149 = arith.truncf %148 : vector<128x384xf32> to vector<128x384xbf16>
    %c0_53 = arith.constant 0 : index
    %c0_54 = arith.constant 0 : index
    %150 = vector.load %arg8[%c0_53, %c0_54] : memref<384x64xbf16, #tpu.memory_space<vmem>>, vector<384x64xbf16>
    %cst_55 = arith.constant dense<0.000000e+00> : vector<128x64xf32>
    %151 = tpu.matmul %149, %150, %cst_55 {dimension_numbers = #tpu.dot_dimension_numbers<[1], [0], [0], [1], [0, 0, 1, 1], [], []>} : vector<128x384xbf16>, vector<384x64xbf16>, vector<128x64xf32> -> vector<128x64xf32>
    %c6 = arith.constant 6 : index
    %c0_56 = arith.constant 0 : index
    %152 = vector.load %arg16[%c6, %c0_56] : memref<14x128xf32, #tpu.memory_space<vmem>>, vector<1x64xf32>
    %153 = vector.broadcast %152 : vector<1x64xf32> to vector<128x64xf32>
    %154 = arith.addf %151, %153 : vector<128x64xf32>
    %cst_57 = arith.constant 0.000000e+00 : f32
    %155 = vector.broadcast %cst_57 : f32 to vector<128x64xf32>
    %156 = arith.maximumf %154, %155 : vector<128x64xf32>
    %c1_i32_58 = arith.constant 1 : i32
    %157 = tpu.dynamic_rotate %156 by %c1_i32_58 dim 0 : vector<128x64xf32>, i32 -> vector<128x64xf32>
    %158 = vector.broadcast %20 : vector<128x1xf32> to vector<128x64xf32>
    %159 = arith.mulf %157, %158 : vector<128x64xf32>
    %c127_i32_59 = arith.constant 127 : i32
    %160 = tpu.dynamic_rotate %156 by %c127_i32_59 dim 0 : vector<128x64xf32>, i32 -> vector<128x64xf32>
    %161 = vector.broadcast %40 : vector<128x1xf32> to vector<128x64xf32>
    %162 = arith.mulf %160, %161 : vector<128x64xf32>
    %163 = tpu.concatenate %159, %156, %162 in 1 : vector<128x64xf32>, vector<128x64xf32>, vector<128x64xf32> -> vector<128x192xf32>
    %164 = arith.truncf %163 : vector<128x192xf32> to vector<128x192xbf16>
    %c0_60 = arith.constant 0 : index
    %c0_61 = arith.constant 0 : index
    %165 = vector.load %arg9[%c0_60, %c0_61] : memref<192x32xbf16, #tpu.memory_space<vmem>>, vector<192x32xbf16>
    %cst_62 = arith.constant dense<0.000000e+00> : vector<128x32xf32>
    %166 = tpu.matmul %164, %165, %cst_62 {dimension_numbers = #tpu.dot_dimension_numbers<[1], [0], [0], [1], [0, 0, 1, 1], [], []>} : vector<128x192xbf16>, vector<192x32xbf16>, vector<128x32xf32> -> vector<128x32xf32>
    %c7 = arith.constant 7 : index
    %c0_63 = arith.constant 0 : index
    %167 = vector.load %arg16[%c7, %c0_63] : memref<14x128xf32, #tpu.memory_space<vmem>>, vector<1x32xf32>
    %168 = vector.broadcast %167 : vector<1x32xf32> to vector<128x32xf32>
    %169 = arith.addf %166, %168 : vector<128x32xf32>
    %cst_64 = arith.constant 0.000000e+00 : f32
    %170 = vector.broadcast %cst_64 : f32 to vector<128x32xf32>
    %171 = arith.maximumf %169, %170 : vector<128x32xf32>
    %172 = tpu.concatenate %95, %171 in 1 : vector<128x32xf32>, vector<128x32xf32> -> vector<128x64xf32>
    %c1_i32_65 = arith.constant 1 : i32
    %173 = tpu.dynamic_rotate %172 by %c1_i32_65 dim 0 : vector<128x64xf32>, i32 -> vector<128x64xf32>
    %174 = vector.broadcast %20 : vector<128x1xf32> to vector<128x64xf32>
    %175 = arith.mulf %173, %174 : vector<128x64xf32>
    %c127_i32_66 = arith.constant 127 : i32
    %176 = tpu.dynamic_rotate %172 by %c127_i32_66 dim 0 : vector<128x64xf32>, i32 -> vector<128x64xf32>
    %177 = vector.broadcast %40 : vector<128x1xf32> to vector<128x64xf32>
    %178 = arith.mulf %176, %177 : vector<128x64xf32>
    %179 = tpu.concatenate %175, %172, %178 in 1 : vector<128x64xf32>, vector<128x64xf32>, vector<128x64xf32> -> vector<128x192xf32>
    %180 = arith.truncf %179 : vector<128x192xf32> to vector<128x192xbf16>
    %c0_67 = arith.constant 0 : index
    %c0_68 = arith.constant 0 : index
    %181 = vector.load %arg10[%c0_67, %c0_68] : memref<192x32xbf16, #tpu.memory_space<vmem>>, vector<192x32xbf16>
    %cst_69 = arith.constant dense<0.000000e+00> : vector<128x32xf32>
    %182 = tpu.matmul %180, %181, %cst_69 {dimension_numbers = #tpu.dot_dimension_numbers<[1], [0], [0], [1], [0, 0, 1, 1], [], []>} : vector<128x192xbf16>, vector<192x32xbf16>, vector<128x32xf32> -> vector<128x32xf32>
    %c8 = arith.constant 8 : index
    %c0_70 = arith.constant 0 : index
    %183 = vector.load %arg16[%c8, %c0_70] : memref<14x128xf32, #tpu.memory_space<vmem>>, vector<1x32xf32>
    %184 = vector.broadcast %183 : vector<1x32xf32> to vector<128x32xf32>
    %185 = arith.addf %182, %184 : vector<128x32xf32>
    %cst_71 = arith.constant 0.000000e+00 : f32
    %186 = vector.broadcast %cst_71 : f32 to vector<128x32xf32>
    %187 = arith.maximumf %185, %186 : vector<128x32xf32>
    %c1_i32_72 = arith.constant 1 : i32
    %188 = tpu.dynamic_rotate %187 by %c1_i32_72 dim 0 : vector<128x32xf32>, i32 -> vector<128x32xf32>
    %189 = vector.broadcast %20 : vector<128x1xf32> to vector<128x32xf32>
    %190 = arith.mulf %188, %189 : vector<128x32xf32>
    %c127_i32_73 = arith.constant 127 : i32
    %191 = tpu.dynamic_rotate %187 by %c127_i32_73 dim 0 : vector<128x32xf32>, i32 -> vector<128x32xf32>
    %192 = vector.broadcast %40 : vector<128x1xf32> to vector<128x32xf32>
    %193 = arith.mulf %191, %192 : vector<128x32xf32>
    %194 = tpu.concatenate %190, %187, %193 in 1 : vector<128x32xf32>, vector<128x32xf32>, vector<128x32xf32> -> vector<128x96xf32>
    %195 = arith.truncf %194 : vector<128x96xf32> to vector<128x96xbf16>
    %c0_74 = arith.constant 0 : index
    %c0_75 = arith.constant 0 : index
    %196 = vector.load %arg11[%c0_74, %c0_75] : memref<96x16xbf16, #tpu.memory_space<vmem>>, vector<96x16xbf16>
    %cst_76 = arith.constant dense<0.000000e+00> : vector<128x16xf32>
    %197 = tpu.matmul %195, %196, %cst_76 {dimension_numbers = #tpu.dot_dimension_numbers<[1], [0], [0], [1], [0, 0, 1, 1], [], []>} : vector<128x96xbf16>, vector<96x16xbf16>, vector<128x16xf32> -> vector<128x16xf32>
    %c9 = arith.constant 9 : index
    %c0_77 = arith.constant 0 : index
    %198 = vector.load %arg16[%c9, %c0_77] : memref<14x128xf32, #tpu.memory_space<vmem>>, vector<1x16xf32>
    %199 = vector.broadcast %198 : vector<1x16xf32> to vector<128x16xf32>
    %200 = arith.addf %197, %199 : vector<128x16xf32>
    %cst_78 = arith.constant 0.000000e+00 : f32
    %201 = vector.broadcast %cst_78 : f32 to vector<128x16xf32>
    %202 = arith.maximumf %200, %201 : vector<128x16xf32>
    %203 = tpu.concatenate %80, %202 in 1 : vector<128x16xf32>, vector<128x16xf32> -> vector<128x32xf32>
    %c1_i32_79 = arith.constant 1 : i32
    %204 = tpu.dynamic_rotate %203 by %c1_i32_79 dim 0 : vector<128x32xf32>, i32 -> vector<128x32xf32>
    %205 = vector.broadcast %20 : vector<128x1xf32> to vector<128x32xf32>
    %206 = arith.mulf %204, %205 : vector<128x32xf32>
    %c127_i32_80 = arith.constant 127 : i32
    %207 = tpu.dynamic_rotate %203 by %c127_i32_80 dim 0 : vector<128x32xf32>, i32 -> vector<128x32xf32>
    %208 = vector.broadcast %40 : vector<128x1xf32> to vector<128x32xf32>
    %209 = arith.mulf %207, %208 : vector<128x32xf32>
    %210 = tpu.concatenate %206, %203, %209 in 1 : vector<128x32xf32>, vector<128x32xf32>, vector<128x32xf32> -> vector<128x96xf32>
    %211 = arith.truncf %210 : vector<128x96xf32> to vector<128x96xbf16>
    %c0_81 = arith.constant 0 : index
    %c0_82 = arith.constant 0 : index
    %212 = vector.load %arg12[%c0_81, %c0_82] : memref<96x16xbf16, #tpu.memory_space<vmem>>, vector<96x16xbf16>
    %cst_83 = arith.constant dense<0.000000e+00> : vector<128x16xf32>
    %213 = tpu.matmul %211, %212, %cst_83 {dimension_numbers = #tpu.dot_dimension_numbers<[1], [0], [0], [1], [0, 0, 1, 1], [], []>} : vector<128x96xbf16>, vector<96x16xbf16>, vector<128x16xf32> -> vector<128x16xf32>
    %c10 = arith.constant 10 : index
    %c0_84 = arith.constant 0 : index
    %214 = vector.load %arg16[%c10, %c0_84] : memref<14x128xf32, #tpu.memory_space<vmem>>, vector<1x16xf32>
    %215 = vector.broadcast %214 : vector<1x16xf32> to vector<128x16xf32>
    %216 = arith.addf %213, %215 : vector<128x16xf32>
    %cst_85 = arith.constant 0.000000e+00 : f32
    %217 = vector.broadcast %cst_85 : f32 to vector<128x16xf32>
    %218 = arith.maximumf %216, %217 : vector<128x16xf32>
    %c1_i32_86 = arith.constant 1 : i32
    %219 = tpu.dynamic_rotate %218 by %c1_i32_86 dim 0 : vector<128x16xf32>, i32 -> vector<128x16xf32>
    %220 = vector.broadcast %20 : vector<128x1xf32> to vector<128x16xf32>
    %221 = arith.mulf %219, %220 : vector<128x16xf32>
    %c127_i32_87 = arith.constant 127 : i32
    %222 = tpu.dynamic_rotate %218 by %c127_i32_87 dim 0 : vector<128x16xf32>, i32 -> vector<128x16xf32>
    %223 = vector.broadcast %40 : vector<128x1xf32> to vector<128x16xf32>
    %224 = arith.mulf %222, %223 : vector<128x16xf32>
    %225 = tpu.concatenate %221, %218, %224 in 1 : vector<128x16xf32>, vector<128x16xf32>, vector<128x16xf32> -> vector<128x48xf32>
    %226 = arith.truncf %225 : vector<128x48xf32> to vector<128x48xbf16>
    %c0_88 = arith.constant 0 : index
    %c0_89 = arith.constant 0 : index
    %227 = vector.load %arg13[%c0_88, %c0_89] : memref<48x8xbf16, #tpu.memory_space<vmem>>, vector<48x8xbf16>
    %cst_90 = arith.constant dense<0.000000e+00> : vector<128x8xf32>
    %228 = tpu.matmul %226, %227, %cst_90 {dimension_numbers = #tpu.dot_dimension_numbers<[1], [0], [0], [1], [0, 0, 1, 1], [], []>} : vector<128x48xbf16>, vector<48x8xbf16>, vector<128x8xf32> -> vector<128x8xf32>
    %c11 = arith.constant 11 : index
    %c0_91 = arith.constant 0 : index
    %229 = vector.load %arg16[%c11, %c0_91] : memref<14x128xf32, #tpu.memory_space<vmem>>, vector<1x8xf32>
    %230 = vector.broadcast %229 : vector<1x8xf32> to vector<128x8xf32>
    %231 = arith.addf %228, %230 : vector<128x8xf32>
    %cst_92 = arith.constant 0.000000e+00 : f32
    %232 = vector.broadcast %cst_92 : f32 to vector<128x8xf32>
    %233 = arith.maximumf %231, %232 : vector<128x8xf32>
    %234 = tpu.concatenate %65, %233 in 1 : vector<128x8xf32>, vector<128x8xf32> -> vector<128x16xf32>
    %c1_i32_93 = arith.constant 1 : i32
    %235 = tpu.dynamic_rotate %234 by %c1_i32_93 dim 0 : vector<128x16xf32>, i32 -> vector<128x16xf32>
    %236 = vector.broadcast %20 : vector<128x1xf32> to vector<128x16xf32>
    %237 = arith.mulf %235, %236 : vector<128x16xf32>
    %c127_i32_94 = arith.constant 127 : i32
    %238 = tpu.dynamic_rotate %234 by %c127_i32_94 dim 0 : vector<128x16xf32>, i32 -> vector<128x16xf32>
    %239 = vector.broadcast %40 : vector<128x1xf32> to vector<128x16xf32>
    %240 = arith.mulf %238, %239 : vector<128x16xf32>
    %241 = tpu.concatenate %237, %234, %240 in 1 : vector<128x16xf32>, vector<128x16xf32>, vector<128x16xf32> -> vector<128x48xf32>
    %242 = arith.truncf %241 : vector<128x48xf32> to vector<128x48xbf16>
    %c0_95 = arith.constant 0 : index
    %c0_96 = arith.constant 0 : index
    %243 = vector.load %arg14[%c0_95, %c0_96] : memref<48x8xbf16, #tpu.memory_space<vmem>>, vector<48x8xbf16>
    %cst_97 = arith.constant dense<0.000000e+00> : vector<128x8xf32>
    %244 = tpu.matmul %242, %243, %cst_97 {dimension_numbers = #tpu.dot_dimension_numbers<[1], [0], [0], [1], [0, 0, 1, 1], [], []>} : vector<128x48xbf16>, vector<48x8xbf16>, vector<128x8xf32> -> vector<128x8xf32>
    %c12 = arith.constant 12 : index
    %c0_98 = arith.constant 0 : index
    %245 = vector.load %arg16[%c12, %c0_98] : memref<14x128xf32, #tpu.memory_space<vmem>>, vector<1x8xf32>
    %246 = vector.broadcast %245 : vector<1x8xf32> to vector<128x8xf32>
    %247 = arith.addf %244, %246 : vector<128x8xf32>
    %cst_99 = arith.constant 0.000000e+00 : f32
    %248 = vector.broadcast %cst_99 : f32 to vector<128x8xf32>
    %249 = arith.maximumf %247, %248 : vector<128x8xf32>
    %c0_100 = arith.constant 0 : index
    %c0_101 = arith.constant 0 : index
    %250 = vector.load %arg15[%c0_100, %c0_101] : memref<8x2xf32, #tpu.memory_space<vmem>>, vector<8x2xf32>
    %cst_102 = arith.constant dense<0.000000e+00> : vector<128x2xf32>
    %251 = tpu.matmul %249, %250, %cst_102 {dimension_numbers = #tpu.dot_dimension_numbers<[1], [0], [0], [1], [0, 0, 1, 1], [], []>} : vector<128x8xf32>, vector<8x2xf32>, vector<128x2xf32> -> vector<128x2xf32>
    %c13 = arith.constant 13 : index
    %c0_103 = arith.constant 0 : index
    %252 = vector.load %arg16[%c13, %c0_103] : memref<14x128xf32, #tpu.memory_space<vmem>>, vector<1x2xf32>
    %253 = vector.broadcast %252 : vector<1x2xf32> to vector<128x2xf32>
    %254 = arith.addf %251, %253 : vector<128x2xf32>
    %c0_104 = arith.constant 0 : index
    %c0_105 = arith.constant 0 : index
    %255 = vector.load %arg17[%c0_104, %c0_105] : memref<128x2xf32, #tpu.memory_space<vmem>>, vector<128x2xf32>
    tpu.vector_store %arg17[%c0_104, %c0_105], %254 {strides = array<i32>} : memref<128x2xf32, #tpu.memory_space<vmem>>, vector<128x2xf32>,
    return
  }
  func.func @transform_0(%arg0: i32) -> (i32, i32) {
    %c0_i32 = arith.constant 0 : i32
    %c0_i32_0 = arith.constant 0 : i32
    return %arg0, %c0_i32 : i32, i32
  }
  func.func @transform_1(%arg0: i32) -> (i32, i32) {
    %c0_i32 = arith.constant 0 : i32
    %c0_i32_0 = arith.constant 0 : i32
    %c0_i32_1 = arith.constant 0 : i32
    return %c0_i32, %c0_i32_0 : i32, i32
  }
  func.func @transform_2(%arg0: i32) -> (i32, i32) {
    %c0_i32 = arith.constant 0 : i32
    %c0_i32_0 = arith.constant 0 : i32
    %c0_i32_1 = arith.constant 0 : i32
    return %c0_i32, %c0_i32_0 : i32, i32
  }
  func.func @transform_3(%arg0: i32) -> (i32, i32) {
    %c0_i32 = arith.constant 0 : i32
    %c0_i32_0 = arith.constant 0 : i32
    %c0_i32_1 = arith.constant 0 : i32
    return %c0_i32, %c0_i32_0 : i32, i32
  }
  func.func @transform_4(%arg0: i32) -> (i32, i32) {
    %c0_i32 = arith.constant 0 : i32
    %c0_i32_0 = arith.constant 0 : i32
    %c0_i32_1 = arith.constant 0 : i32
    return %c0_i32, %c0_i32_0 : i32, i32
  }
  func.func @transform_5(%arg0: i32) -> (i32, i32) {
    %c0_i32 = arith.constant 0 : i32
    %c0_i32_0 = arith.constant 0 : i32
    %c0_i32_1 = arith.constant 0 : i32
    return %c0_i32, %c0_i32_0 : i32, i32
  }
  func.func @transform_6(%arg0: i32) -> (i32, i32) {
    %c0_i32 = arith.constant 0 : i32
    %c0_i32_0 = arith.constant 0 : i32
    %c0_i32_1 = arith.constant 0 : i32
    return %c0_i32, %c0_i32_0 : i32, i32
  }
  func.func @transform_7(%arg0: i32) -> (i32, i32) {
    %c0_i32 = arith.constant 0 : i32
    %c0_i32_0 = arith.constant 0 : i32
    %c0_i32_1 = arith.constant 0 : i32
    return %c0_i32, %c0_i32_0 : i32, i32
  }
  func.func @transform_8(%arg0: i32) -> (i32, i32) {
    %c0_i32 = arith.constant 0 : i32
    %c0_i32_0 = arith.constant 0 : i32
    %c0_i32_1 = arith.constant 0 : i32
    return %c0_i32, %c0_i32_0 : i32, i32
  }
  func.func @transform_9(%arg0: i32) -> (i32, i32) {
    %c0_i32 = arith.constant 0 : i32
    %c0_i32_0 = arith.constant 0 : i32
    %c0_i32_1 = arith.constant 0 : i32
    return %c0_i32, %c0_i32_0 : i32, i32
  }
  func.func @transform_10(%arg0: i32) -> (i32, i32) {
    %c0_i32 = arith.constant 0 : i32
    %c0_i32_0 = arith.constant 0 : i32
    %c0_i32_1 = arith.constant 0 : i32
    return %c0_i32, %c0_i32_0 : i32, i32
  }
  func.func @transform_11(%arg0: i32) -> (i32, i32) {
    %c0_i32 = arith.constant 0 : i32
    %c0_i32_0 = arith.constant 0 : i32
    %c0_i32_1 = arith.constant 0 : i32
    return %c0_i32, %c0_i32_0 : i32, i32
  }
  func.func @transform_12(%arg0: i32) -> (i32, i32) {
    %c0_i32 = arith.constant 0 : i32
    %c0_i32_0 = arith.constant 0 : i32
    %c0_i32_1 = arith.constant 0 : i32
    return %c0_i32, %c0_i32_0 : i32, i32
  }
  func.func @transform_13(%arg0: i32) -> (i32, i32) {
    %c0_i32 = arith.constant 0 : i32
    %c0_i32_0 = arith.constant 0 : i32
    %c0_i32_1 = arith.constant 0 : i32
    return %c0_i32, %c0_i32_0 : i32, i32
  }
  func.func @transform_14(%arg0: i32) -> (i32, i32) {
    %c0_i32 = arith.constant 0 : i32
    %c0_i32_0 = arith.constant 0 : i32
    %c0_i32_1 = arith.constant 0 : i32
    return %c0_i32, %c0_i32_0 : i32, i32
  }
  func.func @transform_15(%arg0: i32) -> (i32, i32) {
    %c0_i32 = arith.constant 0 : i32
    %c0_i32_0 = arith.constant 0 : i32
    %c0_i32_1 = arith.constant 0 : i32
    return %c0_i32, %c0_i32_0 : i32, i32
  }
  func.func @transform_16(%arg0: i32) -> (i32, i32) {
    %c0_i32 = arith.constant 0 : i32
    %c0_i32_0 = arith.constant 0 : i32
    return %arg0, %c0_i32 : i32, i32
  }
}

</mosaic_0001>

<bundles_post_ra>
// kernel: unet_forward.1
= control target key start
LH: loop header
LB: loop body
LE: loop exit
PB: predicated region body
PF: predicated region fallthrough
CT: control target
= control target key end

     0   :  { %s9015_s21 = smov 0   ;;  %s12804_s0 = inlined_call_operand.vmem [shape: f32[256,1], index: 0, kind: input, shape index: {}]   ;;  %s12805_s1 = inlined_call_operand.vmem [shape: f32[3,8], index: 1, kind: input, shape index: {}]   ;;  %s12806_s2 = inlined_call_operand.vmem [shape: bf16[24,16], index: 2, kind: input, shape index: {}]   ;;  %s12807_s3 = inlined_call_operand.vmem [shape: bf16[48,32], index: 3, kind: input, shape index: {}]   ;;  %s12808_s4 = inlined_call_operand.vmem [shape: bf16[96,64], index: 4, kind: input, shape index: {}]   ;;  %s12809_s5 = inlined_call_operand.vmem [shape: bf16[192,128], index: 5, kind: input, shape index: {}]   ;;  %s12810_s6 = inlined_call_operand.vmem [shape: bf16[384,64], index: 6, kind: input, shape index: {}]   ;;  %s12811_s7 = inlined_call_operand.vmem [shape: bf16[384,64], index: 7, kind: input, shape index: {}]   ;;  %s12812_s8 = inlined_call_operand.vmem [shape: bf16[192,32], index: 8, kind: input, shape index: {}]   ;;  %s12813_s9 = inlined_call_operand.vmem [shape: bf16[192,32], index: 9, kind: input, shape index: {}]   ;;  %s12814_s10 = inlined_call_operand.vmem [shape: bf16[96,16], index: 10, kind: input, shape index: {}]   ;;  %s12815_s11 = inlined_call_operand.vmem [shape: bf16[96,16], index: 11, kind: input, shape index: {}]   ;;  %s12816_s12 = inlined_call_operand.vmem [shape: bf16[48,8], index: 12, kind: input, shape index: {}]   ;;  %s12817_s13 = inlined_call_operand.vmem [shape: bf16[48,8], index: 13, kind: input, shape index: {}]   ;;  %s12818_s14 = inlined_call_operand.vmem [shape: f32[8,2], index: 14, kind: input, shape index: {}]   ;;  %s12819_s15 = inlined_call_operand.vmem [shape: f32[14,128], index: 15, kind: input, shape index: {}]   ;;  %s12820_s16 = inlined_call_operand.vmem [shape: f32[256,2], index: 16, kind: output, shape index: {}]  }
   0x1   :  { %12908 = sst [smem:[#allocation66_spill]] %s12804_s0 }
   0x2 LB: > { %s7332_s22 = sadd.s32 4294967295, %s8922_s21   ;;  %p7336_p0 = scmp.ge.s32.totalorder %s8922_s21, 1  ;;  %s8922_s21 = sphi %s9015_s21, %s26_s21  }
   0x3   : > { %p463_p1 = scmp.lt.s32.totalorder %s8922_s21, 3 }
   0x5   : > { %p464_p2 = pnand %p7336_p0, %p463_p1 }
   0x7   : > { %467 = sbr.rel (%p464_p2) target bundleno = 5011 (0x1393), region = 84 }
   0xe   : > { %s7337_s23 = sshll.u32 %s7332_s22, 4  ;;  %v526_v0 = vlaneseq  ;;  %v12821_v1 = vmov 0   ;;  %s12909_s27 = sld [smem:[#allocation66_spill]]  ;;  %v8925_v24 = vmov 0.0  }
   0xf   : > { %8122 = vset.pattern.permute.xlu0 %v12821_v1  ;;  %8121 = vset.pattern.permute.xlu1 %v12821_v1  ;;  %p514_p3 = scmp.lt.s32.totalorder %s7337_s23, 31  ;;  %s12871_s25 = smov 8  }
  0x10   : > { %v9025_v2 = vshrl.u32 %v526_v0, 7  ;;  %s8927_s26 = smov 16   ;;  %s8928_s0 = smov 32  }
  0x11   : > { %s13070_s23 = smov (!%p514_p3, %s7337_s23), 31  ;;  %s8929_s29 = smov 64  }
  0x12   : > { %v531_v3 = vadd.s32 32, %v9025_v2  ;;  %v529_v4 = vadd.s32 16, %v9025_v2  ;;  %s12870_s24 = sshll.u32 %s13070_s23, 3  ;;  %vm864_vm0 = vcmp.lt.s32.totalorder %v9025_v2, 1  ;;  %v547_v18 = vand.u32 15, %v9025_v2 }
  0x13   : > { %v528_v19 = vadd.s32 8, %v9025_v2  ;;  %v530_v23 = vadd.s32 24, %v9025_v2  ;;  %v533_v30 = vadd.s32 48, %v9025_v2  ;;  %v535_v34 = vadd.s32 64, %v9025_v2 }
  0x14   : > { %s9037_s28 = scalar_lea.vmem %s12909_s27, %s12870_s24  ;;  %v575_v5 = vand.u32 15, %v531_v3  ;;  %v561_v6 = vand.u32 15, %v529_v4  ;;  %vm735_vm3 = vcmp.ne.s32.totalorder %v547_v18, 0  ;;  %vm913_vm4 = vcmp.lt.s32.totalorder %v9025_v2, 7 }
  0x15   : > { %v9040_v7 = vld [vmem:[%s9037_s28 + $0x18] sm:$0xff]  ;;  %v9043_v8 = vld [vmem:[%s9037_s28 + $0x8] sm:$0xff]  ;;  %v833_v9 = vld [vmem:[%s9037_s28 + $0x10] sm:$0xff]  ;;  %v554_v29 = vand.u32 15, %v528_v19  ;;  %v568_v33 = vand.u32 15, %v530_v23  ;;  %v9089_v37 = vsel %vm735_vm3, 1.0, %v8925_v24 }
  0x16   : > { %1063 = vperm.xlu0 %8122, %v9040_v7   ;;  %v851_v10 = vrot.slane %v9040_v7, 7  ;;  %1053 = vperm.xlu1 %8121, %v9043_v8   ;;  %v849_v11 = vrot.slane %v9043_v8, 7  ;;  %v9051_v12 = vld [vmem:[%s9037_s28] sm:$0xff]  ;;  %v850_v14 = vrot.slane %v833_v9, 7  ;;  %v9060_v17 = vld [vmem:[%s9037_s28 + $0x78] sm:$0xff]  ;;  %vm739_vm1 = vcmp.ne.s32.totalorder %v575_v5, 0 }
  0x17   : > { %v9055_v13 = vld [vmem:[%s9037_s28 + $0x20] sm:$0xff]  ;;  %v848_v15 = vrot.slane %v9051_v12, 7  ;;  %vm737_vm2 = vcmp.ne.s32.totalorder %v561_v6, 0  ;;  %v863_v22 = vrot.slane %v9060_v17, 7  ;;  %v9071_v25 = vsel %vm739_vm1, 1.0, %v8925_v24  ;;  %v9098_v40 = vld [vmem:[%s9037_s28 + $0x28] sm:$0xff] }
  0x18   : > { %v852_v16 = vrot.slane %v9055_v13, 7  ;;  %v877_v21 = vsel %vm864_vm0, %v850_v14, %v851_v10  ;;  %12910 = vst [vmem:[#allocation2_spill] sm:$0xff] %v9071_v25  ;;  %v9078_v27 = vsel %vm737_vm2, 1.0, %v8925_v24  ;;  %v878_v28 = vsel %vm864_vm0, %v849_v11, %v850_v14  ;;  %v9111_v47 = vld [vmem:[%s9037_s28 + $0x30] sm:$0xff]  ;;  %v9116_v51 = vld [vmem:[%s9037_s28 + $0x38] sm:$0xff]  ;;  %v9119_v52 = vld [vmem:[%s9037_s28 + $0x40] sm:$0xff] }
  0x19   : > { %v879_v20 = vsel %vm864_vm0, %v848_v15, %v849_v11  ;;  %v883_v32 = vmul.f32 %v9078_v27, %v878_v28  ;;  %v898_v35 = vrot.slane %v9043_v8, 1  ;;  %v899_v36 = vrot.slane %v833_v9, 1  ;;  %v9141_v4 = vld [vmem:[%s9037_s28 + $0x48] sm:$0xff]  ;;  %v9144_v5 = vld [vmem:[%s9037_s28 + $0x50] sm:$0xff]  ;;  %v9158_v14 = vld [vmem:[%s9037_s28 + $0x58] sm:$0xff] }
  0x1a   : > { %1058 = vperm.xlu1 %8121, %v833_v9   ;;  %953 = vperm.xlu0 %8122, %v879_v20   ;;  %v876_v26 = vsel %vm864_vm0, %v851_v10, %v852_v16  ;;  %v880_v38 = vsel %vm864_vm0, %v863_v22, %v848_v15  ;;  %v900_v39 = vrot.slane %v9040_v7, 1  ;;  %vm784_vm5 = vcmp.ne.s32.totalorder %v554_v29, 15  ;;  %v9166_v20 = vld [vmem:[%s9037_s28 + $0x60] sm:$0xff]  ;;  %v9176_v29 = vld [vmem:[%s9037_s28 + $0x70] sm:$0xff] }
  0x1b   : > { %v885_v31 = vmul.f32 %v9071_v25, %v876_v26  ;;  %v901_v41 = vrot.slane %v9055_v13, 1  ;;  %v589_v42 = vand.u32 15, %v533_v30  ;;  %v881_v43 = vmul.f32 %v9089_v37, %v880_v38 }
  0x1c   : > { %vm786_vm6 = vcmp.ne.s32.totalorder %v568_v33, 15  ;;  %v532_v44 = vadd.s32 40, %v9025_v2  ;;  %v9104_v45 = vsel %vm784_vm5, 1.0, %v8925_v24  ;;  %v927_v46 = vsel %vm913_vm4, %v898_v35, %v899_v36 }
  0x1d   : > { %v603_v48 = vand.u32 15, %v535_v34  ;;  %v534_v49 = vadd.s32 56, %v9025_v2  ;;  %v902_v50 = vrot.slane %v9098_v40, 1  ;;  %v926_v53 = vsel %vm913_vm4, %v899_v36, %v900_v39 }
  0x1e   : > { %1068 = vperm.xlu1 %8121, %v9055_v13   ;;  %963 = vperm.xlu0 %8122, %v877_v21   ;;  %v9124_v54 = vsel %vm786_vm6, 1.0, %v8925_v24  ;;  %vm9126_vm7 = vcmp.ne.s32.totalorder %v589_v42, 0  ;;  %v931_v56 = vmul.f32 %v9104_v45, %v927_v46  ;;  %v925_v57 = vsel %vm913_vm4, %v900_v39, %v901_v41 }
  0x1f   : > { %v582_v58 = vand.u32 15, %v532_v44  ;;  %v537_v59 = vadd.s32 80, %v9025_v2  ;;  %v853_v60 = vrot.slane %v9098_v40, 7  ;;  %v897_v61 = vrot.slane %v9051_v12, 1 }
  0x20   : > { %vm743_vm8 = vcmp.ne.s32.totalorder %v603_v48, 0  ;;  %v596_v62 = vand.u32 15, %v534_v49  ;;  %v854_v63 = vrot.slane %v9111_v47, 7  ;;  %v855_v0 = vrot.slane %v9116_v51, 7 }
  0x21   : > { %v856_v3 = vrot.slane %v9119_v52, 7  ;;  %v539_v6 = vadd.s32 96, %v9025_v2  ;;  %v924_v7 = vsel %vm913_vm4, %v901_v41, %v902_v50  ;;  %v933_v9 = vmul.f32 %v9124_v54, %v925_v57 }
  0x22   : > { %968 = vperm.xlu1 %8121, %v885_v31   ;;  %958 = vperm.xlu0 %8122, %v883_v32   ;;  %v9155_v10 = vsel %vm9126_vm7, 1.0, %v8925_v24  ;;  %v617_v11 = vand.u32 15, %v537_v59  ;;  %v9161_v15 = vsel %vm743_vm8, 1.0, %v8925_v24  ;;  %vm788_vm9 = vcmp.ne.s32.totalorder %v582_v58, 15 }
  0x23   : > { %12913 = vst [vmem:[#allocation3_spill] sm:$0xff] %v9155_v10  ;;  %12914 = vst [vmem:[#allocation4_spill] sm:$0xff] %v9161_v15  ;;  %v903_v18 = vrot.slane %v9111_v47, 1  ;;  %v904_v19 = vrot.slane %v9116_v51, 1  ;;  %vm9168_vm10 = vcmp.ne.s32.totalorder %v596_v62, 15  ;;  %v905_v23 = vrot.slane %v9119_v52, 1 }
  0x24   : > { %v857_v26 = vrot.slane %v9141_v4, 7  ;;  %v536_v28 = vadd.s32 72, %v9025_v2  ;;  %v875_v30 = vsel %vm864_vm0, %v852_v16, %v853_v60  ;;  %v906_v31 = vrot.slane %v9141_v4, 1 }
  0x25   : > { %v631_v32 = vand.u32 15, %v539_v6  ;;  %v9184_v33 = vsel %vm788_vm9, 1.0, %v8925_v24  ;;  %vm745_vm11 = vcmp.ne.s32.totalorder %v617_v11, 0  ;;  %v858_v34 = vrot.slane %v9144_v5, 7 }
  0x26   : > { %1048 = vperm.xlu1 %8121, %v9051_v12   ;;  %948 = vperm.xlu0 %8122, %v881_v43   ;;  %12917 = vst [vmem:[#allocation5_spill] sm:$0xff] %v9184_v33  ;;  %v538_v36 = vadd.s32 88, %v9025_v2  ;;  %v928_v13 = vsel %vm913_vm4, %v897_v61, %v898_v35  ;;  %v874_v16 = vsel %vm864_vm0, %v853_v60, %v854_v63  ;;  %v9201_v38 = vsel %vm9168_vm10, 1.0, %v8925_v24 }
  0x27   : > { %12918 = vst [vmem:[#allocation6_spill] sm:$0xff] %v9201_v38  ;;  %v859_v39 = vrot.slane %v9158_v14, 7  ;;  %v860_v8 = vrot.slane %v9166_v20, 7  ;;  %v610_v41 = vand.u32 15, %v536_v28  ;;  %v907_v42 = vrot.slane %v9144_v5, 1 }
  0x28   : > { %v541_v35 = vadd.s32 112, %v9025_v2  ;;  %v9208_v43 = vsel %vm745_vm11, 1.0, %v8925_v24  ;;  %vm9210_vm12 = vcmp.ne.s32.totalorder %v631_v32, 0  ;;  %v862_v46 = vrot.slane %v9176_v29, 7 }
  0x29   : > { %12919 = vst [vmem:[#allocation7_spill] sm:$0xff] %v9208_v43  ;;  %v540_v48 = vadd.s32 104, %v9025_v2  ;;  %v624_v49 = vand.u32 15, %v538_v36  ;;  %v887_v55 = vmul.f32 %v9155_v10, %v874_v16  ;;  %v542_v59 = vadd.s32 120, %v9025_v2 }
  0x2a   : > { %1174 = vperm.xlu1 %8121, %v926_v53   ;;  %1169 = vperm.xlu0 %8122, %v931_v56   ;;  %v645_v53 = vand.u32 15, %v541_v35  ;;  %v9218_v56 = vld [vmem:[%s9037_s28 + $0x68] sm:$0xff]  ;;  %v9226_v57 = vsel %vm864_vm0, %v862_v46, %v863_v22  ;;  %vm792_vm13 = vcmp.ne.s32.totalorder %v610_v41, 15  ;;  %v908_v60 = vrot.slane %v9158_v14, 1  ;;  %s13051_s28 = smov 8  }
  0x2b   : > { %v638_v58 = vand.u32 15, %v540_v48  ;;  %v909_v62 = vrot.slane %v9166_v20, 1  ;;  %v9234_v6 = vsel %vm9210_vm12, 1.0, %v8925_v24  ;;  %v652_v22 = vand.u32 15, %v542_v59 }
  0x2c   : > { %vm749_vm14 = vcmp.ne.s32.totalorder %v645_v53, 0  ;;  %vm794_vm1 = vcmp.ne.s32.totalorder %v624_v49, 15  ;;  %v9244_v11 = vsel %vm792_vm13, 1.0, %v8925_v24  ;;  %v873_v21 = vsel %vm864_vm0, %v854_v63, %v855_v0 }
  0x2d   : > { %vm796_vm15 = vcmp.ne.s32.totalorder %v638_v58, 15  ;;  %12922 = vst [vmem:[#allocation8_spill] sm:$0xff] %v9244_v11  ;;  %vm798_vm2 = vcmp.ne.s32.totalorder %v652_v22, 15  ;;  %v872_v28 = vsel %vm864_vm0, %v855_v0, %v856_v3  ;;  %v9263_v36 = vsel %vm794_vm1, 1.0, %v8925_v24 }
  0x2e   : > { %1184 = vperm.xlu1 %8121, %v924_v7   ;;  %1179 = vperm.xlu0 %8122, %v933_v9   ;;  %v9237_v7 = vsel %vm749_vm14, 1.0, %v8925_v24  ;;  %v9240_v9 = vsel %vm796_vm15, 1.0, %v8925_v24  ;;  %v9260_v32 = vsel %vm798_vm2, 1.0, %v8925_v24  ;;  %12923 = vst [vmem:[#allocation9_spill] sm:$0xff] %v9263_v36  ;;  %v889_v63 = vmul.f32 %v9161_v15, %v872_v28 }
  0x2f   : > { %v923_v0 = vsel %vm913_vm4, %v902_v50, %v903_v18  ;;  %v911_v16 = vrot.slane %v9176_v29, 1  ;;  %v912_v41 = vrot.slane %v9060_v17, 1  ;;  %v921_v35 = vsel %vm913_vm4, %v904_v19, %v905_v23 }
  0x30   : > { %v935_v24 = vmul.f32 %v9184_v33, %v923_v0  ;;  %v922_v50 = vsel %vm913_vm4, %v903_v18, %v904_v19  ;;  %v871_v44 = vsel %vm864_vm0, %v856_v3, %v857_v26  ;;  %v868_v3 = vsel %vm864_vm0, %v859_v39, %v860_v8 }
  0x31   : > { %v893_v19 = vmul.f32 %v9234_v6, %v868_v3  ;;  %v914_v49 = vsel %vm913_vm4, %v911_v16, %v912_v41  ;;  %v1028_v12 = vsub.s32 0, %v9025_v2  ;;  %v1244_v22 = vsub.s32 2, %v9025_v2 }
  0x32   : > { %973 = vperm.xlu1 %8121, %v875_v30   ;;  %1164 = vperm.xlu0 %8122, %v928_v13   ;;  %v861_v30 = vrot.slane %v9218_v56, 7  ;;  %v910_v13 = vrot.slane %v9218_v56, 1  ;;  %vm1623_vm3 = vcmask 1043456   ;;  %vm1539_vm5 = vcmask 64512  }
  0x33   : > { %vm1556_vm6 = vcmask 130048   ;;  %vm1598_vm7 = vcmask 195584   ;;  %vm1980_vm8 = vcmask 261120   ;;  %vm2034_vm9 = vcmask 392192  }
  0x34   : > { %v866_v48 = vsel %vm864_vm0, %v861_v30, %v862_v46  ;;  %vm2412_vm10 = vcmask 523264   ;;  %vm2490_vm11 = vcmask 785408  }
  0x36   : > { %1073 = vperm.xlu1 %8121, %v9098_v40   ;;  %978 = vperm.xlu0 %8122, %v887_v55   ;;  %v937_v40 = vmul.f32 %v9201_v38, %v921_v35 }
  0x3a   : > { %983 = vperm.xlu1 %8121, %v873_v21   ;;  %1078 = vperm.xlu0 %8122, %v9111_v47   ;;  %v870_v47 = vsel %vm864_vm0, %v857_v26, %v858_v34 }
  0x3b   : > { %v891_v18 = vmul.f32 %v9208_v43, %v870_v47 }
  0x3e   : > { %1083 = vperm.xlu1 %8121, %v9116_v51   ;;  %988 = vperm.xlu0 %8122, %v889_v63   ;;  %v920_v51 = vsel %vm913_vm4, %v905_v23, %v906_v31  ;;  %v919_v23 = vsel %vm913_vm4, %v906_v31, %v907_v42  ;;  %v916_v31 = vsel %vm913_vm4, %v909_v62, %v910_v13 }
  0x3f   : > { %v939_v26 = vmul.f32 %v9244_v11, %v919_v23 }
  0x42   : > { %1189 = vperm.xlu1 %8121, %v935_v24   ;;  %1088 = vperm.xlu0 %8122, %v9119_v52   ;;  %v869_v52 = vsel %vm864_vm0, %v858_v34, %v859_v39  ;;  %v917_v34 = vsel %vm913_vm4, %v908_v60, %v909_v62 }
  0x43   : > { %v941_v39 = vmul.f32 %v9263_v36, %v917_v34 }
  0x46   : > { %1199 = vperm.xlu1 %8121, %v937_v40   ;;  %1194 = vperm.xlu0 %8122, %v922_v50  }
  0x4a   : > { %993 = vperm.xlu1 %8121, %v871_v44   ;;  %1204 = vperm.xlu0 %8122, %v920_v51  }
  0x4e   : > { %1093 = vperm.xlu1 %8121, %v9141_v4   ;;  %998 = vperm.xlu0 %8122, %v891_v18   ;;  %v918_v4 = vsel %vm913_vm4, %v907_v42, %v908_v60  ;;  %v929_v42 = vsel %vm913_vm4, %v912_v41, %v897_v61  ;;  %v1128_v61 = vsub.s32 1, %v9025_v2 }
  0x4f   : > { %v945_v46 = vmul.f32 %v9260_v32, %v929_v42 }
  0x52   : > { %1003 = vperm.xlu1 %8121, %v869_v52   ;;  %1098 = vperm.xlu0 %8122, %v9144_v5   ;;  %v895_v5 = vmul.f32 %v9237_v7, %v866_v48 }
  0x56   : > { %1103 = vperm.xlu1 %8121, %v9158_v14   ;;  %1008 = vperm.xlu0 %8122, %v893_v19   ;;  %v867_v14 = vsel %vm864_vm0, %v860_v8, %v861_v30  ;;  %v9392_v19 = vld [vmem:[%s12819_s15] ss:$0 sm:$0xff] }
  0x5a   : > { %1209 = vperm.xlu1 %8121, %v939_v26   ;;  %1108 = vperm.xlu0 %8122, %v9166_v20   ;;  %v915_v20 = vsel %vm913_vm4, %v910_v13, %v911_v16 }
  0x5b   : > { %v943_v8 = vmul.f32 %v9240_v9, %v915_v20 }
  0x5e   : > { %1219 = vperm.xlu1 %8121, %v941_v39   ;;  %1214 = vperm.xlu0 %8122, %v918_v4  }
  0x62   : > { %1013 = vperm.xlu1 %8121, %v867_v14   ;;  %1224 = vperm.xlu0 %8122, %v916_v31  }
  0x66   : > { %1113 = vperm.xlu1 %8121, %v9218_v56   ;;  %1018 = vperm.xlu0 %8122, %v895_v5  }
  0x6a   : > { %1023 = vperm.xlu1 %8121, %v9226_v57   ;;  %1118 = vperm.xlu0 %8122, %v9176_v29  }
  0x6e   : > { %1229 = vperm.xlu1 %8121, %v943_v8   ;;  %1123 = vperm.xlu0 %8122, %v9060_v17   ;;  %v847_v17 = vld [vmem:[%s12805_s1] sm:$0x7] }
  0x6f   : > { %v9372_v62 = vrot.slane %v847_v17, %v1028_v12  ;;  %v9375_v21 = vrot.slane %v847_v17, %v1128_v61  ;;  %v9379_v0 = vrot.slane %v847_v17, %v1244_v22  ;;  %v8803_v12 = vld [vmem:[%s12806_s2] sm:$0xff]   ;;  %v8804_v22 = vld [vmem:[%s12806_s2 + $0x8] ss:$0 sps:$4 sm:$0xff]  }
  0x70   : > { %7844 = vmatprep.subr.bf16.mxu0 %v8803_v12 }
  0x71   : > { %7845 = vmatpush3.bf16.msra.mxu0 %v8803_v12 }
  0x72   : > { %1239 = vperm.xlu1 %8121, %v945_v46   ;;  %1234 = vperm.xlu0 %8122, %v914_v49  }
  0x73   : > { %8106 = vmatprep.subr.msk.bf16.mxu0 %vm1623_vm3, %v8804_v22 }
  0x95   : > { %v1064_v53 = vpop.permute.xlu0 %1063  ;;  %v1054_v55 = vpop.permute.xlu1 %1053 }
  0x96   : > { %v1131_v16 = vmul.f32 %v9375_v21, %v1054_v55  ;;  %v1133_v52 = vmul.f32 %v9375_v21, %v1064_v53 }
  0x99   : > { %v1059_v29 = vpop.permute.xlu1 %1058  ;;  %v954_v56 = vpop.permute.xlu0 %953 }
  0x9a   : > { %v1031_v13 = vmul.f32 %v9372_v62, %v954_v56  ;;  %v1132_v41 = vmul.f32 %v9375_v21, %v1059_v29 }
  0x9c   : > { %v1147_v44 = vadd.f32 %v1131_v16, %v1031_v13 }
  0x9d   : > { %v1069_v57 = vpop.permute.xlu1 %1068  ;;  %v964_v58 = vpop.permute.xlu0 %963 }
  0x9e   : > { %v1033_v24 = vmul.f32 %v9372_v62, %v964_v58  ;;  %v1134_v3 = vmul.f32 %v9375_v21, %v1069_v57 }
  0xa0   : > { %v1149_v34 = vadd.f32 %v1133_v52, %v1033_v24 }
  0xa1   : > { %v969_v59 = vpop.permute.xlu1 %968  ;;  %v959_v60 = vpop.permute.xlu0 %958 }
  0xa2   : > { %v1032_v63 = vmul.f32 %v9372_v62, %v959_v60  ;;  %v1034_v35 = vmul.f32 %v9372_v62, %v969_v59 }
  0xa4   : > { %v1148_v51 = vadd.f32 %v1132_v41, %v1032_v63  ;;  %v1150_v39 = vadd.f32 %v1134_v3, %v1034_v35 }
  0xa5   : > { %v1049_v28 = vpop.permute.xlu1 %1048  ;;  %v949_v30 = vpop.permute.xlu0 %948 }
  0xa6   : > { %v1130_v8 = vmul.f32 %v9375_v21, %v1049_v28  ;;  %v1030_v42 = vmul.f32 %v9372_v62, %v949_v30 }
  0xa8   : > { %v1146_v61 = vadd.f32 %v1130_v8, %v1030_v42 }
  0xa9   : > { %v1175_v40 = vpop.permute.xlu1 %1174  ;;  %v1170_v50 = vpop.permute.xlu0 %1169 }
  0xaa   : > { %v1248_v47 = vmul.f32 %v9379_v0, %v1175_v40  ;;  %v1247_v18 = vmul.f32 %v9379_v0, %v1170_v50  ;;  %v1625_v50 = vsel %vm1623_vm3, %v8804_v22, 0 }
  0xab   : > { %7847 = vmatpush3.bf16.msra.mxu0 %v1625_v50 }
  0xac   : > { %v1264_v23 = vadd.f32 %v1248_v47, %v1148_v51  ;;  %v1263_v26 = vadd.f32 %v1247_v18, %v1147_v44 }
  0xad   : > { %v1185_v4 = vpop.permute.xlu1 %1184  ;;  %v1180_v14 = vpop.permute.xlu0 %1179 }
  0xae   : > { %v1285_v31 = vadd.f32 %v9392_v19, %v1264_v23  ;;  %v1284_v48 = vadd.f32 %v9392_v19, %v1263_v26  ;;  %v1250_v5 = vmul.f32 %v9379_v0, %v1185_v4  ;;  %v1249_v20 = vmul.f32 %v9379_v0, %v1180_v14 }
  0xb0   : > { %v1266_v46 = vadd.f32 %v1250_v5, %v1150_v39  ;;  %v1265_v49 = vadd.f32 %v1249_v20, %v1149_v34  ;;  %v9400_v53 = vmax.f32 %v1285_v31, 0.0  ;;  %v9402_v55 = vmax.f32 %v1284_v48, 0.0 }
  0xb1   : > { %v974_v29 = vpop.permute.xlu1 %973  ;;  %v1165_v56 = vpop.permute.xlu0 %1164 }
  0xb2   : > { %12924 = vst [vmem:[#allocation10_spill] sm:$0xff] %v9400_v53  ;;  %12925 = vst [vmem:[#allocation11_spill] sm:$0xff] %v9402_v55  ;;  %v1287_v57 = vadd.f32 %v9392_v19, %v1266_v46  ;;  %v1286_v58 = vadd.f32 %v9392_v19, %v1265_v49  ;;  %v1246_v17 = vmul.f32 %v9379_v0, %v1165_v56  ;;  %v1365_v63 = vrot.slane %v9400_v53, 1 }
  0xb3   : > { %v1364_v16 = vrot.slane %v9402_v55, 1  ;;  %v1035_v8 = vmul.f32 %v9372_v62, %v974_v29 }
  0xb4   : > { %v9410_v59 = vmax.f32 %v1287_v57, 0.0  ;;  %v9412_v60 = vmax.f32 %v1286_v58, 0.0  ;;  %v1262_v28 = vadd.f32 %v1246_v17, %v1146_v61 }
  0xb5   : > { %v1074_v30 = vpop.permute.xlu1 %1073  ;;  %v979_v13 = vpop.permute.xlu0 %978  ;;  %v1392_v52 = vsel %vm913_vm4, %v1364_v16, %v1365_v63 }
  0xb6   : > { %12926 = vst [vmem:[#allocation12_spill] sm:$0xff] %v9410_v59  ;;  %12927 = vst [vmem:[#allocation13_spill] sm:$0xff] %v9412_v60  ;;  %v1283_v41 = vadd.f32 %v9392_v19, %v1262_v28  ;;  %v8128_v24 = vpack.i.bf16 %v9412_v60, %v9400_v53  ;;  %v1366_v35 = vrot.slane %v9412_v60, 1  ;;  %v1367_v40 = vrot.slane %v9410_v59, 1 }
  0xb7   : > { %v1396_v4 = vmul.f32 %v9104_v45, %v1392_v52  ;;  %v1135_v5 = vmul.f32 %v9375_v21, %v1074_v30  ;;  %v1036_v12 = vmul.f32 %v9372_v62, %v979_v13 }
  0xb8   : > { %v9424_v44 = vmax.f32 %v1283_v41, 0.0  ;;  %8129 = vrot.lane.b32.xlu1 %v8128_v24, %s12871_s25  ;;  %v1390_v18 = vsel %vm913_vm4, %v1366_v35, %v1367_v40  ;;  %v1391_v26 = vsel %vm913_vm4, %v1365_v63, %v1366_v35 }
  0xb9   : > { %v984_v51 = vpop.permute.xlu1 %983  ;;  %v1079_v47 = vpop.permute.xlu0 %1078  ;;  %v1398_v3 = vmul.f32 %v9124_v54, %v1390_v18  ;;  %v1151_v56 = vadd.f32 %v1135_v5, %v1035_v8 }
  0xba   : > { %12928 = vst [vmem:[#allocation14_spill] sm:$0xff] %v9424_v44  ;;  %v8123_v23 = vpack.i.bf16 %v9402_v55, %v9424_v44  ;;  %v1363_v34 = vrot.slane %v9424_v44, 1  ;;  %v1136_v42 = vmul.f32 %v9375_v21, %v1079_v47  ;;  %v1037_v61 = vmul.f32 %v9372_v62, %v984_v51 }
  0xbb   : > { %v8143_v39 = vpack.i.bf16 %v1398_v3, %v1391_v26 }
  0xbc   : > { %8124 = vrot.lane.b32.xlu0 %v8123_v23, %s12871_s25  ;;  %v1393_v48 = vsel %vm913_vm4, %v1363_v34, %v1364_v16  ;;  %v1152_v22 = vadd.f32 %v1136_v42, %v1036_v12 }
  0xbd   : > { %v1084_v14 = vpop.permute.xlu1 %1083  ;;  %v989_v31 = vpop.permute.xlu0 %988  ;;  %8144 = vrot.lane.b32.xlu1 %v8143_v39, %s8927_s26  ;;  %v8133_v20 = vpack.i.bf16 %v1396_v4, %v1393_v48 }
  0xbe   : > { %v1137_v57 = vmul.f32 %v9375_v21, %v1084_v14  ;;  %v1038_v13 = vmul.f32 %v9372_v62, %v989_v31 }
  0xc0   : > { %8134 = vrot.lane.b32.xlu0 %v8133_v20, %s8927_s26  ;;  %v1153_v29 = vadd.f32 %v1137_v57, %v1037_v61 }
  0xc1   : > { %v1190_v46 = vpop.permute.xlu1 %1189  ;;  %v1089_v49 = vpop.permute.xlu0 %1088 }
  0xc2   : > { %v1251_v58 = vmul.f32 %v9379_v0, %v1190_v46  ;;  %v1138_v24 = vmul.f32 %v9375_v21, %v1089_v49 }
  0xc4   : > { %v1267_v17 = vadd.f32 %v1251_v58, %v1151_v56  ;;  %v1154_v23 = vadd.f32 %v1138_v24, %v1038_v13 }
  0xc5   : > { %v1200_v28 = vpop.permute.xlu1 %1199  ;;  %v1195_v30 = vpop.permute.xlu0 %1194 }
  0xc6   : > { %v1288_v63 = vadd.f32 %v9392_v19, %v1267_v17  ;;  %v1253_v16 = vmul.f32 %v9379_v0, %v1200_v28  ;;  %v1252_v41 = vmul.f32 %v9379_v0, %v1195_v30 }
  0xc8   : > { %v9458_v35 = vmax.f32 %v1288_v63, 0.0  ;;  %v1269_v50 = vadd.f32 %v1253_v16, %v1153_v29  ;;  %v1268_v47 = vadd.f32 %v1252_v41, %v1152_v22 }
  0xc9   : > { %v994_v51 = vpop.permute.xlu1 %993  ;;  %v1205_v18 = vpop.permute.xlu0 %1204 }
  0xca   : > { %12929 = vst [vmem:[#allocation15_spill] sm:$0xff] %v9458_v35  ;;  %v1290_v52 = vadd.f32 %v9392_v19, %v1269_v50  ;;  %v1289_v3 = vadd.f32 %v9392_v19, %v1268_v47  ;;  %v1254_v26 = vmul.f32 %v9379_v0, %v1205_v18  ;;  %v8138_v39 = vpack.i.bf16 %v9458_v35, %v9410_v59 }
  0xcb   : > { %v1368_v42 = vrot.slane %v9458_v35, 1 }
  0xcc   : > { %v9466_v4 = vmax.f32 %v1290_v52, 0.0  ;;  %v9468_v14 = vmax.f32 %v1289_v3, 0.0  ;;  %v1270_v48 = vadd.f32 %v1254_v26, %v1154_v23  ;;  %8139 = vrot.lane.b32.xlu0 %v8138_v39, %s12871_s25 }
  0xcd   : > { %v1094_v31 = vpop.permute.xlu1 %1093  ;;  %v999_v5 = vpop.permute.xlu0 %998  ;;  %v1389_v61 = vsel %vm913_vm4, %v1367_v40, %v1368_v42  ;;  %v1039_v40 = vmul.f32 %v9372_v62, %v994_v51 }
  0xce   : > { %12930 = vst [vmem:[#allocation16_spill] sm:$0xff] %v9466_v4  ;;  %12931 = vst [vmem:[#allocation17_spill] sm:$0xff] %v9468_v14  ;;  %v1291_v20 = vadd.f32 %v9392_v19, %v1270_v48  ;;  %v8148_v8 = vpack.i.bf16 %v9466_v4, %v9468_v14  ;;  %v1369_v46 = vrot.slane %v9468_v14, 1  ;;  %v1370_v17 = vrot.slane %v9466_v4, 1 }
  0xcf   : > { %v1139_v16 = vmul.f32 %v9375_v21, %v1094_v31  ;;  %v1040_v26 = vmul.f32 %v9372_v62, %v999_v5 }
  0xd0   : > { %v9476_v49 = vmax.f32 %v1291_v20, 0.0  ;;  %8149 = vrot.lane.b32.xlu1 %v8148_v8, %s12871_s25  ;;  %v1388_v58 = vsel %vm913_vm4, %v1368_v42, %v1369_v46  ;;  %v1387_v24 = vsel %vm913_vm4, %v1369_v46, %v1370_v17 }
  0xd1   : > { %v1004_v56 = vpop.permute.xlu1 %1003  ;;  %v1099_v57 = vpop.permute.xlu0 %1098  ;;  %v1400_v12 = vmul.f32 %v9184_v33, %v1388_v58  ;;  %v1155_v52 = vadd.f32 %v1139_v16, %v1039_v40 }
  0xd2   : > { %12932 = vst [vmem:[#allocation18_spill] sm:$0xff] %v9476_v49  ;;  %v1371_v22 = vrot.slane %v9476_v49, 1  ;;  %v1140_v47 = vmul.f32 %v9375_v21, %v1099_v57  ;;  %v1041_v39 = vmul.f32 %v9372_v62, %v1004_v56 }
  0xd3   : > { %v8153_v28 = vpack.i.bf16 %v1400_v12, %v1389_v61 }
  0xd4   : > { %v1386_v63 = vsel %vm913_vm4, %v1370_v17, %v1371_v22  ;;  %v1156_v31 = vadd.f32 %v1140_v47, %v1040_v26 }
  0xd5   : > { %v1104_v30 = vpop.permute.xlu1 %1103  ;;  %v1009_v29 = vpop.permute.xlu0 %1008  ;;  %8154 = vrot.lane.b32.xlu0 %v8153_v28, %s8927_s26  ;;  %v1402_v41 = vmul.f32 %v9201_v38, %v1386_v63 }
  0xd6   : > { %v1141_v3 = vmul.f32 %v9375_v21, %v1104_v30  ;;  %v1042_v5 = vmul.f32 %v9372_v62, %v1009_v29 }
  0xd7   : > { %v8163_v50 = vpack.i.bf16 %v1402_v41, %v1387_v24 }
  0xd8   : > { %v1157_v8 = vadd.f32 %v1141_v3, %v1041_v39 }
  0xd9   : > { %v1210_v13 = vpop.permute.xlu1 %1209  ;;  %v1109_v18 = vpop.permute.xlu0 %1108  ;;  %8164 = vrot.lane.b32.xlu1 %v8163_v50, %s8927_s26 }
  0xda   : > { %v1255_v23 = vmul.f32 %v9379_v0, %v1210_v13  ;;  %v1142_v58 = vmul.f32 %v9375_v21, %v1109_v18 }
  0xdc   : > { %v1271_v48 = vadd.f32 %v1255_v23, %v1155_v52  ;;  %v1158_v16 = vadd.f32 %v1142_v58, %v1042_v5 }
  0xdd   : > { %v1220_v20 = vpop.permute.xlu1 %1219  ;;  %v1215_v51 = vpop.permute.xlu0 %1214 }
  0xde   : > { %v1292_v42 = vadd.f32 %v9392_v19, %v1271_v48  ;;  %v1257_v46 = vmul.f32 %v9379_v0, %v1220_v20  ;;  %v1256_v57 = vmul.f32 %v9379_v0, %v1215_v51 }
  0xe0   : > { %v9506_v12 = vmax.f32 %v1292_v42, 0.0  ;;  %v1273_v61 = vadd.f32 %v1257_v46, %v1157_v8  ;;  %v1272_v17 = vadd.f32 %v1256_v57, %v1156_v31 }
  0xe1   : > { %v1014_v56 = vpop.permute.xlu1 %1013  ;;  %v1225_v28 = vpop.permute.xlu0 %1224 }
  0xe2   : > { %12933 = vst [vmem:[#allocation19_spill] sm:$0xff] %v9506_v12  ;;  %v1294_v30 = vadd.f32 %v9392_v19, %v1273_v61  ;;  %v1293_v63 = vadd.f32 %v9392_v19, %v1272_v17  ;;  %v1258_v41 = vmul.f32 %v9379_v0, %v1225_v28  ;;  %v8158_v24 = vpack.i.bf16 %v9506_v12, %v9476_v49 }
  0xe3   : > { %v1372_v3 = vrot.slane %v9506_v12, 1  ;;  %v1043_v57 = vmul.f32 %v9372_v62, %v1014_v56 }
  0xe4   : > { %v9514_v40 = vmax.f32 %v1294_v30, 0.0  ;;  %v9516_v50 = vmax.f32 %v1293_v63, 0.0  ;;  %v1274_v47 = vadd.f32 %v1258_v41, %v1158_v16  ;;  %8159 = vrot.lane.b32.xlu0 %v8158_v24, %s12871_s25 }
  0xe5   : > { %v1114_v29 = vpop.permute.xlu1 %1113  ;;  %v1019_v13 = vpop.permute.xlu0 %1018  ;;  %v1385_v8 = vsel %vm913_vm4, %v1371_v22, %v1372_v3 }
  0xe6   : > { %12934 = vst [vmem:[#allocation20_spill] sm:$0xff] %v9514_v40  ;;  %12935 = vst [vmem:[#allocation21_spill] sm:$0xff] %v9516_v50  ;;  %v1295_v18 = vadd.f32 %v9392_v19, %v1274_v47  ;;  %v8168_v52 = vpack.i.bf16 %v9514_v40, %v9516_v50  ;;  %v1373_v23 = vrot.slane %v9516_v50, 1  ;;  %v1143_v20 = vmul.f32 %v9375_v21, %v1114_v29 }
  0xe7   : > { %v1374_v42 = vrot.slane %v9514_v40, 1  ;;  %v1044_v41 = vmul.f32 %v9372_v62, %v1019_v13 }
  0xe8   : > { %v9524_v26 = vmax.f32 %v1295_v18, 0.0  ;;  %8169 = vrot.lane.b32.xlu1 %v8168_v52, %s12871_s25  ;;  %v1384_v31 = vsel %vm913_vm4, %v1372_v3, %v1373_v23  ;;  %v1159_v30 = vadd.f32 %v1143_v20, %v1043_v57 }
  0xe9   : > { %v1024_v39 = vpop.permute.xlu1 %1023  ;;  %v1119_v48 = vpop.permute.xlu0 %1118  ;;  %v1404_v51 = vmul.f32 %v9244_v11, %v1384_v31  ;;  %v1383_v56 = vsel %vm913_vm4, %v1373_v23, %v1374_v42 }
  0xea   : > { %12936 = vst [vmem:[#allocation22_spill] sm:$0xff] %v9524_v26  ;;  %v1375_v46 = vrot.slane %v9524_v26, 1  ;;  %v1144_v61 = vmul.f32 %v9375_v21, %v1119_v48  ;;  %v1045_v24 = vmul.f32 %v9372_v62, %v1024_v39 }
  0xeb   : > { %v8173_v58 = vpack.i.bf16 %v1404_v51, %v1385_v8 }
  0xec   : > { %v1382_v28 = vsel %vm913_vm4, %v1374_v42, %v1375_v46  ;;  %v1160_v18 = vadd.f32 %v1144_v61, %v1044_v41 }
  0xed   : > { %v1230_v17 = vpop.permute.xlu1 %1229  ;;  %v1124_v5 = vpop.permute.xlu0 %1123  ;;  %8174 = vrot.lane.b32.xlu0 %v8173_v58, %s8927_s26  ;;  %v1406_v16 = vmul.f32 %v9263_v36, %v1382_v28 }
  0xee   : > { %v1259_v63 = vmul.f32 %v9379_v0, %v1230_v17  ;;  %v1145_v22 = vmul.f32 %v9375_v21, %v1124_v5 }
  0xef   : > { %v8178_v29 = vpack.i.bf16 %v1406_v16, %v1383_v56  ;;  %v1317_v56 = vrot.slane %v9400_v53, 7 }
  0xf0   : > { %v1275_v47 = vadd.f32 %v1259_v63, %v1159_v30  ;;  %v1161_v31 = vadd.f32 %v1145_v22, %v1045_v24  ;;  %v1316_v24 = vrot.slane %v9402_v55, 7 }
  0xf1   : > { %v1240_v52 = vpop.permute.xlu1 %1239  ;;  %v1235_v3 = vpop.permute.xlu0 %1234  ;;  %8179 = vrot.lane.b32.xlu1 %v8178_v29, %s8927_s26  ;;  %v1318_v29 = vrot.slane %v9412_v60, 7 }
  0xf2   : > { %v1296_v48 = vadd.f32 %v9392_v19, %v1275_v47  ;;  %v1261_v20 = vmul.f32 %v9379_v0, %v1240_v52  ;;  %v1260_v21 = vmul.f32 %v9379_v0, %v1235_v3 }
  0xf4   : > { %v9551_v13 = vmax.f32 %v1296_v48, 0.0  ;;  %v1277_v51 = vadd.f32 %v1261_v20, %v1161_v31  ;;  %v1276_v23 = vadd.f32 %v1260_v21, %v1160_v18  ;;  %v1344_v18 = vsel %vm864_vm0, %v1316_v24, %v1317_v56 }
  0xf6   : > { %12937 = vst [vmem:[#allocation23_spill] sm:$0xff] %v9551_v13  ;;  %v1298_v62 = vadd.f32 %v9392_v19, %v1277_v51  ;;  %v1297_v39 = vadd.f32 %v9392_v19, %v1276_v23  ;;  %v8183_v8 = vpack.i.bf16 %v9551_v13, %v9524_v26  ;;  %v1376_v58 = vrot.slane %v9551_v13, 1 }
  0xf8   : > { %v9557_v42 = vmax.f32 %v1298_v62, 0.0  ;;  %v9559_v57 = vmax.f32 %v1297_v39, 0.0  ;;  %8184 = vrot.lane.b32.xlu0 %v8183_v8, %s12871_s25  ;;  %v1381_v30 = vsel %vm913_vm4, %v1375_v46, %v1376_v58  ;;  %v1315_v46 = vrot.slane %v9424_v44, 7 }
  0xf9   : > { %v1349_v39 = vmul.f32 %v9078_v27, %v1344_v18  ;;  %v1343_v8 = vsel %vm864_vm0, %v1317_v56, %v1318_v29 }
  0xfa   : > { %12938 = vst [vmem:[#allocation24_spill] sm:$0xff] %v9557_v42  ;;  %12939 = vst [vmem:[#allocation25_spill] sm:$0xff] %v9559_v57  ;;  %v8188_v0 = vpack.i.bf16 %v9557_v42, %v9559_v57  ;;  %v1377_v61 = vrot.slane %v9559_v57, 1  ;;  %v1378_v17 = vrot.slane %v9557_v42, 1 }
  0xfc   : > { %8189 = vrot.lane.b32.xlu1 %v8188_v0, %s12871_s25  ;;  %v1380_v19 = vsel %vm913_vm4, %v1376_v58, %v1377_v61  ;;  %v1394_v28 = vsel %vm913_vm4, %v1378_v17, %v1363_v34  ;;  %v1379_v16 = vsel %vm913_vm4, %v1377_v61, %v1378_v17  ;;  %v1330_v34 = vrot.slane %v9557_v42, 7 }
  0xfd   : > { %v1408_v5 = vmul.f32 %v9240_v9, %v1380_v19  ;;  %v1410_v63 = vmul.f32 %v9260_v32, %v1394_v28  ;;  %v1345_v58 = vsel %vm864_vm0, %v1315_v46, %v1316_v24 }
  0xfe   : > { %v1346_v20 = vsel %vm864_vm0, %v1330_v34, %v1315_v46  ;;  %v1319_v46 = vrot.slane %v9410_v59, 7 }
  0xff   : > { %v8193_v22 = vpack.i.bf16 %v1408_v5, %v1381_v30  ;;  %v8198_v41 = vpack.i.bf16 %v1410_v63, %v1379_v16  ;;  %v1347_v61 = vmul.f32 %v9089_v37, %v1346_v20 }
 0x101   : > { %8194 = vrot.lane.b32.xlu0 %v8193_v22, %s8927_s26  ;;  %8199 = vrot.lane.b32.xlu1 %v8198_v41, %s8927_s26 }
 0x12a   : > { %v8130_v47 = vpop.permute.xlu1 %8129 }
 0x12b   : > { %v8132_v3 = vunpack.i.h.bf16 %v8130_v47  ;;  %v8131_v48 = vunpack.i.l.bf16 %v8130_v47 }
 0x12d   : > { %v1542_v17 = vsel %vm1539_vm5, %v1349_v39, %v8131_v48  ;;  %v1543_v19 = vsel %vm1539_vm5, %v1343_v8, %v8132_v3  ;;  %v1321_v3 = vrot.slane %v9468_v14, 7  ;;  %v1342_v48 = vsel %vm864_vm0, %v1318_v29, %v1319_v46 }
 0x12e   : > { %v8125_v52 = vpop.permute.xlu0 %8124  ;;  %v1322_v39 = vrot.slane %v9466_v4, 7 }
 0x12f   : > { %v8145_v31 = vpop.permute.xlu1 %8144  ;;  %v8127_v21 = vunpack.i.h.bf16 %v8125_v52  ;;  %v8126_v51 = vunpack.i.l.bf16 %v8125_v52  ;;  %v1320_v52 = vrot.slane %v9458_v35, 7 }
 0x130   : > { %v8147_v23 = vunpack.i.h.bf16 %v8145_v31  ;;  %v8146_v62 = vunpack.i.l.bf16 %v8145_v31 }
 0x131   : > { %v1540_v22 = vsel %vm1539_vm5, %v1347_v61, %v8126_v51  ;;  %v1541_v16 = vsel %vm1539_vm5, %v1345_v58, %v8127_v21  ;;  %v1341_v51 = vsel %vm864_vm0, %v1319_v46, %v1320_v52  ;;  %v1340_v8 = vsel %vm864_vm0, %v1320_v52, %v1321_v3 }
 0x132   : > { %v8135_v0 = vpop.permute.xlu0 %8134  ;;  %v1559_v30 = vsel %vm1556_vm6, %v1542_v17, %v8146_v62  ;;  %v1560_v63 = vsel %vm1556_vm6, %v1543_v19, %v8147_v23  ;;  %v1351_v23 = vmul.f32 %v9071_v25, %v1342_v48  ;;  %v1323_v48 = vrot.slane %v9476_v49, 7 }
 0x133   : > { %v8137_v5 = vunpack.i.h.bf16 %v8135_v0  ;;  %v8136_v28 = vunpack.i.l.bf16 %v8135_v0  ;;  %v1574_v47 = vpack.c.bf16 %v1560_v63, %v1559_v30  ;;  %v1353_v30 = vmul.f32 %v9155_v10, %v1340_v8 }
 0x135   : > { %v1557_v41 = vsel %vm1556_vm6, %v1540_v22, %v8136_v28  ;;  %v1558_v56 = vsel %vm1556_vm6, %v1541_v16, %v8137_v5  ;;  %v1339_v16 = vsel %vm864_vm0, %v1321_v3, %v1322_v39  ;;  %v1324_v3 = vrot.slane %v9506_v12, 7 }
 0x136   : > { %v1573_v24 = vpack.c.bf16 %v1558_v56, %v1557_v41 }
 0x137   : > { %v1337_v8 = vsel %vm864_vm0, %v1323_v48, %v1324_v3 }
 0x138   : > { %7848 = vmatprep.mubr.msk.bf16.mxu0 %vm1598_vm7, %v1573_v24 }
 0x139   : > { %7849 = vmatmul.mubr.msk.bf16.vlgmr.msra.gmra.mrb[0].mxu0 %vm1598_vm7, %v1574_v47 }
 0x13e   : > { %v8140_v18 = vpop.permute.xlu0 %8139 }
 0x13f   : > { %v8142_v31 = vunpack.i.h.bf16 %v8140_v18  ;;  %v8141_v20 = vunpack.i.l.bf16 %v8140_v18 }
 0x141   : > { %v1545_v61 = vsel %vm1539_vm5, %v1341_v51, %v8142_v31  ;;  %v1544_v29 = vsel %vm1539_vm5, %v1351_v23, %v8141_v20  ;;  %v1325_v20 = vrot.slane %v9516_v50, 7 }
 0x142   : > { %v8150_v21 = vpop.permute.xlu1 %8149 }
 0x143   : > { %v8152_v17 = vunpack.i.h.bf16 %v8150_v21  ;;  %v8151_v19 = vunpack.i.l.bf16 %v8150_v21  ;;  %v1338_v21 = vsel %vm864_vm0, %v1322_v39, %v1323_v48 }
 0x145   : > { %v1546_v24 = vsel %vm1539_vm5, %v1353_v30, %v8151_v19  ;;  %v1547_v47 = vsel %vm1539_vm5, %v1339_v16, %v8152_v17 }
 0x147   : > { %v8155_v62 = vpop.permute.xlu0 %8154 }
 0x148   : > { %v8157_v0 = vunpack.i.h.bf16 %v8155_v62  ;;  %v8156_v58 = vunpack.i.l.bf16 %v8155_v62 }
 0x14a   : > { %v1561_v5 = vsel %vm1556_vm6, %v1544_v29, %v8156_v58  ;;  %v1562_v28 = vsel %vm1556_vm6, %v1545_v61, %v8157_v0  ;;  %v1355_v0 = vmul.f32 %v9161_v15, %v1338_v21  ;;  %v1326_v61 = vrot.slane %v9514_v40, 7 }
 0x14b   : > { %v8165_v63 = vpop.permute.xlu1 %8164  ;;  %v1575_v22 = vpack.c.bf16 %v1562_v28, %v1561_v5  ;;  %v1336_v29 = vsel %vm864_vm0, %v1324_v3, %v1325_v20  ;;  %v1327_v21 = vrot.slane %v9524_v26, 7 }
 0x14c   : > { %v8167_v41 = vunpack.i.h.bf16 %v8165_v63  ;;  %v8166_v56 = vunpack.i.l.bf16 %v8165_v63  ;;  %v1357_v16 = vmul.f32 %v9208_v43, %v1336_v29 }
 0x14d   : > { %7852 = vmatprep.mubr.msk.bf16.mxu0 %vm1598_vm7, %v1575_v22 }
 0x14e   : > { %v1564_v46 = vsel %vm1556_vm6, %v1547_v47, %v8167_v41  ;;  %v1563_v18 = vsel %vm1556_vm6, %v1546_v24, %v8166_v56  ;;  %v1335_v24 = vsel %vm864_vm0, %v1325_v20, %v1326_v61 }
 0x14f   : > { %v1576_v52 = vpack.c.bf16 %v1564_v46, %v1563_v18 }
 0x151   : > { %7853 = vmatmul.mubr.msk.bf16.gmra.mrb[4].mxu0 %vm1598_vm7, %v1576_v52 }
 0x156   : > { %v8160_v31 = vpop.permute.xlu0 %8159 }
 0x157   : > { %v8162_v51 = vunpack.i.h.bf16 %v8160_v31  ;;  %v8161_v23 = vunpack.i.l.bf16 %v8160_v31 }
 0x159   : > { %v1549_v5 = vsel %vm1539_vm5, %v1337_v8, %v8162_v51  ;;  %v1548_v39 = vsel %vm1539_vm5, %v1355_v0, %v8161_v23  ;;  %v1329_v51 = vrot.slane %v9559_v57, 7  ;;  %v1334_v8 = vsel %vm864_vm0, %v1326_v61, %v1327_v21 }
 0x15a   : > { %v8170_v62 = vpop.permute.xlu1 %8169 }
 0x15b   : > { %v8172_v28 = vunpack.i.h.bf16 %v8170_v62  ;;  %v8171_v30 = vunpack.i.l.bf16 %v8170_v62  ;;  %v1328_v62 = vrot.slane %v9551_v13, 7 }
 0x15d   : > { %v1550_v18 = vsel %vm1539_vm5, %v1357_v16, %v8171_v30  ;;  %v1551_v52 = vsel %vm1539_vm5, %v1335_v24, %v8172_v28  ;;  %v1332_v29 = vsel %vm864_vm0, %v1328_v62, %v1329_v51  ;;  %v1331_v30 = vsel %vm864_vm0, %v1329_v51, %v1330_v34  ;;  %v9685_v51 = vld [vmem:[%s12819_s15 + $0x1] ss:$0 sm:$0xff] }
 0x15e   : > { %v1361_v61 = vmul.f32 %v9237_v7, %v1332_v29 }
 0x15f   : > { %v8175_v58 = vpop.permute.xlu0 %8174 }
 0x160   : > { %v8177_v17 = vunpack.i.h.bf16 %v8175_v58  ;;  %v8176_v19 = vunpack.i.l.bf16 %v8175_v58 }
 0x162   : > { %v1565_v63 = vsel %vm1556_vm6, %v1548_v39, %v8176_v19  ;;  %v1566_v22 = vsel %vm1556_vm6, %v1549_v5, %v8177_v17  ;;  %v1333_v5 = vsel %vm864_vm0, %v1327_v21, %v1328_v62  ;;  %v1359_v39 = vmul.f32 %v9234_v6, %v1334_v8 }
 0x163   : > { %v8180_v41 = vpop.permute.xlu1 %8179  ;;  %v1577_v56 = vpack.c.bf16 %v1566_v22, %v1565_v63 }
 0x164   : > { %v8182_v47 = vunpack.i.h.bf16 %v8180_v41  ;;  %v8181_v46 = vunpack.i.l.bf16 %v8180_v41 }
 0x165   : > { %7856 = vmatprep.mubr.msk.bf16.mxu0 %vm1598_vm7, %v1577_v56 }
 0x166   : > { %v1568_v48 = vsel %vm1556_vm6, %v1551_v52, %v8182_v47  ;;  %v1567_v31 = vsel %vm1556_vm6, %v1550_v18, %v8181_v46 }
 0x167   : > { %v1578_v3 = vpack.c.bf16 %v1568_v48, %v1567_v31 }
 0x169   : > { %7857 = vmatmul.mubr.msk.bf16.gmra.mrb[8].mxu0 %vm1598_vm7, %v1578_v3 }
 0x16a   : > { %v8185_v20 = vpop.permute.xlu0 %8184 }
 0x16b   : > { %v8187_v0 = vunpack.i.h.bf16 %v8185_v20  ;;  %v8186_v58 = vunpack.i.l.bf16 %v8185_v20 }
 0x16d   : > { %v1553_v41 = vsel %vm1539_vm5, %v1333_v5, %v8187_v0  ;;  %v1552_v56 = vsel %vm1539_vm5, %v1359_v39, %v8186_v58 }
 0x16e   : > { %v8190_v23 = vpop.permute.xlu1 %8189 }
 0x16f   : > { %v8192_v17 = vunpack.i.h.bf16 %v8190_v23  ;;  %v8191_v19 = vunpack.i.l.bf16 %v8190_v23 }
 0x171   : > { %v1554_v46 = vsel %vm1539_vm5, %v1361_v61, %v8191_v19  ;;  %v1555_v18 = vsel %vm1539_vm5, %v1331_v30, %v8192_v17  ;;  %v8805_v61 = vld [vmem:[%s12807_s3] sm:$0xff]  }
 0x172   : > { %7864 = vmatprep.subr.bf16.mxu1 %v8805_v61 }
 0x173   : > { %v8195_v28 = vpop.permute.xlu0 %8194  ;;  %v8200_v63 = vpop.permute.xlu1 %8199  ;;  %7865 = vmatpush3.bf16.msra.mxu1 %v8805_v61 }
 0x174   : > { %v8197_v22 = vunpack.i.h.bf16 %v8195_v28  ;;  %v8196_v16 = vunpack.i.l.bf16 %v8195_v28  ;;  %v8202_v24 = vunpack.i.h.bf16 %v8200_v63  ;;  %v8201_v47 = vunpack.i.l.bf16 %v8200_v63 }
 0x176   : > { %v1569_v52 = vsel %vm1556_vm6, %v1552_v56, %v8196_v16  ;;  %v1570_v48 = vsel %vm1556_vm6, %v1553_v41, %v8197_v22  ;;  %v1571_v34 = vsel %vm1556_vm6, %v1554_v46, %v8201_v47  ;;  %v1572_v31 = vsel %vm1556_vm6, %v1555_v18, %v8202_v24  ;;  %v8806_v18 = vld [vmem:[%s12807_s3 + $0x8] sm:$0xff]  }
 0x177   : > { %v1579_v3 = vpack.c.bf16 %v1570_v48, %v1569_v52  ;;  %v1580_v21 = vpack.c.bf16 %v1572_v31, %v1571_v34  ;;  %7866 = vmatprep.subr.bf16.mxu1 %v8806_v18  ;;  %v8807_v31 = vld [vmem:[%s12807_s3 + $0x10] sm:$0xff]  }
 0x178   : > { %7867 = vmatpush3.bf16.msra.mxu1 %v8806_v18 }
 0x179   : > { %7860 = vmatprep.mubr.msk.bf16.mxu0 %vm1598_vm7, %v1579_v3  ;;  %7868 = vmatprep.subr.bf16.mxu1 %v8807_v31 }
 0x17a   : > { %7861 = vmatmul.mubr.msk.bf16.gmra.mrb[12].mxu0 %vm1598_vm7, %v1580_v21 }
 0x17c   : > { %7869 = vmatpush3.bf16.msra.mxu1 %v8807_v31 }
 0x17d   : > { %2945 = vmatprep.subr.bf16.mxu1 %v12821_v1 }
 0x20c   : > { %v7850_v20 = vpop.f32.mrb[0].mxu0 }
 0x20d   : > { %v1670_v23 = vadd.f32 %v7850_v20, %v9685_v51  ;;  %v1661_v62 = vpop.f32.mrb[1].mxu0 }
 0x20e   : > { %v1662_v8 = vadd.f32 %v9685_v51, %v1661_v62  ;;  %v7851_v0 = vpop.f32.mrb[2].mxu0 }
 0x20f   : > { %v1673_v58 = vadd.f32 %v7851_v0, %v9685_v51  ;;  %v1664_v29 = vpop.f32.mrb[3].mxu0  ;;  %v9690_v17 = vmax.f32 %v1670_v23, 0.0 }
 0x210   : > { %v1665_v19 = vadd.f32 %v9685_v51, %v1664_v29  ;;  %v9695_v39 = vmax.f32 %v1662_v8, 0.0 }
 0x211   : > { %12940 = vst [vmem:[#allocation26_spill] sm:$0xff] %v9690_v17  ;;  %v9693_v5 = vmax.f32 %v1673_v58, 0.0  ;;  %v1790_v63 = vrot.slane %v9690_v17, 1 }
 0x212   : > { %12942 = vst [vmem:[#allocation28_spill] sm:$0xff] %v9695_v39  ;;  %v9697_v28 = vmax.f32 %v1665_v19, 0.0  ;;  %v1788_v41 = vrot.slane %v9695_v39, 1 }
 0x213   : > { %12941 = vst [vmem:[#allocation27_spill] sm:$0xff] %v9693_v5  ;;  %v8203_v30 = vpack.i.bf16 %v9693_v5, %v9690_v17  ;;  %v1791_v0 = vrot.slane %v9693_v5, 1  ;;  %v1743_v57 = vrot.slane %v9693_v5, 7 }
 0x214   : > { %12943 = vst [vmem:[#allocation29_spill] sm:$0xff] %v9697_v28  ;;  %v1789_v22 = vrot.slane %v9697_v28, 1  ;;  %v8208_v16 = vpack.i.bf16 %v9697_v28, %v9695_v39 }
 0x215   : > { %8204 = vrot.lane.b32.xlu1 %v8203_v30, %s8927_s26 }
 0x216   : > { %8209 = vrot.lane.b32.xlu0 %v8208_v16, %s8927_s26  ;;  %v1817_v56 = vsel %vm913_vm4, %v1789_v22, %v1790_v63  ;;  %v1818_v47 = vsel %vm913_vm4, %v1788_v41, %v1789_v22 }
 0x217   : > { %v1821_v24 = vmul.f32 %v9104_v45, %v1817_v56 }
 0x219   : > { %v8213_v46 = vpack.i.bf16 %v1821_v24, %v1818_v47  ;;  %v1816_v24 = vsel %vm913_vm4, %v1790_v63, %v1791_v0 }
 0x21b   : > { %8214 = vrot.lane.b32.xlu0 %v8213_v46, %s8928_s0 }
 0x224   : > { %v7854_v52 = vpop.f32.mrb[4].mxu0 }
 0x225   : > { %v1686_v48 = vadd.f32 %v7854_v52, %v9685_v51  ;;  %v1677_v34 = vpop.f32.mrb[5].mxu0 }
 0x226   : > { %v1678_v3 = vadd.f32 %v9685_v51, %v1677_v34  ;;  %v7855_v21 = vpop.f32.mrb[6].mxu0 }
 0x227   : > { %v1680_v20 = vpop.f32.mrb[7].mxu0  ;;  %v9727_v23 = vmax.f32 %v1686_v48, 0.0  ;;  %v1689_v19 = vadd.f32 %v7855_v21, %v9685_v51 }
 0x228   : > { %v9729_v62 = vmax.f32 %v1678_v3, 0.0  ;;  %v1681_v8 = vadd.f32 %v9685_v51, %v1680_v20 }
 0x229   : > { %12944 = vst [vmem:[#allocation30_spill] sm:$0xff] %v9727_v23  ;;  %v1794_v30 = vrot.slane %v9727_v23, 1  ;;  %v9750_v46 = vmax.f32 %v1689_v19, 0.0 }
 0x22a   : > { %12945 = vst [vmem:[#allocation31_spill] sm:$0xff] %v9729_v62  ;;  %v1792_v58 = vrot.slane %v9729_v62, 1  ;;  %v9735_v29 = vmax.f32 %v1681_v8, 0.0 }
 0x22b   : > { %12947 = vst [vmem:[#allocation33_spill] sm:$0xff] %v9750_v46  ;;  %v8228_v31 = vpack.i.bf16 %v9750_v46, %v9727_v23 }
 0x22c   : > { %12946 = vst [vmem:[#allocation32_spill] sm:$0xff] %v9735_v29  ;;  %v1793_v61 = vrot.slane %v9735_v29, 1  ;;  %v8218_v22 = vpack.i.bf16 %v9735_v29, %v9729_v62  ;;  %v1815_v16 = vsel %vm913_vm4, %v1791_v0, %v1792_v58 }
 0x22d   : > { %v1823_v56 = vmul.f32 %v9124_v54, %v1815_v16 }
 0x22e   : > { %8219 = vrot.lane.b32.xlu0 %v8218_v22, %s8927_s26  ;;  %v1813_v47 = vsel %vm913_vm4, %v1793_v61, %v1794_v30  ;;  %v1814_v48 = vsel %vm913_vm4, %v1792_v58, %v1793_v61  ;;  %v1795_v22 = vrot.slane %v9750_v46, 1 }
 0x22f   : > { %v8223_v18 = vpack.i.bf16 %v1823_v56, %v1816_v24  ;;  %v1825_v52 = vmul.f32 %v9184_v33, %v1813_v47 }
 0x231   : > { %8224 = vrot.lane.b32.xlu1 %v8223_v18, %s8928_s0  ;;  %v8233_v34 = vpack.i.bf16 %v1825_v52, %v1814_v48 }
 0x233   : > { %8234 = vrot.lane.b32.xlu0 %v8233_v34, %s8928_s0 }
 0x235   : > { %8229 = vrot.lane.b32.xlu1 %v8228_v31, %s8927_s26  ;;  %v1812_v31 = vsel %vm913_vm4, %v1794_v30, %v1795_v22 }
 0x23c   : > { %v7858_v63 = vpop.f32.mrb[8].mxu0 }
 0x23d   : > { %v1702_v3 = vadd.f32 %v7858_v63, %v9685_v51  ;;  %v1693_v21 = vpop.f32.mrb[9].mxu0 }
 0x23e   : > { %v1694_v20 = vadd.f32 %v9685_v51, %v1693_v21  ;;  %v7859_v8 = vpop.f32.mrb[10].mxu0 }
 0x23f   : > { %v1696_v0 = vpop.f32.mrb[11].mxu0  ;;  %v9762_v19 = vmax.f32 %v1702_v3, 0.0  ;;  %v1705_v24 = vadd.f32 %v7859_v8, %v9685_v51 }
 0x240   : > { %v9764_v58 = vmax.f32 %v1694_v20, 0.0  ;;  %v1697_v61 = vadd.f32 %v9685_v51, %v1696_v0 }
 0x241   : > { %12948 = vst [vmem:[#allocation34_spill] sm:$0xff] %v9762_v19  ;;  %v1798_v47 = vrot.slane %v9762_v19, 1  ;;  %v9784_v3 = vmax.f32 %v1705_v24, 0.0 }
 0x242   : > { %12949 = vst [vmem:[#allocation35_spill] sm:$0xff] %v9764_v58  ;;  %v1796_v16 = vrot.slane %v9764_v58, 1  ;;  %v9769_v56 = vmax.f32 %v1697_v61, 0.0 }
 0x243   : > { %12951 = vst [vmem:[#allocation37_spill] sm:$0xff] %v9784_v3  ;;  %v8248_v61 = vpack.i.bf16 %v9784_v3, %v9762_v19 }
 0x244   : > { %12950 = vst [vmem:[#allocation36_spill] sm:$0xff] %v9769_v56  ;;  %v1797_v18 = vrot.slane %v9769_v56, 1  ;;  %v8243_v52 = vpack.i.bf16 %v9769_v56, %v9764_v58  ;;  %v1811_v48 = vsel %vm913_vm4, %v1795_v22, %v1796_v16 }
 0x245   : > { %v1827_v34 = vmul.f32 %v9201_v38, %v1811_v48 }
 0x246   : > { %8244 = vrot.lane.b32.xlu0 %v8243_v52, %s8927_s26  ;;  %v1809_v63 = vsel %vm913_vm4, %v1797_v18, %v1798_v47  ;;  %v1810_v8 = vsel %vm913_vm4, %v1796_v16, %v1797_v18 }
 0x247   : > { %v8238_v21 = vpack.i.bf16 %v1827_v34, %v1812_v31  ;;  %v1829_v20 = vmul.f32 %v9244_v11, %v1809_v63 }
 0x249   : > { %8239 = vrot.lane.b32.xlu1 %v8238_v21, %s8928_s0  ;;  %v8253_v0 = vpack.i.bf16 %v1829_v20, %v1810_v8  ;;  %v1799_v20 = vrot.slane %v9784_v3, 1 }
 0x24b   : > { %8254 = vrot.lane.b32.xlu0 %v8253_v0, %s8928_s0 }
 0x24d   : > { %v7862_v30 = vpop.f32.mrb[12].mxu0  ;;  %8249 = vrot.lane.b32.xlu1 %v8248_v61, %s8927_s26 }
 0x24e   : > { %v1718_v22 = vadd.f32 %v7862_v30, %v9685_v51  ;;  %v1709_v24 = vpop.f32.mrb[13].mxu0 }
 0x24f   : > { %v1710_v52 = vadd.f32 %v9685_v51, %v1709_v24  ;;  %v7863_v48 = vpop.f32.mrb[14].mxu0 }
 0x250   : > { %v9796_v34 = vmax.f32 %v1718_v22, 0.0  ;;  %v1721_v16 = vadd.f32 %v7863_v48, %v9685_v51  ;;  %v1712_v18 = vpop.f32.mrb[15].mxu0  ;;  %v1808_v48 = vsel %vm913_vm4, %v1798_v47, %v1799_v20 }
 0x251   : > { %v9799_v31 = vmax.f32 %v1710_v52, 0.0  ;;  %v1713_v63 = vadd.f32 %v9685_v51, %v1712_v18 }
 0x252   : > { %12952 = vst [vmem:[#allocation38_spill] sm:$0xff] %v9796_v34  ;;  %v9802_v21 = vmax.f32 %v1721_v16, 0.0  ;;  %v1802_v61 = vrot.slane %v9796_v34, 1 }
 0x253   : > { %12953 = vst [vmem:[#allocation39_spill] sm:$0xff] %v9799_v31  ;;  %v1800_v8 = vrot.slane %v9799_v31, 1  ;;  %v9806_v0 = vmax.f32 %v1713_v63, 0.0 }
 0x254   : > { %12954 = vst [vmem:[#allocation40_spill] sm:$0xff] %v9802_v21  ;;  %v1803_v30 = vrot.slane %v9802_v21, 1  ;;  %v8268_v47 = vpack.i.bf16 %v9802_v21, %v9796_v34 }
 0x255   : > { %12955 = vst [vmem:[#allocation41_spill] sm:$0xff] %v9806_v0  ;;  %v1801_v22 = vrot.slane %v9806_v0, 1  ;;  %v8263_v24 = vpack.i.bf16 %v9806_v0, %v9799_v31  ;;  %v1807_v51 = vsel %vm913_vm4, %v1799_v20, %v1800_v8 }
 0x256   : > { %v1831_v52 = vmul.f32 %v9263_v36, %v1807_v51  ;;  %v1819_v42 = vsel %vm913_vm4, %v1803_v30, %v1788_v41  ;;  %v12824_v41 = vrot.slane %v9802_v21, 7  ;;  %v1740_v51 = vrot.slane %v9695_v39, 7 }
 0x257   : > { %8264 = vrot.lane.b32.xlu0 %v8263_v24, %s8927_s26  ;;  %v1805_v16 = vsel %vm913_vm4, %v1801_v22, %v1802_v61  ;;  %v1806_v1 = vsel %vm913_vm4, %v1800_v8, %v1801_v22  ;;  %v1835_v20 = vmul.f32 %v9260_v32, %v1819_v42  ;;  %v1804_v8 = vsel %vm913_vm4, %v1802_v61, %v1803_v30 }
 0x258   : > { %v8258_v18 = vpack.i.bf16 %v1831_v52, %v1808_v48  ;;  %v1833_v63 = vmul.f32 %v9240_v9, %v1805_v16  ;;  %v1741_v52 = vrot.slane %v9697_v28, 7  ;;  %v1771_v42 = vsel %vm864_vm0, %v12824_v41, %v1740_v51 }
 0x259   : > { %v8278_v22 = vpack.i.bf16 %v1835_v20, %v1804_v8  ;;  %v1772_v61 = vmul.f32 %v9089_v37, %v1771_v42  ;;  %v1744_v42 = vrot.slane %v9729_v62, 7 }
 0x25a   : > { %8259 = vrot.lane.b32.xlu1 %v8258_v18, %s8928_s0  ;;  %v8273_v24 = vpack.i.bf16 %v1833_v63, %v1806_v1 }
 0x25c   : > { %8274 = vrot.lane.b32.xlu0 %v8273_v24, %s8928_s0  ;;  %v1770_v24 = vsel %vm864_vm0, %v1740_v51, %v1741_v52 }
 0x25e   : > { %8269 = vrot.lane.b32.xlu1 %v8268_v47, %s8927_s26 }
 0x262   : > { %8279 = vrot.lane.b32.xlu1 %v8278_v22, %s8928_s0 }
 0x288   : > { %v8210_v1 = vpop.permute.xlu0 %8209 }
 0x289   : > { %v8212_v48 = vunpack.i.h.bf16 %v8210_v1  ;;  %v8211_v16 = vunpack.i.l.bf16 %v8210_v1  ;;  %v1742_v1 = vrot.slane %v9690_v17, 7 }
 0x28b   : > { %v1964_v47 = vsel %vm1556_vm6, %v1772_v61, %v8211_v16  ;;  %v1965_v20 = vsel %vm1556_vm6, %v1770_v24, %v8212_v48  ;;  %v1769_v51 = vsel %vm864_vm0, %v1741_v52, %v1742_v1  ;;  %v1745_v48 = vrot.slane %v9735_v29, 7 }
 0x28d   : > { %v8215_v18 = vpop.permute.xlu0 %8214 }
 0x28e   : > { %v8217_v30 = vunpack.i.h.bf16 %v8215_v18  ;;  %v8216_v63 = vunpack.i.l.bf16 %v8215_v18  ;;  %v8205_v18 = vpop.permute.xlu1 %8204 }
 0x28f   : > { %v8207_v61 = vunpack.i.h.bf16 %v8205_v18 }
 0x290   : > { %v1981_v8 = vsel %vm1980_vm8, %v1964_v47, %v8216_v63  ;;  %v1982_v22 = vsel %vm1980_vm8, %v1965_v20, %v8217_v30  ;;  %v8206_v63 = vunpack.i.l.bf16 %v8205_v18  ;;  %v1767_v30 = vsel %vm864_vm0, %v1743_v57, %v1744_v42 }
 0x291   : > { %v1997_v41 = vpack.c.bf16 %v1982_v22, %v1981_v8  ;;  %v1768_v8 = vsel %vm864_vm0, %v1742_v1, %v1743_v57  ;;  %v1766_v18 = vsel %vm864_vm0, %v1744_v42, %v1745_v48  ;;  %v1776_v40 = vmul.f32 %v9071_v25, %v1767_v30 }
 0x292   : > { %v1967_v26 = vsel %vm1556_vm6, %v1768_v8, %v8207_v61 }
 0x293   : > { %7870 = vmatprep.mubr.msk.bf16.mxu1 %vm2034_vm9, %v1997_v41  ;;  %v1774_v41 = vmul.f32 %v9078_v27, %v1769_v51 }
 0x295   : > { %v1966_v52 = vsel %vm1556_vm6, %v1774_v41, %v8206_v63 }
 0x2a0   : > { %v8220_v16 = vpop.permute.xlu0 %8219 }
 0x2a1   : > { %v8222_v24 = vunpack.i.h.bf16 %v8220_v16  ;;  %v8221_v47 = vunpack.i.l.bf16 %v8220_v16 }
 0x2a3   : > { %v8225_v20 = vpop.permute.xlu1 %8224  ;;  %v1969_v57 = vsel %vm1556_vm6, %v1766_v18, %v8222_v24  ;;  %v1968_v1 = vsel %vm1556_vm6, %v1776_v40, %v8221_v47 }
 0x2a4   : > { %v8227_v22 = vunpack.i.h.bf16 %v8225_v20  ;;  %v8226_v13 = vunpack.i.l.bf16 %v8225_v20 }
 0x2a5   : > { %v8235_v50 = vpop.permute.xlu0 %8234 }
 0x2a6   : > { %v1984_v51 = vsel %vm1980_vm8, %v1967_v26, %v8227_v22  ;;  %v1983_v16 = vsel %vm1980_vm8, %v1966_v52, %v8226_v13  ;;  %v8237_v12 = vunpack.i.h.bf16 %v8235_v50  ;;  %v8236_v49 = vunpack.i.l.bf16 %v8235_v50 }
 0x2a7   : > { %v1998_v20 = vpack.c.bf16 %v1984_v51, %v1983_v16  ;;  %v1746_v26 = vrot.slane %v9727_v23, 7  ;;  %v1748_v13 = vrot.slane %v9764_v58, 7  ;;  %v8230_v30 = vpop.permute.xlu1 %8229  ;;  %v1747_v50 = vrot.slane %v9750_v46, 7 }
 0x2a8   : > { %v1985_v63 = vsel %vm1980_vm8, %v1968_v1, %v8236_v49  ;;  %v1986_v61 = vsel %vm1980_vm8, %v1969_v57, %v8237_v12  ;;  %v1749_v49 = vrot.slane %v9769_v56, 7  ;;  %v8232_v24 = vunpack.i.h.bf16 %v8230_v30 }
 0x2a9   : > { %7871 = vmatmul.mubr.msk.bf16.vlgmr.msra.gmra.mrb[0].mxu1 %vm2034_vm9, %v1998_v20  ;;  %v1999_v42 = vpack.c.bf16 %v1986_v61, %v1985_v63  ;;  %v1765_v40 = vsel %vm864_vm0, %v1745_v48, %v1746_v26  ;;  %v8231_v12 = vunpack.i.l.bf16 %v8230_v30  ;;  %v1763_v47 = vsel %vm864_vm0, %v1747_v50, %v1748_v13 }
 0x2aa   : > { %v1778_v8 = vmul.f32 %v9155_v10, %v1765_v40  ;;  %v1764_v51 = vsel %vm864_vm0, %v1746_v26, %v1747_v50  ;;  %v1762_v20 = vsel %vm864_vm0, %v1748_v13, %v1749_v49  ;;  %v1780_v63 = vmul.f32 %v9161_v15, %v1763_v47 }
 0x2ab   : > { %7874 = vmatprep.mubr.msk.bf16.mxu1 %vm2034_vm9, %v1999_v42  ;;  %v1971_v48 = vsel %vm1556_vm6, %v1764_v51, %v8232_v24  ;;  %v1750_v47 = vrot.slane %v9762_v19, 7 }
 0x2ac   : > { %v1970_v1 = vsel %vm1556_vm6, %v1778_v8, %v8231_v12  ;;  %v1752_v8 = vrot.slane %v9799_v31, 7 }
 0x2b8   : > { %v8245_v41 = vpop.permute.xlu0 %8244 }
 0x2b9   : > { %v8247_v22 = vunpack.i.h.bf16 %v8245_v41  ;;  %v8246_v52 = vunpack.i.l.bf16 %v8245_v41 }
 0x2bb   : > { %v8240_v18 = vpop.permute.xlu1 %8239  ;;  %v1973_v26 = vsel %vm1556_vm6, %v1762_v20, %v8247_v22  ;;  %v1972_v50 = vsel %vm1556_vm6, %v1780_v63, %v8246_v52  ;;  %v1761_v22 = vsel %vm864_vm0, %v1749_v49, %v1750_v47 }
 0x2bc   : > { %v8242_v16 = vunpack.i.h.bf16 %v8240_v18  ;;  %v8241_v57 = vunpack.i.l.bf16 %v8240_v18  ;;  %v1782_v63 = vmul.f32 %v9208_v43, %v1761_v22 }
 0x2bd   : > { %v8255_v61 = vpop.permute.xlu0 %8254 }
 0x2be   : > { %v1987_v42 = vsel %vm1980_vm8, %v1970_v1, %v8241_v57  ;;  %v1988_v30 = vsel %vm1980_vm8, %v1971_v48, %v8242_v16  ;;  %v8257_v40 = vunpack.i.h.bf16 %v8255_v61  ;;  %v8256_v41 = vunpack.i.l.bf16 %v8255_v61 }
 0x2bf   : > { %v2000_v18 = vpack.c.bf16 %v1988_v30, %v1987_v42  ;;  %v8250_v51 = vpop.permute.xlu1 %8249  ;;  %v1751_v16 = vrot.slane %v9784_v3, 7  ;;  %v1753_v57 = vrot.slane %v9806_v0, 7 }
 0x2c0   : > { %v1989_v24 = vsel %vm1980_vm8, %v1972_v50, %v8256_v41  ;;  %v1990_v12 = vsel %vm1980_vm8, %v1973_v26, %v8257_v40  ;;  %v8252_v48 = vunpack.i.h.bf16 %v8250_v51  ;;  %v8251_v1 = vunpack.i.l.bf16 %v8250_v51 }
 0x2c1   : > { %7875 = vmatmul.mubr.msk.bf16.gmra.mrb[4].mxu1 %vm2034_vm9, %v2000_v18  ;;  %v2001_v13 = vpack.c.bf16 %v1990_v12, %v1989_v24  ;;  %v1759_v20 = vsel %vm864_vm0, %v1751_v16, %v1752_v8  ;;  %v1754_v40 = vrot.slane %v9796_v34, 7  ;;  %v1760_v41 = vsel %vm864_vm0, %v1750_v47, %v1751_v16 }
 0x2c2   : > { %v1975_v50 = vsel %vm1556_vm6, %v1760_v41, %v8252_v48  ;;  %v1974_v18 = vsel %vm1556_vm6, %v1782_v63, %v8251_v1  ;;  %v1758_v24 = vsel %vm864_vm0, %v1752_v8, %v1753_v57  ;;  %v1784_v12 = vmul.f32 %v9234_v6, %v1759_v20 }
 0x2c3   : > { %7878 = vmatprep.mubr.msk.bf16.mxu1 %vm2034_vm9, %v2001_v13  ;;  %v1757_v8 = vsel %vm864_vm0, %v1753_v57, %v1754_v40 }
 0x2c9   : > { %v8265_v52 = vpop.permute.xlu0 %8264 }
 0x2ca   : > { %v8267_v61 = vunpack.i.h.bf16 %v8265_v52  ;;  %v8266_v42 = vunpack.i.l.bf16 %v8265_v52 }
 0x2cc   : > { %v8260_v30 = vpop.permute.xlu1 %8259  ;;  %v1977_v47 = vsel %vm1556_vm6, %v1758_v24, %v8267_v61  ;;  %v1976_v16 = vsel %vm1556_vm6, %v1784_v12, %v8266_v42  ;;  %v12956_v61 = vrot.slane %v9802_v21, 7 }
 0x2cd   : > { %v8262_v26 = vunpack.i.h.bf16 %v8260_v30  ;;  %v8261_v49 = vunpack.i.l.bf16 %v8260_v30 }
 0x2ce   : > { %v8275_v13 = vpop.permute.xlu0 %8274 }
 0x2cf   : > { %v1991_v51 = vsel %vm1980_vm8, %v1974_v18, %v8261_v49  ;;  %v1992_v22 = vsel %vm1980_vm8, %v1975_v50, %v8262_v26  ;;  %v8277_v52 = vunpack.i.h.bf16 %v8275_v13  ;;  %v8276_v4 = vunpack.i.l.bf16 %v8275_v13 }
 0x2d0   : > { %v8270_v30 = vpop.permute.xlu1 %8269  ;;  %v2002_v48 = vpack.c.bf16 %v1992_v22, %v1991_v51  ;;  %v1786_v49 = vmul.f32 %v9237_v7, %v1757_v8  ;;  %v9940_v22 = vld [vmem:[%s12819_s15 + $0x2] ss:$0 sm:$0xff] }
 0x2d1   : > { %v1993_v1 = vsel %vm1980_vm8, %v1976_v16, %v8276_v4  ;;  %v1994_v63 = vsel %vm1980_vm8, %v1977_v47, %v8277_v52  ;;  %v8272_v20 = vunpack.i.h.bf16 %v8270_v30  ;;  %v8271_v41 = vunpack.i.l.bf16 %v8270_v30 }
 0x2d2   : > { %7879 = vmatmul.mubr.msk.bf16.gmra.mrb[8].mxu1 %vm2034_vm9, %v2002_v48  ;;  %v2003_v26 = vpack.c.bf16 %v1994_v63, %v1993_v1  ;;  %v1756_v4 = vsel %vm864_vm0, %v1754_v40, %v12956_v61  ;;  %v8808_v40 = vld [vmem:[%s12808_s4] sm:$0xff]  }
 0x2d3   : > { %v1979_v24 = vsel %vm1556_vm6, %v1756_v4, %v8272_v20  ;;  %v1978_v57 = vsel %vm1556_vm6, %v1786_v49, %v8271_v41  ;;  %7886 = vmatprep.subr.bf16.mxu0 %v8808_v40  ;;  %v8809_v41 = vld [vmem:[%s12808_s4 + $0x8] sm:$0xff]   ;;  %v8810_v4 = vld [vmem:[%s12808_s4 + $0x10] sm:$0xff]  }
 0x2d4   : > { %v8280_v50 = vpop.permute.xlu1 %8279  ;;  %7882 = vmatprep.mubr.msk.bf16.mxu1 %vm2034_vm9, %v2003_v26  ;;  %7887 = vmatpush3.bf16.msra.mxu0 %v8808_v40 }
 0x2d5   : > { %v8282_v42 = vunpack.i.h.bf16 %v8280_v50  ;;  %v8281_v18 = vunpack.i.l.bf16 %v8280_v50  ;;  %7888 = vmatprep.subr.bf16.mxu0 %v8809_v41 }
 0x2d7   : > { %v1996_v12 = vsel %vm1980_vm8, %v1979_v24, %v8282_v42  ;;  %v1995_v13 = vsel %vm1980_vm8, %v1978_v57, %v8281_v18  ;;  %v8811_v57 = vld [vmem:[%s12808_s4 + $0x18] sm:$0xff]  }
 0x2d8   : > { %v2004_v51 = vpack.c.bf16 %v1996_v12, %v1995_v13  ;;  %7889 = vmatpush3.bf16.msra.mxu0 %v8809_v41 }
 0x2d9   : > { %7890 = vmatprep.subr.bf16.mxu0 %v8810_v4 }
 0x2da   : > { %7883 = vmatmul.mubr.msk.bf16.gmra.mrb[12].mxu1 %vm2034_vm9, %v2004_v51 }
 0x2dc   : > { %7891 = vmatpush3.bf16.msra.mxu0 %v8810_v4 }
 0x2dd   : > { %7892 = vmatprep.subr.bf16.mxu0 %v8811_v57 }
 0x2e0   : > { %7893 = vmatpush3.bf16.msra.mxu0 %v8811_v57 }
 0x37c   : > { %v7872_v52 = vpop.f32.mrb[0].mxu1 }
 0x37d   : > { %v2102_v47 = vadd.f32 %v7872_v52, %v9940_v22  ;;  %v2093_v16 = vpop.f32.mrb[1].mxu1  ;;  %v8812_v52 = vld [vmem:[%s12808_s4 + $0x20] sm:$0xff]  }
 0x37e   : > { %v2094_v30 = vadd.f32 %v9940_v22, %v2093_v16  ;;  %v7873_v48 = vpop.f32.mrb[2].mxu1  ;;  %7894 = vmatprep.subr.bf16.mxu0 %v8812_v52 }
 0x37f   : > { %v2105_v1 = vadd.f32 %v7873_v48, %v9940_v22  ;;  %v2096_v63 = vpop.f32.mrb[3].mxu1  ;;  %v9948_v8 = vmax.f32 %v2102_v47, 0.0  ;;  %7895 = vmatpush3.bf16.msra.mxu0 %v8812_v52 }
 0x380   : > { %v2097_v20 = vadd.f32 %v9940_v22, %v2096_v63  ;;  %v9956_v49 = vmax.f32 %v2094_v30, 0.0 }
 0x381   : > { %12957 = vst [vmem:[#allocation42_spill] sm:$0xff] %v9948_v8  ;;  %v9954_v26 = vmax.f32 %v2105_v1, 0.0  ;;  %v2222_v42 = vrot.slane %v9948_v8, 1  ;;  %v8813_v1 = vld [vmem:[%s12808_s4 + $0x28] sm:$0xff]  }
 0x382   : > { %12959 = vst [vmem:[#allocation44_spill] sm:$0xff] %v9956_v49  ;;  %v9958_v50 = vmax.f32 %v2097_v20, 0.0  ;;  %v12833_v12 = vrot.slane %v9956_v49, 1  ;;  %7896 = vmatprep.subr.bf16.mxu0 %v8813_v1 }
 0x383   : > { %12958 = vst [vmem:[#allocation43_spill] sm:$0xff] %v9954_v26  ;;  %v8283_v61 = vpack.i.bf16 %v9954_v26, %v9948_v8  ;;  %7897 = vmatpush3.bf16.msra.mxu0 %v8813_v1 }
 0x384   : > { %12960 = vst [vmem:[#allocation45_spill] sm:$0xff] %v9958_v50  ;;  %v2221_v18 = vrot.slane %v9958_v50, 1  ;;  %v8288_v24 = vpack.i.bf16 %v9958_v50, %v9956_v49 }
 0x385   : > { %8284 = vrot.lane.b32.xlu1 %v8283_v61, %s8928_s0 }
 0x386   : > { %8289 = vrot.lane.b32.xlu0 %v8288_v24, %s8928_s0  ;;  %v2249_v13 = vsel %vm913_vm4, %v2221_v18, %v2222_v42  ;;  %v2250_v40 = vsel %vm913_vm4, %v12833_v12, %v2221_v18  ;;  %v2223_v24 = vrot.slane %v9954_v26, 1 }
 0x387   : > { %v2253_v51 = vmul.f32 %v9104_v45, %v2249_v13 }
 0x389   : > { %v8293_v47 = vpack.i.bf16 %v2253_v51, %v2250_v40 }
 0x38b   : > { %8294 = vrot.lane.b32.xlu0 %v8293_v47, %s8929_s29 }
 0x394   : > { %v7876_v16 = vpop.f32.mrb[4].mxu1 }
 0x395   : > { %v2118_v30 = vadd.f32 %v7876_v16, %v9940_v22  ;;  %v2109_v48 = vpop.f32.mrb[5].mxu1 }
 0x396   : > { %v2110_v63 = vadd.f32 %v9940_v22, %v2109_v48  ;;  %v7877_v20 = vpop.f32.mrb[6].mxu1  ;;  %v2248_v48 = vsel %vm913_vm4, %v2222_v42, %v2223_v24 }
 0x397   : > { %v2112_v41 = vpop.f32.mrb[7].mxu1  ;;  %v9991_v61 = vmax.f32 %v2118_v30, 0.0  ;;  %v2121_v51 = vadd.f32 %v7877_v20, %v9940_v22 }
 0x398   : > { %v9993_v4 = vmax.f32 %v2110_v63, 0.0  ;;  %v2113_v18 = vadd.f32 %v9940_v22, %v2112_v41 }
 0x399   : > { %12961 = vst [vmem:[#allocation46_spill] sm:$0xff] %v9991_v61  ;;  %v2226_v40 = vrot.slane %v9991_v61, 1  ;;  %v10013_v63 = vmax.f32 %v2121_v51, 0.0 }
 0x39a   : > { %12962 = vst [vmem:[#allocation47_spill] sm:$0xff] %v9993_v4  ;;  %v2224_v57 = vrot.slane %v9993_v4, 1  ;;  %v9998_v13 = vmax.f32 %v2113_v18, 0.0 }
 0x39b   : > { %12964 = vst [vmem:[#allocation49_spill] sm:$0xff] %v10013_v63 }
 0x39c   : > { %12963 = vst [vmem:[#allocation48_spill] sm:$0xff] %v9998_v13  ;;  %v2225_v52 = vrot.slane %v9998_v13, 1  ;;  %v8303_v47 = vpack.i.bf16 %v9998_v13, %v9993_v4  ;;  %v2247_v16 = vsel %vm913_vm4, %v2223_v24, %v2224_v57 }
 0x39d   : > { %v2255_v30 = vmul.f32 %v9124_v54, %v2247_v16 }
 0x39e   : > { %8304 = vrot.lane.b32.xlu0 %v8303_v47, %s8928_s0  ;;  %v2245_v1 = vsel %vm913_vm4, %v2225_v52, %v2226_v40  ;;  %v2246_v18 = vsel %vm913_vm4, %v2224_v57, %v2225_v52  ;;  %v8308_v47 = vpack.i.bf16 %v10013_v63, %v9991_v61 }
 0x39f   : > { %v8298_v20 = vpack.i.bf16 %v2255_v30, %v2248_v48  ;;  %v2257_v41 = vmul.f32 %v9184_v33, %v2245_v1 }
 0x3a1   : > { %8299 = vrot.lane.b32.xlu1 %v8298_v20, %s8929_s29  ;;  %v8313_v12 = vpack.i.bf16 %v2257_v41, %v2246_v18 }
 0x3a3   : > { %8314 = vrot.lane.b32.xlu0 %v8313_v12, %s8929_s29  ;;  %v2227_v12 = vrot.slane %v10013_v63, 1 }
 0x3a5   : > { %v7880_v42 = vpop.f32.mrb[8].mxu1  ;;  %8309 = vrot.lane.b32.xlu1 %v8308_v47, %s8928_s0  ;;  %v2244_v44 = vsel %vm913_vm4, %v2226_v40, %v2227_v12 }
 0x3a6   : > { %v2134_v24 = vadd.f32 %v7880_v42, %v9940_v22  ;;  %v2125_v51 = vpop.f32.mrb[9].mxu1 }
 0x3a7   : > { %v2126_v16 = vadd.f32 %v9940_v22, %v2125_v51  ;;  %v7881_v30 = vpop.f32.mrb[10].mxu1 }
 0x3a8   : > { %v2128_v48 = vpop.f32.mrb[11].mxu1  ;;  %v10025_v1 = vmax.f32 %v2134_v24, 0.0  ;;  %v2137_v41 = vadd.f32 %v7881_v30, %v9940_v22 }
 0x3a9   : > { %v10027_v57 = vmax.f32 %v2126_v16, 0.0  ;;  %v2129_v52 = vadd.f32 %v9940_v22, %v2128_v48 }
 0x3aa   : > { %12965 = vst [vmem:[#allocation50_spill] sm:$0xff] %v10025_v1  ;;  %v2230_v47 = vrot.slane %v10025_v1, 1  ;;  %v10043_v59 = vmax.f32 %v2137_v41, 0.0 }
 0x3ab   : > { %12966 = vst [vmem:[#allocation51_spill] sm:$0xff] %v10027_v57  ;;  %v2228_v20 = vrot.slane %v10027_v57, 1  ;;  %v10033_v18 = vmax.f32 %v2129_v52, 0.0 }
 0x3ac   : > { %12968 = vst [vmem:[#allocation53_spill] sm:$0xff] %v10043_v59  ;;  %v2183_v23 = vrot.slane %v10043_v59, 7 }
 0x3ad   : > { %12967 = vst [vmem:[#allocation52_spill] sm:$0xff] %v10033_v18  ;;  %v2229_v42 = vrot.slane %v10033_v18, 1  ;;  %v7884_v51 = vpop.f32.mrb[12].mxu1  ;;  %v8323_v24 = vpack.i.bf16 %v10033_v18, %v10027_v57  ;;  %v2243_v16 = vsel %vm913_vm4, %v2227_v12, %v2228_v20  ;;  %v2231_v12 = vrot.slane %v10043_v59, 1 }
 0x3ae   : > { %v2150_v48 = vadd.f32 %v7884_v51, %v9940_v22  ;;  %v2141_v35 = vpop.f32.mrb[13].mxu1  ;;  %v2259_v14 = vmul.f32 %v9201_v38, %v2243_v16 }
 0x3af   : > { %v2142_v30 = vadd.f32 %v9940_v22, %v2141_v35  ;;  %v7885_v52 = vpop.f32.mrb[14].mxu1  ;;  %8324 = vrot.lane.b32.xlu0 %v8323_v24, %s8928_s0  ;;  %v2241_v55 = vsel %vm913_vm4, %v2229_v42, %v2230_v47  ;;  %v2242_v24 = vsel %vm913_vm4, %v2228_v20, %v2229_v42  ;;  %v2240_v42 = vsel %vm913_vm4, %v2230_v47, %v2231_v12 }
 0x3b0   : > { %v10051_v60 = vmax.f32 %v2150_v48, 0.0  ;;  %v2153_v51 = vadd.f32 %v7885_v52, %v9940_v22  ;;  %v2144_v53 = vpop.f32.mrb[15].mxu1  ;;  %v8318_v21 = vpack.i.bf16 %v2259_v14, %v2244_v44  ;;  %v2261_v41 = vmul.f32 %v9244_v11, %v2241_v55 }
 0x3b1   : > { %v10055_v16 = vmax.f32 %v2142_v30, 0.0  ;;  %v2145_v35 = vadd.f32 %v9940_v22, %v2144_v53  ;;  %v8328_v53 = vpack.i.bf16 %v10043_v59, %v10025_v1 }
 0x3b2   : > { %12969 = vst [vmem:[#allocation54_spill] sm:$0xff] %v10051_v60  ;;  %v10060_v34 = vmax.f32 %v2153_v51, 0.0  ;;  %8319 = vrot.lane.b32.xlu1 %v8318_v21, %s8929_s29  ;;  %v8333_v40 = vpack.i.bf16 %v2261_v41, %v2242_v24  ;;  %v2234_v55 = vrot.slane %v10051_v60, 1  ;;  %v12973_v24 = vrot.slane %v9956_v49, 1 }
 0x3b3   : > { %12970 = vst [vmem:[#allocation55_spill] sm:$0xff] %v10055_v16  ;;  %v2232_v48 = vrot.slane %v10055_v16, 1  ;;  %v10065_v52 = vmax.f32 %v2145_v35, 0.0 }
 0x3b4   : > { %12971 = vst [vmem:[#allocation56_spill] sm:$0xff] %v10060_v34  ;;  %8334 = vrot.lane.b32.xlu0 %v8333_v40, %s8929_s29  ;;  %v2235_v44 = vrot.slane %v10060_v34, 1  ;;  %v8348_v47 = vpack.i.bf16 %v10060_v34, %v10051_v60 }
 0x3b5   : > { %12972 = vst [vmem:[#allocation57_spill] sm:$0xff] %v10065_v52  ;;  %v2233_v14 = vrot.slane %v10065_v52, 1  ;;  %v8343_v21 = vpack.i.bf16 %v10065_v52, %v10055_v16  ;;  %v2239_v22 = vsel %vm913_vm4, %v2231_v12, %v2232_v48 }
 0x3b6   : > { %8329 = vrot.lane.b32.xlu1 %v8328_v53, %s8928_s0  ;;  %v2263_v20 = vmul.f32 %v9263_v36, %v2239_v22  ;;  %v2251_v40 = vsel %vm913_vm4, %v2235_v44, %v12973_v24  ;;  %v2172_v22 = vrot.slane %v9956_v49, 7 }
 0x3b7   : > { %v2237_v30 = vsel %vm913_vm4, %v2233_v14, %v2234_v55  ;;  %v2238_v35 = vsel %vm913_vm4, %v2232_v48, %v2233_v14  ;;  %v2267_v12 = vmul.f32 %v9260_v32, %v2251_v40  ;;  %v2236_v48 = vsel %vm913_vm4, %v2234_v55, %v2235_v44 }
 0x3b8   : > { %8344 = vrot.lane.b32.xlu0 %v8343_v21, %s8928_s0  ;;  %v8338_v51 = vpack.i.bf16 %v2263_v20, %v2240_v42  ;;  %v2265_v41 = vmul.f32 %v9240_v9, %v2237_v30  ;;  %v12843_v21 = vrot.slane %v10060_v34, 7  ;;  %v2173_v42 = vrot.slane %v9958_v50, 7 }
 0x3b9   : > { %v8358_v14 = vpack.i.bf16 %v2267_v12, %v2236_v48 }
 0x3ba   : > { %8339 = vrot.lane.b32.xlu1 %v8338_v51, %s8929_s29  ;;  %v8353_v53 = vpack.i.bf16 %v2265_v41, %v2238_v35  ;;  %v2203_v30 = vsel %vm864_vm0, %v12843_v21, %v2172_v22  ;;  %v2202_v44 = vsel %vm864_vm0, %v2172_v22, %v2173_v42  ;;  %v2175_v22 = vrot.slane %v9954_v26, 7 }
 0x3bb   : > { %v2204_v35 = vmul.f32 %v9089_v37, %v2203_v30  ;;  %v2176_v30 = vrot.slane %v9993_v4, 7 }
 0x3bc   : > { %8354 = vrot.lane.b32.xlu0 %v8353_v53, %s8929_s29 }
 0x3be   : > { %8349 = vrot.lane.b32.xlu1 %v8348_v47, %s8928_s0 }
 0x3c2   : > { %8359 = vrot.lane.b32.xlu1 %v8358_v14, %s8929_s29 }
 0x3f7   : > { %v8285_v21 = vpop.permute.xlu1 %8284 }
 0x3f8   : > { %v8290_v20 = vpop.permute.xlu0 %8289 }
 0x3f9   : > { %v8292_v51 = vunpack.i.h.bf16 %v8290_v20  ;;  %v8291_v41 = vunpack.i.l.bf16 %v8290_v20  ;;  %v2174_v20 = vrot.slane %v9948_v8, 7 }
 0x3fb   : > { %v2396_v53 = vsel %vm1980_vm8, %v2204_v35, %v8291_v41  ;;  %v2397_v47 = vsel %vm1980_vm8, %v2202_v44, %v8292_v51  ;;  %v2201_v41 = vsel %vm864_vm0, %v2173_v42, %v2174_v20  ;;  %v2177_v51 = vrot.slane %v9998_v13, 7 }
 0x3fc   : > { %v8286_v44 = vunpack.i.l.bf16 %v8285_v21 }
 0x3fd   : > { %v8295_v55 = vpop.permute.xlu0 %8294 }
 0x3fe   : > { %v8297_v24 = vunpack.i.h.bf16 %v8295_v55  ;;  %v8296_v40 = vunpack.i.l.bf16 %v8295_v55  ;;  %v8287_v55 = vunpack.i.h.bf16 %v8285_v21  ;;  %v2198_v21 = vsel %vm864_vm0, %v2176_v30, %v2177_v51 }
 0x400   : > { %v2413_v12 = vsel %vm2412_vm10, %v2396_v53, %v8296_v40  ;;  %v2414_v48 = vsel %vm2412_vm10, %v2397_v47, %v8297_v24  ;;  %v2199_v24 = vsel %vm864_vm0, %v2175_v22, %v2176_v30  ;;  %v2206_v40 = vmul.f32 %v9078_v27, %v2201_v41 }
 0x401   : > { %v2429_v14 = vpack.c.bf16 %v2414_v48, %v2413_v12  ;;  %v2200_v48 = vsel %vm864_vm0, %v2174_v20, %v2175_v22  ;;  %v2208_v3 = vmul.f32 %v9071_v25, %v2199_v24 }
 0x402   : > { %v2398_v42 = vsel %vm1980_vm8, %v2206_v40, %v8286_v44  ;;  %v2399_v31 = vsel %vm1980_vm8, %v2200_v48, %v8287_v55  ;;  %v2181_v40 = vrot.slane %v10033_v18, 7 }
 0x403   : > { %7898 = vmatprep.mubr.msk.bf16.mxu0 %vm2490_vm11, %v2429_v14 }
 0x410   : > { %v8305_v35 = vpop.permute.xlu0 %8304 }
 0x411   : > { %v8307_v53 = vunpack.i.h.bf16 %v8305_v35  ;;  %v8306_v47 = vunpack.i.l.bf16 %v8305_v35 }
 0x413   : > { %v8300_v12 = vpop.permute.xlu1 %8299  ;;  %v2401_v20 = vsel %vm1980_vm8, %v2198_v21, %v8307_v53  ;;  %v2400_v22 = vsel %vm1980_vm8, %v2208_v3, %v8306_v47 }
 0x414   : > { %v8302_v14 = vunpack.i.h.bf16 %v8300_v12  ;;  %v8301_v0 = vunpack.i.l.bf16 %v8300_v12 }
 0x415   : > { %v8315_v19 = vpop.permute.xlu0 %8314 }
 0x416   : > { %v2416_v41 = vsel %vm2412_vm10, %v2399_v31, %v8302_v14  ;;  %v2415_v35 = vsel %vm2412_vm10, %v2398_v42, %v8301_v0  ;;  %v8317_v56 = vunpack.i.h.bf16 %v8315_v19  ;;  %v8316_v58 = vunpack.i.l.bf16 %v8315_v19 }
 0x417   : > { %v2430_v12 = vpack.c.bf16 %v2416_v41, %v2415_v35  ;;  %v2178_v31 = vrot.slane %v9991_v61, 7  ;;  %v2180_v0 = vrot.slane %v10027_v57, 7  ;;  %v8310_v24 = vpop.permute.xlu1 %8309  ;;  %v2179_v19 = vrot.slane %v10013_v63, 7 }
 0x418   : > { %v2417_v44 = vsel %vm2412_vm10, %v2400_v22, %v8316_v58  ;;  %v2418_v55 = vsel %vm2412_vm10, %v2401_v20, %v8317_v56  ;;  %v8312_v53 = vunpack.i.h.bf16 %v8310_v24  ;;  %v8311_v56 = vunpack.i.l.bf16 %v8310_v24 }
 0x419   : > { %7899 = vmatmul.mubr.msk.bf16.vlgmr.msra.gmra.mrb[16].mxu0 %vm2490_vm11, %v2430_v12  ;;  %v2431_v30 = vpack.c.bf16 %v2418_v55, %v2417_v44  ;;  %v2197_v3 = vsel %vm864_vm0, %v2177_v51, %v2178_v31  ;;  %v2195_v47 = vsel %vm864_vm0, %v2179_v19, %v2180_v0  ;;  %v2196_v48 = vsel %vm864_vm0, %v2178_v31, %v2179_v19 }
 0x41a   : > { %v2210_v14 = vmul.f32 %v9155_v10, %v2197_v3  ;;  %v2182_v35 = vrot.slane %v10025_v1, 7  ;;  %v2194_v20 = vsel %vm864_vm0, %v2180_v0, %v2181_v40  ;;  %v2184_v12 = vrot.slane %v10055_v16, 7 }
 0x41b   : > { %7902 = vmatprep.mubr.msk.bf16.mxu0 %vm2490_vm11, %v2431_v30  ;;  %v2403_v44 = vsel %vm1980_vm8, %v2196_v48, %v8312_v53  ;;  %v2212_v30 = vmul.f32 %v9161_v15, %v2195_v47  ;;  %v2185_v48 = vrot.slane %v10065_v52, 7 }
 0x41c   : > { %v2402_v55 = vsel %vm1980_vm8, %v2210_v14, %v8311_v56  ;;  %v2193_v47 = vsel %vm864_vm0, %v2181_v40, %v2182_v35  ;;  %v2192_v40 = vsel %vm864_vm0, %v2182_v35, %v2183_v23 }
 0x421   : > { %v8325_v58 = vpop.permute.xlu0 %8324 }
 0x422   : > { %v8327_v42 = vunpack.i.h.bf16 %v8325_v58  ;;  %v8326_v21 = vunpack.i.l.bf16 %v8325_v58 }
 0x424   : > { %v8320_v41 = vpop.permute.xlu1 %8319  ;;  %v2405_v46 = vsel %vm1980_vm8, %v2194_v20, %v8327_v42  ;;  %v2404_v0 = vsel %vm1980_vm8, %v2212_v30, %v8326_v21  ;;  %v2191_v21 = vsel %vm864_vm0, %v2183_v23, %v2184_v12  ;;  %v2214_v20 = vmul.f32 %v9208_v43, %v2193_v47 }
 0x425   : > { %v8322_v51 = vunpack.i.h.bf16 %v8320_v41  ;;  %v8321_v22 = vunpack.i.l.bf16 %v8320_v41 }
 0x426   : > { %v8335_v31 = vpop.permute.xlu0 %8334 }
 0x427   : > { %v2419_v24 = vsel %vm2412_vm10, %v2402_v55, %v8321_v22  ;;  %v2420_v19 = vsel %vm2412_vm10, %v2403_v44, %v8322_v51  ;;  %v8337_v3 = vunpack.i.h.bf16 %v8335_v31  ;;  %v8336_v58 = vunpack.i.l.bf16 %v8335_v31 }
 0x428   : > { %v8330_v41 = vpop.permute.xlu1 %8329  ;;  %v2432_v29 = vpack.c.bf16 %v2420_v19, %v2419_v24 }
 0x429   : > { %v2421_v53 = vsel %vm2412_vm10, %v2404_v0, %v8336_v58  ;;  %v2422_v56 = vsel %vm2412_vm10, %v2405_v46, %v8337_v3  ;;  %v8332_v14 = vunpack.i.h.bf16 %v8330_v41  ;;  %v8331_v51 = vunpack.i.l.bf16 %v8330_v41 }
 0x42a   : > { %v8345_v22 = vpop.permute.xlu0 %8344  ;;  %7903 = vmatmul.mubr.msk.bf16.gmra.mrb[20].mxu0 %vm2490_vm11, %v2432_v29  ;;  %v2433_v42 = vpack.c.bf16 %v2422_v56, %v2421_v53  ;;  %v2186_v46 = vrot.slane %v10051_v60, 7  ;;  %v2190_v3 = vsel %vm864_vm0, %v2184_v12, %v2185_v48  ;;  %v2216_v58 = vmul.f32 %v9234_v6, %v2191_v21 }
 0x42b   : > { %v8347_v44 = vunpack.i.h.bf16 %v8345_v22  ;;  %v8346_v55 = vunpack.i.l.bf16 %v8345_v22  ;;  %v2407_v29 = vsel %vm1980_vm8, %v2192_v40, %v8332_v14  ;;  %v2406_v19 = vsel %vm1980_vm8, %v2214_v20, %v8331_v51 }
 0x42c   : > { %v8340_v30 = vpop.permute.xlu1 %8339  ;;  %7906 = vmatprep.mubr.msk.bf16.mxu0 %vm2490_vm11, %v2433_v42  ;;  %v2189_v12 = vsel %vm864_vm0, %v2185_v48, %v2186_v46 }
 0x42d   : > { %v8342_v31 = vunpack.i.h.bf16 %v8340_v30  ;;  %v8341_v24 = vunpack.i.l.bf16 %v8340_v30  ;;  %v2409_v23 = vsel %vm1980_vm8, %v2190_v3, %v8347_v44  ;;  %v2408_v35 = vsel %vm1980_vm8, %v2216_v58, %v8346_v55 }
 0x42e   : > { %v8355_v0 = vpop.permute.xlu0 %8354  ;;  %v2218_v40 = vmul.f32 %v9237_v7, %v2189_v12  ;;  %v12974_v44 = vrot.slane %v10060_v34, 7  ;;  %v8824_v12 = vld [vmem:[%s12809_s5 + $0x50] sm:$0xff]  }
 0x42f   : > { %v2423_v41 = vsel %vm2412_vm10, %v2406_v19, %v8341_v24  ;;  %v2424_v53 = vsel %vm2412_vm10, %v2407_v29, %v8342_v31  ;;  %v8357_v56 = vunpack.i.h.bf16 %v8355_v0  ;;  %v8356_v47 = vunpack.i.l.bf16 %v8355_v0 }
 0x430   : > { %v8350_v22 = vpop.permute.xlu1 %8349  ;;  %v2434_v14 = vpack.c.bf16 %v2424_v53, %v2423_v41  ;;  %v2188_v55 = vsel %vm864_vm0, %v2186_v46, %v12974_v44  ;;  %v8814_v41 = vld [vmem:[%s12809_s5] sm:$0xff]   ;;  %v8815_v46 = vld [vmem:[%s12809_s5 + $0x8] sm:$0xff]   ;;  %v12975_v53 = vmov 0  }
 0x431   : > { %v2425_v51 = vsel %vm2412_vm10, %v2408_v35, %v8356_v47  ;;  %v2426_v42 = vsel %vm2412_vm10, %v2409_v23, %v8357_v56  ;;  %v8352_v21 = vunpack.i.h.bf16 %v8350_v22  ;;  %v8351_v20 = vunpack.i.l.bf16 %v8350_v22  ;;  %2946 = vmatpush1.bf16.msra.mxu1 %v8814_v41  ;;  %v8816_v56 = vld [vmem:[%s12809_s5 + $0x10] sm:$0xff]   ;;  %v8817_v47 = vld [vmem:[%s12809_s5 + $0x18] sm:$0xff]   ;;  %v8818_v23 = vld [vmem:[%s12809_s5 + $0x20] sm:$0xff]  }
 0x432   : > { %7907 = vmatmul.mubr.msk.bf16.gmra.mrb[24].mxu0 %vm2490_vm11, %v2434_v14  ;;  %v2435_v30 = vpack.c.bf16 %v2426_v42, %v2425_v51  ;;  %2947 = vmatprep.subr.bf16.mxu1 %v12975_v53  ;;  %v8819_v35 = vld [vmem:[%s12809_s5 + $0x28] sm:$0xff]   ;;  %v8820_v22 = vld [vmem:[%s12809_s5 + $0x30] sm:$0xff]   ;;  %v8821_v14 = vld [vmem:[%s12809_s5 + $0x38] sm:$0xff]  }
 0x433   : > { %v2411_v19 = vsel %vm1980_vm8, %v2188_v55, %v8352_v21  ;;  %v2410_v48 = vsel %vm1980_vm8, %v2218_v40, %v8351_v20  ;;  %v8822_v51 = vld [vmem:[%s12809_s5 + $0x40] sm:$0xff]   ;;  %v8823_v42 = vld [vmem:[%s12809_s5 + $0x48] sm:$0xff]  }
 0x434   : > { %v8360_v31 = vpop.permute.xlu1 %8359  ;;  %7910 = vmatprep.mubr.msk.bf16.mxu0 %vm2490_vm11, %v2435_v30  ;;  %v10247_v21 = vld [vmem:[%s12819_s15 + $0x3] ss:$0 sm:$0xff]  ;;  %v8825_v30 = vld [vmem:[%s12809_s5 + $0x58] sm:$0xff]  }
 0x435   : > { %v8362_v24 = vunpack.i.h.bf16 %v8360_v31  ;;  %v8361_v29 = vunpack.i.l.bf16 %v8360_v31  ;;  %2948 = vmatpush1.bf16.msra.mxu1 %v8815_v46 }
 0x436   : > { %2949 = vmatprep.subr.bf16.mxu1 %v12975_v53 }
 0x437   : > { %v2428_v3 = vsel %vm2412_vm10, %v2411_v19, %v8362_v24  ;;  %v2427_v58 = vsel %vm2412_vm10, %v2410_v48, %v8361_v29 }
 0x438   : > { %v2436_v0 = vpack.c.bf16 %v2428_v3, %v2427_v58 }
 0x439   : > { %2950 = vmatpush1.bf16.msra.mxu1 %v8816_v56 }
 0x43a   : > { %7911 = vmatmul.mubr.msk.bf16.gmra.mrb[28].mxu0 %vm2490_vm11, %v2436_v0  ;;  %2951 = vmatprep.subr.bf16.mxu1 %v12975_v53 }
 0x43d   : > { %2952 = vmatpush1.bf16.msra.mxu1 %v8817_v47 }
 0x43e   : > { %2953 = vmatprep.subr.bf16.mxu1 %v12975_v53 }
 0x441   : > { %2954 = vmatpush1.bf16.msra.mxu1 %v8818_v23 }
 0x442   : > { %2955 = vmatprep.subr.bf16.mxu1 %v12975_v53 }
 0x445   : > { %2956 = vmatpush1.bf16.msra.mxu1 %v8819_v35 }
 0x446   : > { %2957 = vmatprep.subr.bf16.mxu1 %v12975_v53 }
 0x449   : > { %2958 = vmatpush1.bf16.msra.mxu1 %v8820_v22 }
 0x44a   : > { %2959 = vmatprep.subr.bf16.mxu1 %v12975_v53 }
 0x44d   : > { %2960 = vmatpush1.bf16.msra.mxu1 %v8821_v14 }
 0x44e   : > { %2961 = vmatprep.subr.bf16.mxu1 %v12975_v53 }
 0x451   : > { %2962 = vmatpush1.bf16.msra.mxu1 %v8822_v51 }
 0x452   : > { %2963 = vmatprep.subr.bf16.mxu1 %v12975_v53 }
 0x455   : > { %2964 = vmatpush1.bf16.msra.mxu1 %v8823_v42 }
 0x456   : > { %2965 = vmatprep.subr.bf16.mxu1 %v12975_v53 }
 0x459   : > { %2966 = vmatpush1.bf16.msra.mxu1 %v8824_v12 }
 0x45a   : > { %2967 = vmatprep.subr.bf16.mxu1 %v12975_v53 }
 0x45d   : > { %2968 = vmatpush1.bf16.msra.mxu1 %v8825_v30 }
 0x4ec   : > { %v7900_v20 = vpop.f32.mrb[16].mxu0 }
 0x4ed   : > { %v2558_v40 = vadd.f32 %v7900_v20, %v10247_v21  ;;  %v2549_v31 = vpop.f32.mrb[17].mxu0 }
 0x4ee   : > { %v2550_v44 = vadd.f32 %v10247_v21, %v2549_v31  ;;  %v7901_v55 = vpop.f32.mrb[18].mxu0 }
 0x4ef   : > { %v2561_v24 = vadd.f32 %v7901_v55, %v10247_v21  ;;  %v2552_v29 = vpop.f32.mrb[19].mxu0  ;;  %v10255_v19 = vmax.f32 %v2558_v40, 0.0 }
 0x4f0   : > { %v2553_v48 = vadd.f32 %v10247_v21, %v2552_v29  ;;  %v10260_v58 = vmax.f32 %v2550_v44, 0.0 }
 0x4f1   : > { %v10258_v3 = vmax.f32 %v2561_v24, 0.0  ;;  %v12854_v46 = vrot.slane %v10255_v19, 1  ;;  %v2630_v17 = vrot.slane %v10255_v19, 7 }
 0x4f2   : > { %v10262_v0 = vmax.f32 %v2553_v48, 0.0  ;;  %v12853_v23 = vrot.slane %v10260_v58, 1 }
 0x4f3   : > { %v8368_v41 = vpack.i.bf16 %v10258_v3, %v10255_v19 }
 0x4f4   : > { %v2677_v56 = vrot.slane %v10262_v0, 1  ;;  %v8363_v47 = vpack.i.bf16 %v10262_v0, %v10260_v58 }
 0x4f5   : > { %8369 = vrot.lane.b32.xlu1 %v8368_v41, %s8929_s29 }
 0x4f6   : > { %8364 = vrot.lane.b32.xlu0 %v8363_v47, %s8929_s29  ;;  %v2705_v35 = vsel %vm913_vm4, %v2677_v56, %v12854_v46  ;;  %v2706_v14 = vsel %vm913_vm4, %v12853_v23, %v2677_v56 }
 0x4f7   : > { %v2709_v22 = vmul.f32 %v9104_v45, %v2705_v35 }
 0x4f9   : > { %v2805_v51 = vpack.c.bf16 %v2709_v22, %v2706_v14 }
 0x4fb   : > { %7409 = vmatprep.mubr.msk.bf16.mxu1 %vm2412_vm10, %v2805_v51 }
 0x4fd   : > { %v7904_v42 = vpop.f32.mrb[20].mxu0 }
 0x4fe   : > { %v2574_v12 = vadd.f32 %v7904_v42, %v10247_v21  ;;  %v2565_v20 = vpop.f32.mrb[21].mxu0 }
 0x4ff   : > { %v2566_v30 = vadd.f32 %v10247_v21, %v2565_v20  ;;  %v7905_v40 = vpop.f32.mrb[22].mxu0 }
 0x500   : > { %v2577_v31 = vadd.f32 %v7905_v40, %v10247_v21  ;;  %v2568_v44 = vpop.f32.mrb[23].mxu0  ;;  %v10287_v24 = vmax.f32 %v2574_v12, 0.0 }
 0x501   : > { %v2569_v55 = vadd.f32 %v10247_v21, %v2568_v44  ;;  %v10291_v48 = vmax.f32 %v2566_v30, 0.0 }
 0x502   : > { %v10289_v29 = vmax.f32 %v2577_v31, 0.0 }
 0x503   : > { %v10293_v41 = vmax.f32 %v2569_v55, 0.0 }
 0x504   : > { %12976 = vst [vmem:[#allocation58_spill] sm:$0xff] %v10289_v29  ;;  %v8378_v56 = vpack.i.bf16 %v10289_v29, %v10287_v24 }
 0x505   : > { %v7908_v47 = vpop.f32.mrb[24].mxu0  ;;  %v8373_v35 = vpack.i.bf16 %v10293_v41, %v10291_v48  ;;  %v2681_v34 = vrot.slane %v10293_v41, 1 }
 0x506   : > { %v2590_v22 = vadd.f32 %v7908_v47, %v10247_v21  ;;  %8379 = vrot.lane.b32.xlu1 %v8378_v56, %s8929_s29  ;;  %v2581_v14 = vpop.f32.mrb[25].mxu0 }
 0x507   : > { %v2582_v51 = vadd.f32 %v10247_v21, %v2581_v14  ;;  %v7909_v42 = vpop.f32.mrb[26].mxu0  ;;  %8374 = vrot.lane.b32.xlu0 %v8373_v35, %s8929_s29 }
 0x508   : > { %v2593_v12 = vadd.f32 %v7909_v42, %v10247_v21  ;;  %v2584_v20 = vpop.f32.mrb[27].mxu0  ;;  %v10305_v40 = vmax.f32 %v2590_v22, 0.0 }
 0x509   : > { %v2585_v30 = vadd.f32 %v10247_v21, %v2584_v20  ;;  %v10309_v44 = vmax.f32 %v2582_v51, 0.0 }
 0x50a   : > { %12977 = vst [vmem:[#allocation59_spill] sm:$0xff] %v10305_v40  ;;  %v10307_v31 = vmax.f32 %v2593_v12, 0.0 }
 0x50b   : > { %12979 = vst [vmem:[#allocation61_spill] sm:$0xff] %v10309_v44  ;;  %v10311_v55 = vmax.f32 %v2585_v30, 0.0 }
 0x50c   : > { %12978 = vst [vmem:[#allocation60_spill] sm:$0xff] %v10307_v31  ;;  %v8388_v56 = vpack.i.bf16 %v10307_v31, %v10305_v40 }
 0x50d   : > { %12980 = vst [vmem:[#allocation62_spill] sm:$0xff] %v10311_v55  ;;  %v7912_v47 = vpop.f32.mrb[28].mxu0  ;;  %v8383_v35 = vpack.i.bf16 %v10311_v55, %v10309_v44 }
 0x50e   : > { %v2606_v14 = vadd.f32 %v7912_v47, %v10247_v21  ;;  %8389 = vrot.lane.b32.xlu1 %v8388_v56, %s8929_s29  ;;  %v2597_v42 = vpop.f32.mrb[29].mxu0 }
 0x50f   : > { %v2598_v22 = vadd.f32 %v10247_v21, %v2597_v42  ;;  %v7913_v12 = vpop.f32.mrb[30].mxu0  ;;  %8384 = vrot.lane.b32.xlu0 %v8383_v35, %s8929_s29  ;;  %v2680_v35 = vrot.slane %v10291_v48, 1 }
 0x510   : > { %v2609_v51 = vadd.f32 %v7913_v12, %v10247_v21  ;;  %v2600_v20 = vpop.f32.mrb[31].mxu0  ;;  %v10323_v23 = vmax.f32 %v2606_v14, 0.0  ;;  %v2679_v12 = vrot.slane %v10258_v3, 1 }
 0x511   : > { %v2601_v30 = vadd.f32 %v10247_v21, %v2600_v20  ;;  %v10327_v62 = vmax.f32 %v2598_v22, 0.0  ;;  %v8826_v21 = vld [vmem:[%s12810_s6 + $0x80] sm:$0xff]   ;;  %v2628_v22 = vrot.slane %v10260_v58, 7 }
 0x512   : > { %12981 = vst [vmem:[#allocation63_spill] sm:$0xff] %v10323_v23  ;;  %v10325_v46 = vmax.f32 %v2609_v51, 0.0  ;;  %7914 = vmatprep.subr.bf16.mxu1 %v8826_v21  ;;  %v2629_v51 = vrot.slane %v10262_v0, 7 }
 0x513   : > { %12982 = vst [vmem:[#allocation64_spill] sm:$0xff] %v10327_v62  ;;  %v10329_v47 = vmax.f32 %v2601_v30, 0.0  ;;  %v2703_v30 = vsel %vm913_vm4, %v2679_v12, %v2680_v35 }
 0x514   : > { %v8398_v56 = vpack.i.bf16 %v10325_v46, %v10323_v23  ;;  %v12863_v14 = vrot.slane %v10325_v46, 7  ;;  %v2711_v5 = vmul.f32 %v9124_v54, %v2703_v30  ;;  %v2658_v52 = vsel %vm864_vm0, %v2628_v22, %v2629_v51 }
 0x515   : > { %12983 = vst [vmem:[#allocation65_spill] sm:$0xff] %v10329_v47  ;;  %v8393_v42 = vpack.i.bf16 %v10329_v47, %v10327_v62  ;;  %v2657_v18 = vsel %vm864_vm0, %v2629_v51, %v2630_v17 }
 0x516   : > { %8399 = vrot.lane.b32.xlu1 %v8398_v56, %s8929_s29  ;;  %v2659_v20 = vsel %vm864_vm0, %v12863_v14, %v2628_v22  ;;  %v2631_v14 = vrot.slane %v10258_v3, 7 }
 0x517   : > { %8394 = vrot.lane.b32.xlu0 %v8393_v42, %s8929_s29  ;;  %v2660_v28 = vmul.f32 %v9089_v37, %v2659_v20  ;;  %v12984_v20 = vrot.slane %v10255_v19, 1 }
 0x519   : > { %v2704_v30 = vsel %vm913_vm4, %v12984_v20, %v2679_v12 }
 0x51a   : > { %v2807_v22 = vpack.c.bf16 %v2711_v5, %v2704_v30  ;;  %v2684_v5 = vrot.slane %v10309_v44, 1 }
 0x567   : > { %v8370_v60 = vpop.permute.xlu1 %8369 }
 0x568   : > { %v8365_v56 = vpop.permute.xlu0 %8364  ;;  %v8372_v57 = vunpack.i.h.bf16 %v8370_v60  ;;  %v8371_v63 = vunpack.i.l.bf16 %v8370_v60  ;;  %v2632_v60 = vrot.slane %v10291_v48, 7 }
 0x569   : > { %v8367_v42 = vunpack.i.h.bf16 %v8365_v56  ;;  %v8366_v39 = vunpack.i.l.bf16 %v8365_v56  ;;  %v2682_v56 = vrot.slane %v10287_v24, 1 }
 0x56b   : > { %v2788_v16 = vsel %vm2412_vm10, %v2660_v28, %v8366_v39  ;;  %v2789_v59 = vsel %vm2412_vm10, %v2658_v52, %v8367_v42  ;;  %v2701_v39 = vsel %vm913_vm4, %v2681_v34, %v2682_v56  ;;  %v2662_v28 = vmul.f32 %v9078_v27, %v2657_v18 }
 0x56c   : > { %v2804_v1 = vpack.c.bf16 %v2789_v59, %v2788_v16  ;;  %v2656_v59 = vsel %vm864_vm0, %v2630_v17, %v2631_v14  ;;  %v2713_v12 = vmul.f32 %v9184_v33, %v2701_v39  ;;  %v2702_v18 = vsel %vm913_vm4, %v2680_v35, %v2681_v34 }
 0x56d   : > { %v2790_v16 = vsel %vm2412_vm10, %v2662_v28, %v8371_v63  ;;  %v2791_v52 = vsel %vm2412_vm10, %v2656_v59, %v8372_v57  ;;  %v2633_v42 = vrot.slane %v10293_v41, 7  ;;  %v2655_v17 = vsel %vm864_vm0, %v2631_v14, %v2632_v60 }
 0x56e   : > { %2978 = vmatmul.mubr.bf16.vlgmr.msra.gmra.mrb[16].mxu1 %v2804_v1  ;;  %v2683_v1 = vrot.slane %v10289_v29, 1  ;;  %v2806_v51 = vpack.c.bf16 %v2791_v52, %v2790_v16  ;;  %v2634_v34 = vrot.slane %v10287_v24, 7  ;;  %v2685_v35 = vrot.slane %v10311_v55, 1 }
 0x56f   : > { %7410 = vmatprep.mubr.msk.bf16.mxu1 %vm2412_vm10, %v2807_v22  ;;  %7915 = vmatpush3.bf16.msra.mxu1 %v8826_v21  ;;  %v2809_v21 = vpack.c.bf16 %v2713_v12, %v2702_v18  ;;  %v2664_v22 = vmul.f32 %v9071_v25, %v2655_v17  ;;  %v2654_v14 = vsel %vm864_vm0, %v2632_v60, %v2633_v42  ;;  %v2635_v59 = vrot.slane %v10289_v29, 7 }
 0x570   : > { %v2699_v63 = vsel %vm913_vm4, %v2683_v1, %v2684_v5  ;;  %v2686_v12 = vrot.slane %v10305_v40, 1  ;;  %v2700_v18 = vsel %vm913_vm4, %v2682_v56, %v2683_v1 }
 0x571   : > { %v2715_v39 = vmul.f32 %v9201_v38, %v2699_v63 }
 0x572   : > { %v2697_v60 = vsel %vm913_vm4, %v2685_v35, %v2686_v12 }
 0x576   : > { %2986 = vmatmul.mubr.bf16.gmra.mrb[20].mxu1 %v2806_v51 }
 0x577   : > { %7411 = vmatprep.mubr.msk.bf16.mxu1 %vm2412_vm10, %v2809_v21  ;;  %v2653_v21 = vsel %vm864_vm0, %v2633_v42, %v2634_v34  ;;  %v2717_v42 = vmul.f32 %v9244_v11, %v2697_v60 }
 0x578   : > { %v8380_v28 = vpop.permute.xlu1 %8379 }
 0x579   : > { %v8375_v57 = vpop.permute.xlu0 %8374  ;;  %v8382_v17 = vunpack.i.h.bf16 %v8380_v28  ;;  %v8381_v63 = vunpack.i.l.bf16 %v8380_v28 }
 0x57a   : > { %v8377_v20 = vunpack.i.h.bf16 %v8375_v57  ;;  %v8376_v30 = vunpack.i.l.bf16 %v8375_v57  ;;  %v2811_v57 = vpack.c.bf16 %v2715_v39, %v2700_v18  ;;  %v2688_v39 = vrot.slane %v10327_v62, 1 }
 0x57c   : > { %v2792_v16 = vsel %vm2412_vm10, %v2664_v22, %v8376_v30  ;;  %v2793_v52 = vsel %vm2412_vm10, %v2654_v14, %v8377_v20  ;;  %v2666_v20 = vmul.f32 %v9155_v10, %v2653_v21  ;;  %v2636_v30 = vrot.slane %v10309_v44, 7 }
 0x57d   : > { %v2808_v51 = vpack.c.bf16 %v2793_v52, %v2792_v16  ;;  %v2652_v22 = vsel %vm864_vm0, %v2634_v34, %v2635_v59  ;;  %v2687_v14 = vrot.slane %v10307_v31, 1  ;;  %v2637_v16 = vrot.slane %v10311_v55, 7 }
 0x57e   : > { %v2794_v56 = vsel %vm2412_vm10, %v2666_v20, %v8381_v63  ;;  %v2795_v1 = vsel %vm2412_vm10, %v2652_v22, %v8382_v17  ;;  %v2651_v34 = vsel %vm864_vm0, %v2635_v59, %v2636_v30  ;;  %v2638_v59 = vrot.slane %v10305_v40, 7 }
 0x57f   : > { %2994 = vmatmul.mubr.bf16.gmra.mrb[24].mxu1 %v2808_v51  ;;  %v2810_v52 = vpack.c.bf16 %v2795_v1, %v2794_v56  ;;  %v2698_v51 = vsel %vm913_vm4, %v2684_v5, %v2685_v35  ;;  %v2695_v17 = vsel %vm913_vm4, %v2687_v14, %v2688_v39  ;;  %v2650_v60 = vsel %vm864_vm0, %v2636_v30, %v2637_v16 }
 0x580   : > { %7412 = vmatprep.mubr.msk.bf16.mxu1 %vm2412_vm10, %v2811_v57  ;;  %v2813_v63 = vpack.c.bf16 %v2717_v42, %v2698_v51  ;;  %v2668_v57 = vmul.f32 %v9161_v15, %v2651_v34  ;;  %v2719_v35 = vmul.f32 %v9263_v36, %v2695_v17  ;;  %v2689_v22 = vrot.slane %v10329_v47, 1  ;;  %v8390_v56 = vpop.permute.xlu1 %8389 }
 0x581   : > { %v8385_v28 = vpop.permute.xlu0 %8384  ;;  %v2639_v1 = vrot.slane %v10307_v31, 7  ;;  %v2690_v42 = vrot.slane %v10323_v23, 1  ;;  %v2649_v30 = vsel %vm864_vm0, %v2637_v16, %v2638_v59  ;;  %v8392_v51 = vunpack.i.h.bf16 %v8390_v56 }
 0x582   : > { %v8387_v18 = vunpack.i.h.bf16 %v8385_v28  ;;  %v8386_v21 = vunpack.i.l.bf16 %v8385_v28  ;;  %v8391_v34 = vunpack.i.l.bf16 %v8390_v56  ;;  %v2640_v17 = vrot.slane %v10327_v62, 7 }
 0x583   : > { %v2694_v56 = vsel %vm913_vm4, %v2688_v39, %v2689_v22 }
 0x584   : > { %v2796_v20 = vsel %vm2412_vm10, %v2668_v57, %v8386_v21  ;;  %v2797_v5 = vsel %vm2412_vm10, %v2650_v60, %v8387_v18  ;;  %v2693_v21 = vsel %vm913_vm4, %v2689_v22, %v2690_v42  ;;  %v2648_v57 = vsel %vm864_vm0, %v2638_v59, %v2639_v1 }
 0x585   : > { %v2812_v28 = vpack.c.bf16 %v2797_v5, %v2796_v20  ;;  %v2721_v16 = vmul.f32 %v9240_v9, %v2693_v21  ;;  %v2691_v60 = vrot.slane %v10325_v46, 1  ;;  %v2641_v5 = vrot.slane %v10329_v47, 7 }
 0x587   : > { %3002 = vmatmul.mubr.bf16.gmra.mrb[28].mxu1 %v2810_v52  ;;  %v2696_v52 = vsel %vm913_vm4, %v2686_v12, %v2687_v14  ;;  %v2799_v14 = vsel %vm2412_vm10, %v2648_v57, %v8392_v51  ;;  %v12985_v51 = vrot.slane %v10260_v58, 1  ;;  %v2646_v21 = vsel %vm864_vm0, %v2640_v17, %v2641_v5 }
 0x588   : > { %7413 = vmatprep.mubr.msk.bf16.mxu1 %vm2412_vm10, %v2813_v63  ;;  %v2815_v18 = vpack.c.bf16 %v2719_v35, %v2696_v52  ;;  %v2670_v63 = vmul.f32 %v9208_v43, %v2649_v30  ;;  %v2817_v30 = vpack.c.bf16 %v2721_v16, %v2694_v56  ;;  %v8400_v57 = vpop.permute.xlu1 %8399 }
 0x589   : > { %v8395_v20 = vpop.permute.xlu0 %8394 }
 0x58a   : > { %v2798_v12 = vsel %vm2412_vm10, %v2670_v63, %v8391_v34  ;;  %v8397_v52 = vunpack.i.h.bf16 %v8395_v20  ;;  %v8396_v59 = vunpack.i.l.bf16 %v8395_v20  ;;  %v2707_v34 = vsel %vm913_vm4, %v2691_v60, %v12985_v51  ;;  %v8829_v51 = vld [vmem:[%s12810_s6 + $0x98] sm:$0xff]  }
 0x58b   : > { %v2814_v35 = vpack.c.bf16 %v2799_v14, %v2798_v12  ;;  %v2642_v63 = vrot.slane %v10323_v23, 7  ;;  %v2692_v14 = vsel %vm913_vm4, %v2690_v42, %v2691_v60  ;;  %v8402_v20 = vunpack.i.h.bf16 %v8400_v57 }
 0x58c   : > { %v2801_v22 = vsel %vm2412_vm10, %v2646_v21, %v8397_v52  ;;  %v8832_v21 = vld [vmem:[%s12810_s6 + $0xb0] sm:$0xff]  }
 0x58d   : > { %v2645_v16 = vsel %vm864_vm0, %v2641_v5, %v2642_v63  ;;  %v8827_v5 = vld [vmem:[%s12810_s6 + $0x88] sm:$0xff]  }
 0x58e   : > { %7916 = vmatprep.subr.bf16.mxu1 %v8827_v5 }
 0x58f   : > { %3010 = vmatmul.mubr.bf16.gmra.mrb[32].mxu1 %v2812_v28  ;;  %v2647_v28 = vsel %vm864_vm0, %v2639_v1, %v2640_v17  ;;  %v2723_v1 = vmul.f32 %v9260_v32, %v2707_v34  ;;  %v2674_v17 = vmul.f32 %v9237_v7, %v2645_v16  ;;  %v8830_v34 = vld [vmem:[%s12810_s6 + $0xa0] sm:$0xff]   ;;  %v8840_v16 = vld [vmem:[%s12810_s6 + $0x58] sm:$0xff]  }
 0x590   : > { %7414 = vmatprep.mubr.msk.bf16.mxu1 %vm2412_vm10, %v2815_v18  ;;  %v2672_v18 = vmul.f32 %v9234_v6, %v2647_v28  ;;  %v12986_v28 = vrot.slane %v10325_v46, 7  ;;  %7917 = vmatpush3.bf16.msra.mxu1 %v8827_v5  ;;  %v10547_v5 = vld [vmem:[%s12819_s15 + $0x4] ss:$0 sm:$0xff] }
 0x591   : > { %v2819_v56 = vpack.c.bf16 %v2723_v1, %v2692_v14  ;;  %v8835_v1 = vld [vmem:[%s12810_s6] sm:$0xff]   ;;  %v8839_v14 = vld [vmem:[%s12810_s6 + $0x10] sm:$0xff]  }
 0x592   : > { %v2800_v39 = vsel %vm2412_vm10, %v2672_v18, %v8396_v59  ;;  %v2644_v52 = vsel %vm864_vm0, %v2642_v63, %v12986_v28  ;;  %v8831_v18 = vld [vmem:[%s12810_s6 + $0xa8] sm:$0xff]  }
 0x593   : > { %v2816_v12 = vpack.c.bf16 %v2801_v22, %v2800_v39  ;;  %v2803_v42 = vsel %vm2412_vm10, %v2644_v52, %v8402_v20  ;;  %v8833_v39 = vld [vmem:[%s12810_s6 + $0xb8] sm:$0xff]   ;;  %v8834_v22 = vld [vmem:[%s12810_s6 + $0x40] sm:$0xff]   ;;  %v8836_v63 = vld [vmem:[%s12810_s6 + $0x48] sm:$0xff]  }
 0x594   : > { %7617 = vmatprep.subr.bf16.mxu0 %v8834_v22  ;;  %v8841_v20 = vld [vmem:[%s12810_s6 + $0x18] sm:$0xff]   ;;  %v8845_v28 = vld [vmem:[%s12810_s6 + $0x28] sm:$0xff]   ;;  %v8846_v52 = vld [vmem:[%s12810_s6 + $0x70] sm:$0xff]  }
 0x595   : > { %7618 = vmatpush3.bf16.msra.mxu0 %v8835_v1 }
 0x596   : > { %7619 = vmatprep.subr.bf16.mxu0 %v8836_v63 }
 0x597   : > { %3018 = vmatmul.mubr.bf16.gmra.mrb[36].mxu1 %v2814_v35  ;;  %v8401_v35 = vunpack.i.l.bf16 %v8400_v57  ;;  %v8837_v57 = vld [vmem:[%s12810_s6 + $0x8] sm:$0xff]  }
 0x598   : > { %7415 = vmatprep.mubr.msk.bf16.mxu1 %vm2412_vm10, %v2817_v30  ;;  %v8828_v30 = vld [vmem:[%s12810_s6 + $0x90] sm:$0xff]  }
 0x599   : > { %v2802_v59 = vsel %vm2412_vm10, %v2674_v17, %v8401_v35  ;;  %7918 = vmatprep.subr.bf16.mxu1 %v8828_v30  ;;  %7620 = vmatpush3.bf16.msra.mxu0 %v8837_v57  ;;  %v8842_v35 = vld [vmem:[%s12810_s6 + $0x60] sm:$0xff]   ;;  %v8844_v17 = vld [vmem:[%s12810_s6 + $0x68] sm:$0xff]  }
 0x59a   : > { %v2818_v60 = vpack.c.bf16 %v2803_v42, %v2802_v59  ;;  %7919 = vmatpush3.bf16.msra.mxu1 %v8828_v30  ;;  %v8847_v59 = vld [vmem:[%s12810_s6 + $0x30] sm:$0xff]   ;;  %v8848_v42 = vld [vmem:[%s12810_s6 + $0x78] sm:$0xff]  }
 0x59b   : > { %7920 = vmatprep.subr.bf16.mxu1 %v8829_v51 }
 0x59e   : > { %7921 = vmatpush3.bf16.msra.mxu1 %v8829_v51 }
 0x59f   : > { %3026 = vmatmul.mubr.bf16.gmra.mrb[40].mxu1 %v2816_v12  ;;  %7922 = vmatprep.subr.bf16.mxu1 %v8830_v34  ;;  %v8838_v12 = vld [vmem:[%s12810_s6 + $0x50] sm:$0xff]  }
 0x5a0   : > { %7416 = vmatprep.mubr.msk.bf16.mxu1 %vm2412_vm10, %v2819_v56  ;;  %7621 = vmatprep.subr.bf16.mxu0 %v8838_v12  ;;  %v8843_v56 = vld [vmem:[%s12810_s6 + $0x20] sm:$0xff]  }
 0x5a1   : > { %7622 = vmatpush3.bf16.msra.mxu0 %v8839_v14 }
 0x5a2   : > { %7923 = vmatpush3.bf16.msra.mxu1 %v8830_v34  ;;  %7623 = vmatprep.subr.bf16.mxu0 %v8840_v16 }
 0x5a3   : > { %7924 = vmatprep.subr.bf16.mxu1 %v8831_v18 }
 0x5a5   : > { %7624 = vmatpush3.bf16.msra.mxu0 %v8841_v20 }
 0x5a6   : > { %7925 = vmatpush3.bf16.msra.mxu1 %v8831_v18  ;;  %7625 = vmatprep.subr.bf16.mxu0 %v8842_v35 }
 0x5a7   : > { %3034 = vmatmul.mubr.bf16.gmra.mrb[44].mxu1 %v2818_v60  ;;  %7926 = vmatprep.subr.bf16.mxu1 %v8832_v21  ;;  %v8849_v60 = vld [vmem:[%s12810_s6 + $0x38] sm:$0xff]  }
 0x5a9   : > { %7626 = vmatpush3.bf16.msra.mxu0 %v8843_v56 }
 0x5aa   : > { %7927 = vmatpush3.bf16.msra.mxu1 %v8832_v21  ;;  %7627 = vmatprep.subr.bf16.mxu0 %v8844_v17 }
 0x5ab   : > { %7928 = vmatprep.subr.bf16.mxu1 %v8833_v39 }
 0x5ad   : > { %7628 = vmatpush3.bf16.msra.mxu0 %v8845_v28 }
 0x5ae   : > { %7929 = vmatpush3.bf16.msra.mxu1 %v8833_v39  ;;  %7629 = vmatprep.subr.bf16.mxu0 %v8846_v52 }
 0x5b1   : > { %7630 = vmatpush3.bf16.msra.mxu0 %v8847_v59 }
 0x5b2   : > { %7631 = vmatprep.subr.bf16.mxu0 %v8848_v42 }
 0x5b5   : > { %7632 = vmatpush3.bf16.msra.mxu0 %v8849_v60 }
 0x641   : > { %v2979_v30 = vpop.f32.mrb[16].mxu1 }
 0x642   : > { %v2980_v51 = vadd.f32 %v10547_v5, %v2979_v30  ;;  %v2981_v34 = vpop.f32.mrb[17].mxu1 }
 0x643   : > { %v2982_v18 = vpop.f32.mrb[18].mxu1 }
 0x644   : > { %v10550_v21 = vmax.f32 %v2980_v51, 0.0  ;;  %v2983_v39 = vadd.f32 %v10547_v5, %v2982_v18  ;;  %v2984_v22 = vpop.f32.mrb[19].mxu1 }
 0x646   : > { %v3043_v1 = vmax.f32 %v2983_v39, 0.0  ;;  %v12874_v63 = vrot.slane %v10550_v21, 7  ;;  %v12873_v57 = vrot.slane %v10550_v21, 1 }
 0x648   : > { %v3059_v12 = vrot.slane %v3043_v1, 7  ;;  %v3107_v14 = vrot.slane %v3043_v1, 1  ;;  %v3155_v16 = vpack.c.bf16 %v3043_v1, %v10550_v21 }
 0x649   : > { %v2987_v20 = vpop.f32.mrb[20].mxu1 }
 0x64a   : > { %v10560_v35 = vsel %vm864_vm0, %v12874_v63, %v3059_v12  ;;  %v2988_v56 = vadd.f32 %v10547_v5, %v2987_v20  ;;  %v2989_v17 = vpop.f32.mrb[21].mxu1  ;;  %3407 = vmatprep.mubr.bf16.mxu0 %v3155_v16  ;;  %v3136_v28 = vsel %vm913_vm4, %v12873_v57, %v3107_v14 }
 0x64b   : > { %v2990_v52 = vpop.f32.mrb[22].mxu1 }
 0x64c   : > { %v10567_v59 = vmax.f32 %v2988_v56, 0.0  ;;  %v2991_v42 = vadd.f32 %v10547_v5, %v2990_v52  ;;  %v2992_v60 = vpop.f32.mrb[23].mxu1 }
 0x64e   : > { %v3060_v30 = vrot.slane %v10567_v59, 7  ;;  %v3108_v51 = vrot.slane %v10567_v59, 1  ;;  %v10572_v34 = vmax.f32 %v2991_v42, 0.0 }
 0x650   : > { %v3061_v18 = vrot.slane %v10572_v34, 7  ;;  %v3109_v39 = vrot.slane %v10572_v34, 1  ;;  %v3135_v22 = vsel %vm913_vm4, %v3107_v14, %v3108_v51  ;;  %v3087_v56 = vsel %vm864_vm0, %v3059_v12, %v3060_v30 }
 0x651   : > { %v3139_v20 = vmul.f32 %v9104_v45, %v3135_v22  ;;  %v10591_v14 = vmul.f32 %v9078_v27, %v3087_v56 }
 0x652   : > { %v2995_v16 = vpop.f32.mrb[24].mxu1  ;;  %v3134_v17 = vsel %vm913_vm4, %v3108_v51, %v3109_v39  ;;  %v10588_v60 = vsel %vm864_vm0, %v3060_v30, %v3061_v18 }
 0x653   : > { %v2996_v52 = vadd.f32 %v10547_v5, %v2995_v16  ;;  %v2997_v42 = vpop.f32.mrb[25].mxu1  ;;  %v3156_v57 = vpack.c.bf16 %v3139_v20, %v3136_v28 }
 0x654   : > { %v2998_v1 = vpop.f32.mrb[26].mxu1 }
 0x655   : > { %v10593_v63 = vmax.f32 %v2996_v52, 0.0  ;;  %v2999_v22 = vadd.f32 %v10547_v5, %v2998_v1  ;;  %v3000_v12 = vpop.f32.mrb[27].mxu1  ;;  %7930 = vmatprep.mubr.bf16.mxu1 %v3156_v57 }
 0x657   : > { %v3062_v16 = vrot.slane %v10593_v63, 7  ;;  %v3110_v42 = vrot.slane %v10593_v63, 1  ;;  %v10600_v30 = vmax.f32 %v2999_v22, 0.0 }
 0x659   : > { %v3133_v56 = vsel %vm913_vm4, %v3109_v39, %v3110_v42  ;;  %v3063_v28 = vrot.slane %v10600_v30, 7  ;;  %v3111_v20 = vrot.slane %v10600_v30, 1  ;;  %v3085_v57 = vsel %vm864_vm0, %v3061_v18, %v3062_v16 }
 0x65a   : > { %v3141_v52 = vmul.f32 %v9124_v54, %v3133_v56  ;;  %v3003_v12 = vpop.f32.mrb[28].mxu1  ;;  %v10619_v13 = vmul.f32 %v9071_v25, %v3085_v57 }
 0x65b   : > { %v3004_v51 = vadd.f32 %v10547_v5, %v3003_v12  ;;  %v3005_v22 = vpop.f32.mrb[29].mxu1  ;;  %v3132_v61 = vsel %vm913_vm4, %v3110_v42, %v3111_v20  ;;  %v10616_v39 = vsel %vm864_vm0, %v3062_v16, %v3063_v28 }
 0x65c   : > { %v3006_v1 = vpop.f32.mrb[30].mxu1  ;;  %v3159_v4 = vpack.c.bf16 %v3141_v52, %v3134_v17 }
 0x65d   : > { %v10621_v56 = vmax.f32 %v3004_v51, 0.0  ;;  %v3007_v26 = vadd.f32 %v10547_v5, %v3006_v1  ;;  %v3008_v18 = vpop.f32.mrb[31].mxu1 }
 0x65e   : > { %7931 = vmatmul.mubr.bf16.vlgmr.msra.gmra.mrb[48].mxu1 %v3159_v4 }
 0x65f   : > { %v3064_v42 = vrot.slane %v10621_v56, 7  ;;  %v3112_v22 = vrot.slane %v10621_v56, 1  ;;  %v10628_v16 = vmax.f32 %v3007_v26, 0.0 }
 0x661   : > { %v3065_v57 = vrot.slane %v10628_v16, 7  ;;  %v3113_v8 = vrot.slane %v10628_v16, 1  ;;  %v3131_v17 = vsel %vm913_vm4, %v3111_v20, %v3112_v22  ;;  %v3083_v4 = vsel %vm864_vm0, %v3063_v28, %v3064_v42 }
 0x662   : > { %v3011_v1 = vpop.f32.mrb[32].mxu1  ;;  %v3143_v52 = vmul.f32 %v9184_v33, %v3131_v17  ;;  %v10647_v20 = vmul.f32 %v9155_v10, %v3083_v4 }
 0x663   : > { %v3012_v18 = vadd.f32 %v10547_v5, %v3011_v1  ;;  %v3013_v26 = vpop.f32.mrb[33].mxu1  ;;  %v3130_v12 = vsel %vm913_vm4, %v3112_v22, %v3113_v8  ;;  %v10644_v50 = vsel %vm864_vm0, %v3064_v42, %v3065_v57 }
 0x664   : > { %v3014_v51 = vpop.f32.mrb[34].mxu1  ;;  %v3162_v49 = vpack.c.bf16 %v3143_v52, %v3132_v61 }
 0x665   : > { %v10649_v23 = vmax.f32 %v3012_v18, 0.0  ;;  %v3015_v17 = vadd.f32 %v10547_v5, %v3014_v51  ;;  %v3016_v28 = vpop.f32.mrb[35].mxu1 }
 0x666   : > { %7934 = vmatprep.mubr.bf16.mxu1 %v3162_v49 }
 0x667   : > { %v3066_v22 = vrot.slane %v10649_v23, 7  ;;  %v3114_v26 = vrot.slane %v10649_v23, 1  ;;  %v10656_v42 = vmax.f32 %v3015_v17, 0.0 }
 0x669   : > { %v3067_v4 = vrot.slane %v10656_v42, 7  ;;  %v3115_v10 = vrot.slane %v10656_v42, 1  ;;  %v3129_v61 = vsel %vm913_vm4, %v3113_v8, %v3114_v26  ;;  %v3081_v49 = vsel %vm864_vm0, %v3065_v57, %v3066_v22 }
 0x66a   : > { %v3019_v52 = vpop.f32.mrb[36].mxu1  ;;  %v3145_v18 = vmul.f32 %v9201_v38, %v3129_v61  ;;  %v10675_v8 = vmul.f32 %v9161_v15, %v3081_v49 }
 0x66b   : > { %v3020_v28 = vadd.f32 %v10547_v5, %v3019_v52  ;;  %v3021_v17 = vpop.f32.mrb[37].mxu1  ;;  %v3128_v1 = vsel %vm913_vm4, %v3114_v26, %v3115_v10  ;;  %v10672_v47 = vsel %vm864_vm0, %v3066_v22, %v3067_v4 }
 0x66c   : > { %v3022_v51 = vpop.f32.mrb[38].mxu1  ;;  %v3165_v62 = vpack.c.bf16 %v3145_v18, %v3130_v12 }
 0x66d   : > { %v10677_v31 = vmax.f32 %v3020_v28, 0.0  ;;  %v3023_v61 = vadd.f32 %v10547_v5, %v3022_v51  ;;  %v3024_v57 = vpop.f32.mrb[39].mxu1 }
 0x66e   : > { %7935 = vmatmul.mubr.bf16.gmra.mrb[52].mxu1 %v3165_v62 }
 0x66f   : > { %v3068_v26 = vrot.slane %v10677_v31, 7  ;;  %v3116_v17 = vrot.slane %v10677_v31, 1  ;;  %v10684_v22 = vmax.f32 %v3023_v61, 0.0 }
 0x671   : > { %v3069_v49 = vrot.slane %v10684_v22, 7  ;;  %v3117_v15 = vrot.slane %v10684_v22, 1  ;;  %v3127_v12 = vsel %vm913_vm4, %v3115_v10, %v3116_v17  ;;  %v3079_v62 = vsel %vm864_vm0, %v3067_v4, %v3068_v26 }
 0x672   : > { %v3027_v18 = vpop.f32.mrb[40].mxu1  ;;  %v3147_v28 = vmul.f32 %v9244_v11, %v3127_v12  ;;  %v3100_v10 = vmul.f32 %v9208_v43, %v3079_v62 }
 0x673   : > { %v3028_v57 = vadd.f32 %v10547_v5, %v3027_v18  ;;  %v3029_v61 = vpop.f32.mrb[41].mxu1  ;;  %v3126_v52 = vsel %vm913_vm4, %v3116_v17, %v3117_v15  ;;  %v10700_v38 = vsel %vm864_vm0, %v3068_v26, %v3069_v49 }
 0x674   : > { %v3030_v40 = vpop.f32.mrb[42].mxu1  ;;  %v3168_v51 = vpack.c.bf16 %v3147_v28, %v3128_v1  ;;  %v3169_v4 = vpack.c.bf16 %v10700_v38, %v3100_v10 }
 0x675   : > { %v3054_v25 = vmax.f32 %v3028_v57, 0.0  ;;  %v3031_v12 = vadd.f32 %v10547_v5, %v3030_v40  ;;  %v3032_v11 = vpop.f32.mrb[43].mxu1 }
 0x676   : > { %7938 = vmatprep.mubr.bf16.mxu1 %v3168_v51 }
 0x677   : > { %v3070_v18 = vrot.slane %v3054_v25, 7  ;;  %v3118_v61 = vrot.slane %v3054_v25, 1  ;;  %v3055_v55 = vmax.f32 %v3031_v12, 0.0 }
 0x679   : > { %v3071_v33 = vrot.slane %v3055_v55, 7  ;;  %v3119_v17 = vrot.slane %v3055_v55, 1  ;;  %v3125_v26 = vsel %vm913_vm4, %v3117_v15, %v3118_v61  ;;  %v3173_v44 = vpack.c.bf16 %v3055_v55, %v3054_v25 }
 0x67a   : > { %v3035_v29 = vpop.f32.mrb[44].mxu1  ;;  %v3149_v62 = vmul.f32 %v9263_v36, %v3125_v26  ;;  %v3077_v1 = vsel %vm864_vm0, %v3069_v49, %v3070_v18 }
 0x67b   : > { %v3036_v11 = vadd.f32 %v10547_v5, %v3035_v29  ;;  %v3037_v40 = vpop.f32.mrb[45].mxu1  ;;  %v3124_v38 = vsel %vm913_vm4, %v3118_v61, %v3119_v17  ;;  %v3076_v51 = vsel %vm864_vm0, %v3070_v18, %v3071_v33  ;;  %v3102_v28 = vmul.f32 %v9234_v6, %v3077_v1 }
 0x67c   : > { %v3038_v57 = vpop.f32.mrb[46].mxu1  ;;  %v3171_v15 = vpack.c.bf16 %v3149_v62, %v3126_v52  ;;  %v12987_v62 = vrot.slane %v10550_v21, 7 }
 0x67d   : > { %v3056_v25 = vmax.f32 %v3036_v11, 0.0  ;;  %v3039_v55 = vadd.f32 %v10547_v5, %v3038_v57  ;;  %v3040_v10 = vpop.f32.mrb[47].mxu1  ;;  %v3172_v12 = vpack.c.bf16 %v3076_v51, %v3102_v28  ;;  %v12988_v11 = vrot.slane %v10550_v21, 1 }
 0x67e   : > { %7939 = vmatmul.mubr.bf16.gmra.mrb[56].mxu1 %v3171_v15  ;;  %v12990_v21 = vpack.c.bf16 %v10588_v60, %v10591_v14 }
 0x67f   : > { %v3072_v49 = vrot.slane %v3056_v25, 7  ;;  %v3120_v26 = vrot.slane %v3056_v25, 1  ;;  %v3057_v29 = vmax.f32 %v3039_v55, 0.0 }
 0x681   : > { %v3073_v40 = vrot.slane %v3057_v29, 7  ;;  %v3121_v43 = vrot.slane %v3057_v29, 1  ;;  %v3123_v61 = vsel %vm913_vm4, %v3119_v17, %v3120_v26  ;;  %v3176_v36 = vpack.c.bf16 %v3057_v29, %v3056_v25 }
 0x682   : > { %v3151_v18 = vmul.f32 %v9240_v9, %v3123_v61  ;;  %v3075_v52 = vsel %vm864_vm0, %v3071_v33, %v3072_v49 }
 0x683   : > { %v3089_v5 = vsel %vm864_vm0, %v3073_v40, %v12987_v62  ;;  %v3122_v1 = vsel %vm913_vm4, %v3120_v26, %v3121_v43  ;;  %v3137_v51 = vsel %vm913_vm4, %v3121_v43, %v12988_v11  ;;  %v3074_v17 = vsel %vm864_vm0, %v3072_v49, %v3073_v40  ;;  %v8850_v62 = vld [vmem:[%s12811_s7 + $0x40] sm:$0xff]  }
 0x684   : > { %v3090_v28 = vmul.f32 %v9089_v37, %v3089_v5  ;;  %v3174_v57 = vpack.c.bf16 %v3151_v18, %v3124_v38  ;;  %v3153_v33 = vmul.f32 %v9260_v32, %v3137_v51  ;;  %v3104_v15 = vmul.f32 %v9237_v7, %v3075_v52  ;;  %v8851_v5 = vld [vmem:[%s12811_s7] sm:$0xff]   ;;  %7697 = vmatprep.subr.bf16.mxu0 %v8850_v62  ;;  %v8856_v62 = vld [vmem:[%s12811_s7 + $0x58] sm:$0xff]  }
 0x685   : > { %v12989_v43 = vpack.c.bf16 %v10572_v34, %v10567_v59  ;;  %v12991_v38 = vpack.c.bf16 %v10600_v30, %v10593_v63  ;;  %v12992_v49 = vpack.c.bf16 %v10616_v39, %v10619_v13  ;;  %v12994_v59 = vpack.c.bf16 %v10644_v50, %v10647_v20 }
 0x686   : > { %7942 = vmatprep.mubr.bf16.mxu1 %v3174_v57  ;;  %v3154_v25 = vpack.c.bf16 %v10560_v35, %v3090_v28  ;;  %v3177_v55 = vpack.c.bf16 %v3153_v33, %v3122_v1  ;;  %v3175_v10 = vpack.c.bf16 %v3074_v17, %v3104_v15  ;;  %v12993_v35 = vpack.c.bf16 %v10628_v16, %v10621_v56  ;;  %v8852_v57 = vld [vmem:[%s12811_s7 + $0x48] sm:$0xff]  }
 0x687   : > { %v12995_v34 = vpack.c.bf16 %v10656_v42, %v10649_v23  ;;  %v12996_v63 = vpack.c.bf16 %v10672_v47, %v10675_v8  ;;  %v12997_v13 = vpack.c.bf16 %v10684_v22, %v10677_v31  ;;  %v10782_v8 = vld [vmem:[%s12819_s15 + $0x5] ss:$0 sm:$0xff]  ;;  %v8853_v33 = vld [vmem:[%s12811_s7 + $0x8] sm:$0xff]  }
 0x688   : > { %3408 = vmatmul.mubr.bf16.vlgmr.msra.gmra.mrb[32].mxu0 %v3154_v25  ;;  %7943 = vmatmul.mubr.bf16.gmra.mrb[60].mxu1 %v3177_v55 }
 0x689   : > { %3415 = vmatprep.mubr.bf16.mxu0 %v12989_v43  ;;  %7698 = vmatpush3.bf16.msra.mxu0 %v8851_v5  ;;  %v8857_v5 = vld [vmem:[%s12811_s7 + $0x18] sm:$0xff]  }
 0x68a   : > { %7699 = vmatprep.subr.bf16.mxu0 %v8852_v57 }
 0x68d   : > { %7700 = vmatpush3.bf16.msra.mxu0 %v8853_v33 }
 0x690   : > { %3416 = vmatmul.mubr.bf16.gmra.mrb[36].mxu0 %v12990_v21 }
 0x691   : > { %3423 = vmatprep.mubr.bf16.mxu0 %v12991_v38 }
 0x698   : > { %3424 = vmatmul.mubr.bf16.gmra.mrb[40].mxu0 %v12992_v49 }
 0x699   : > { %3431 = vmatprep.mubr.bf16.mxu0 %v12993_v35 }
 0x6a0   : > { %3432 = vmatmul.mubr.bf16.gmra.mrb[44].mxu0 %v12994_v59 }
 0x6a1   : > { %3439 = vmatprep.mubr.bf16.mxu0 %v12995_v34 }
 0x6a8   : > { %3440 = vmatmul.mubr.bf16.gmra.mrb[48].mxu0 %v12996_v63  ;;  %v8854_v63 = vld [vmem:[%s12811_s7 + $0x50] sm:$0xff]  }
 0x6a9   : > { %3447 = vmatprep.mubr.bf16.mxu0 %v12997_v13  ;;  %v8855_v13 = vld [vmem:[%s12811_s7 + $0x10] sm:$0xff]   ;;  %7701 = vmatprep.subr.bf16.mxu0 %v8854_v63 }
 0x6aa   : > { %7702 = vmatpush3.bf16.msra.mxu0 %v8855_v13 }
 0x6ab   : > { %7703 = vmatprep.subr.bf16.mxu0 %v8856_v62 }
 0x6ae   : > { %7704 = vmatpush3.bf16.msra.mxu0 %v8857_v5 }
 0x6b0   : > { %3448 = vmatmul.mubr.bf16.gmra.mrb[52].mxu0 %v3169_v4 }
 0x6b1   : > { %3455 = vmatprep.mubr.bf16.mxu0 %v3173_v44 }
 0x6b8   : > { %3456 = vmatmul.mubr.bf16.gmra.mrb[56].mxu0 %v3172_v12 }
 0x6b9   : > { %3463 = vmatprep.mubr.bf16.mxu0 %v3176_v36 }
 0x6c0   : > { %3464 = vmatmul.mubr.bf16.gmra.mrb[60].mxu0 %v3175_v10 }
 0x731   : > { %v7932_v60 = vpop.f32.mrb[48].mxu1 }
 0x732   : > { %v3506_v50 = vpop.f32.mrb[49].mxu1 }
 0x733   : > { %v7933_v14 = vpop.f32.mrb[50].mxu1 }
 0x734   : > { %v3509_v30 = vpop.f32.mrb[51].mxu1 }
 0x741   : > { %v10765_v39 = vpop.f32.mrb[52].mxu1 }
 0x742   : > { %v3522_v23 = vpop.f32.mrb[53].mxu1 }
 0x743   : > { %v10767_v56 = vpop.f32.mrb[54].mxu1 }
 0x744   : > { %v3525_v47 = vpop.f32.mrb[55].mxu1 }
 0x751   : > { %v10769_v16 = vpop.f32.mrb[56].mxu1 }
 0x752   : > { %v10771_v20 = vpop.f32.mrb[57].mxu1 }
 0x753   : > { %v10773_v31 = vpop.f32.mrb[58].mxu1 }
 0x754   : > { %v10775_v44 = vpop.f32.mrb[59].mxu1 }
 0x75b   : > { %v7633_v36 = vpop.f32.mrb[32].mxu0  ;;  %v10777_v42 = vpop.f32.mrb[60].mxu1 }
 0x75c   : > { %v7634_v22 = vpop.f32.mrb[33].mxu0  ;;  %v10784_v4 = vpop.f32.mrb[61].mxu1 }
 0x75d   : > { %v7635_v12 = vadd.f32 %v7634_v22, %v7633_v36  ;;  %v7636_v26 = vpop.f32.mrb[34].mxu0  ;;  %v10786_v29 = vpop.f32.mrb[62].mxu1 }
 0x75e   : > { %v7637_v40 = vpop.f32.mrb[35].mxu0  ;;  %v10788_v61 = vpop.f32.mrb[63].mxu1 }
 0x75f   : > { %v3410_v18 = vadd.f32 %v7635_v12, %v10782_v8  ;;  %v7638_v52 = vadd.f32 %v7637_v40, %v7636_v26 }
 0x761   : > { %v3507_v1 = vadd.f32 %v3506_v50, %v3410_v18  ;;  %v3413_v11 = vadd.f32 %v7638_v52, %v10782_v8 }
 0x763   : > { %v3569_v51 = vmax.f32 %v3507_v1, 0.0  ;;  %v3510_v17 = vadd.f32 %v3509_v30, %v3413_v11  ;;  %v7639_v28 = vpop.f32.mrb[36].mxu0 }
 0x764   : > { %v7640_v15 = vpop.f32.mrb[37].mxu0 }
 0x765   : > { %v7641_v25 = vadd.f32 %v7640_v15, %v7639_v28  ;;  %v7642_v55 = vpop.f32.mrb[38].mxu0  ;;  %3601 = vrot.lane.b32.xlu0 %v3569_v51, %s8929_s29  ;;  %v3570_v43 = vmax.f32 %v3510_v17, 0.0 }
 0x766   : > { %v7643_v10 = vpop.f32.mrb[39].mxu0 }
 0x767   : > { %v3418_v21 = vadd.f32 %v7641_v25, %v10782_v8  ;;  %v7644_v38 = vadd.f32 %v7643_v10, %v7642_v55  ;;  %v8858_v55 = vld [vmem:[%s12811_s7 + $0x60] sm:$0xff]  }
 0x768   : > { %v8859_v10 = vld [vmem:[%s12811_s7 + $0x20] sm:$0xff]   ;;  %7705 = vmatprep.subr.bf16.mxu0 %v8858_v55 }
 0x769   : > { %v10806_v49 = vadd.f32 %v7932_v60, %v3418_v21  ;;  %v3421_v35 = vadd.f32 %v7644_v38, %v10782_v8  ;;  %3603 = vrot.lane.b32.xlu0 %v3570_v43, %s8929_s29  ;;  %v8860_v43 = vld [vmem:[%s12811_s7 + $0x80] sm:$0xff]   ;;  %7706 = vmatpush3.bf16.msra.mxu0 %v8859_v10 }
 0x76a   : > { %7946 = vmatprep.subr.bf16.mxu1 %v8860_v43 }
 0x76b   : > { %v3518_v59 = vadd.f32 %v7933_v14, %v3421_v35  ;;  %v7645_v34 = vpop.f32.mrb[40].mxu0  ;;  %7947 = vmatpush3.bf16.msra.mxu1 %v8860_v43 }
 0x76c   : > { %v7646_v50 = vpop.f32.mrb[41].mxu0 }
 0x76d   : > { %v3572_v30 = vmax.f32 %v3518_v59, 0.0  ;;  %v7647_v36 = vadd.f32 %v7646_v50, %v7645_v34  ;;  %v7648_v22 = vpop.f32.mrb[42].mxu0 }
 0x76e   : > { %v7649_v60 = vpop.f32.mrb[43].mxu0 }
 0x76f   : > { %v3426_v12 = vadd.f32 %v7647_v36, %v10782_v8  ;;  %v7650_v26 = vadd.f32 %v7649_v60, %v7648_v22  ;;  %3607 = vrot.lane.b32.xlu0 %v3572_v30, %s8929_s29  ;;  %v8861_v36 = vld [vmem:[%s12811_s7 + $0x68] sm:$0xff]  }
 0x770   : > { %v8862_v22 = vld [vmem:[%s12811_s7 + $0x88] sm:$0xff]   ;;  %7707 = vmatprep.subr.bf16.mxu0 %v8861_v36 }
 0x771   : > { %v10818_v14 = vadd.f32 %v3522_v23, %v3426_v12  ;;  %v3429_v40 = vadd.f32 %v7650_v26, %v10782_v8  ;;  %v8863_v60 = vld [vmem:[%s12811_s7 + $0x28] sm:$0xff]   ;;  %7948 = vmatprep.subr.bf16.mxu1 %v8862_v22 }
 0x772   : > { %7708 = vmatpush3.bf16.msra.mxu0 %v8863_v60  ;;  %7949 = vmatpush3.bf16.msra.mxu1 %v8862_v22  ;;  %v8870_v36 = vld [vmem:[%s12811_s7 + $0xa8] sm:$0xff]   ;;  %v8871_v60 = vld [vmem:[%s12811_s7 + $0x38] sm:$0xff]  }
 0x773   : > { %v3526_v18 = vadd.f32 %v3525_v47, %v3429_v40  ;;  %v7651_v52 = vpop.f32.mrb[44].mxu0 }
 0x774   : > { %v7652_v1 = vpop.f32.mrb[45].mxu0 }
 0x775   : > { %v3574_v11 = vmax.f32 %v3526_v18, 0.0  ;;  %v7653_v51 = vadd.f32 %v7652_v1, %v7651_v52  ;;  %v7654_v17 = vpop.f32.mrb[46].mxu0 }
 0x776   : > { %v7655_v28 = vpop.f32.mrb[47].mxu0 }
 0x777   : > { %v3434_v23 = vadd.f32 %v7653_v51, %v10782_v8  ;;  %v7656_v57 = vadd.f32 %v7655_v28, %v7654_v17  ;;  %3611 = vrot.lane.b32.xlu0 %v3574_v11, %s8929_s29  ;;  %v8865_v17 = vld [vmem:[%s12811_s7 + $0x70] sm:$0xff]   ;;  %v8866_v28 = vld [vmem:[%s12811_s7 + $0x98] sm:$0xff]  }
 0x778   : > { %7709 = vmatprep.subr.bf16.mxu0 %v8865_v17 }
 0x779   : > { %v10830_v47 = vadd.f32 %v10765_v39, %v3434_v23  ;;  %v3437_v33 = vadd.f32 %v7656_v57, %v10782_v8  ;;  %v8867_v23 = vld [vmem:[%s12811_s7 + $0x30] sm:$0xff]   ;;  %v8868_v57 = vld [vmem:[%s12811_s7 + $0xa0] sm:$0xff]  }
 0x77a   : > { %7710 = vmatpush3.bf16.msra.mxu0 %v8867_v23 }
 0x77b   : > { %v3534_v15 = vadd.f32 %v10767_v56, %v3437_v33  ;;  %v7657_v25 = vpop.f32.mrb[48].mxu0 }
 0x77c   : > { %v7658_v21 = vpop.f32.mrb[49].mxu0 }
 0x77d   : > { %v3576_v39 = vmax.f32 %v3534_v15, 0.0  ;;  %v7659_v38 = vadd.f32 %v7658_v21, %v7657_v25  ;;  %v7660_v35 = vpop.f32.mrb[50].mxu0 }
 0x77e   : > { %v7661_v56 = vpop.f32.mrb[51].mxu0 }
 0x77f   : > { %v3442_v59 = vadd.f32 %v7659_v38, %v10782_v8  ;;  %v7662_v34 = vadd.f32 %v7661_v56, %v7660_v35  ;;  %3615 = vrot.lane.b32.xlu0 %v3576_v39, %s8929_s29 }
 0x781   : > { %v10846_v63 = vadd.f32 %v10771_v20, %v3442_v59  ;;  %v3445_v13 = vadd.f32 %v7662_v34, %v10782_v8  ;;  %v8864_v20 = vld [vmem:[%s12811_s7 + $0x90] sm:$0xff]  }
 0x782   : > { %7950 = vmatprep.subr.bf16.mxu1 %v8864_v20 }
 0x783   : > { %v3542_v50 = vadd.f32 %v10775_v44, %v3445_v13  ;;  %v7663_v30 = vpop.f32.mrb[52].mxu0  ;;  %7951 = vmatpush3.bf16.msra.mxu1 %v8864_v20 }
 0x784   : > { %v7664_v12 = vpop.f32.mrb[53].mxu0  ;;  %7952 = vmatprep.subr.bf16.mxu1 %v8866_v28 }
 0x785   : > { %v3578_v26 = vmax.f32 %v3542_v50, 0.0  ;;  %v7665_v44 = vadd.f32 %v7664_v12, %v7663_v30  ;;  %v7666_v40 = vpop.f32.mrb[54].mxu0  ;;  %v8872_v12 = vld [vmem:[%s12811_s7 + $0xb0] sm:$0xff]  }
 0x786   : > { %v7667_v18 = vpop.f32.mrb[55].mxu0 }
 0x787   : > { %v3450_v52 = vadd.f32 %v7665_v44, %v10782_v8  ;;  %v7668_v62 = vadd.f32 %v7667_v18, %v7666_v40  ;;  %3619 = vrot.lane.b32.xlu0 %v3578_v26, %s8929_s29  ;;  %7953 = vmatpush3.bf16.msra.mxu1 %v8866_v28  ;;  %v3571_v26 = vmax.f32 %v10806_v49, 0.0  ;;  %v3575_v44 = vmax.f32 %v10830_v47, 0.0 }
 0x788   : > { %7954 = vmatprep.subr.bf16.mxu1 %v8868_v57  ;;  %v3577_v40 = vmax.f32 %v10846_v63, 0.0 }
 0x789   : > { %v10865_v5 = vadd.f32 %v10769_v16, %v3450_v52  ;;  %v3453_v1 = vadd.f32 %v7668_v62, %v10782_v8 }
 0x78b   : > { %v3550_v11 = vadd.f32 %v10773_v31, %v3453_v1  ;;  %v7669_v51 = vpop.f32.mrb[56].mxu0  ;;  %7955 = vmatpush3.bf16.msra.mxu1 %v8868_v57  ;;  %v3579_v49 = vmax.f32 %v10865_v5, 0.0 }
 0x78c   : > { %v7670_v16 = vpop.f32.mrb[57].mxu0  ;;  %7956 = vmatprep.subr.bf16.mxu1 %v8870_v36 }
 0x78d   : > { %v3580_v33 = vmax.f32 %v3550_v11, 0.0  ;;  %v7671_v31 = vadd.f32 %v7670_v16, %v7669_v51  ;;  %v7672_v15 = vpop.f32.mrb[58].mxu0 }
 0x78e   : > { %v7673_v25 = vpop.f32.mrb[59].mxu0 }
 0x78f   : > { %v3458_v55 = vadd.f32 %v7671_v31, %v10782_v8  ;;  %v7674_v10 = vadd.f32 %v7673_v25, %v7672_v15  ;;  %3623 = vrot.lane.b32.xlu0 %v3580_v33, %s8929_s29  ;;  %7957 = vmatpush3.bf16.msra.mxu1 %v8870_v36 }
 0x790   : > { %7958 = vmatprep.subr.bf16.mxu1 %v8872_v12 }
 0x791   : > { %v3555_v43 = vadd.f32 %v10784_v4, %v3458_v55  ;;  %v3461_v21 = vadd.f32 %v7674_v10, %v10782_v8  ;;  %v8869_v4 = vld [vmem:[%s12811_s7 + $0x78] sm:$0xff]  }
 0x792   : > { %7711 = vmatprep.subr.bf16.mxu0 %v8869_v4 }
 0x793   : > { %v3558_v39 = vadd.f32 %v10788_v61, %v3461_v21  ;;  %v7675_v38 = vpop.f32.mrb[60].mxu0  ;;  %7712 = vmatpush3.bf16.msra.mxu0 %v8871_v60  ;;  %7959 = vmatpush3.bf16.msra.mxu1 %v8872_v12  ;;  %v3581_v18 = vmax.f32 %v3555_v43, 0.0 }
 0x794   : > { %v7676_v35 = vpop.f32.mrb[61].mxu0  ;;  %4509 = vmatprep.subr.bf16.mxu0 %v12975_v53 }
 0x795   : > { %v3582_v56 = vmax.f32 %v3558_v39, 0.0  ;;  %v7677_v59 = vadd.f32 %v7676_v35, %v7675_v38  ;;  %v7678_v34 = vpop.f32.mrb[62].mxu0 }
 0x796   : > { %v7679_v13 = vpop.f32.mrb[63].mxu0 }
 0x797   : > { %v3466_v50 = vadd.f32 %v7677_v59, %v10782_v8  ;;  %v7680_v30 = vadd.f32 %v7679_v13, %v7678_v34  ;;  %3627 = vrot.lane.b32.xlu0 %v3582_v56, %s8929_s29 }
 0x799   : > { %v3563_v61 = vadd.f32 %v10777_v42, %v3466_v50  ;;  %v3469_v22 = vadd.f32 %v7680_v30, %v10782_v8  ;;  %v8873_v8 = vld [vmem:[%s12811_s7 + $0xb8] sm:$0xff]  }
 0x79a   : > { %7960 = vmatprep.subr.bf16.mxu1 %v8873_v8 }
 0x79b   : > { %v3566_v20 = vadd.f32 %v10786_v29, %v3469_v22  ;;  %7961 = vmatpush3.bf16.msra.mxu1 %v8873_v8  ;;  %v3573_v29 = vmax.f32 %v10818_v14, 0.0  ;;  %v3583_v52 = vmax.f32 %v3563_v61, 0.0 }
 0x79c   : > { %5019 = vmatprep.subr.bf16.mxu1 %v12975_v53 }
 0x79d   : > { %v3584_v42 = vmax.f32 %v3566_v20, 0.0 }
 0x79f   : > { %3631 = vrot.lane.b32.xlu1 %v3584_v42, %s8929_s29 }
 0x7a3   : > { %3605 = vrot.lane.b32.xlu1 %v3571_v26, %s8929_s29  ;;  %v12998_v26 = vld [vmem:[#allocation58_spill] sm:$0xff] }
 0x7a7   : > { %3609 = vrot.lane.b32.xlu1 %v3573_v29, %s8929_s29 }
 0x7ab   : > { %3613 = vrot.lane.b32.xlu1 %v3575_v44, %s8929_s29 }
 0x7af   : > { %3617 = vrot.lane.b32.xlu1 %v3577_v40, %s8929_s29 }
 0x7b3   : > { %3621 = vrot.lane.b32.xlu1 %v3579_v49, %s8929_s29 }
 0x7b7   : > { %3625 = vrot.lane.b32.xlu1 %v3581_v18, %s8929_s29 }
 0x7bb   : > { %3629 = vrot.lane.b32.xlu1 %v3583_v52, %s8929_s29 }
 0x7d7   : > { %v3602_v14 = vpop.permute.xlu0 %3601 }
 0x7d8   : > { %v10923_v47 = vsel %vm2412_vm10, %v10260_v58, %v3602_v14 }
 0x7d9   : > { %v3665_v51 = vrot.slane %v10923_v47, 7  ;;  %v3713_v43 = vrot.slane %v10923_v47, 1 }
 0x7db   : > { %v3604_v62 = vpop.permute.xlu0 %3603 }
 0x7dc   : > { %v3650_v63 = vsel %vm2412_vm10, %v10262_v0, %v3604_v62  ;;  %v12999_v62 = vld [vmem:[#allocation61_spill] sm:$0xff] }
 0x7dd   : > { %v3762_v1 = vpack.c.bf16 %v3650_v63, %v10923_v47  ;;  %v3666_v17 = vrot.slane %v3650_v63, 7  ;;  %v3714_v33 = vrot.slane %v3650_v63, 1 }
 0x7df   : > { %4014 = vmatprep.mubr.bf16.mxu0 %v3762_v1  ;;  %v3743_v34 = vsel %vm913_vm4, %v3713_v43, %v3714_v33  ;;  %v13000_v1 = vld [vmem:[#allocation5_spill] sm:$0xff] }
 0x7e1   : > { %v3608_v23 = vpop.permute.xlu0 %3607 }
 0x7e2   : > { %v3652_v25 = vsel %vm2412_vm10, %v10258_v3, %v3608_v23 }
 0x7e3   : > { %v3716_v59 = vrot.slane %v3652_v25, 1  ;;  %v3668_v36 = vrot.slane %v3652_v25, 7 }
 0x7e9   : > { %v3612_v55 = vpop.permute.xlu0 %3611 }
 0x7ea   : > { %v3654_v13 = vsel %vm2412_vm10, %v10293_v41, %v3612_v55 }
 0x7eb   : > { %v3718_v20 = vrot.slane %v3654_v13, 1 }
 0x7f1   : > { %v3616_v50 = vpop.permute.xlu0 %3615 }
 0x7f2   : > { %v10974_v29 = vsel %vm2412_vm10, %v12998_v26, %v3616_v50 }
 0x7f9   : > { %v3620_v44 = vpop.permute.xlu0 %3619 }
 0x811   : > { %v3632_v5 = vpop.permute.xlu1 %3631 }
 0x812   : > { %v10930_v11 = vsel %vm2412_vm10, %v10325_v46, %v3632_v5  ;;  %v3695_v46 = vsel %vm864_vm0, %v3665_v51, %v3666_v17 }
 0x813   : > { %v3680_v28 = vrot.slane %v10930_v11, 7 }
 0x815   : > { %v3696_v58 = vsel %vm864_vm0, %v3680_v28, %v3665_v51  ;;  %v3606_v0 = vpop.permute.xlu1 %3605  ;;  %v3720_v51 = vrot.slane %v10974_v29, 1 }
 0x816   : > { %v3697_v16 = vmul.f32 %v9089_v37, %v3696_v58  ;;  %v3651_v57 = vsel %vm2412_vm10, %v10255_v19, %v3606_v0  ;;  %v13001_v58 = vld [vmem:[#allocation62_spill] sm:$0xff] }
 0x817   : > { %v3667_v31 = vrot.slane %v3651_v57, 7  ;;  %v3715_v15 = vrot.slane %v3651_v57, 1  ;;  %v3765_v39 = vpack.c.bf16 %v3652_v25, %v3651_v57  ;;  %v10991_v0 = vsel %vm2412_vm10, %v13001_v58, %v3620_v44  ;;  %v13011_v58 = vld [vmem:[#allocation9_spill] sm:$0xff] }
 0x818   : > { %v3761_v10 = vpack.c.bf16 %v3695_v46, %v3697_v16  ;;  %v3624_v16 = vpop.permute.xlu0 %3623  ;;  %v13002_v46 = vld [vmem:[#allocation2_spill] sm:$0xff] }
 0x819   : > { %v3610_v21 = vpop.permute.xlu1 %3609  ;;  %v3742_v38 = vsel %vm913_vm4, %v3714_v33, %v3715_v15  ;;  %v3694_v19 = vsel %vm864_vm0, %v3666_v17, %v3667_v31  ;;  %v3741_v41 = vsel %vm913_vm4, %v3715_v15, %v3716_v59  ;;  %v3693_v8 = vsel %vm864_vm0, %v3667_v31, %v3668_v36 }
 0x81a   : > { %v3653_v35 = vsel %vm2412_vm10, %v10291_v48, %v3610_v21  ;;  %4015 = vmatmul.mubr.bf16.vlgmr.msra.gmra.mrb[64].mxu0 %v3761_v10  ;;  %v3746_v56 = vmul.f32 %v9104_v45, %v3742_v38  ;;  %v3699_v4 = vmul.f32 %v9078_v27, %v3694_v19  ;;  %v3670_v31 = vrot.slane %v3654_v13, 7  ;;  %v13003_v10 = vld [vmem:[#allocation59_spill] sm:$0xff] }
 0x81b   : > { %v3717_v3 = vrot.slane %v3653_v35, 1  ;;  %4022 = vmatprep.mubr.bf16.mxu0 %v3765_v39  ;;  %v3669_v48 = vrot.slane %v3653_v35, 7  ;;  %v13004_v39 = vld [vmem:[#allocation6_spill] sm:$0xff]  ;;  %v3722_v19 = vrot.slane %v10991_v0, 1 }
 0x81c   : > { %v3763_v30 = vpack.c.bf16 %v3746_v56, %v3743_v34  ;;  %v3764_v49 = vpack.c.bf16 %v3693_v8, %v3699_v4  ;;  %v13008_v8 = vld [vmem:[#allocation65_spill] sm:$0xff] }
 0x81d   : > { %v3740_v61 = vsel %vm913_vm4, %v3716_v59, %v3717_v3  ;;  %v3614_v22 = vpop.permute.xlu1 %3613  ;;  %v3692_v14 = vsel %vm864_vm0, %v3668_v36, %v3669_v48  ;;  %v3739_v23 = vsel %vm913_vm4, %v3717_v3, %v3718_v20  ;;  %v3691_v56 = vsel %vm864_vm0, %v3669_v48, %v3670_v31  ;;  %v13005_v3 = vld [vmem:[#allocation60_spill] sm:$0xff] }
 0x81e   : > { %v3748_v60 = vmul.f32 %v9124_v54, %v3740_v61  ;;  %v10965_v12 = vsel %vm2412_vm10, %v10287_v24, %v3614_v22  ;;  %7962 = vmatprep.mubr.bf16.mxu1 %v3763_v30  ;;  %v3768_v24 = vpack.c.bf16 %v3654_v13, %v3653_v35  ;;  %v3701_v33 = vmul.f32 %v13002_v46, %v3692_v14  ;;  %v3628_v13 = vpop.permute.xlu0 %3627  ;;  %v13006_v22 = vld [vmem:[#allocation64_spill] sm:$0xff] }
 0x81f   : > { %v3719_v42 = vrot.slane %v10965_v12, 1  ;;  %v3671_v15 = vrot.slane %v10965_v12, 7  ;;  %v11010_v34 = vsel %vm2412_vm10, %v13005_v3, %v3624_v16  ;;  %v3771_v36 = vpack.c.bf16 %v10974_v29, %v10965_v12 }
 0x820   : > { %v3766_v40 = vpack.c.bf16 %v3748_v60, %v3741_v41  ;;  %v3767_v50 = vpack.c.bf16 %v3691_v56, %v3701_v33  ;;  %v3662_v26 = vsel %vm2412_vm10, %v13008_v8, %v3628_v13  ;;  %v13012_v56 = vld [vmem:[#allocation4_spill] sm:$0xff]  ;;  %v3674_v3 = vrot.slane %v10991_v0, 7 }
 0x821   : > { %v3618_v18 = vpop.permute.xlu1 %3617  ;;  %v3738_v52 = vsel %vm913_vm4, %v3718_v20, %v3719_v42  ;;  %v3737_v59 = vsel %vm913_vm4, %v3719_v42, %v3720_v51  ;;  %v3690_v48 = vsel %vm864_vm0, %v3670_v31, %v3671_v15  ;;  %v13007_v20 = vld [vmem:[#allocation8_spill] sm:$0xff]  ;;  %v3724_v42 = vrot.slane %v11010_v34, 1 }
 0x822   : > { %v10982_v63 = vsel %vm2412_vm10, %v12999_v62, %v3618_v18  ;;  %4023 = vmatmul.mubr.bf16.gmra.mrb[68].mxu0 %v3764_v49  ;;  %7963 = vmatmul.mubr.bf16.vlgmr.msra.gmra.mrb[64].mxu1 %v3766_v40  ;;  %v3750_v5 = vmul.f32 %v13000_v1, %v3738_v52  ;;  %v13009_v49 = vld [vmem:[#allocation3_spill] sm:$0xff] }
 0x823   : > { %v3721_v17 = vrot.slane %v10982_v63, 1  ;;  %4030 = vmatprep.mubr.bf16.mxu0 %v3768_v24  ;;  %v3703_v18 = vmul.f32 %v13009_v49, %v3690_v48  ;;  %v3672_v24 = vrot.slane %v10974_v29, 7  ;;  %v3673_v52 = vrot.slane %v10982_v63, 7 }
 0x824   : > { %v3769_v57 = vpack.c.bf16 %v3750_v5, %v3739_v23  ;;  %v3726_v5 = vrot.slane %v3662_v26, 1 }
 0x825   : > { %v3622_v25 = vpop.permute.xlu1 %3621  ;;  %v3736_v55 = vsel %vm913_vm4, %v3720_v51, %v3721_v17  ;;  %v3735_v44 = vsel %vm913_vm4, %v3721_v17, %v3722_v19  ;;  %v13010_v51 = vld [vmem:[#allocation63_spill] sm:$0xff]  ;;  %v3728_v17 = vrot.slane %v10930_v11, 1  ;;  %v3689_v33 = vsel %vm864_vm0, %v3671_v15, %v3672_v24 }
 0x826   : > { %v10999_v21 = vsel %vm2412_vm10, %v13003_v10, %v3622_v25  ;;  %7966 = vmatprep.mubr.bf16.mxu1 %v3769_v57  ;;  %v3752_v38 = vmul.f32 %v13004_v39, %v3736_v55  ;;  %v3770_v31 = vpack.c.bf16 %v3689_v33, %v3703_v18  ;;  %v3774_v55 = vpack.c.bf16 %v10991_v0, %v10982_v63  ;;  %v13013_v0 = vld [vmem:[#allocation7_spill] sm:$0xff]  ;;  %v8882_v33 = vld [vmem:[%s12812_s8 + $0x40] sm:$0xff]  }
 0x827   : > { %v3723_v35 = vrot.slane %v10999_v21, 1  ;;  %v3675_v13 = vrot.slane %v10999_v21, 7 }
 0x828   : > { %v3772_v30 = vpack.c.bf16 %v3752_v38, %v3737_v59  ;;  %v3688_v38 = vsel %vm864_vm0, %v3672_v24, %v3673_v52 }
 0x829   : > { %v3626_v4 = vpop.permute.xlu1 %3625  ;;  %v3734_v61 = vsel %vm913_vm4, %v3722_v19, %v3723_v35  ;;  %v3733_v29 = vsel %vm913_vm4, %v3723_v35, %v3724_v42  ;;  %v3744_v35 = vsel %vm913_vm4, %v3728_v17, %v3713_v43  ;;  %v3705_v59 = vmul.f32 %v13012_v56, %v3688_v38 }
 0x82a   : > { %v11020_v60 = vsel %vm2412_vm10, %v13006_v22, %v3626_v4  ;;  %4031 = vmatmul.mubr.bf16.gmra.mrb[72].mxu0 %v3767_v50  ;;  %7967 = vmatmul.mubr.bf16.gmra.mrb[68].mxu1 %v3772_v30  ;;  %v3754_v41 = vmul.f32 %v13007_v20, %v3734_v61  ;;  %v3760_v30 = vmul.f32 %v9260_v32, %v3744_v35  ;;  %v3676_v22 = vrot.slane %v11010_v34, 7  ;;  %v11133_v35 = vld [vmem:[%s12819_s15 + $0x6] ss:$0 sm:$0xff] }
 0x82b   : > { %v3725_v12 = vrot.slane %v11020_v60, 1  ;;  %4038 = vmatprep.mubr.bf16.mxu0 %v3771_v36  ;;  %v3687_v4 = vsel %vm864_vm0, %v3673_v52, %v3674_v3  ;;  %v3777_v43 = vpack.c.bf16 %v11010_v34, %v10999_v21  ;;  %v3686_v61 = vsel %vm864_vm0, %v3674_v3, %v3675_v13 }
 0x82c   : > { %v3775_v40 = vpack.c.bf16 %v3754_v41, %v3735_v44  ;;  %v3773_v47 = vpack.c.bf16 %v3687_v4, %v3705_v59  ;;  %v3707_v48 = vmul.f32 %v13013_v0, %v3686_v61  ;;  %v3677_v41 = vrot.slane %v11020_v60, 7 }
 0x82d   : > { %v3630_v14 = vpop.permute.xlu1 %3629  ;;  %v3732_v62 = vsel %vm913_vm4, %v3724_v42, %v3725_v12  ;;  %v3731_v15 = vsel %vm913_vm4, %v3725_v12, %v3726_v5  ;;  %v3685_v42 = vsel %vm864_vm0, %v3675_v13, %v3676_v22  ;;  %v3780_v12 = vpack.c.bf16 %v3662_v26, %v11020_v60 }
 0x82e   : > { %v3663_v23 = vsel %vm2412_vm10, %v13010_v51, %v3630_v14  ;;  %7970 = vmatprep.mubr.bf16.mxu1 %v3775_v40  ;;  %v3756_v16 = vmul.f32 %v13011_v58, %v3732_v62  ;;  %v3776_v8 = vpack.c.bf16 %v3685_v42, %v3707_v48  ;;  %v3684_v21 = vsel %vm864_vm0, %v3676_v22, %v3677_v41  ;;  %v8875_v51 = vld [vmem:[%s12812_s8 + $0x8] sm:$0xff]  }
 0x82f   : > { %v3727_v57 = vrot.slane %v3663_v23, 1  ;;  %v3709_v44 = vmul.f32 %v9234_v6, %v3684_v21  ;;  %v3678_v40 = vrot.slane %v3662_v26, 7  ;;  %v3679_v18 = vrot.slane %v3663_v23, 7 }
 0x830   : > { %v3778_v25 = vpack.c.bf16 %v3756_v16, %v3733_v29  ;;  %v3783_v52 = vpack.c.bf16 %v10930_v11, %v3663_v23  ;;  %v8876_v11 = vld [vmem:[%s12812_s8 + $0x10] sm:$0xff]   ;;  %v8878_v23 = vld [vmem:[%s12812_s8 + $0x20] sm:$0xff]   ;;  %v8879_v16 = vld [vmem:[%s12812_s8 + $0x28] sm:$0xff]  }
 0x831   : > { %v3730_v10 = vsel %vm913_vm4, %v3726_v5, %v3727_v57  ;;  %v3729_v50 = vsel %vm913_vm4, %v3727_v57, %v3728_v17  ;;  %v3683_v34 = vsel %vm864_vm0, %v3677_v41, %v3678_v40  ;;  %v3682_v14 = vsel %vm864_vm0, %v3678_v40, %v3679_v18  ;;  %v8874_v5 = vld [vmem:[%s12812_s8] sm:$0xff]   ;;  %v8880_v17 = vld [vmem:[%s12812_s8 + $0x30] sm:$0xff]   ;;  %v8881_v57 = vld [vmem:[%s12812_s8 + $0x38] sm:$0xff]  }
 0x832   : > { %4039 = vmatmul.mubr.bf16.gmra.mrb[76].mxu0 %v3770_v31  ;;  %7971 = vmatmul.mubr.bf16.gmra.mrb[72].mxu1 %v3778_v25  ;;  %v3758_v19 = vmul.f32 %v9240_v9, %v3730_v10  ;;  %v3784_v36 = vpack.c.bf16 %v3760_v30, %v3729_v50  ;;  %v3779_v24 = vpack.c.bf16 %v3683_v34, %v3709_v44  ;;  %v8883_v29 = vld [vmem:[%s12812_s8 + $0x48] sm:$0xff]   ;;  %v8884_v31 = vld [vmem:[%s12812_s8 + $0x50] sm:$0xff]   ;;  %v8885_v30 = vld [vmem:[%s12812_s8 + $0x58] sm:$0xff]  }
 0x833   : > { %4046 = vmatprep.mubr.bf16.mxu0 %v3774_v55  ;;  %v3711_v60 = vmul.f32 %v9237_v7, %v3682_v14  ;;  %v3681_v62 = vsel %vm864_vm0, %v3679_v18, %v3680_v28  ;;  %4510 = vmatpush1.bf16.msra.mxu0 %v8874_v5  ;;  %v8877_v28 = vld [vmem:[%s12812_s8 + $0x18] sm:$0xff]  }
 0x834   : > { %v3781_v63 = vpack.c.bf16 %v3758_v19, %v3731_v15  ;;  %4511 = vmatprep.subr.bf16.mxu0 %v12975_v53 }
 0x835   : > { %v3782_v26 = vpack.c.bf16 %v3681_v62, %v3711_v60 }
 0x836   : > { %7974 = vmatprep.mubr.bf16.mxu1 %v3781_v63 }
 0x837   : > { %4512 = vmatpush1.bf16.msra.mxu0 %v8875_v51 }
 0x838   : > { %4513 = vmatprep.subr.bf16.mxu0 %v12975_v53 }
 0x83a   : > { %4047 = vmatmul.mubr.bf16.gmra.mrb[80].mxu0 %v3773_v47  ;;  %7975 = vmatmul.mubr.bf16.gmra.mrb[76].mxu1 %v3784_v36 }
 0x83b   : > { %4054 = vmatprep.mubr.bf16.mxu0 %v3777_v43  ;;  %4514 = vmatpush1.bf16.msra.mxu0 %v8876_v11 }
 0x83c   : > { %4515 = vmatprep.subr.bf16.mxu0 %v12975_v53 }
 0x83f   : > { %4516 = vmatpush1.bf16.msra.mxu0 %v8877_v28 }
 0x840   : > { %4517 = vmatprep.subr.bf16.mxu0 %v12975_v53 }
 0x842   : > { %4055 = vmatmul.mubr.bf16.gmra.mrb[84].mxu0 %v3776_v8 }
 0x843   : > { %4062 = vmatprep.mubr.bf16.mxu0 %v3780_v12  ;;  %4518 = vmatpush1.bf16.msra.mxu0 %v8878_v23 }
 0x844   : > { %4519 = vmatprep.subr.bf16.mxu0 %v12975_v53 }
 0x847   : > { %4520 = vmatpush1.bf16.msra.mxu0 %v8879_v16 }
 0x848   : > { %4521 = vmatprep.subr.bf16.mxu0 %v12975_v53 }
 0x84a   : > { %4063 = vmatmul.mubr.bf16.gmra.mrb[88].mxu0 %v3779_v24 }
 0x84b   : > { %4070 = vmatprep.mubr.bf16.mxu0 %v3783_v52  ;;  %4522 = vmatpush1.bf16.msra.mxu0 %v8880_v17 }
 0x84c   : > { %4523 = vmatprep.subr.bf16.mxu0 %v12975_v53 }
 0x84f   : > { %4524 = vmatpush1.bf16.msra.mxu0 %v8881_v57 }
 0x850   : > { %4525 = vmatprep.subr.bf16.mxu0 %v12975_v53 }
 0x852   : > { %4071 = vmatmul.mubr.bf16.gmra.mrb[92].mxu0 %v3782_v26 }
 0x853   : > { %4526 = vmatpush1.bf16.msra.mxu0 %v8882_v33 }
 0x854   : > { %4527 = vmatprep.subr.bf16.mxu0 %v12975_v53 }
 0x857   : > { %4528 = vmatpush1.bf16.msra.mxu0 %v8883_v29 }
 0x858   : > { %4529 = vmatprep.subr.bf16.mxu0 %v12975_v53 }
 0x85b   : > { %4530 = vmatpush1.bf16.msra.mxu0 %v8884_v31 }
 0x85c   : > { %4531 = vmatprep.subr.bf16.mxu0 %v12975_v53 }
 0x85f   : > { %4532 = vmatpush1.bf16.msra.mxu0 %v8885_v30 }
 0x8ed   : > { %v7713_v25 = vpop.f32.mrb[64].mxu0 }
 0x8ee   : > { %v7714_v55 = vpop.f32.mrb[65].mxu0 }
 0x8ef   : > { %v7715_v10 = vadd.f32 %v7714_v55, %v7713_v25  ;;  %v7716_v38 = vpop.f32.mrb[66].mxu0 }
 0x8f0   : > { %v7717_v19 = vpop.f32.mrb[67].mxu0 }
 0x8f1   : > { %v7718_v15 = vadd.f32 %v7717_v19, %v7716_v38  ;;  %v4017_v3 = vadd.f32 %v7715_v10, %v11133_v35 }
 0x8f3   : > { %v4020_v61 = vadd.f32 %v7718_v15, %v11133_v35 }
 0x8f5   : > { %v7719_v63 = vpop.f32.mrb[68].mxu0  ;;  %v7964_v59 = vpop.f32.mrb[64].mxu1 }
 0x8f6   : > { %v7720_v13 = vpop.f32.mrb[69].mxu0  ;;  %v4113_v50 = vpop.f32.mrb[65].mxu1 }
 0x8f7   : > { %v7721_v4 = vadd.f32 %v7720_v13, %v7719_v63  ;;  %v4114_v47 = vadd.f32 %v4113_v50, %v4017_v3  ;;  %v7722_v36 = vpop.f32.mrb[70].mxu0  ;;  %v7965_v43 = vpop.f32.mrb[66].mxu1 }
 0x8f8   : > { %v7723_v48 = vpop.f32.mrb[71].mxu0  ;;  %v4116_v22 = vpop.f32.mrb[67].mxu1 }
 0x8f9   : > { %v4025_v41 = vadd.f32 %v7721_v4, %v11133_v35  ;;  %v11141_v42 = vmax.f32 %v4114_v47, 0.0  ;;  %v7724_v8 = vadd.f32 %v7723_v48, %v7722_v36  ;;  %v4117_v12 = vadd.f32 %v4116_v22, %v4020_v61 }
 0x8fb   : > { %v4122_v21 = vadd.f32 %v7964_v59, %v4025_v41  ;;  %v4028_v44 = vadd.f32 %v7724_v8, %v11133_v35  ;;  %v4177_v40 = vmax.f32 %v4117_v12, 0.0  ;;  %v4192_v34 = vrot.slane %v11141_v42, 7 }
 0x8fc   : > { %v12906_v60 = vrot.slane %v11141_v42, 1 }
 0x8fd   : > { %v4178_v18 = vmax.f32 %v4122_v21, 0.0  ;;  %v4125_v24 = vadd.f32 %v7965_v43, %v4028_v44  ;;  %v7725_v52 = vpop.f32.mrb[72].mxu0  ;;  %v7968_v14 = vpop.f32.mrb[68].mxu1  ;;  %v4193_v62 = vrot.slane %v4177_v40, 7  ;;  %v4241_v26 = vrot.slane %v4177_v40, 1 }
 0x8fe   : > { %v8403_v5 = vpack.i.bf16 %v4177_v40, %v11141_v42  ;;  %v7726_v51 = vpop.f32.mrb[73].mxu0  ;;  %v4129_v11 = vpop.f32.mrb[69].mxu1 }
 0x8ff   : > { %v4194_v28 = vrot.slane %v4178_v18, 7  ;;  %v4242_v23 = vrot.slane %v4178_v18, 1  ;;  %v4179_v16 = vmax.f32 %v4125_v24, 0.0  ;;  %v7727_v17 = vadd.f32 %v7726_v51, %v7725_v52  ;;  %v7728_v57 = vpop.f32.mrb[74].mxu0  ;;  %v7969_v33 = vpop.f32.mrb[70].mxu1 }
 0x900   : > { %v11151_v29 = vsel %vm864_vm0, %v4192_v34, %v4193_v62  ;;  %8404 = vrot.lane.b32.xlu0 %v8403_v5, %s8929_s29  ;;  %v7729_v31 = vpop.f32.mrb[75].mxu0  ;;  %v4132_v25 = vpop.f32.mrb[71].mxu1  ;;  %v4270_v55 = vsel %vm913_vm4, %v12906_v60, %v4241_v26 }
 0x901   : > { %v4195_v10 = vrot.slane %v4179_v16, 7  ;;  %v4243_v38 = vrot.slane %v4179_v16, 1  ;;  %v11160_v19 = vsel %vm864_vm0, %v4193_v62, %v4194_v28  ;;  %v4269_v15 = vsel %vm913_vm4, %v4241_v26, %v4242_v23 }
 0x902   : > { %v4033_v63 = vadd.f32 %v7727_v17, %v11133_v35  ;;  %v7730_v59 = vadd.f32 %v7729_v31, %v7728_v57  ;;  %v8408_v3 = vpack.i.bf16 %v4179_v16, %v4178_v18  ;;  %v4273_v13 = vmul.f32 %v9104_v45, %v4269_v15 }
 0x903   : > { %v11168_v50 = vsel %vm913_vm4, %v4242_v23, %v4243_v38  ;;  %v11172_v30 = vsel %vm864_vm0, %v4194_v28, %v4195_v10 }
 0x904   : > { %v4130_v4 = vadd.f32 %v4129_v11, %v4033_v63  ;;  %v4036_v47 = vadd.f32 %v7730_v59, %v11133_v35  ;;  %8409 = vrot.lane.b32.xlu1 %v8408_v3, %s8929_s29  ;;  %v4369_v36 = vpack.c.bf16 %v4273_v13, %v4270_v55 }
 0x905   : > { %v7731_v43 = vpop.f32.mrb[76].mxu0  ;;  %v11176_v61 = vpop.f32.mrb[72].mxu1 }
 0x906   : > { %v4180_v48 = vmax.f32 %v4130_v4, 0.0  ;;  %v4133_v22 = vadd.f32 %v4132_v25, %v4036_v47  ;;  %v7732_v41 = vpop.f32.mrb[77].mxu0  ;;  %v4145_v8 = vpop.f32.mrb[73].mxu1  ;;  %7480 = vmatprep.mubr.msk.bf16.mxu0 %vm2412_vm10, %v4369_v36 }
 0x907   : > { %v7733_v12 = vadd.f32 %v7732_v41, %v7731_v43  ;;  %v7734_v21 = vpop.f32.mrb[78].mxu0  ;;  %v11179_v44 = vpop.f32.mrb[74].mxu1 }
 0x908   : > { %v4196_v40 = vrot.slane %v4180_v48, 7  ;;  %v4244_v18 = vrot.slane %v4180_v48, 1  ;;  %v4181_v24 = vmax.f32 %v4133_v22, 0.0  ;;  %v7735_v52 = vpop.f32.mrb[79].mxu0  ;;  %v4148_v62 = vpop.f32.mrb[75].mxu1 }
 0x909   : > { %v4041_v26 = vadd.f32 %v7733_v12, %v11133_v35  ;;  %v7736_v5 = vadd.f32 %v7735_v52, %v7734_v21 }
 0x90a   : > { %v11184_v51 = vsel %vm864_vm0, %v4195_v10, %v4196_v40  ;;  %v4267_v11 = vsel %vm913_vm4, %v4243_v38, %v4244_v18  ;;  %v4197_v28 = vrot.slane %v4181_v24, 7  ;;  %v4245_v23 = vrot.slane %v4181_v24, 1 }
 0x90b   : > { %v8413_v16 = vpack.i.bf16 %v4181_v24, %v4180_v48  ;;  %v4138_v17 = vadd.f32 %v7968_v14, %v4041_v26  ;;  %v4044_v57 = vadd.f32 %v7736_v5, %v11133_v35  ;;  %v11190_v31 = vmul.f32 %v9124_v54, %v4267_v11 }
 0x90c   : > { %v11194_v25 = vsel %vm913_vm4, %v4244_v18, %v4245_v23  ;;  %v11198_v55 = vsel %vm864_vm0, %v4196_v40, %v4197_v28 }
 0x90d   : > { %v4182_v10 = vmax.f32 %v4138_v17, 0.0  ;;  %v4141_v15 = vadd.f32 %v7969_v33, %v4044_v57  ;;  %8414 = vrot.lane.b32.xlu0 %v8413_v16, %s8929_s29  ;;  %v7737_v38 = vpop.f32.mrb[80].mxu0  ;;  %v11201_v63 = vpop.f32.mrb[76].mxu1 }
 0x90e   : > { %v7738_v59 = vpop.f32.mrb[81].mxu0  ;;  %v11205_v3 = vpop.f32.mrb[77].mxu1 }
 0x90f   : > { %v4198_v13 = vrot.slane %v4182_v10, 7  ;;  %v4246_v4 = vrot.slane %v4182_v10, 1  ;;  %v4183_v47 = vmax.f32 %v4141_v15, 0.0  ;;  %v7739_v36 = vadd.f32 %v7738_v59, %v7737_v38  ;;  %v7740_v43 = vpop.f32.mrb[82].mxu0  ;;  %v11207_v48 = vpop.f32.mrb[78].mxu1 }
 0x910   : > { %v7741_v22 = vpop.f32.mrb[83].mxu0  ;;  %v11209_v33 = vpop.f32.mrb[79].mxu1 }
 0x911   : > { %v4199_v41 = vrot.slane %v4183_v47, 7  ;;  %v4247_v12 = vrot.slane %v4183_v47, 1  ;;  %v4049_v21 = vadd.f32 %v7739_v36, %v11133_v35  ;;  %v7742_v40 = vadd.f32 %v7741_v22, %v7740_v43 }
 0x912   : > { %v8418_v18 = vpack.i.bf16 %v4183_v47, %v4182_v10  ;;  %v4265_v24 = vsel %vm913_vm4, %v4245_v23, %v4246_v4  ;;  %v11216_v52 = vsel %vm864_vm0, %v4197_v28, %v4198_v13 }
 0x913   : > { %v4146_v26 = vadd.f32 %v4145_v8, %v4049_v21  ;;  %v4052_v5 = vadd.f32 %v7742_v40, %v11133_v35  ;;  %v11220_v11 = vmul.f32 %v13000_v1, %v4265_v24  ;;  %v11224_v16 = vsel %vm913_vm4, %v4246_v4, %v4247_v12 }
 0x914   : > { %8419 = vrot.lane.b32.xlu1 %v8418_v18, %s8929_s29  ;;  %v11229_v17 = vsel %vm864_vm0, %v4198_v13, %v4199_v41 }
 0x915   : > { %v4184_v23 = vmax.f32 %v4146_v26, 0.0  ;;  %v4149_v57 = vadd.f32 %v4148_v62, %v4052_v5  ;;  %v7743_v28 = vpop.f32.mrb[84].mxu0 }
 0x916   : > { %v7744_v10 = vpop.f32.mrb[85].mxu0 }
 0x917   : > { %v4200_v15 = vrot.slane %v4184_v23, 7  ;;  %v4248_v38 = vrot.slane %v4184_v23, 1  ;;  %v4185_v59 = vmax.f32 %v4149_v57, 0.0  ;;  %v7745_v47 = vadd.f32 %v7744_v10, %v7743_v28  ;;  %v7746_v36 = vpop.f32.mrb[86].mxu0 }
 0x918   : > { %v7747_v4 = vpop.f32.mrb[87].mxu0 }
 0x919   : > { %v4201_v43 = vrot.slane %v4185_v59, 7  ;;  %v4249_v22 = vrot.slane %v4185_v59, 1  ;;  %v4057_v21 = vadd.f32 %v7745_v47, %v11133_v35  ;;  %v7748_v40 = vadd.f32 %v7747_v4, %v7746_v36 }
 0x91a   : > { %v8423_v13 = vpack.i.bf16 %v4185_v59, %v4184_v23  ;;  %v4263_v62 = vsel %vm913_vm4, %v4247_v12, %v4248_v38  ;;  %v11238_v18 = vsel %vm864_vm0, %v4199_v41, %v4200_v15 }
 0x91b   : > { %v4154_v24 = vadd.f32 %v11176_v61, %v4057_v21  ;;  %v4060_v26 = vadd.f32 %v7748_v40, %v11133_v35  ;;  %v11243_v5 = vmul.f32 %v13004_v39, %v4263_v62  ;;  %v11247_v57 = vsel %vm913_vm4, %v4248_v38, %v4249_v22 }
 0x91c   : > { %8424 = vrot.lane.b32.xlu0 %v8423_v13, %s8929_s29  ;;  %v11252_v12 = vsel %vm864_vm0, %v4200_v15, %v4201_v43 }
 0x91d   : > { %v4186_v23 = vmax.f32 %v4154_v24, 0.0  ;;  %v4157_v41 = vadd.f32 %v11179_v44, %v4060_v26  ;;  %v7749_v28 = vpop.f32.mrb[88].mxu0 }
 0x91e   : > { %v7750_v10 = vpop.f32.mrb[89].mxu0 }
 0x91f   : > { %v4202_v59 = vrot.slane %v4186_v23, 7  ;;  %v4250_v47 = vrot.slane %v4186_v23, 1  ;;  %v4187_v36 = vmax.f32 %v4157_v41, 0.0  ;;  %v7751_v4 = vadd.f32 %v7750_v10, %v7749_v28  ;;  %v7752_v38 = vpop.f32.mrb[90].mxu0 }
 0x920   : > { %v7753_v21 = vpop.f32.mrb[91].mxu0 }
 0x921   : > { %v4203_v40 = vrot.slane %v4187_v36, 7  ;;  %v4251_v13 = vrot.slane %v4187_v36, 1  ;;  %v4065_v62 = vadd.f32 %v7751_v4, %v11133_v35  ;;  %v7754_v15 = vadd.f32 %v7753_v21, %v7752_v38 }
 0x922   : > { %v8428_v8 = vpack.i.bf16 %v4187_v36, %v4186_v23  ;;  %v4261_v44 = vsel %vm913_vm4, %v4249_v22, %v4250_v47  ;;  %v11262_v24 = vsel %vm864_vm0, %v4201_v43, %v4202_v59 }
 0x923   : > { %v4162_v26 = vadd.f32 %v11205_v3, %v4065_v62  ;;  %v4068_v41 = vadd.f32 %v7754_v15, %v11133_v35  ;;  %v11267_v28 = vmul.f32 %v13007_v20, %v4261_v44  ;;  %v11271_v10 = vsel %vm913_vm4, %v4250_v47, %v4251_v13 }
 0x924   : > { %8429 = vrot.lane.b32.xlu1 %v8428_v8, %s8929_s29  ;;  %v11276_v22 = vsel %vm864_vm0, %v4202_v59, %v4203_v40 }
 0x925   : > { %v4188_v23 = vmax.f32 %v4162_v26, 0.0  ;;  %v4165_v43 = vadd.f32 %v11209_v33, %v4068_v41  ;;  %v7755_v36 = vpop.f32.mrb[92].mxu0  ;;  %v4377_v3 = vpack.c.bf16 %v11267_v28, %v11247_v57 }
 0x926   : > { %v7756_v4 = vpop.f32.mrb[93].mxu0 }
 0x927   : > { %v4204_v38 = vrot.slane %v4188_v23, 7  ;;  %v4252_v21 = vrot.slane %v4188_v23, 1  ;;  %v4189_v62 = vmax.f32 %v4165_v43, 0.0  ;;  %v7757_v15 = vadd.f32 %v7756_v4, %v7755_v36  ;;  %v7758_v47 = vpop.f32.mrb[94].mxu0 }
 0x928   : > { %v7759_v44 = vpop.f32.mrb[95].mxu0 }
 0x929   : > { %v4205_v61 = vrot.slane %v4189_v62, 7  ;;  %v4253_v8 = vrot.slane %v4189_v62, 1  ;;  %v4073_v14 = vadd.f32 %v7757_v15, %v11133_v35  ;;  %v7760_v59 = vadd.f32 %v7759_v44, %v7758_v47 }
 0x92a   : > { %v8433_v60 = vpack.i.bf16 %v4189_v62, %v4188_v23  ;;  %v4259_v33 = vsel %vm913_vm4, %v4251_v13, %v4252_v21  ;;  %v11286_v26 = vsel %vm864_vm0, %v4203_v40, %v4204_v38 }
 0x92b   : > { %v4170_v41 = vadd.f32 %v11201_v63, %v4073_v14  ;;  %v4076_v43 = vadd.f32 %v7760_v59, %v11133_v35  ;;  %v11291_v36 = vmul.f32 %v13011_v58, %v4259_v33  ;;  %v11295_v4 = vsel %vm913_vm4, %v4252_v21, %v4253_v8 }
 0x92c   : > { %8434 = vrot.lane.b32.xlu0 %v8433_v60, %s8929_s29  ;;  %v11300_v13 = vsel %vm864_vm0, %v4204_v38, %v4205_v61 }
 0x92d   : > { %v4190_v23 = vmax.f32 %v4170_v41, 0.0  ;;  %v4173_v40 = vadd.f32 %v11207_v48, %v4076_v43  ;;  %v4379_v63 = vpack.c.bf16 %v11291_v36, %v11271_v10 }
 0x92f   : > { %v4206_v35 = vrot.slane %v4190_v23, 7  ;;  %v4254_v14 = vrot.slane %v4190_v23, 1  ;;  %v4191_v62 = vmax.f32 %v4173_v40, 0.0 }
 0x931   : > { %v4207_v15 = vrot.slane %v4191_v62, 7  ;;  %v4255_v47 = vrot.slane %v4191_v62, 1  ;;  %v8438_v44 = vpack.i.bf16 %v4191_v62, %v4190_v23  ;;  %v4257_v21 = vsel %vm913_vm4, %v4253_v8, %v4254_v14 }
 0x932   : > { %v11308_v60 = vmul.f32 %v9240_v9, %v4257_v21  ;;  %v11312_v38 = vsel %vm864_vm0, %v4205_v61, %v4206_v35  ;;  %v13014_v8 = vrot.slane %v11141_v42, 1  ;;  %v4226_v21 = vmul.f32 %v9078_v27, %v11160_v19 }
 0x933   : > { %8439 = vrot.lane.b32.xlu1 %v8438_v44, %s8929_s29  ;;  %v4223_v48 = vsel %vm864_vm0, %v4207_v15, %v4192_v34  ;;  %v11321_v59 = vsel %vm913_vm4, %v4254_v14, %v4255_v47  ;;  %v11329_v61 = vsel %vm864_vm0, %v4206_v35, %v4207_v15  ;;  %v13016_v19 = vpack.c.bf16 %v11220_v11, %v11194_v25 }
 0x934   : > { %v4271_v33 = vsel %vm913_vm4, %v4255_v47, %v13014_v8  ;;  %v4381_v41 = vpack.c.bf16 %v11308_v60, %v11295_v4  ;;  %v4224_v40 = vmul.f32 %v9089_v37, %v4223_v48  ;;  %v13015_v60 = vpack.c.bf16 %v11190_v31, %v11168_v50 }
 0x935   : > { %v11334_v43 = vmul.f32 %v9260_v32, %v4271_v33 }
 0x937   : > { %v4383_v34 = vpack.c.bf16 %v11334_v43, %v11321_v59 }
 0x972   : > { %v8405_v23 = vpop.permute.xlu0 %8404 }
 0x973   : > { %v8407_v42 = vunpack.i.h.bf16 %v8405_v23  ;;  %v8406_v14 = vunpack.i.l.bf16 %v8405_v23 }
 0x975   : > { %v4353_v62 = vsel %vm2412_vm10, %v11151_v29, %v8407_v42  ;;  %v4352_v35 = vsel %vm2412_vm10, %v4224_v40, %v8406_v14  ;;  %v4228_v42 = vmul.f32 %v13002_v46, %v11184_v51  ;;  %v13017_v51 = vpack.c.bf16 %v11243_v5, %v11224_v16 }
 0x976   : > { %v4368_v15 = vpack.c.bf16 %v4353_v62, %v4352_v35  ;;  %v8410_v47 = vpop.permute.xlu1 %8409 }
 0x977   : > { %v8412_v44 = vunpack.i.h.bf16 %v8410_v47  ;;  %v8411_v4 = vunpack.i.l.bf16 %v8410_v47 }
 0x978   : > { %4542 = vmatmul.mubr.bf16.vlgmr.msra.gmra.mrb[96].mxu0 %v4368_v15  ;;  %v4230_v15 = vmul.f32 %v13009_v49, %v11216_v52 }
 0x979   : > { %7481 = vmatprep.mubr.msk.bf16.mxu0 %vm2412_vm10, %v13015_v60  ;;  %v4354_v48 = vsel %vm2412_vm10, %v4226_v21, %v8411_v4  ;;  %v4355_v29 = vsel %vm2412_vm10, %v11172_v30, %v8412_v44  ;;  %v4232_v21 = vmul.f32 %v13012_v56, %v11238_v18 }
 0x97a   : > { %v4370_v8 = vpack.c.bf16 %v4355_v29, %v4354_v48  ;;  %v4234_v29 = vmul.f32 %v13013_v0, %v11262_v24 }
 0x97f   : > { %v8415_v33 = vpop.permute.xlu0 %8414 }
 0x980   : > { %v8417_v23 = vunpack.i.h.bf16 %v8415_v33  ;;  %v8416_v40 = vunpack.i.l.bf16 %v8415_v33  ;;  %4550 = vmatmul.mubr.bf16.gmra.mrb[100].mxu0 %v4370_v8  ;;  %v4236_v33 = vmul.f32 %v9234_v6, %v11286_v26 }
 0x981   : > { %7482 = vmatprep.mubr.msk.bf16.mxu0 %vm2412_vm10, %v13016_v19 }
 0x982   : > { %v4356_v50 = vsel %vm2412_vm10, %v4228_v42, %v8416_v40  ;;  %v4357_v31 = vsel %vm2412_vm10, %v11198_v55, %v8417_v23 }
 0x983   : > { %v4372_v14 = vpack.c.bf16 %v4357_v31, %v4356_v50 }
 0x986   : > { %v8420_v30 = vpop.permute.xlu1 %8419 }
 0x987   : > { %v8422_v62 = vunpack.i.h.bf16 %v8420_v30  ;;  %v8421_v35 = vunpack.i.l.bf16 %v8420_v30 }
 0x988   : > { %4558 = vmatmul.mubr.bf16.gmra.mrb[104].mxu0 %v4372_v14 }
 0x989   : > { %7483 = vmatprep.mubr.msk.bf16.mxu0 %vm2412_vm10, %v13017_v51  ;;  %v4358_v25 = vsel %vm2412_vm10, %v4230_v15, %v8421_v35  ;;  %v4359_v11 = vsel %vm2412_vm10, %v11229_v17, %v8422_v62 }
 0x98a   : > { %v4374_v47 = vpack.c.bf16 %v4359_v11, %v4358_v25 }
 0x98e   : > { %v8425_v55 = vpop.permute.xlu0 %8424 }
 0x98f   : > { %v8427_v44 = vunpack.i.h.bf16 %v8425_v55  ;;  %v8426_v4 = vunpack.i.l.bf16 %v8425_v55 }
 0x990   : > { %4566 = vmatmul.mubr.bf16.gmra.mrb[108].mxu0 %v4374_v47 }
 0x991   : > { %7484 = vmatprep.mubr.msk.bf16.mxu0 %vm2412_vm10, %v4377_v3  ;;  %v4360_v52 = vsel %vm2412_vm10, %v4232_v21, %v8426_v4  ;;  %v4361_v16 = vsel %vm2412_vm10, %v11252_v12, %v8427_v44 }
 0x992   : > { %v4376_v5 = vpack.c.bf16 %v4361_v16, %v4360_v52 }
 0x996   : > { %v8430_v17 = vpop.permute.xlu1 %8429 }
 0x997   : > { %v8432_v60 = vunpack.i.h.bf16 %v8430_v17  ;;  %v8431_v48 = vunpack.i.l.bf16 %v8430_v17 }
 0x998   : > { %4574 = vmatmul.mubr.bf16.gmra.mrb[112].mxu0 %v4376_v5 }
 0x999   : > { %7485 = vmatprep.mubr.msk.bf16.mxu0 %vm2412_vm10, %v4379_v63  ;;  %v4362_v18 = vsel %vm2412_vm10, %v4234_v29, %v8431_v48  ;;  %v4363_v57 = vsel %vm2412_vm10, %v11276_v22, %v8432_v60  ;;  %v4238_v22 = vmul.f32 %v9237_v7, %v11312_v38 }
 0x99a   : > { %v4378_v28 = vpack.c.bf16 %v4363_v57, %v4362_v18 }
 0x99e   : > { %v8435_v12 = vpop.permute.xlu0 %8434 }
 0x99f   : > { %v8437_v3 = vunpack.i.h.bf16 %v8435_v12  ;;  %v8436_v8 = vunpack.i.l.bf16 %v8435_v12 }
 0x9a0   : > { %4582 = vmatmul.mubr.bf16.gmra.mrb[116].mxu0 %v4378_v28 }
 0x9a1   : > { %7486 = vmatprep.mubr.msk.bf16.mxu0 %vm2412_vm10, %v4381_v41  ;;  %v4364_v24 = vsel %vm2412_vm10, %v4236_v33, %v8436_v8  ;;  %v4365_v10 = vsel %vm2412_vm10, %v11300_v13, %v8437_v3  ;;  %v11405_v13 = vld [vmem:[%s12819_s15 + $0x7] ss:$0 sm:$0xff] }
 0x9a2   : > { %v4380_v36 = vpack.c.bf16 %v4365_v10, %v4364_v24 }
 0x9a5   : > { %v8440_v63 = vpop.permute.xlu1 %8439 }
 0x9a6   : > { %v8442_v23 = vunpack.i.h.bf16 %v8440_v63  ;;  %v8441_v40 = vunpack.i.l.bf16 %v8440_v63 }
 0x9a8   : > { %4590 = vmatmul.mubr.bf16.gmra.mrb[120].mxu0 %v4380_v36  ;;  %v4366_v42 = vsel %vm2412_vm10, %v4238_v22, %v8441_v40  ;;  %v4367_v26 = vsel %vm2412_vm10, %v11329_v61, %v8442_v23 }
 0x9a9   : > { %7487 = vmatprep.mubr.msk.bf16.mxu0 %vm2412_vm10, %v4383_v34  ;;  %v4382_v41 = vpack.c.bf16 %v4367_v26, %v4366_v42 }
 0x9b0   : > { %4598 = vmatmul.mubr.bf16.gmra.mrb[124].mxu0 %v4382_v41 }
 0xa4b   : > { %v4543_v19 = vpop.f32.mrb[96].mxu0 }
 0xa4c   : > { %v4544_v38 = vadd.f32 %v11405_v13, %v4543_v19  ;;  %v4545_v50 = vpop.f32.mrb[97].mxu0 }
 0xa4d   : > { %v4546_v31 = vpop.f32.mrb[98].mxu0 }
 0xa4e   : > { %v4606_v14 = vmax.f32 %v4544_v38, 0.0  ;;  %v4547_v61 = vadd.f32 %v11405_v13, %v4546_v31  ;;  %v4548_v30 = vpop.f32.mrb[99].mxu0 }
 0xa50   : > { %v4607_v62 = vmax.f32 %v4547_v61, 0.0  ;;  %4638 = vrot.lane.b32.xlu0 %v4606_v14, %s8928_s0 }
 0xa52   : > { %4640 = vrot.lane.b32.xlu1 %v4607_v62, %s8928_s0 }
 0xa53   : > { %v4551_v59 = vpop.f32.mrb[100].mxu0 }
 0xa54   : > { %v4552_v43 = vadd.f32 %v11405_v13, %v4551_v59  ;;  %v4553_v34 = vpop.f32.mrb[101].mxu0 }
 0xa55   : > { %v4554_v35 = vpop.f32.mrb[102].mxu0 }
 0xa56   : > { %v4608_v15 = vmax.f32 %v4552_v43, 0.0  ;;  %v4555_v51 = vadd.f32 %v11405_v13, %v4554_v35  ;;  %v4556_v25 = vpop.f32.mrb[103].mxu0  ;;  %v8886_v35 = vld [vmem:[%s12813_s9] sm:$0xff]  }
 0xa57   : > { %5020 = vmatpush1.bf16.msra.mxu1 %v8886_v35 }
 0xa58   : > { %v4609_v11 = vmax.f32 %v4555_v51, 0.0  ;;  %4642 = vrot.lane.b32.xlu0 %v4608_v15, %s8928_s0  ;;  %v8887_v51 = vld [vmem:[%s12813_s9 + $0x8] sm:$0xff]   ;;  %5021 = vmatprep.subr.bf16.mxu1 %v12975_v53 }
 0xa5a   : > { %4644 = vrot.lane.b32.xlu1 %v4609_v11, %s8928_s0 }
 0xa5b   : > { %v4559_v47 = vpop.f32.mrb[104].mxu0  ;;  %5022 = vmatpush1.bf16.msra.mxu1 %v8887_v51 }
 0xa5c   : > { %v4560_v55 = vadd.f32 %v11405_v13, %v4559_v47  ;;  %v4561_v44 = vpop.f32.mrb[105].mxu0  ;;  %5023 = vmatprep.subr.bf16.mxu1 %v12975_v53 }
 0xa5d   : > { %v4562_v4 = vpop.f32.mrb[106].mxu0 }
 0xa5e   : > { %v4610_v21 = vmax.f32 %v4560_v55, 0.0  ;;  %v4563_v52 = vadd.f32 %v11405_v13, %v4562_v4  ;;  %v4564_v16 = vpop.f32.mrb[107].mxu0 }
 0xa5f   : > { %v8889_v16 = vld [vmem:[%s12813_s9 + $0x18] sm:$0xff]  }
 0xa60   : > { %v4611_v5 = vmax.f32 %v4563_v52, 0.0  ;;  %4646 = vrot.lane.b32.xlu0 %v4610_v21, %s8928_s0  ;;  %v8888_v21 = vld [vmem:[%s12813_s9 + $0x10] sm:$0xff]  }
 0xa61   : > { %5024 = vmatpush1.bf16.msra.mxu1 %v8888_v21  ;;  %v13023_v21 = vld [vmem:[#allocation48_spill] sm:$0xff] }
 0xa62   : > { %4648 = vrot.lane.b32.xlu1 %v4611_v5, %s8928_s0  ;;  %5025 = vmatprep.subr.bf16.mxu1 %v12975_v53  ;;  %v8891_v5 = vld [vmem:[%s12813_s9 + $0x28] sm:$0xff]  }
 0xa63   : > { %v4567_v17 = vpop.f32.mrb[108].mxu0 }
 0xa64   : > { %v4568_v60 = vadd.f32 %v11405_v13, %v4567_v17  ;;  %v4569_v48 = vpop.f32.mrb[109].mxu0  ;;  %v8892_v17 = vld [vmem:[%s12813_s9 + $0x30] sm:$0xff]  }
 0xa65   : > { %v4570_v29 = vpop.f32.mrb[110].mxu0  ;;  %5026 = vmatpush1.bf16.msra.mxu1 %v8889_v16  ;;  %v8894_v48 = vld [vmem:[%s12813_s9 + $0x40] sm:$0xff]  }
 0xa66   : > { %v4612_v18 = vmax.f32 %v4568_v60, 0.0  ;;  %v4571_v57 = vadd.f32 %v11405_v13, %v4570_v29  ;;  %v4572_v28 = vpop.f32.mrb[111].mxu0  ;;  %5027 = vmatprep.subr.bf16.mxu1 %v12975_v53  ;;  %v8893_v60 = vld [vmem:[%s12813_s9 + $0x38] sm:$0xff]   ;;  %v8895_v29 = vld [vmem:[%s12813_s9 + $0x48] sm:$0xff]  }
 0xa68   : > { %v4613_v12 = vmax.f32 %v4571_v57, 0.0  ;;  %4650 = vrot.lane.b32.xlu0 %v4612_v18, %s8928_s0  ;;  %v8896_v18 = vld [vmem:[%s12813_s9 + $0x50] sm:$0xff]   ;;  %v8897_v57 = vld [vmem:[%s12813_s9 + $0x58] sm:$0xff]  }
 0xa6a   : > { %4652 = vrot.lane.b32.xlu1 %v4613_v12, %s8928_s0  ;;  %v13018_v12 = vld [vmem:[#allocation44_spill] sm:$0xff] }
 0xa6b   : > { %v4575_v3 = vpop.f32.mrb[112].mxu0 }
 0xa6c   : > { %v4576_v8 = vadd.f32 %v11405_v13, %v4575_v3  ;;  %v4577_v33 = vpop.f32.mrb[113].mxu0 }
 0xa6d   : > { %v4578_v24 = vpop.f32.mrb[114].mxu0  ;;  %v13019_v33 = vld [vmem:[#allocation45_spill] sm:$0xff] }
 0xa6e   : > { %v4614_v10 = vmax.f32 %v4576_v8, 0.0  ;;  %v4579_v36 = vadd.f32 %v11405_v13, %v4578_v24  ;;  %v4580_v63 = vpop.f32.mrb[115].mxu0 }
 0xa70   : > { %v4615_v23 = vmax.f32 %v4579_v36, 0.0  ;;  %4654 = vrot.lane.b32.xlu0 %v4614_v10, %s8928_s0 }
 0xa72   : > { %4656 = vrot.lane.b32.xlu1 %v4615_v23, %s8928_s0 }
 0xa73   : > { %v4583_v40 = vpop.f32.mrb[116].mxu0 }
 0xa74   : > { %v4584_v22 = vadd.f32 %v11405_v13, %v4583_v40  ;;  %v4585_v42 = vpop.f32.mrb[117].mxu0  ;;  %v13020_v40 = vld [vmem:[#allocation42_spill] sm:$0xff] }
 0xa75   : > { %v4586_v26 = vpop.f32.mrb[118].mxu0 }
 0xa76   : > { %v4616_v41 = vmax.f32 %v4584_v22, 0.0  ;;  %v4587_v19 = vadd.f32 %v11405_v13, %v4586_v26  ;;  %v4588_v38 = vpop.f32.mrb[119].mxu0 }
 0xa78   : > { %v4617_v50 = vmax.f32 %v4587_v19, 0.0  ;;  %4658 = vrot.lane.b32.xlu0 %v4616_v41, %s8928_s0 }
 0xa7a   : > { %4660 = vrot.lane.b32.xlu1 %v4617_v50, %s8928_s0  ;;  %v13021_v50 = vld [vmem:[#allocation43_spill] sm:$0xff] }
 0xa7b   : > { %v4591_v31 = vpop.f32.mrb[120].mxu0 }
 0xa7c   : > { %v4592_v14 = vadd.f32 %v11405_v13, %v4591_v31  ;;  %v4593_v61 = vpop.f32.mrb[121].mxu0 }
 0xa7d   : > { %v4594_v30 = vpop.f32.mrb[122].mxu0 }
 0xa7e   : > { %v4618_v62 = vmax.f32 %v4592_v14, 0.0  ;;  %v4595_v59 = vadd.f32 %v11405_v13, %v4594_v30  ;;  %v4596_v43 = vpop.f32.mrb[123].mxu0 }
 0xa80   : > { %v4619_v34 = vmax.f32 %v4595_v59, 0.0  ;;  %4662 = vrot.lane.b32.xlu0 %v4618_v62, %s8928_s0 }
 0xa82   : > { %4664 = vrot.lane.b32.xlu1 %v4619_v34, %s8928_s0 }
 0xa83   : > { %v4599_v15 = vpop.f32.mrb[124].mxu0 }
 0xa84   : > { %v4600_v25 = vadd.f32 %v11405_v13, %v4599_v15  ;;  %v4601_v11 = vpop.f32.mrb[125].mxu0 }
 0xa85   : > { %v4602_v47 = vpop.f32.mrb[126].mxu0  ;;  %v13022_v11 = vld [vmem:[#allocation47_spill] sm:$0xff] }
 0xa86   : > { %v4620_v55 = vmax.f32 %v4600_v25, 0.0  ;;  %v4603_v44 = vadd.f32 %v11405_v13, %v4602_v47  ;;  %v4604_v4 = vpop.f32.mrb[127].mxu0  ;;  %v8890_v13 = vld [vmem:[%s12813_s9 + $0x20] sm:$0xff]  }
 0xa87   : > { %5028 = vmatpush1.bf16.msra.mxu1 %v8890_v13 }
 0xa88   : > { %v4621_v52 = vmax.f32 %v4603_v44, 0.0  ;;  %4666 = vrot.lane.b32.xlu1 %v4620_v55, %s8928_s0  ;;  %5029 = vmatprep.subr.bf16.mxu1 %v12975_v53 }
 0xa8a   : > { %4668 = vrot.lane.b32.xlu0 %v4621_v52, %s8928_s0 }
 0xa8b   : > { %5030 = vmatpush1.bf16.msra.mxu1 %v8891_v5 }
 0xa8c   : > { %5031 = vmatprep.subr.bf16.mxu1 %v12975_v53 }
 0xa8f   : > { %5032 = vmatpush1.bf16.msra.mxu1 %v8892_v17 }
 0xa90   : > { %5033 = vmatprep.subr.bf16.mxu1 %v12975_v53 }
 0xa93   : > { %5034 = vmatpush1.bf16.msra.mxu1 %v8893_v60 }
 0xa94   : > { %5035 = vmatprep.subr.bf16.mxu1 %v12975_v53 }
 0xa97   : > { %5036 = vmatpush1.bf16.msra.mxu1 %v8894_v48 }
 0xa98   : > { %5037 = vmatprep.subr.bf16.mxu1 %v12975_v53 }
 0xa9b   : > { %5038 = vmatpush1.bf16.msra.mxu1 %v8895_v29 }
 0xa9c   : > { %5039 = vmatprep.subr.bf16.mxu1 %v12975_v53 }
 0xa9f   : > { %5040 = vmatpush1.bf16.msra.mxu1 %v8896_v18 }
 0xaa0   : > { %5041 = vmatprep.subr.bf16.mxu1 %v12975_v53 }
 0xaa3   : > { %5042 = vmatpush1.bf16.msra.mxu1 %v8897_v57 }
 0xac2   : > { %v4639_v28 = vpop.permute.xlu0 %4638 }
 0xac3   : > { %v11488_v3 = vsel %vm1980_vm8, %v13018_v12, %v4639_v28  ;;  %v13024_v12 = vld [vmem:[#allocation46_spill] sm:$0xff] }
 0xac4   : > { %v4641_v8 = vpop.permute.xlu1 %4640  ;;  %v4702_v10 = vrot.slane %v11488_v3, 7  ;;  %v4750_v38 = vrot.slane %v11488_v3, 1 }
 0xac5   : > { %v4687_v24 = vsel %vm1980_vm8, %v13019_v33, %v4641_v8 }
 0xac6   : > { %v4703_v36 = vrot.slane %v4687_v24, 7  ;;  %v8443_v63 = vpack.i.bf16 %v4687_v24, %v11488_v3  ;;  %v4751_v42 = vrot.slane %v4687_v24, 1 }
 0xac8   : > { %v11498_v53 = vsel %vm864_vm0, %v4702_v10, %v4703_v36  ;;  %8444 = vrot.lane.b32.xlu0 %v8443_v63, %s8929_s29  ;;  %v4780_v34 = vsel %vm913_vm4, %v4750_v38, %v4751_v42  ;;  %v13025_v63 = vld [vmem:[#allocation49_spill] sm:$0xff] }
 0xaca   : > { %v4643_v23 = vpop.permute.xlu0 %4642 }
 0xacb   : > { %v4688_v22 = vsel %vm1980_vm8, %v13020_v40, %v4643_v23 }
 0xacc   : > { %v4704_v26 = vrot.slane %v4688_v22, 7  ;;  %v4752_v41 = vrot.slane %v4688_v22, 1  ;;  %v4645_v19 = vpop.permute.xlu1 %4644 }
 0xacd   : > { %v4689_v31 = vsel %vm1980_vm8, %v13021_v50, %v4645_v19 }
 0xace   : > { %v11508_v14 = vsel %vm864_vm0, %v4703_v36, %v4704_v26  ;;  %v4779_v61 = vsel %vm913_vm4, %v4751_v42, %v4752_v41  ;;  %v4705_v30 = vrot.slane %v4689_v31, 7  ;;  %v4753_v62 = vrot.slane %v4689_v31, 1 }
 0xacf   : > { %v8448_v59 = vpack.i.bf16 %v4689_v31, %v4688_v22  ;;  %v4783_v43 = vmul.f32 %v9104_v45, %v4779_v61 }
 0xad0   : > { %v11519_v35 = vsel %vm913_vm4, %v4752_v41, %v4753_v62  ;;  %v11523_v15 = vsel %vm864_vm0, %v4704_v26, %v4705_v30 }
 0xad1   : > { %8449 = vrot.lane.b32.xlu1 %v8448_v59, %s8929_s29  ;;  %v4879_v51 = vpack.c.bf16 %v4783_v43, %v4780_v34 }
 0xad2   : > { %v4647_v25 = vpop.permute.xlu0 %4646 }
 0xad3   : > { %v4690_v47 = vsel %vm1980_vm8, %v13022_v11, %v4647_v25  ;;  %7501 = vmatprep.mubr.msk.bf16.mxu1 %vm2412_vm10, %v4879_v51  ;;  %v13027_v25 = vld [vmem:[#allocation52_spill] sm:$0xff] }
 0xad4   : > { %v4706_v55 = vrot.slane %v4690_v47, 7  ;;  %v4754_v44 = vrot.slane %v4690_v47, 1  ;;  %v4649_v4 = vpop.permute.xlu1 %4648 }
 0xad5   : > { %v4691_v52 = vsel %vm1980_vm8, %v13023_v21, %v4649_v4 }
 0xad6   : > { %v11533_v16 = vsel %vm864_vm0, %v4705_v30, %v4706_v55  ;;  %v4777_v13 = vsel %vm913_vm4, %v4753_v62, %v4754_v44  ;;  %v4707_v5 = vrot.slane %v4691_v52, 7  ;;  %v4755_v17 = vrot.slane %v4691_v52, 1  ;;  %v13026_v62 = vld [vmem:[#allocation51_spill] sm:$0xff] }
 0xad7   : > { %v8453_v60 = vpack.i.bf16 %v4691_v52, %v4690_v47  ;;  %v11538_v48 = vmul.f32 %v9124_v54, %v4777_v13 }
 0xad8   : > { %v11542_v29 = vsel %vm913_vm4, %v4754_v44, %v4755_v17  ;;  %v11546_v18 = vsel %vm864_vm0, %v4706_v55, %v4707_v5 }
 0xad9   : > { %8454 = vrot.lane.b32.xlu0 %v8453_v60, %s8929_s29  ;;  %v4881_v57 = vpack.c.bf16 %v11538_v48, %v11519_v35 }
 0xada   : > { %v4651_v28 = vpop.permute.xlu0 %4650 }
 0xadb   : > { %v4692_v8 = vsel %vm1980_vm8, %v13024_v12, %v4651_v28  ;;  %v13028_v28 = vld [vmem:[#allocation50_spill] sm:$0xff] }
 0xadc   : > { %v4708_v33 = vrot.slane %v4692_v8, 7  ;;  %v4756_v24 = vrot.slane %v4692_v8, 1  ;;  %v4653_v36 = vpop.permute.xlu1 %4652 }
 0xadd   : > { %v4693_v23 = vsel %vm1980_vm8, %v13025_v63, %v4653_v36  ;;  %v13029_v36 = vld [vmem:[#allocation53_spill] sm:$0xff] }
 0xade   : > { %v11557_v40 = vsel %vm864_vm0, %v4707_v5, %v4708_v33  ;;  %v4775_v22 = vsel %vm913_vm4, %v4755_v17, %v4756_v24  ;;  %v4709_v42 = vrot.slane %v4693_v23, 7  ;;  %v4757_v26 = vrot.slane %v4693_v23, 1 }
 0xadf   : > { %v8458_v41 = vpack.i.bf16 %v4693_v23, %v4692_v8  ;;  %v11562_v19 = vmul.f32 %v13000_v1, %v4775_v22 }
 0xae0   : > { %v11566_v50 = vsel %vm913_vm4, %v4756_v24, %v4757_v26  ;;  %v11570_v31 = vsel %vm864_vm0, %v4708_v33, %v4709_v42 }
 0xae1   : > { %8459 = vrot.lane.b32.xlu1 %v8458_v41, %s8929_s29  ;;  %v4883_v61 = vpack.c.bf16 %v11562_v19, %v11542_v29 }
 0xae2   : > { %v4655_v30 = vpop.permute.xlu0 %4654 }
 0xae3   : > { %v4694_v59 = vsel %vm1980_vm8, %v13026_v62, %v4655_v30 }
 0xae4   : > { %v4710_v43 = vrot.slane %v4694_v59, 7  ;;  %v4758_v34 = vrot.slane %v4694_v59, 1  ;;  %v4657_v51 = vpop.permute.xlu1 %4656 }
 0xae5   : > { %v4695_v11 = vsel %vm1980_vm8, %v13027_v25, %v4657_v51  ;;  %v13030_v51 = vld [vmem:[#allocation55_spill] sm:$0xff] }
 0xae6   : > { %v11581_v47 = vsel %vm864_vm0, %v4709_v42, %v4710_v43  ;;  %v4773_v55 = vsel %vm913_vm4, %v4757_v26, %v4758_v34  ;;  %v4711_v44 = vrot.slane %v4695_v11, 7  ;;  %v4759_v4 = vrot.slane %v4695_v11, 1 }
 0xae7   : > { %v8463_v21 = vpack.i.bf16 %v4695_v11, %v4694_v59  ;;  %v11586_v52 = vmul.f32 %v13004_v39, %v4773_v55 }
 0xae8   : > { %v11590_v13 = vsel %vm913_vm4, %v4758_v34, %v4759_v4  ;;  %v11594_v5 = vsel %vm864_vm0, %v4710_v43, %v4711_v44 }
 0xae9   : > { %8464 = vrot.lane.b32.xlu0 %v8463_v21, %s8929_s29  ;;  %v4885_v17 = vpack.c.bf16 %v11586_v52, %v11566_v50 }
 0xaea   : > { %v4659_v60 = vpop.permute.xlu0 %4658 }
 0xaeb   : > { %v4696_v12 = vsel %vm1980_vm8, %v13028_v28, %v4659_v60 }
 0xaec   : > { %v4712_v8 = vrot.slane %v4696_v12, 7  ;;  %v4760_v33 = vrot.slane %v4696_v12, 1  ;;  %v4661_v24 = vpop.permute.xlu1 %4660 }
 0xaed   : > { %v4697_v63 = vsel %vm1980_vm8, %v13029_v36, %v4661_v24 }
 0xaee   : > { %v11605_v23 = vsel %vm864_vm0, %v4711_v44, %v4712_v8  ;;  %v4771_v22 = vsel %vm913_vm4, %v4759_v4, %v4760_v33  ;;  %v4713_v42 = vrot.slane %v4697_v63, 7  ;;  %v4761_v26 = vrot.slane %v4697_v63, 1  ;;  %v13031_v4 = vld [vmem:[#allocation57_spill] sm:$0xff] }
 0xaef   : > { %v8468_v41 = vpack.i.bf16 %v4697_v63, %v4696_v12  ;;  %v11610_v30 = vmul.f32 %v13007_v20, %v4771_v22 }
 0xaf0   : > { %v11614_v62 = vsel %vm913_vm4, %v4760_v33, %v4761_v26  ;;  %v11618_v59 = vsel %vm864_vm0, %v4712_v8, %v4713_v42 }
 0xaf1   : > { %8469 = vrot.lane.b32.xlu1 %v8468_v41, %s8929_s29  ;;  %v4887_v43 = vpack.c.bf16 %v11610_v30, %v11590_v13 }
 0xaf2   : > { %v4663_v34 = vpop.permute.xlu0 %4662 }
 0xaf3   : > { %v4698_v25 = vsel %vm1980_vm8, %v13030_v51, %v4663_v34 }
 0xaf4   : > { %v4714_v11 = vrot.slane %v4698_v25, 7  ;;  %v4762_v55 = vrot.slane %v4698_v25, 1  ;;  %v4665_v44 = vpop.permute.xlu1 %4664 }
 0xaf5   : > { %v4699_v21 = vsel %vm1980_vm8, %v13031_v4, %v4665_v44 }
 0xaf6   : > { %v11629_v60 = vsel %vm864_vm0, %v4713_v42, %v4714_v11  ;;  %v4769_v28 = vsel %vm913_vm4, %v4761_v26, %v4762_v55  ;;  %v4715_v12 = vrot.slane %v4699_v21, 7  ;;  %v4763_v8 = vrot.slane %v4699_v21, 1  ;;  %v13032_v26 = vld [vmem:[#allocation54_spill] sm:$0xff] }
 0xaf7   : > { %v8473_v33 = vpack.i.bf16 %v4699_v21, %v4698_v25  ;;  %v11634_v24 = vmul.f32 %v13011_v58, %v4769_v28 }
 0xaf8   : > { %v11638_v36 = vsel %vm913_vm4, %v4762_v55, %v4763_v8  ;;  %v11642_v63 = vsel %vm864_vm0, %v4714_v11, %v4715_v12  ;;  %v13033_v55 = vld [vmem:[#allocation56_spill] sm:$0xff] }
 0xaf9   : > { %8474 = vrot.lane.b32.xlu0 %v8473_v33, %s8929_s29  ;;  %v4889_v22 = vpack.c.bf16 %v11634_v24, %v11614_v62  ;;  %v4746_v24 = vmul.f32 %v9234_v6, %v11629_v60 }
 0xafa   : > { %v4667_v42 = vpop.permute.xlu1 %4666 }
 0xafb   : > { %v11649_v41 = vsel %vm1980_vm8, %v13032_v26, %v4667_v42 }
 0xafc   : > { %v12907_v34 = vrot.slane %v11649_v41, 7  ;;  %v4764_v51 = vrot.slane %v11649_v41, 1  ;;  %v4669_v25 = vpop.permute.xlu0 %4668  ;;  %v13034_v60 = vrot.slane %v11649_v41, 7 }
 0xafd   : > { %v11655_v44 = vsel %vm1980_vm8, %v13033_v55, %v4669_v25 }
 0xafe   : > { %v11661_v11 = vsel %vm864_vm0, %v4715_v12, %v12907_v34  ;;  %v4767_v4 = vsel %vm913_vm4, %v4763_v8, %v4764_v51  ;;  %v8478_v21 = vpack.i.bf16 %v11655_v44, %v11649_v41  ;;  %v4765_v28 = vrot.slane %v11655_v44, 1  ;;  %v8900_v41 = vld [vmem:[%s12814_s10 + $0x10] sm:$0xff]  }
 0xaff   : > { %v11669_v33 = vmul.f32 %v9240_v9, %v4767_v4  ;;  %v4717_v55 = vrot.slane %v11655_v44, 7  ;;  %v11775_v44 = vld [vmem:[%s12819_s15 + $0x8] ss:$0 sm:$0xff] }
 0xb00   : > { %8479 = vrot.lane.b32.xlu1 %v8478_v21, %s8929_s29  ;;  %v4781_v42 = vsel %vm913_vm4, %v4765_v28, %v4750_v38  ;;  %v11680_v8 = vsel %vm913_vm4, %v4764_v51, %v4765_v28 }
 0xb01   : > { %v4891_v12 = vpack.c.bf16 %v11669_v33, %v11638_v36  ;;  %v11683_v26 = vmul.f32 %v9260_v32, %v4781_v42  ;;  %v4733_v38 = vsel %vm864_vm0, %v4717_v55, %v4702_v10 }
 0xb02   : > { %v4734_v4 = vmul.f32 %v9089_v37, %v4733_v38  ;;  %v4736_v38 = vmul.f32 %v9078_v27, %v11508_v14 }
 0xb03   : > { %v4893_v25 = vpack.c.bf16 %v11683_v26, %v11680_v8  ;;  %v8898_v26 = vld [vmem:[%s12814_s10] sm:$0xff]  }
 0xb04   : > { %7978 = vmatprep.subr.bf16.mxu0 %v8898_v26 }
 0xb05   : > { %7979 = vmatpush3.bf16.msra.mxu0 %v8898_v26 }
 0xb3a   : > { %v8445_v36 = vpop.permute.xlu0 %8444 }
 0xb3b   : > { %v8447_v51 = vunpack.i.h.bf16 %v8445_v36  ;;  %v8446_v21 = vunpack.i.l.bf16 %v8445_v36 }
 0xb3d   : > { %v4863_v28 = vsel %vm2412_vm10, %v11498_v53, %v8447_v51  ;;  %v4862_v33 = vsel %vm2412_vm10, %v4734_v4, %v8446_v21  ;;  %v4738_v4 = vmul.f32 %v13002_v46, %v11533_v16 }
 0xb3e   : > { %v4878_v42 = vpack.c.bf16 %v4863_v28, %v4862_v33 }
 0xb40   : > { %5052 = vmatmul.mubr.bf16.vlgmr.msra.gmra.mrb[80].mxu1 %v4878_v42 }
 0xb41   : > { %7502 = vmatprep.mubr.msk.bf16.mxu1 %vm2412_vm10, %v4881_v57 }
 0xb43   : > { %v8450_v3 = vpop.permute.xlu1 %8449 }
 0xb44   : > { %v8452_v34 = vunpack.i.h.bf16 %v8450_v3  ;;  %v8451_v10 = vunpack.i.l.bf16 %v8450_v3 }
 0xb46   : > { %v4864_v36 = vsel %vm2412_vm10, %v4736_v38, %v8451_v10  ;;  %v4865_v53 = vsel %vm2412_vm10, %v11523_v15, %v8452_v34 }
 0xb47   : > { %v4880_v51 = vpack.c.bf16 %v4865_v53, %v4864_v36 }
 0xb49   : > { %5060 = vmatmul.mubr.bf16.gmra.mrb[84].mxu1 %v4880_v51 }
 0xb4a   : > { %7503 = vmatprep.mubr.msk.bf16.mxu1 %vm2412_vm10, %v4883_v61  ;;  %v4740_v61 = vmul.f32 %v13009_v49, %v11557_v40 }
 0xb4b   : > { %v8455_v35 = vpop.permute.xlu0 %8454 }
 0xb4c   : > { %v8457_v48 = vunpack.i.h.bf16 %v8455_v35  ;;  %v8456_v57 = vunpack.i.l.bf16 %v8455_v35  ;;  %v4748_v35 = vmul.f32 %v9237_v7, %v11661_v11  ;;  %v8899_v11 = vld [vmem:[%s12814_s10 + $0x8] sm:$0xff]  }
 0xb4d   : > { %7980 = vmatprep.subr.bf16.mxu0 %v8899_v11 }
 0xb4e   : > { %v4866_v14 = vsel %vm2412_vm10, %v4738_v4, %v8456_v57  ;;  %v4867_v21 = vsel %vm2412_vm10, %v11546_v18, %v8457_v48  ;;  %7981 = vmatpush3.bf16.msra.mxu0 %v8899_v11 }
 0xb4f   : > { %v4882_v28 = vpack.c.bf16 %v4867_v21, %v4866_v14  ;;  %7982 = vmatprep.subr.bf16.mxu0 %v8900_v41 }
 0xb51   : > { %5068 = vmatmul.mubr.bf16.gmra.mrb[88].mxu1 %v4882_v28 }
 0xb52   : > { %7504 = vmatprep.mubr.msk.bf16.mxu1 %vm2412_vm10, %v4885_v17  ;;  %v4742_v17 = vmul.f32 %v13012_v56, %v11581_v47  ;;  %7983 = vmatpush3.bf16.msra.mxu0 %v8900_v41 }
 0xb53   : > { %v8460_v15 = vpop.permute.xlu1 %8459 }
 0xb54   : > { %v8462_v29 = vunpack.i.h.bf16 %v8460_v15  ;;  %v8461_v19 = vunpack.i.l.bf16 %v8460_v15 }
 0xb56   : > { %v4868_v16 = vsel %vm2412_vm10, %v4740_v61, %v8461_v19  ;;  %v4869_v34 = vsel %vm2412_vm10, %v11570_v31, %v8462_v29 }
 0xb57   : > { %v4884_v33 = vpack.c.bf16 %v4869_v34, %v4868_v16 }
 0xb59   : > { %5076 = vmatmul.mubr.bf16.gmra.mrb[92].mxu1 %v4884_v33 }
 0xb5a   : > { %7505 = vmatprep.mubr.msk.bf16.mxu1 %vm2412_vm10, %v4887_v43  ;;  %v4744_v43 = vmul.f32 %v13013_v0, %v11605_v23 }
 0xb5b   : > { %v8465_v18 = vpop.permute.xlu0 %8464 }
 0xb5c   : > { %v8467_v50 = vunpack.i.h.bf16 %v8465_v18  ;;  %v8466_v52 = vunpack.i.l.bf16 %v8465_v18 }
 0xb5e   : > { %v4870_v40 = vsel %vm2412_vm10, %v4742_v17, %v8466_v52  ;;  %v4871_v42 = vsel %vm2412_vm10, %v11594_v5, %v8467_v50 }
 0xb5f   : > { %v4886_v3 = vpack.c.bf16 %v4871_v42, %v4870_v40 }
 0xb61   : > { %5084 = vmatmul.mubr.bf16.gmra.mrb[96].mxu1 %v4886_v3 }
 0xb62   : > { %7506 = vmatprep.mubr.msk.bf16.mxu1 %vm2412_vm10, %v4889_v22 }
 0xb63   : > { %v8470_v31 = vpop.permute.xlu1 %8469 }
 0xb64   : > { %v8472_v13 = vunpack.i.h.bf16 %v8470_v31  ;;  %v8471_v30 = vunpack.i.l.bf16 %v8470_v31 }
 0xb66   : > { %v4872_v47 = vsel %vm2412_vm10, %v4744_v43, %v8471_v30  ;;  %v4873_v10 = vsel %vm2412_vm10, %v11618_v59, %v8472_v13  ;;  %v8902_v43 = vld [vmem:[%s12814_s10 + $0x20] sm:$0xff]  }
 0xb67   : > { %v4888_v38 = vpack.c.bf16 %v4873_v10, %v4872_v47 }
 0xb69   : > { %5092 = vmatmul.mubr.bf16.gmra.mrb[100].mxu1 %v4888_v38 }
 0xb6a   : > { %7507 = vmatprep.mubr.msk.bf16.mxu1 %vm2412_vm10, %v4891_v12 }
 0xb6b   : > { %v8475_v5 = vpop.permute.xlu0 %8474 }
 0xb6c   : > { %v8477_v36 = vunpack.i.h.bf16 %v8475_v5  ;;  %v8476_v62 = vunpack.i.l.bf16 %v8475_v5 }
 0xb6e   : > { %v4874_v22 = vsel %vm2412_vm10, %v4746_v24, %v8476_v62  ;;  %v4875_v23 = vsel %vm2412_vm10, %v11642_v63, %v8477_v36  ;;  %v4718_v63 = vsel %vm864_vm0, %v13034_v60, %v4717_v55 }
 0xb6f   : > { %v4890_v53 = vpack.c.bf16 %v4875_v23, %v4874_v22 }
 0xb71   : > { %5100 = vmatmul.mubr.bf16.gmra.mrb[104].mxu1 %v4890_v53 }
 0xb72   : > { %7508 = vmatprep.mubr.msk.bf16.mxu1 %vm2412_vm10, %v4893_v25  ;;  %v8480_v59 = vpop.permute.xlu1 %8479  ;;  %v8901_v25 = vld [vmem:[%s12814_s10 + $0x18] sm:$0xff]  }
 0xb73   : > { %v8482_v12 = vunpack.i.h.bf16 %v8480_v59  ;;  %v8481_v51 = vunpack.i.l.bf16 %v8480_v59  ;;  %7984 = vmatprep.subr.bf16.mxu0 %v8901_v25  ;;  %v8903_v59 = vld [vmem:[%s12814_s10 + $0x28] sm:$0xff]  }
 0xb74   : > { %7985 = vmatpush3.bf16.msra.mxu0 %v8901_v25 }
 0xb75   : > { %v4876_v48 = vsel %vm2412_vm10, %v4748_v35, %v8481_v51  ;;  %v4877_v57 = vsel %vm2412_vm10, %v4718_v63, %v8482_v12  ;;  %7986 = vmatprep.subr.bf16.mxu0 %v8902_v43 }
 0xb76   : > { %v4892_v8 = vpack.c.bf16 %v4877_v57, %v4876_v48 }
 0xb78   : > { %7987 = vmatpush3.bf16.msra.mxu0 %v8902_v43 }
 0xb79   : > { %5108 = vmatmul.mubr.bf16.gmra.mrb[108].mxu1 %v4892_v8  ;;  %7988 = vmatprep.subr.bf16.mxu0 %v8903_v59 }
 0xb7c   : > { %7989 = vmatpush3.bf16.msra.mxu0 %v8903_v59 }
 0xc13   : > { %v5053_v55 = vpop.f32.mrb[80].mxu1 }
 0xc14   : > { %v5054_v4 = vadd.f32 %v11775_v44, %v5053_v55  ;;  %v5055_v14 = vpop.f32.mrb[81].mxu1 }
 0xc15   : > { %v5056_v21 = vpop.f32.mrb[82].mxu1 }
 0xc16   : > { %v11781_v28 = vmax.f32 %v5054_v4, 0.0  ;;  %v5057_v15 = vadd.f32 %v11775_v44, %v5056_v21  ;;  %v5058_v29 = vpop.f32.mrb[83].mxu1 }
 0xc18   : > { %v5117_v19 = vmax.f32 %v5057_v15, 0.0  ;;  %v5132_v61 = vrot.slane %v11781_v28, 7  ;;  %v5180_v16 = vrot.slane %v11781_v28, 1 }
 0xc1a   : > { %v5133_v34 = vrot.slane %v5117_v19, 7  ;;  %v5181_v33 = vrot.slane %v5117_v19, 1  ;;  %v8483_v18 = vpack.i.bf16 %v5117_v19, %v11781_v28 }
 0xc1c   : > { %v5061_v50 = vpop.f32.mrb[84].mxu1  ;;  %8484 = vrot.lane.b32.xlu0 %v8483_v18, %s8928_s0  ;;  %v5210_v52 = vsel %vm913_vm4, %v5180_v16, %v5181_v33  ;;  %v11796_v17 = vsel %vm864_vm0, %v5132_v61, %v5133_v34 }
 0xc1d   : > { %v5062_v40 = vadd.f32 %v11775_v44, %v5061_v50  ;;  %v5063_v42 = vpop.f32.mrb[85].mxu1 }
 0xc1e   : > { %v5064_v3 = vpop.f32.mrb[86].mxu1 }
 0xc1f   : > { %v5118_v31 = vmax.f32 %v5062_v40, 0.0  ;;  %v5065_v13 = vadd.f32 %v11775_v44, %v5064_v3  ;;  %v5066_v30 = vpop.f32.mrb[87].mxu1 }
 0xc21   : > { %v5134_v47 = vrot.slane %v5118_v31, 7  ;;  %v5182_v10 = vrot.slane %v5118_v31, 1  ;;  %v5119_v38 = vmax.f32 %v5065_v13, 0.0 }
 0xc23   : > { %v11805_v5 = vsel %vm864_vm0, %v5133_v34, %v5134_v47  ;;  %v5209_v36 = vsel %vm913_vm4, %v5181_v33, %v5182_v10  ;;  %v5135_v62 = vrot.slane %v5119_v38, 7  ;;  %v5183_v24 = vrot.slane %v5119_v38, 1 }
 0xc24   : > { %v8488_v22 = vpack.i.bf16 %v5119_v38, %v5118_v31  ;;  %v5069_v23 = vpop.f32.mrb[88].mxu1  ;;  %v5213_v53 = vmul.f32 %v9104_v45, %v5209_v36 }
 0xc25   : > { %v5070_v12 = vadd.f32 %v11775_v44, %v5069_v23  ;;  %v5071_v51 = vpop.f32.mrb[89].mxu1  ;;  %v5208_v35 = vsel %vm913_vm4, %v5182_v10, %v5183_v24  ;;  %v11818_v60 = vsel %vm864_vm0, %v5134_v47, %v5135_v62 }
 0xc26   : > { %8489 = vrot.lane.b32.xlu1 %v8488_v22, %s8928_s0  ;;  %v5072_v63 = vpop.f32.mrb[90].mxu1  ;;  %v8493_v48 = vpack.i.bf16 %v5213_v53, %v5210_v52 }
 0xc27   : > { %v5120_v57 = vmax.f32 %v5070_v12, 0.0  ;;  %v5073_v8 = vadd.f32 %v11775_v44, %v5072_v63  ;;  %v5074_v26 = vpop.f32.mrb[91].mxu1 }
 0xc28   : > { %8494 = vrot.lane.b32.xlu0 %v8493_v48, %s8929_s29 }
 0xc29   : > { %v5136_v11 = vrot.slane %v5120_v57, 7  ;;  %v5184_v41 = vrot.slane %v5120_v57, 1  ;;  %v5121_v25 = vmax.f32 %v5073_v8, 0.0 }
 0xc2b   : > { %v11825_v55 = vsel %vm864_vm0, %v5135_v62, %v5136_v11  ;;  %v5207_v4 = vsel %vm913_vm4, %v5183_v24, %v5184_v41  ;;  %v5137_v14 = vrot.slane %v5121_v25, 7  ;;  %v5185_v21 = vrot.slane %v5121_v25, 1 }
 0xc2c   : > { %v8498_v15 = vpack.i.bf16 %v5121_v25, %v5120_v57  ;;  %v5077_v29 = vpop.f32.mrb[92].mxu1  ;;  %v5215_v19 = vmul.f32 %v9124_v54, %v5207_v4 }
 0xc2d   : > { %v5078_v34 = vadd.f32 %v11775_v44, %v5077_v29  ;;  %v5079_v33 = vpop.f32.mrb[93].mxu1  ;;  %v5206_v18 = vsel %vm913_vm4, %v5184_v41, %v5185_v21  ;;  %v11835_v50 = vsel %vm864_vm0, %v5136_v11, %v5137_v14 }
 0xc2e   : > { %8499 = vrot.lane.b32.xlu0 %v8498_v15, %s8928_s0  ;;  %v5080_v52 = vpop.f32.mrb[94].mxu1  ;;  %v8503_v40 = vpack.i.bf16 %v5215_v19, %v5208_v35 }
 0xc2f   : > { %v5122_v42 = vmax.f32 %v5078_v34, 0.0  ;;  %v5081_v3 = vadd.f32 %v11775_v44, %v5080_v52  ;;  %v5082_v31 = vpop.f32.mrb[95].mxu1 }
 0xc30   : > { %8504 = vrot.lane.b32.xlu1 %v8503_v40, %s8929_s29 }
 0xc31   : > { %v5138_v13 = vrot.slane %v5122_v42, 7  ;;  %v5186_v30 = vrot.slane %v5122_v42, 1  ;;  %v5123_v43 = vmax.f32 %v5081_v3, 0.0 }
 0xc33   : > { %v11842_v47 = vsel %vm864_vm0, %v5137_v14, %v5138_v13  ;;  %v5205_v10 = vsel %vm913_vm4, %v5185_v21, %v5186_v30  ;;  %v5139_v38 = vrot.slane %v5123_v43, 7  ;;  %v5187_v36 = vrot.slane %v5123_v43, 1 }
 0xc34   : > { %v8508_v62 = vpack.i.bf16 %v5123_v43, %v5122_v42  ;;  %v5085_v24 = vpop.f32.mrb[96].mxu1  ;;  %v5217_v22 = vmul.f32 %v13000_v1, %v5205_v10 }
 0xc35   : > { %v5086_v23 = vadd.f32 %v11775_v44, %v5085_v24  ;;  %v5087_v53 = vpop.f32.mrb[97].mxu1  ;;  %v5204_v59 = vsel %vm913_vm4, %v5186_v30, %v5187_v36  ;;  %v11852_v12 = vsel %vm864_vm0, %v5138_v13, %v5139_v38 }
 0xc36   : > { %8509 = vrot.lane.b32.xlu1 %v8508_v62, %s8928_s0  ;;  %v5088_v51 = vpop.f32.mrb[98].mxu1  ;;  %v8513_v35 = vpack.i.bf16 %v5217_v22, %v5206_v18 }
 0xc37   : > { %v5124_v63 = vmax.f32 %v5086_v23, 0.0  ;;  %v5089_v48 = vadd.f32 %v11775_v44, %v5088_v51  ;;  %v5090_v57 = vpop.f32.mrb[99].mxu1 }
 0xc38   : > { %8514 = vrot.lane.b32.xlu0 %v8513_v35, %s8929_s29 }
 0xc39   : > { %v5140_v8 = vrot.slane %v5124_v63, 7  ;;  %v5188_v26 = vrot.slane %v5124_v63, 1  ;;  %v5125_v11 = vmax.f32 %v5089_v48, 0.0 }
 0xc3b   : > { %v11859_v41 = vsel %vm864_vm0, %v5139_v38, %v5140_v8  ;;  %v5203_v25 = vsel %vm913_vm4, %v5187_v36, %v5188_v26  ;;  %v5141_v4 = vrot.slane %v5125_v11, 7  ;;  %v5189_v14 = vrot.slane %v5125_v11, 1 }
 0xc3c   : > { %v8518_v21 = vpack.i.bf16 %v5125_v11, %v5124_v63  ;;  %v5093_v15 = vpop.f32.mrb[100].mxu1  ;;  %v5219_v29 = vmul.f32 %v13004_v39, %v5203_v25 }
 0xc3d   : > { %v5094_v19 = vadd.f32 %v11775_v44, %v5093_v15  ;;  %v5095_v34 = vpop.f32.mrb[101].mxu1  ;;  %v5202_v33 = vsel %vm913_vm4, %v5188_v26, %v5189_v14  ;;  %v11869_v18 = vsel %vm864_vm0, %v5140_v8, %v5141_v4 }
 0xc3e   : > { %8519 = vrot.lane.b32.xlu0 %v8518_v21, %s8928_s0  ;;  %v5096_v52 = vpop.f32.mrb[102].mxu1  ;;  %v8523_v40 = vpack.i.bf16 %v5219_v29, %v5204_v59 }
 0xc3f   : > { %v5126_v42 = vmax.f32 %v5094_v19, 0.0  ;;  %v5097_v3 = vadd.f32 %v11775_v44, %v5096_v52  ;;  %v5098_v31 = vpop.f32.mrb[103].mxu1 }
 0xc40   : > { %8524 = vrot.lane.b32.xlu1 %v8523_v40, %s8929_s29 }
 0xc41   : > { %v5142_v13 = vrot.slane %v5126_v42, 7  ;;  %v5190_v30 = vrot.slane %v5126_v42, 1  ;;  %v5127_v43 = vmax.f32 %v5097_v3, 0.0 }
 0xc43   : > { %v11876_v10 = vsel %vm864_vm0, %v5141_v4, %v5142_v13  ;;  %v5201_v38 = vsel %vm913_vm4, %v5189_v14, %v5190_v30  ;;  %v5143_v36 = vrot.slane %v5127_v43, 7  ;;  %v5191_v62 = vrot.slane %v5127_v43, 1 }
 0xc44   : > { %v8528_v24 = vpack.i.bf16 %v5127_v43, %v5126_v42  ;;  %v5101_v22 = vpop.f32.mrb[104].mxu1  ;;  %v5221_v23 = vmul.f32 %v13007_v20, %v5201_v38 }
 0xc45   : > { %v5102_v53 = vadd.f32 %v11775_v44, %v5101_v22  ;;  %v5103_v59 = vpop.f32.mrb[105].mxu1  ;;  %v5200_v51 = vsel %vm913_vm4, %v5190_v30, %v5191_v62  ;;  %v11886_v35 = vsel %vm864_vm0, %v5142_v13, %v5143_v36 }
 0xc46   : > { %8529 = vrot.lane.b32.xlu1 %v8528_v24, %s8928_s0  ;;  %v5104_v63 = vpop.f32.mrb[106].mxu1  ;;  %v8533_v48 = vpack.i.bf16 %v5221_v23, %v5202_v33 }
 0xc47   : > { %v5128_v57 = vmax.f32 %v5102_v53, 0.0  ;;  %v5105_v8 = vadd.f32 %v11775_v44, %v5104_v63  ;;  %v5106_v26 = vpop.f32.mrb[107].mxu1 }
 0xc48   : > { %8534 = vrot.lane.b32.xlu0 %v8533_v48, %s8929_s29 }
 0xc49   : > { %v5144_v11 = vrot.slane %v5128_v57, 7  ;;  %v5192_v25 = vrot.slane %v5128_v57, 1  ;;  %v5129_v4 = vmax.f32 %v5105_v8, 0.0 }
 0xc4b   : > { %v11893_v14 = vsel %vm864_vm0, %v5143_v36, %v5144_v11  ;;  %v5199_v21 = vsel %vm913_vm4, %v5191_v62, %v5192_v25  ;;  %v5145_v15 = vrot.slane %v5129_v4, 7  ;;  %v5193_v29 = vrot.slane %v5129_v4, 1 }
 0xc4c   : > { %v8538_v19 = vpack.i.bf16 %v5129_v4, %v5128_v57  ;;  %v5109_v34 = vpop.f32.mrb[108].mxu1  ;;  %v5223_v33 = vmul.f32 %v13011_v58, %v5199_v21 }
 0xc4d   : > { %v5110_v52 = vadd.f32 %v11775_v44, %v5109_v34  ;;  %v5111_v40 = vpop.f32.mrb[109].mxu1  ;;  %v5198_v42 = vsel %vm913_vm4, %v5192_v25, %v5193_v29  ;;  %v11903_v3 = vsel %vm864_vm0, %v5144_v11, %v5145_v15 }
 0xc4e   : > { %8539 = vrot.lane.b32.xlu0 %v8538_v19, %s8928_s0  ;;  %v5112_v31 = vpop.f32.mrb[110].mxu1  ;;  %v8543_v13 = vpack.i.bf16 %v5223_v33, %v5200_v51 }
 0xc4f   : > { %v5130_v30 = vmax.f32 %v5110_v52, 0.0  ;;  %v5113_v43 = vadd.f32 %v11775_v44, %v5112_v31  ;;  %v5114_v38 = vpop.f32.mrb[111].mxu1 }
 0xc50   : > { %8544 = vrot.lane.b32.xlu1 %v8543_v13, %s8929_s29 }
 0xc51   : > { %v5146_v36 = vrot.slane %v5130_v30, 7  ;;  %v5194_v62 = vrot.slane %v5130_v30, 1  ;;  %v5131_v24 = vmax.f32 %v5113_v43, 0.0 }
 0xc53   : > { %v11910_v22 = vsel %vm864_vm0, %v5145_v15, %v5146_v36  ;;  %v5197_v23 = vsel %vm913_vm4, %v5193_v29, %v5194_v62  ;;  %v5147_v53 = vrot.slane %v5131_v24, 7  ;;  %v5195_v59 = vrot.slane %v5131_v24, 1 }
 0xc54   : > { %v8548_v63 = vpack.i.bf16 %v5131_v24, %v5130_v30  ;;  %v5225_v51 = vmul.f32 %v9240_v9, %v5197_v23  ;;  %v5166_v30 = vmul.f32 %v9078_v27, %v11805_v5  ;;  %v5168_v5 = vmul.f32 %v13002_v46, %v11825_v55 }
 0xc55   : > { %v5163_v44 = vsel %vm864_vm0, %v5147_v53, %v5132_v61  ;;  %v5211_v48 = vsel %vm913_vm4, %v5195_v59, %v5180_v16  ;;  %v5196_v57 = vsel %vm913_vm4, %v5194_v62, %v5195_v59  ;;  %v11927_v8 = vsel %vm864_vm0, %v5146_v36, %v5147_v53 }
 0xc56   : > { %8549 = vrot.lane.b32.xlu1 %v8548_v63, %s8928_s0  ;;  %v8553_v26 = vpack.i.bf16 %v5225_v51, %v5198_v42  ;;  %v5227_v11 = vmul.f32 %v9260_v32, %v5211_v48  ;;  %v5164_v4 = vmul.f32 %v9089_v37, %v5163_v44  ;;  %v5170_v55 = vmul.f32 %v13009_v49, %v11842_v47 }
 0xc57   : > { %v5172_v47 = vmul.f32 %v13012_v56, %v11859_v41  ;;  %v5174_v41 = vmul.f32 %v13013_v0, %v11876_v10  ;;  %v5176_v10 = vmul.f32 %v9234_v6, %v11893_v14 }
 0xc58   : > { %8554 = vrot.lane.b32.xlu0 %v8553_v26, %s8929_s29  ;;  %v8558_v61 = vpack.i.bf16 %v5227_v11, %v5196_v57 }
 0xc5a   : > { %8559 = vrot.lane.b32.xlu1 %v8558_v61, %s8929_s29 }
 0xc8e   : > { %v8485_v28 = vpop.permute.xlu0 %8484 }
 0xc8f   : > { %v8487_v25 = vunpack.i.h.bf16 %v8485_v28  ;;  %v8486_v16 = vunpack.i.l.bf16 %v8485_v28 }
 0xc91   : > { %v5356_v19 = vsel %vm1980_vm8, %v5164_v4, %v8486_v16  ;;  %v5357_v34 = vsel %vm1980_vm8, %v11796_v17, %v8487_v25 }
 0xc98   : > { %v8490_v33 = vpop.permute.xlu1 %8489 }
 0xc99   : > { %v8492_v31 = vunpack.i.h.bf16 %v8490_v33  ;;  %v8491_v13 = vunpack.i.l.bf16 %v8490_v33 }
 0xc9a   : > { %v8495_v21 = vpop.permute.xlu0 %8494 }
 0xc9b   : > { %v8497_v15 = vunpack.i.h.bf16 %v8495_v21  ;;  %v8496_v29 = vunpack.i.l.bf16 %v8495_v21  ;;  %v5358_v62 = vsel %vm1980_vm8, %v5166_v30, %v8491_v13  ;;  %v5359_v17 = vsel %vm1980_vm8, %v11818_v60, %v8492_v31 }
 0xc9d   : > { %v5372_v52 = vsel %vm2412_vm10, %v5356_v19, %v8496_v29  ;;  %v5373_v40 = vsel %vm2412_vm10, %v5357_v34, %v8497_v15 }
 0xc9e   : > { %v5388_v42 = vpack.c.bf16 %v5373_v40, %v5372_v52 }
 0xca0   : > { %7990 = vmatprep.mubr.msk.bf16.mxu0 %vm2490_vm11, %v5388_v42  ;;  %v8500_v24 = vpop.permute.xlu0 %8499 }
 0xca1   : > { %v8502_v63 = vunpack.i.h.bf16 %v8500_v24  ;;  %v8501_v51 = vunpack.i.l.bf16 %v8500_v24 }
 0xca2   : > { %v8505_v43 = vpop.permute.xlu1 %8504 }
 0xca3   : > { %v8507_v38 = vunpack.i.h.bf16 %v8505_v43  ;;  %v8506_v36 = vunpack.i.l.bf16 %v8505_v43  ;;  %v5361_v26 = vsel %vm1980_vm8, %v11835_v50, %v8502_v63  ;;  %v5360_v60 = vsel %vm1980_vm8, %v5168_v5, %v8501_v51 }
 0xca5   : > { %v5374_v23 = vsel %vm2412_vm10, %v5358_v62, %v8506_v36  ;;  %v5375_v53 = vsel %vm2412_vm10, %v5359_v17, %v8507_v38 }
 0xca6   : > { %v5389_v59 = vpack.c.bf16 %v5375_v53, %v5374_v23 }
 0xca8   : > { %7991 = vmatmul.mubr.msk.bf16.vlgmr.msra.gmra.mrb[128].mxu0 %vm2490_vm11, %v5389_v59  ;;  %v8510_v11 = vpop.permute.xlu1 %8509 }
 0xca9   : > { %v8512_v16 = vunpack.i.h.bf16 %v8510_v11  ;;  %v8511_v4 = vunpack.i.l.bf16 %v8510_v11 }
 0xcaa   : > { %v8515_v44 = vpop.permute.xlu0 %8514 }
 0xcab   : > { %v8517_v48 = vunpack.i.h.bf16 %v8515_v44  ;;  %v8516_v57 = vunpack.i.l.bf16 %v8515_v44  ;;  %v5363_v50 = vsel %vm1980_vm8, %v11852_v12, %v8512_v16  ;;  %v5362_v19 = vsel %vm1980_vm8, %v5170_v55, %v8511_v4 }
 0xcad   : > { %v5376_v61 = vsel %vm2412_vm10, %v5360_v60, %v8516_v57  ;;  %v5377_v28 = vsel %vm2412_vm10, %v5361_v26, %v8517_v48 }
 0xcae   : > { %v5390_v25 = vpack.c.bf16 %v5377_v28, %v5376_v61 }
 0xcb0   : > { %7994 = vmatprep.mubr.msk.bf16.mxu0 %vm2490_vm11, %v5390_v25  ;;  %v8520_v34 = vpop.permute.xlu0 %8519 }
 0xcb1   : > { %v8522_v42 = vunpack.i.h.bf16 %v8520_v34  ;;  %v8521_v31 = vunpack.i.l.bf16 %v8520_v34 }
 0xcb2   : > { %v8525_v21 = vpop.permute.xlu1 %8524 }
 0xcb3   : > { %v8527_v15 = vunpack.i.h.bf16 %v8525_v21  ;;  %v8526_v29 = vunpack.i.l.bf16 %v8525_v21  ;;  %v5365_v12 = vsel %vm1980_vm8, %v11869_v18, %v8522_v42  ;;  %v5364_v38 = vsel %vm1980_vm8, %v5172_v47, %v8521_v31 }
 0xcb5   : > { %v5378_v33 = vsel %vm2412_vm10, %v5362_v19, %v8526_v29  ;;  %v5379_v52 = vsel %vm2412_vm10, %v5363_v50, %v8527_v15  ;;  %v5178_v15 = vmul.f32 %v9237_v7, %v11910_v22  ;;  %v7509_v22 = vld [vmem:[%s12819_s15 + $0x9] ss:$0 sm:$0xff] }
 0xcb6   : > { %v5391_v40 = vpack.c.bf16 %v5379_v52, %v5378_v33 }
 0xcb8   : > { %7995 = vmatmul.mubr.msk.bf16.gmra.mrb[132].mxu0 %vm2490_vm11, %v5391_v40  ;;  %v8530_v36 = vpop.permute.xlu1 %8529 }
 0xcb9   : > { %v8532_v23 = vunpack.i.h.bf16 %v8530_v36  ;;  %v8531_v53 = vunpack.i.l.bf16 %v8530_v36 }
 0xcba   : > { %v8535_v13 = vpop.permute.xlu0 %8534 }
 0xcbb   : > { %v8537_v30 = vunpack.i.h.bf16 %v8535_v13  ;;  %v8536_v43 = vunpack.i.l.bf16 %v8535_v13  ;;  %v5367_v18 = vsel %vm1980_vm8, %v11886_v35, %v8532_v23  ;;  %v5366_v5 = vsel %vm1980_vm8, %v5174_v41, %v8531_v53 }
 0xcbd   : > { %v5380_v62 = vsel %vm2412_vm10, %v5364_v38, %v8536_v43  ;;  %v5381_v17 = vsel %vm2412_vm10, %v5365_v12, %v8537_v30 }
 0xcbe   : > { %v5392_v24 = vpack.c.bf16 %v5381_v17, %v5380_v62 }
 0xcc0   : > { %7998 = vmatprep.mubr.msk.bf16.mxu0 %vm2490_vm11, %v5392_v24  ;;  %v8540_v44 = vpop.permute.xlu0 %8539 }
 0xcc1   : > { %v8542_v60 = vunpack.i.h.bf16 %v8540_v44  ;;  %v8541_v11 = vunpack.i.l.bf16 %v8540_v44 }
 0xcc2   : > { %v8545_v59 = vpop.permute.xlu1 %8544 }
 0xcc3   : > { %v8547_v63 = vunpack.i.h.bf16 %v8545_v59  ;;  %v8546_v51 = vunpack.i.l.bf16 %v8545_v59  ;;  %v5369_v55 = vsel %vm1980_vm8, %v11903_v3, %v8542_v60  ;;  %v5368_v21 = vsel %vm1980_vm8, %v5176_v10, %v8541_v11 }
 0xcc5   : > { %v5382_v48 = vsel %vm2412_vm10, %v5366_v5, %v8546_v51  ;;  %v5383_v57 = vsel %vm2412_vm10, %v5367_v18, %v8547_v63 }
 0xcc6   : > { %v5393_v26 = vpack.c.bf16 %v5383_v57, %v5382_v48 }
 0xcc8   : > { %v8550_v61 = vpop.permute.xlu1 %8549  ;;  %7999 = vmatmul.mubr.msk.bf16.gmra.mrb[136].mxu0 %vm2490_vm11, %v5393_v26 }
 0xcc9   : > { %v8552_v28 = vunpack.i.h.bf16 %v8550_v61  ;;  %v8551_v25 = vunpack.i.l.bf16 %v8550_v61 }
 0xcca   : > { %v8555_v16 = vpop.permute.xlu0 %8554 }
 0xccb   : > { %v8557_v35 = vunpack.i.h.bf16 %v8555_v16  ;;  %v8556_v4 = vunpack.i.l.bf16 %v8555_v16  ;;  %v5371_v33 = vsel %vm1980_vm8, %v11927_v8, %v8552_v28  ;;  %v5370_v52 = vsel %vm1980_vm8, %v5178_v15, %v8551_v25 }
 0xccc   : > { %v8560_v29 = vpop.permute.xlu1 %8559 }
 0xccd   : > { %v5384_v50 = vsel %vm2412_vm10, %v5368_v21, %v8556_v4  ;;  %v5385_v19 = vsel %vm2412_vm10, %v5369_v55, %v8557_v35  ;;  %v8562_v34 = vunpack.i.h.bf16 %v8560_v29  ;;  %v8561_v14 = vunpack.i.l.bf16 %v8560_v29 }
 0xcce   : > { %v5394_v40 = vpack.c.bf16 %v5385_v19, %v5384_v50 }
 0xccf   : > { %v5387_v3 = vsel %vm2412_vm10, %v5371_v33, %v8562_v34  ;;  %v5386_v42 = vsel %vm2412_vm10, %v5370_v52, %v8561_v14 }
 0xcd0   : > { %v5395_v31 = vpack.c.bf16 %v5387_v3, %v5386_v42  ;;  %8002 = vmatprep.mubr.msk.bf16.mxu0 %vm2490_vm11, %v5394_v40 }
 0xcd2   : > { %8003 = vmatmul.mubr.msk.bf16.gmra.mrb[140].mxu0 %vm2490_vm11, %v5395_v31 }
 0xd7b   : > { %v7992_v47 = vpop.f32.mrb[128].mxu0 }
 0xd7c   : > { %v5516_v13 = vadd.f32 %v7992_v47, %v7509_v22  ;;  %v5507_v30 = vpop.f32.mrb[129].mxu0 }
 0xd7d   : > { %v7993_v8 = vpop.f32.mrb[130].mxu0  ;;  %v5508_v17 = vadd.f32 %v7509_v22, %v5507_v30  ;;  %v8905_v30 = vld [vmem:[%s12815_s11 + $0x8] sm:$0xff]  }
 0xd7e   : > { %v5572_v43 = vmax.f32 %v5516_v13, 0.0  ;;  %v5519_v12 = vadd.f32 %v7993_v8, %v7509_v22  ;;  %v5510_v38 = vpop.f32.mrb[131].mxu0  ;;  %v8904_v13 = vld [vmem:[%s12815_s11] sm:$0xff]  }
 0xd7f   : > { %v5511_v62 = vadd.f32 %v7509_v22, %v5510_v38  ;;  %v5570_v23 = vmax.f32 %v5508_v17, 0.0  ;;  %8006 = vmatprep.subr.bf16.mxu1 %v8904_v13  ;;  %v13035_v38 = vld [vmem:[#allocation26_spill] sm:$0xff]  ;;  %v13036_v17 = vld [vmem:[#allocation27_spill] sm:$0xff] }
 0xd80   : > { %v5573_v36 = vmax.f32 %v5519_v12, 0.0  ;;  %5606 = vrot.lane.b32.xlu1 %v5572_v43, %s8927_s26  ;;  %8007 = vmatpush3.bf16.msra.mxu1 %v8904_v13  ;;  %v8907_v43 = vld [vmem:[%s12815_s11 + $0x18] sm:$0xff]  }
 0xd81   : > { %v5571_v24 = vmax.f32 %v5511_v62, 0.0  ;;  %8008 = vmatprep.subr.bf16.mxu1 %v8905_v30 }
 0xd82   : > { %5608 = vrot.lane.b32.xlu0 %v5573_v36, %s8927_s26 }
 0xd84   : > { %8009 = vmatpush3.bf16.msra.mxu1 %v8905_v30  ;;  %v13041_v30 = vld [vmem:[#allocation32_spill] sm:$0xff] }
 0xd86   : > { %5604 = vrot.lane.b32.xlu0 %v5571_v24, %s8927_s26 }
 0xd8a   : > { %5602 = vrot.lane.b32.xlu0 %v5570_v23, %s8927_s26 }
 0xd8b   : > { %v7996_v53 = vpop.f32.mrb[132].mxu0 }
 0xd8c   : > { %v5532_v41 = vadd.f32 %v7996_v53, %v7509_v22  ;;  %v5523_v59 = vpop.f32.mrb[133].mxu0 }
 0xd8d   : > { %v5524_v63 = vadd.f32 %v7509_v22, %v5523_v59  ;;  %v7997_v51 = vpop.f32.mrb[134].mxu0 }
 0xd8e   : > { %v5576_v18 = vmax.f32 %v5532_v41, 0.0  ;;  %v5526_v5 = vpop.f32.mrb[135].mxu0  ;;  %v5535_v57 = vadd.f32 %v7997_v51, %v7509_v22  ;;  %v13037_v51 = vld [vmem:[#allocation29_spill] sm:$0xff] }
 0xd8f   : > { %v5574_v44 = vmax.f32 %v5524_v63, 0.0  ;;  %v5527_v48 = vadd.f32 %v7509_v22, %v5526_v5 }
 0xd90   : > { %5614 = vrot.lane.b32.xlu0 %v5576_v18, %s8927_s26  ;;  %v5577_v60 = vmax.f32 %v5535_v57, 0.0  ;;  %v8908_v57 = vld [vmem:[%s12815_s11 + $0x20] sm:$0xff]  }
 0xd91   : > { %5610 = vrot.lane.b32.xlu1 %v5574_v44, %s8927_s26  ;;  %v5575_v26 = vmax.f32 %v5527_v48, 0.0 }
 0xd95   : > { %5612 = vrot.lane.b32.xlu1 %v5575_v26, %s8927_s26 }
 0xd99   : > { %5616 = vrot.lane.b32.xlu1 %v5577_v60, %s8927_s26 }
 0xd9b   : > { %v8000_v11 = vpop.f32.mrb[136].mxu0 }
 0xd9c   : > { %v5539_v61 = vpop.f32.mrb[137].mxu0  ;;  %v5548_v16 = vadd.f32 %v8000_v11, %v7509_v22 }
 0xd9d   : > { %v5540_v10 = vadd.f32 %v7509_v22, %v5539_v61  ;;  %v8001_v28 = vpop.f32.mrb[138].mxu0  ;;  %v13038_v61 = vld [vmem:[#allocation28_spill] sm:$0xff] }
 0xd9e   : > { %v5542_v25 = vpop.f32.mrb[139].mxu0  ;;  %v5551_v55 = vadd.f32 %v8001_v28, %v7509_v22  ;;  %v5580_v15 = vmax.f32 %v5548_v16, 0.0 }
 0xd9f   : > { %v5578_v35 = vmax.f32 %v5540_v10, 0.0  ;;  %v5543_v4 = vadd.f32 %v7509_v22, %v5542_v25 }
 0xda0   : > { %v5581_v29 = vmax.f32 %v5551_v55, 0.0 }
 0xda1   : > { %v5579_v21 = vmax.f32 %v5543_v4, 0.0  ;;  %5618 = vrot.lane.b32.xlu0 %v5578_v35, %s8927_s26 }
 0xda3   : > { %5620 = vrot.lane.b32.xlu1 %v5579_v21, %s8927_s26  ;;  %v8909_v21 = vld [vmem:[%s12815_s11 + $0x28] sm:$0xff]  }
 0xda5   : > { %v8004_v50 = vpop.f32.mrb[140].mxu0  ;;  %5622 = vrot.lane.b32.xlu0 %v5580_v15, %s8927_s26 }
 0xda6   : > { %v5555_v19 = vpop.f32.mrb[141].mxu0  ;;  %v5564_v52 = vadd.f32 %v8004_v50, %v7509_v22 }
 0xda7   : > { %v5556_v34 = vadd.f32 %v7509_v22, %v5555_v19  ;;  %v8005_v14 = vpop.f32.mrb[142].mxu0  ;;  %5624 = vrot.lane.b32.xlu1 %v5581_v29, %s8927_s26 }
 0xda8   : > { %v5558_v33 = vpop.f32.mrb[143].mxu0  ;;  %v5567_v42 = vadd.f32 %v8005_v14, %v7509_v22  ;;  %v5584_v47 = vmax.f32 %v5564_v52, 0.0 }
 0xda9   : > { %v5582_v40 = vmax.f32 %v5556_v34, 0.0  ;;  %v5559_v3 = vadd.f32 %v7509_v22, %v5558_v33  ;;  %v8906_v22 = vld [vmem:[%s12815_s11 + $0x10] sm:$0xff]   ;;  %v13039_v34 = vld [vmem:[#allocation31_spill] sm:$0xff]  ;;  %v13040_v33 = vld [vmem:[#allocation30_spill] sm:$0xff] }
 0xdaa   : > { %v5585_v8 = vmax.f32 %v5567_v42, 0.0  ;;  %8010 = vmatprep.subr.bf16.mxu1 %v8906_v22 }
 0xdab   : > { %v5583_v31 = vmax.f32 %v5559_v3, 0.0  ;;  %5626 = vrot.lane.b32.xlu0 %v5582_v40, %s8927_s26  ;;  %8011 = vmatpush3.bf16.msra.mxu1 %v8906_v22 }
 0xdac   : > { %8012 = vmatprep.subr.bf16.mxu1 %v8907_v43 }
 0xdad   : > { %5628 = vrot.lane.b32.xlu1 %v5583_v31, %s8927_s26 }
 0xdaf   : > { %5630 = vrot.lane.b32.xlu0 %v5584_v47, %s8927_s26  ;;  %8013 = vmatpush3.bf16.msra.mxu1 %v8907_v43 }
 0xdb0   : > { %8014 = vmatprep.subr.bf16.mxu1 %v8908_v57 }
 0xdb1   : > { %5632 = vrot.lane.b32.xlu1 %v5585_v8, %s8927_s26 }
 0xdb3   : > { %8015 = vmatpush3.bf16.msra.mxu1 %v8908_v57 }
 0xdb4   : > { %8016 = vmatprep.subr.bf16.mxu1 %v8909_v21 }
 0xdb7   : > { %8017 = vmatpush3.bf16.msra.mxu1 %v8909_v21 }
 0xdf2   : > { %v5607_v12 = vpop.permute.xlu1 %5606 }
 0xdf3   : > { %v5652_v36 = vsel %vm1556_vm6, %v13035_v38, %v5607_v12 }
 0xdf4   : > { %v5609_v62 = vpop.permute.xlu0 %5608  ;;  %v5668_v23 = vrot.slane %v5652_v36, 7  ;;  %v5716_v5 = vrot.slane %v5652_v36, 1 }
 0xdf5   : > { %v5653_v24 = vsel %vm1556_vm6, %v13036_v17, %v5609_v62 }
 0xdf6   : > { %v8563_v53 = vpack.i.bf16 %v5653_v24, %v5652_v36  ;;  %v5669_v41 = vrot.slane %v5653_v24, 7  ;;  %v5717_v19 = vrot.slane %v5653_v24, 1 }
 0xdf8   : > { %8564 = vrot.lane.b32.xlu1 %v8563_v53, %s8928_s0  ;;  %v5605_v59 = vpop.permute.xlu0 %5604  ;;  %v12034_v63 = vsel %vm864_vm0, %v5668_v23, %v5669_v41  ;;  %v5742_v22 = vsel %vm913_vm4, %v5716_v5, %v5717_v19 }
 0xdf9   : > { %v5651_v18 = vsel %vm1556_vm6, %v13037_v51, %v5605_v59  ;;  %v13042_v59 = vld [vmem:[#allocation33_spill] sm:$0xff] }
 0xdfa   : > { %v5667_v44 = vrot.slane %v5651_v18, 7  ;;  %v5715_v48 = vrot.slane %v5651_v18, 1 }
 0xdfc   : > { %v12043_v26 = vsel %vm864_vm0, %v5667_v44, %v5668_v23  ;;  %v5743_v60 = vsel %vm913_vm4, %v5715_v48, %v5716_v5  ;;  %v5603_v11 = vpop.permute.xlu0 %5602 }
 0xdfd   : > { %v12049_v10 = vsel %vm1556_vm6, %v13038_v61, %v5603_v11  ;;  %v5747_v35 = vmul.f32 %v9104_v45, %v5743_v60 }
 0xdfe   : > { %v8568_v28 = vpack.i.bf16 %v5651_v18, %v12049_v10  ;;  %v5666_v25 = vrot.slane %v12049_v10, 7  ;;  %v5714_v16 = vrot.slane %v12049_v10, 1 }
 0xe00   : > { %8569 = vrot.lane.b32.xlu0 %v8568_v28, %s8928_s0  ;;  %v5744_v4 = vsel %vm913_vm4, %v5714_v16, %v5715_v48  ;;  %v12064_v55 = vsel %vm864_vm0, %v5666_v25, %v5667_v44  ;;  %v13043_v28 = vld [vmem:[#allocation35_spill] sm:$0xff] }
 0xe01   : > { %v8573_v15 = vpack.i.bf16 %v5747_v35, %v5744_v4 }
 0xe02   : > { %v5615_v29 = vpop.permute.xlu0 %5614 }
 0xe03   : > { %v5611_v50 = vpop.permute.xlu1 %5610  ;;  %v5656_v52 = vsel %vm1556_vm6, %v13040_v33, %v5615_v29  ;;  %v13044_v29 = vld [vmem:[#allocation36_spill] sm:$0xff] }
 0xe04   : > { %v5654_v14 = vsel %vm1556_vm6, %v13039_v34, %v5611_v50  ;;  %8574 = vrot.lane.b32.xlu0 %v8573_v15, %s8929_s29  ;;  %v5672_v13 = vrot.slane %v5656_v52, 7  ;;  %v5720_v12 = vrot.slane %v5656_v52, 1 }
 0xe05   : > { %v5670_v40 = vrot.slane %v5654_v14, 7  ;;  %v5718_v3 = vrot.slane %v5654_v14, 1 }
 0xe07   : > { %v12076_v42 = vsel %vm864_vm0, %v5669_v41, %v5670_v40  ;;  %v5741_v31 = vsel %vm913_vm4, %v5717_v19, %v5718_v3  ;;  %v5613_v47 = vpop.permute.xlu1 %5612 }
 0xe08   : > { %v5655_v8 = vsel %vm1556_vm6, %v13041_v30, %v5613_v47  ;;  %v5749_v43 = vmul.f32 %v9124_v54, %v5741_v31 }
 0xe09   : > { %v8578_v38 = vpack.i.bf16 %v5655_v8, %v5654_v14  ;;  %v5671_v36 = vrot.slane %v5655_v8, 7  ;;  %v5719_v62 = vrot.slane %v5655_v8, 1 }
 0xe0a   : > { %v8583_v17 = vpack.i.bf16 %v5749_v43, %v5742_v22 }
 0xe0b   : > { %v12087_v24 = vsel %vm864_vm0, %v5671_v36, %v5672_v13  ;;  %v5739_v23 = vsel %vm913_vm4, %v5719_v62, %v5720_v12  ;;  %v5617_v53 = vpop.permute.xlu1 %5616  ;;  %8579 = vrot.lane.b32.xlu0 %v8578_v38, %s8928_s0  ;;  %v12094_v41 = vsel %vm864_vm0, %v5670_v40, %v5671_v36  ;;  %v5740_v48 = vsel %vm913_vm4, %v5718_v3, %v5719_v62  ;;  %v13045_v40 = vld [vmem:[#allocation34_spill] sm:$0xff]  ;;  %v13046_v38 = vld [vmem:[#allocation37_spill] sm:$0xff] }
 0xe0c   : > { %v5657_v51 = vsel %vm1556_vm6, %v13042_v59, %v5617_v53  ;;  %8584 = vrot.lane.b32.xlu1 %v8583_v17, %s8929_s29  ;;  %v5751_v18 = vmul.f32 %v13000_v1, %v5739_v23 }
 0xe0d   : > { %v5673_v5 = vrot.slane %v5657_v51, 7  ;;  %v8588_v44 = vpack.i.bf16 %v5657_v51, %v5656_v52  ;;  %v5721_v61 = vrot.slane %v5657_v51, 1 }
 0xe0e   : > { %v8593_v57 = vpack.i.bf16 %v5751_v18, %v5740_v48  ;;  %v13047_v48 = vld [vmem:[#allocation39_spill] sm:$0xff] }
 0xe0f   : > { %v12104_v60 = vsel %vm864_vm0, %v5672_v13, %v5673_v5  ;;  %v5738_v31 = vsel %vm913_vm4, %v5720_v12, %v5721_v61 }
 0xe10   : > { %8589 = vrot.lane.b32.xlu1 %v8588_v44, %s8928_s0  ;;  %8594 = vrot.lane.b32.xlu0 %v8593_v57, %s8929_s29 }
 0xe13   : > { %v5619_v11 = vpop.permute.xlu0 %5618 }
 0xe14   : > { %v5658_v35 = vsel %vm1556_vm6, %v13043_v28, %v5619_v11 }
 0xe15   : > { %v5674_v4 = vrot.slane %v5658_v35, 7  ;;  %v5722_v21 = vrot.slane %v5658_v35, 1  ;;  %v5621_v15 = vpop.permute.xlu1 %5620 }
 0xe16   : > { %v5659_v50 = vsel %vm1556_vm6, %v13044_v29, %v5621_v15 }
 0xe17   : > { %v12114_v19 = vsel %vm864_vm0, %v5673_v5, %v5674_v4  ;;  %v5737_v34 = vsel %vm913_vm4, %v5721_v61, %v5722_v21  ;;  %v5675_v14 = vrot.slane %v5659_v50, 7  ;;  %v5623_v33 = vpop.permute.xlu0 %5622  ;;  %v8598_v52 = vpack.i.bf16 %v5659_v50, %v5658_v35 }
 0xe18   : > { %v5660_v3 = vsel %vm1556_vm6, %v13045_v40, %v5623_v33  ;;  %v5753_v47 = vmul.f32 %v13004_v39, %v5737_v34  ;;  %v5723_v13 = vrot.slane %v5659_v50, 1  ;;  %v13049_v33 = vld [vmem:[#allocation38_spill] sm:$0xff] }
 0xe19   : > { %v5676_v30 = vrot.slane %v5660_v3, 7  ;;  %v5724_v8 = vrot.slane %v5660_v3, 1  ;;  %v5625_v22 = vpop.permute.xlu1 %5624  ;;  %v12125_v43 = vsel %vm864_vm0, %v5674_v4, %v5675_v14  ;;  %8599 = vrot.lane.b32.xlu0 %v8598_v52, %s8928_s0  ;;  %v13048_v4 = vld [vmem:[#allocation41_spill] sm:$0xff] }
 0xe1a   : > { %v5661_v36 = vsel %vm1556_vm6, %v13046_v38, %v5625_v22  ;;  %v8603_v62 = vpack.i.bf16 %v5753_v47, %v5738_v31  ;;  %v5736_v51 = vsel %vm913_vm4, %v5722_v21, %v5723_v13  ;;  %v13050_v38 = vld [vmem:[#allocation40_spill] sm:$0xff] }
 0xe1b   : > { %v12132_v17 = vsel %vm864_vm0, %v5675_v14, %v5676_v30  ;;  %v5735_v12 = vsel %vm913_vm4, %v5723_v13, %v5724_v8  ;;  %v5677_v23 = vrot.slane %v5661_v36, 7  ;;  %v5725_v5 = vrot.slane %v5661_v36, 1 }
 0xe1c   : > { %8604 = vrot.lane.b32.xlu1 %v8603_v62, %s8929_s29  ;;  %v5755_v53 = vmul.f32 %v13007_v20, %v5735_v12  ;;  %v8608_v44 = vpack.i.bf16 %v5661_v36, %v5660_v3 }
 0xe1d   : > { %v5627_v59 = vpop.permute.xlu0 %5626  ;;  %v12142_v18 = vsel %vm864_vm0, %v5676_v30, %v5677_v23  ;;  %v5734_v40 = vsel %vm913_vm4, %v5724_v8, %v5725_v5 }
 0xe1e   : > { %v5662_v57 = vsel %vm1556_vm6, %v13047_v48, %v5627_v59  ;;  %v8613_v11 = vpack.i.bf16 %v5755_v53, %v5736_v51 }
 0xe1f   : > { %v5678_v61 = vrot.slane %v5662_v57, 7  ;;  %v5726_v28 = vrot.slane %v5662_v57, 1  ;;  %v5629_v35 = vpop.permute.xlu1 %5628 }
 0xe20   : > { %v5663_v15 = vsel %vm1556_vm6, %v13048_v4, %v5629_v35  ;;  %8609 = vrot.lane.b32.xlu1 %v8608_v44, %s8928_s0  ;;  %8614 = vrot.lane.b32.xlu0 %v8613_v11, %s8929_s29 }
 0xe21   : > { %v12152_v21 = vsel %vm864_vm0, %v5677_v23, %v5678_v61  ;;  %v5733_v29 = vsel %vm913_vm4, %v5725_v5, %v5726_v28  ;;  %v5679_v50 = vrot.slane %v5663_v15, 7  ;;  %v5631_v34 = vpop.permute.xlu0 %5630  ;;  %v8618_v14 = vpack.i.bf16 %v5663_v15, %v5662_v57 }
 0xe22   : > { %v5664_v52 = vsel %vm1556_vm6, %v13049_v33, %v5631_v34  ;;  %v5757_v3 = vmul.f32 %v13011_v58, %v5733_v29  ;;  %v5727_v31 = vrot.slane %v5663_v15, 1 }
 0xe23   : > { %v5680_v47 = vrot.slane %v5664_v52, 7  ;;  %v5728_v13 = vrot.slane %v5664_v52, 1  ;;  %v5633_v30 = vpop.permute.xlu1 %5632  ;;  %v12163_v22 = vsel %vm864_vm0, %v5678_v61, %v5679_v50 }
 0xe24   : > { %v5665_v36 = vsel %vm1556_vm6, %v13050_v38, %v5633_v30  ;;  %8619 = vrot.lane.b32.xlu0 %v8618_v14, %s8928_s0  ;;  %v8623_v62 = vpack.i.bf16 %v5757_v3, %v5734_v40  ;;  %v5732_v44 = vsel %vm913_vm4, %v5726_v28, %v5727_v31  ;;  %v5700_v30 = vmul.f32 %v9078_v27, %v12043_v26 }
 0xe25   : > { %v12170_v12 = vsel %vm864_vm0, %v5679_v50, %v5680_v47  ;;  %v5731_v8 = vsel %vm913_vm4, %v5727_v31, %v5728_v13  ;;  %v5681_v23 = vrot.slane %v5665_v36, 7  ;;  %v5729_v53 = vrot.slane %v5665_v36, 1 }
 0xe26   : > { %8624 = vrot.lane.b32.xlu1 %v8623_v62, %s8929_s29  ;;  %v5759_v59 = vmul.f32 %v9240_v9, %v5731_v8  ;;  %v8628_v57 = vpack.i.bf16 %v5665_v36, %v5664_v52 }
 0xe27   : > { %v5697_v51 = vsel %vm864_vm0, %v5681_v23, %v5666_v25  ;;  %v5745_v5 = vsel %vm913_vm4, %v5729_v53, %v5714_v16  ;;  %v12188_v48 = vsel %vm864_vm0, %v5680_v47, %v5681_v23  ;;  %v5730_v10 = vsel %vm913_vm4, %v5728_v13, %v5729_v53 }
 0xe28   : > { %v8633_v11 = vpack.i.bf16 %v5759_v59, %v5732_v44  ;;  %v5761_v61 = vmul.f32 %v9260_v32, %v5745_v5  ;;  %v5698_v4 = vmul.f32 %v9089_v37, %v5697_v51  ;;  %v5702_v5 = vmul.f32 %v13002_v46, %v12076_v42 }
 0xe2a   : > { %8629 = vrot.lane.b32.xlu1 %v8628_v57, %s8928_s0  ;;  %8634 = vrot.lane.b32.xlu0 %v8633_v11, %s8929_s29  ;;  %v8638_v25 = vpack.i.bf16 %v5761_v61, %v5730_v10 }
 0xe2e   : > { %8639 = vrot.lane.b32.xlu1 %v8638_v25, %s8929_s29 }
 0xe6a   : > { %v8565_v33 = vpop.permute.xlu1 %8564 }
 0xe6b   : > { %v8567_v31 = vunpack.i.h.bf16 %v8565_v33  ;;  %v8566_v47 = vunpack.i.l.bf16 %v8565_v33 }
 0xe6d   : > { %v5892_v8 = vsel %vm1980_vm8, %v5700_v30, %v8566_v47 }
 0xe72   : > { %v8570_v16 = vpop.permute.xlu0 %8569 }
 0xe73   : > { %v8572_v28 = vunpack.i.h.bf16 %v8570_v16  ;;  %v8571_v35 = vunpack.i.l.bf16 %v8570_v16 }
 0xe75   : > { %v5891_v34 = vsel %vm1980_vm8, %v12064_v55, %v8572_v28  ;;  %v5890_v14 = vsel %vm1980_vm8, %v5698_v4, %v8571_v35  ;;  %v5893_v55 = vsel %vm1980_vm8, %v12034_v63, %v8567_v31  ;;  %v5706_v31 = vmul.f32 %v13012_v56, %v12114_v19 }
 0xe76   : > { %v8575_v15 = vpop.permute.xlu0 %8574 }
 0xe77   : > { %v8577_v29 = vunpack.i.h.bf16 %v8575_v15  ;;  %v8576_v50 = vunpack.i.l.bf16 %v8575_v15  ;;  %v5704_v15 = vmul.f32 %v13009_v49, %v12087_v24 }
 0xe79   : > { %v5906_v52 = vsel %vm2412_vm10, %v5890_v14, %v8576_v50  ;;  %v5907_v40 = vsel %vm2412_vm10, %v5891_v34, %v8577_v29 }
 0xe7a   : > { %v5922_v3 = vpack.c.bf16 %v5907_v40, %v5906_v52 }
 0xe7c   : > { %8018 = vmatprep.mubr.msk.bf16.mxu1 %vm2490_vm11, %v5922_v3 }
 0xe7d   : > { %v8580_v13 = vpop.permute.xlu0 %8579 }
 0xe7e   : > { %v8585_v38 = vpop.permute.xlu1 %8584  ;;  %v8582_v23 = vunpack.i.h.bf16 %v8580_v13  ;;  %v8581_v53 = vunpack.i.l.bf16 %v8580_v13 }
 0xe7f   : > { %v8587_v36 = vunpack.i.h.bf16 %v8585_v38  ;;  %v8586_v62 = vunpack.i.l.bf16 %v8585_v38 }
 0xe80   : > { %v5895_v61 = vsel %vm1980_vm8, %v12094_v41, %v8582_v23  ;;  %v5894_v63 = vsel %vm1980_vm8, %v5702_v5, %v8581_v53 }
 0xe81   : > { %v5908_v59 = vsel %vm2412_vm10, %v5892_v8, %v8586_v62  ;;  %v5909_v51 = vsel %vm2412_vm10, %v5893_v55, %v8587_v36 }
 0xe82   : > { %v5923_v44 = vpack.c.bf16 %v5909_v51, %v5908_v59  ;;  %v8595_v57 = vpop.permute.xlu0 %8594  ;;  %v8590_v28 = vpop.permute.xlu1 %8589  ;;  %v5708_v59 = vmul.f32 %v13013_v0, %v12132_v17 }
 0xe83   : > { %v8597_v26 = vunpack.i.h.bf16 %v8595_v57  ;;  %v8596_v11 = vunpack.i.l.bf16 %v8595_v57  ;;  %v8592_v42 = vunpack.i.h.bf16 %v8590_v28  ;;  %v8591_v35 = vunpack.i.l.bf16 %v8590_v28 }
 0xe84   : > { %8019 = vmatmul.mubr.msk.bf16.vlgmr.msra.gmra.mrb[112].mxu1 %vm2490_vm11, %v5923_v44 }
 0xe85   : > { %v5910_v10 = vsel %vm2412_vm10, %v5894_v63, %v8596_v11  ;;  %v5911_v25 = vsel %vm2412_vm10, %v5895_v61, %v8597_v26  ;;  %v5896_v34 = vsel %vm1980_vm8, %v5704_v15, %v8591_v35  ;;  %v5897_v14 = vsel %vm1980_vm8, %v12104_v60, %v8592_v42 }
 0xe86   : > { %v5924_v16 = vpack.c.bf16 %v5911_v25, %v5910_v10  ;;  %v5710_v10 = vmul.f32 %v9234_v6, %v12152_v21  ;;  %v5712_v21 = vmul.f32 %v9237_v7, %v12170_v12  ;;  %v8910_v12 = vld [vmem:[%s12816_s12] sm:$0xff]  }
 0xe87   : > { %8034 = vmatprep.subr.bf16.mxu0 %v8910_v12 }
 0xe88   : > { %8022 = vmatprep.mubr.msk.bf16.mxu1 %vm2490_vm11, %v5924_v16  ;;  %8035 = vmatpush3.bf16.msra.mxu0 %v8910_v12 }
 0xe8b   : > { %v8600_v4 = vpop.permute.xlu0 %8599 }
 0xe8c   : > { %v8602_v33 = vunpack.i.h.bf16 %v8600_v4  ;;  %v8601_v52 = vunpack.i.l.bf16 %v8600_v4 }
 0xe8e   : > { %v8605_v29 = vpop.permute.xlu1 %8604  ;;  %v5899_v36 = vsel %vm1980_vm8, %v12125_v43, %v8602_v33  ;;  %v5898_v62 = vsel %vm1980_vm8, %v5706_v31, %v8601_v52 }
 0xe8f   : > { %v8607_v41 = vunpack.i.h.bf16 %v8605_v29  ;;  %v8606_v50 = vunpack.i.l.bf16 %v8605_v29 }
 0xe91   : > { %v5913_v40 = vsel %vm2412_vm10, %v5897_v14, %v8607_v41  ;;  %v5912_v3 = vsel %vm2412_vm10, %v5896_v34, %v8606_v50 }
 0xe92   : > { %v5925_v47 = vpack.c.bf16 %v5913_v40, %v5912_v3  ;;  %v8615_v13 = vpop.permute.xlu0 %8614  ;;  %v8610_v24 = vpop.permute.xlu1 %8609 }
 0xe93   : > { %v8617_v30 = vunpack.i.h.bf16 %v8615_v13  ;;  %v8616_v38 = vunpack.i.l.bf16 %v8615_v13  ;;  %v8612_v8 = vunpack.i.h.bf16 %v8610_v24  ;;  %v8611_v23 = vunpack.i.l.bf16 %v8610_v24 }
 0xe94   : > { %8023 = vmatmul.mubr.msk.bf16.gmra.mrb[116].mxu1 %vm2490_vm11, %v5925_v47  ;;  %v12265_v47 = vld [vmem:[%s12819_s15 + $0xa] ss:$0 sm:$0xff] }
 0xe95   : > { %v5914_v60 = vsel %vm2412_vm10, %v5898_v62, %v8616_v38  ;;  %v5915_v55 = vsel %vm2412_vm10, %v5899_v36, %v8617_v30  ;;  %v5900_v44 = vsel %vm1980_vm8, %v5708_v59, %v8611_v23  ;;  %v5901_v57 = vsel %vm1980_vm8, %v12142_v18, %v8612_v8 }
 0xe96   : > { %v5926_v53 = vpack.c.bf16 %v5915_v55, %v5914_v60  ;;  %v8620_v19 = vpop.permute.xlu0 %8619 }
 0xe97   : > { %v8622_v26 = vunpack.i.h.bf16 %v8620_v19  ;;  %v8621_v11 = vunpack.i.l.bf16 %v8620_v19 }
 0xe98   : > { %v8625_v51 = vpop.permute.xlu1 %8624  ;;  %8026 = vmatprep.mubr.msk.bf16.mxu1 %vm2490_vm11, %v5926_v53 }
 0xe99   : > { %v8627_v5 = vunpack.i.h.bf16 %v8625_v51  ;;  %v8626_v43 = vunpack.i.l.bf16 %v8625_v51  ;;  %v5903_v35 = vsel %vm1980_vm8, %v12163_v22, %v8622_v26  ;;  %v5902_v4 = vsel %vm1980_vm8, %v5710_v10, %v8621_v11  ;;  %v8912_v26 = vld [vmem:[%s12816_s12 + $0x10] sm:$0xff]  }
 0xe9b   : > { %v5917_v61 = vsel %vm2412_vm10, %v5901_v57, %v8627_v5  ;;  %v5916_v63 = vsel %vm2412_vm10, %v5900_v44, %v8626_v43 }
 0xe9c   : > { %v5927_v17 = vpack.c.bf16 %v5917_v61, %v5916_v63  ;;  %v8630_v25 = vpop.permute.xlu1 %8629  ;;  %v8635_v16 = vpop.permute.xlu0 %8634 }
 0xe9d   : > { %v8637_v28 = vunpack.i.h.bf16 %v8635_v16  ;;  %v8636_v42 = vunpack.i.l.bf16 %v8635_v16  ;;  %v8632_v18 = vunpack.i.h.bf16 %v8630_v25  ;;  %v8631_v15 = vunpack.i.l.bf16 %v8630_v25 }
 0xe9e   : > { %8027 = vmatmul.mubr.msk.bf16.gmra.mrb[120].mxu1 %vm2490_vm11, %v5927_v17 }
 0xe9f   : > { %v5918_v29 = vsel %vm2412_vm10, %v5902_v4, %v8636_v42  ;;  %v5919_v41 = vsel %vm2412_vm10, %v5903_v35, %v8637_v28  ;;  %v5904_v52 = vsel %vm1980_vm8, %v5712_v21, %v8631_v15  ;;  %v5905_v22 = vsel %vm1980_vm8, %v12188_v48, %v8632_v18  ;;  %v8911_v48 = vld [vmem:[%s12816_s12 + $0x8] sm:$0xff]  }
 0xea0   : > { %v5928_v50 = vpack.c.bf16 %v5919_v41, %v5918_v29  ;;  %v8640_v34 = vpop.permute.xlu1 %8639  ;;  %8036 = vmatprep.subr.bf16.mxu0 %v8911_v48 }
 0xea1   : > { %v8642_v14 = vunpack.i.h.bf16 %v8640_v34  ;;  %v8641_v33 = vunpack.i.l.bf16 %v8640_v34  ;;  %8037 = vmatpush3.bf16.msra.mxu0 %v8911_v48 }
 0xea2   : > { %8030 = vmatprep.mubr.msk.bf16.mxu1 %vm2490_vm11, %v5928_v50  ;;  %8038 = vmatprep.subr.bf16.mxu0 %v8912_v26 }
 0xea3   : > { %v5920_v40 = vsel %vm2412_vm10, %v5904_v52, %v8641_v33  ;;  %v5921_v3 = vsel %vm2412_vm10, %v5905_v22, %v8642_v14 }
 0xea4   : > { %v5929_v31 = vpack.c.bf16 %v5921_v3, %v5920_v40 }
 0xea5   : > { %8039 = vmatpush3.bf16.msra.mxu0 %v8912_v26 }
 0xea6   : > { %8031 = vmatmul.mubr.msk.bf16.gmra.mrb[124].mxu1 %vm2490_vm11, %v5929_v31 }
 0xf57   : > { %v8020_v13 = vpop.f32.mrb[112].mxu1 }
 0xf58   : > { %v6050_v24 = vadd.f32 %v8020_v13, %v12265_v47  ;;  %v6041_v30 = vpop.f32.mrb[113].mxu1 }
 0xf59   : > { %v6042_v38 = vadd.f32 %v12265_v47, %v6041_v30  ;;  %v8021_v36 = vpop.f32.mrb[114].mxu1 }
 0xf5a   : > { %v6106_v62 = vmax.f32 %v6050_v24, 0.0  ;;  %v6053_v60 = vadd.f32 %v8021_v36, %v12265_v47  ;;  %v6044_v55 = vpop.f32.mrb[115].mxu1 }
 0xf5b   : > { %v12273_v8 = vmax.f32 %v6042_v38, 0.0  ;;  %v6045_v23 = vadd.f32 %v12265_v47, %v6044_v55 }
 0xf5c   : > { %v6107_v53 = vmax.f32 %v6053_v60, 0.0  ;;  %v6122_v19 = vrot.slane %v6106_v62, 7  ;;  %v6170_v59 = vrot.slane %v6106_v62, 1 }
 0xf5d   : > { %v6105_v51 = vmax.f32 %v6045_v23, 0.0  ;;  %v6120_v5 = vrot.slane %v12273_v8, 7  ;;  %v6168_v11 = vrot.slane %v12273_v8, 1 }
 0xf5e   : > { %v8643_v43 = vpack.i.bf16 %v6107_v53, %v6106_v62  ;;  %v6123_v44 = vrot.slane %v6107_v53, 7  ;;  %v6171_v57 = vrot.slane %v6107_v53, 1 }
 0xf5f   : > { %v6121_v61 = vrot.slane %v6105_v51, 7  ;;  %v6169_v63 = vrot.slane %v6105_v51, 1  ;;  %v8648_v10 = vpack.i.bf16 %v6105_v51, %v12273_v8 }
 0xf60   : > { %8644 = vrot.lane.b32.xlu1 %v8643_v43, %s8927_s26  ;;  %v6196_v17 = vsel %vm913_vm4, %v6170_v59, %v6171_v57  ;;  %v12287_v25 = vsel %vm864_vm0, %v6122_v19, %v6123_v44 }
 0xf61   : > { %v12291_v16 = vsel %vm864_vm0, %v6121_v61, %v6122_v19  ;;  %v6197_v28 = vsel %vm913_vm4, %v6169_v63, %v6170_v59  ;;  %8649 = vrot.lane.b32.xlu0 %v8648_v10, %s8927_s26  ;;  %v6198_v42 = vsel %vm913_vm4, %v6168_v11, %v6169_v63  ;;  %v12304_v35 = vsel %vm864_vm0, %v6120_v5, %v6121_v61 }
 0xf62   : > { %v6201_v4 = vmul.f32 %v9104_v45, %v6197_v28 }
 0xf64   : > { %v8653_v18 = vpack.i.bf16 %v6201_v4, %v6198_v42 }
 0xf66   : > { %8654 = vrot.lane.b32.xlu0 %v8653_v18, %s8928_s0 }
 0xf67   : > { %v8024_v15 = vpop.f32.mrb[116].mxu1 }
 0xf68   : > { %v6066_v29 = vadd.f32 %v8024_v15, %v12265_v47  ;;  %v6057_v41 = vpop.f32.mrb[117].mxu1 }
 0xf69   : > { %v6058_v21 = vadd.f32 %v12265_v47, %v6057_v41  ;;  %v8025_v50 = vpop.f32.mrb[118].mxu1 }
 0xf6a   : > { %v6110_v34 = vmax.f32 %v6066_v29, 0.0  ;;  %v6069_v14 = vadd.f32 %v8025_v50, %v12265_v47  ;;  %v6060_v33 = vpop.f32.mrb[119].mxu1 }
 0xf6b   : > { %v6108_v52 = vmax.f32 %v6058_v21, 0.0  ;;  %v6061_v22 = vadd.f32 %v12265_v47, %v6060_v33 }
 0xf6c   : > { %v6111_v40 = vmax.f32 %v6069_v14, 0.0  ;;  %v6126_v3 = vrot.slane %v6110_v34, 7  ;;  %v6174_v13 = vrot.slane %v6110_v34, 1 }
 0xf6d   : > { %v6124_v31 = vrot.slane %v6108_v52, 7  ;;  %v6172_v12 = vrot.slane %v6108_v52, 1  ;;  %v6109_v48 = vmax.f32 %v6061_v22, 0.0 }
 0xf6e   : > { %v8668_v24 = vpack.i.bf16 %v6111_v40, %v6110_v34  ;;  %v6127_v30 = vrot.slane %v6111_v40, 7  ;;  %v6175_v38 = vrot.slane %v6111_v40, 1 }
 0xf6f   : > { %v12314_v36 = vsel %vm864_vm0, %v6123_v44, %v6124_v31  ;;  %v6195_v62 = vsel %vm913_vm4, %v6171_v57, %v6172_v12  ;;  %v6125_v60 = vrot.slane %v6109_v48, 7  ;;  %v6173_v55 = vrot.slane %v6109_v48, 1 }
 0xf70   : > { %v8658_v23 = vpack.i.bf16 %v6109_v48, %v6108_v52  ;;  %v6203_v53 = vmul.f32 %v9124_v54, %v6195_v62  ;;  %v6192_v19 = vsel %vm913_vm4, %v6174_v13, %v6175_v38  ;;  %v12338_v28 = vsel %vm864_vm0, %v6126_v3, %v6127_v30 }
 0xf71   : > { %v12323_v59 = vsel %vm864_vm0, %v6125_v60, %v6126_v3  ;;  %v6193_v51 = vsel %vm913_vm4, %v6173_v55, %v6174_v13  ;;  %v8028_v43 = vpop.f32.mrb[120].mxu1  ;;  %v6194_v44 = vsel %vm913_vm4, %v6172_v12, %v6173_v55  ;;  %v12331_v57 = vsel %vm864_vm0, %v6124_v31, %v6125_v60 }
 0xf72   : > { %v6082_v26 = vadd.f32 %v8028_v43, %v12265_v47  ;;  %8659 = vrot.lane.b32.xlu0 %v8658_v23, %s8927_s26  ;;  %v6073_v61 = vpop.f32.mrb[121].mxu1  ;;  %v8663_v63 = vpack.i.bf16 %v6203_v53, %v6196_v17  ;;  %v6205_v10 = vmul.f32 %v13000_v1, %v6193_v51 }
 0xf73   : > { %v6074_v42 = vadd.f32 %v12265_v47, %v6073_v61  ;;  %v8029_v4 = vpop.f32.mrb[122].mxu1 }
 0xf74   : > { %v6114_v18 = vmax.f32 %v6082_v26, 0.0  ;;  %v6085_v15 = vadd.f32 %v8029_v4, %v12265_v47  ;;  %v6076_v29 = vpop.f32.mrb[123].mxu1  ;;  %8664 = vrot.lane.b32.xlu1 %v8663_v63, %s8928_s0  ;;  %v8673_v41 = vpack.i.bf16 %v6205_v10, %v6194_v44 }
 0xf75   : > { %v6112_v21 = vmax.f32 %v6074_v42, 0.0  ;;  %v6077_v50 = vadd.f32 %v12265_v47, %v6076_v29 }
 0xf76   : > { %v6115_v17 = vmax.f32 %v6085_v15, 0.0  ;;  %8674 = vrot.lane.b32.xlu0 %v8673_v41, %s8928_s0  ;;  %v6130_v34 = vrot.slane %v6114_v18, 7  ;;  %v6178_v22 = vrot.slane %v6114_v18, 1 }
 0xf77   : > { %v6128_v14 = vrot.slane %v6112_v21, 7  ;;  %v6176_v33 = vrot.slane %v6112_v21, 1  ;;  %v6113_v52 = vmax.f32 %v6077_v50, 0.0 }
 0xf78   : > { %v8688_v40 = vpack.i.bf16 %v6115_v17, %v6114_v18  ;;  %v6131_v3 = vrot.slane %v6115_v17, 7  ;;  %v6179_v31 = vrot.slane %v6115_v17, 1  ;;  %8669 = vrot.lane.b32.xlu1 %v8668_v24, %s8927_s26 }
 0xf79   : > { %v12348_v12 = vsel %vm864_vm0, %v6127_v30, %v6128_v14  ;;  %v6191_v48 = vsel %vm913_vm4, %v6175_v38, %v6176_v33  ;;  %v6129_v13 = vrot.slane %v6113_v52, 7  ;;  %v6177_v62 = vrot.slane %v6113_v52, 1  ;;  %v8032_v60 = vpop.f32.mrb[124].mxu1 }
 0xf7a   : > { %v8678_v55 = vpack.i.bf16 %v6113_v52, %v6112_v21  ;;  %v6098_v23 = vadd.f32 %v8032_v60, %v12265_v47  ;;  %v6089_v53 = vpop.f32.mrb[125].mxu1  ;;  %v6207_v51 = vmul.f32 %v13004_v39, %v6191_v48  ;;  %v6188_v43 = vsel %vm913_vm4, %v6178_v22, %v6179_v31 }
 0xf7b   : > { %v12358_v24 = vsel %vm864_vm0, %v6129_v13, %v6130_v34  ;;  %v6189_v30 = vsel %vm913_vm4, %v6177_v62, %v6178_v22  ;;  %v6090_v38 = vadd.f32 %v12265_v47, %v6089_v53  ;;  %v8033_v44 = vpop.f32.mrb[126].mxu1  ;;  %v6190_v26 = vsel %vm913_vm4, %v6176_v33, %v6177_v62 }
 0xf7c   : > { %v6118_v61 = vmax.f32 %v6098_v23, 0.0  ;;  %v6101_v63 = vadd.f32 %v8033_v44, %v12265_v47  ;;  %8679 = vrot.lane.b32.xlu0 %v8678_v55, %s8927_s26  ;;  %v6092_v10 = vpop.f32.mrb[127].mxu1  ;;  %v8683_v42 = vpack.i.bf16 %v6207_v51, %v6192_v19  ;;  %v6209_v4 = vmul.f32 %v13007_v20, %v6189_v30 }
 0xf7d   : > { %v6116_v18 = vmax.f32 %v6090_v38, 0.0  ;;  %v6093_v15 = vadd.f32 %v12265_v47, %v6092_v10  ;;  %v12371_v29 = vsel %vm864_vm0, %v6128_v14, %v6129_v13  ;;  %v12376_v19 = vsel %vm864_vm0, %v6130_v34, %v6131_v3 }
 0xf7e   : > { %v6134_v41 = vrot.slane %v6118_v61, 7  ;;  %v6119_v21 = vmax.f32 %v6101_v63, 0.0  ;;  %8684 = vrot.lane.b32.xlu1 %v8683_v42, %s8928_s0  ;;  %v8693_v50 = vpack.i.bf16 %v6209_v4, %v6190_v26  ;;  %v6182_v22 = vrot.slane %v6118_v61, 1 }
 0xf7f   : > { %v6132_v17 = vrot.slane %v6116_v18, 7  ;;  %v6180_v33 = vrot.slane %v6116_v18, 1  ;;  %v6117_v52 = vmax.f32 %v6093_v15, 0.0 }
 0xf80   : > { %v8708_v48 = vpack.i.bf16 %v6119_v21, %v6118_v61  ;;  %v6135_v62 = vrot.slane %v6119_v21, 7  ;;  %v6183_v47 = vrot.slane %v6119_v21, 1  ;;  %8694 = vrot.lane.b32.xlu0 %v8693_v50, %s8928_s0 }
 0xf81   : > { %v12381_v14 = vsel %vm864_vm0, %v6131_v3, %v6132_v17  ;;  %v6187_v13 = vsel %vm913_vm4, %v6179_v31, %v6180_v33  ;;  %v6133_v60 = vrot.slane %v6117_v52, 7  ;;  %v6181_v55 = vrot.slane %v6117_v52, 1 }
 0xf82   : > { %v6151_v34 = vsel %vm864_vm0, %v6135_v62, %v6120_v5  ;;  %v6199_v23 = vsel %vm913_vm4, %v6183_v47, %v6168_v11  ;;  %v8698_v53 = vpack.i.bf16 %v6117_v52, %v6116_v18  ;;  %8689 = vrot.lane.b32.xlu1 %v8688_v40, %s8927_s26  ;;  %v6211_v3 = vmul.f32 %v13011_v58, %v6187_v13 }
 0xf83   : > { %v12397_v31 = vsel %vm864_vm0, %v6133_v60, %v6134_v41  ;;  %v6185_v51 = vsel %vm913_vm4, %v6181_v55, %v6182_v22  ;;  %v6186_v5 = vsel %vm913_vm4, %v6180_v33, %v6181_v55  ;;  %v6184_v8 = vsel %vm913_vm4, %v6182_v22, %v6183_v47 }
 0xf84   : > { %8699 = vrot.lane.b32.xlu0 %v8698_v53, %s8927_s26  ;;  %v8703_v11 = vpack.i.bf16 %v6211_v3, %v6188_v43  ;;  %v6213_v40 = vmul.f32 %v9240_v9, %v6185_v51  ;;  %v6215_v30 = vmul.f32 %v9260_v32, %v6199_v23  ;;  %v12410_v38 = vsel %vm864_vm0, %v6132_v17, %v6133_v60 }
 0xf85   : > { %v12414_v44 = vsel %vm864_vm0, %v6134_v41, %v6135_v62  ;;  %v6152_v42 = vmul.f32 %v9089_v37, %v6151_v34  ;;  %v6154_v47 = vmul.f32 %v9078_v27, %v12291_v16  ;;  %v6156_v3 = vmul.f32 %v13002_v46, %v12314_v36 }
 0xf86   : > { %8704 = vrot.lane.b32.xlu1 %v8703_v11, %s8928_s0  ;;  %v8713_v26 = vpack.i.bf16 %v6213_v40, %v6186_v5  ;;  %v8718_v61 = vpack.i.bf16 %v6215_v30, %v6184_v8 }
 0xf88   : > { %8714 = vrot.lane.b32.xlu0 %v8713_v26, %s8928_s0 }
 0xf8a   : > { %8709 = vrot.lane.b32.xlu1 %v8708_v48, %s8927_s26 }
 0xf8e   : > { %8719 = vrot.lane.b32.xlu1 %v8718_v61, %s8928_s0 }
 0xfd2   : > { %v8645_v52 = vpop.permute.xlu1 %8644 }
 0xfd3   : > { %v8650_v43 = vpop.permute.xlu0 %8649  ;;  %v8647_v22 = vunpack.i.h.bf16 %v8645_v52  ;;  %v8646_v48 = vunpack.i.l.bf16 %v8645_v52 }
 0xfd4   : > { %v8652_v63 = vunpack.i.h.bf16 %v8650_v43  ;;  %v8651_v10 = vunpack.i.l.bf16 %v8650_v43 }
 0xfd5   : > { %v6347_v53 = vsel %vm1556_vm6, %v12287_v25, %v8647_v22 }
 0xfd6   : > { %v6344_v41 = vsel %vm1556_vm6, %v6152_v42, %v8651_v10  ;;  %v6345_v21 = vsel %vm1556_vm6, %v12304_v35, %v8652_v63  ;;  %v6346_v35 = vsel %vm1556_vm6, %v6154_v47, %v8646_v48 }
 0xfd8   : > { %v8655_v4 = vpop.permute.xlu0 %8654 }
 0xfd9   : > { %v8657_v18 = vunpack.i.h.bf16 %v8655_v4  ;;  %v8656_v15 = vunpack.i.l.bf16 %v8655_v4  ;;  %v6158_v4 = vmul.f32 %v13009_v49, %v12323_v59 }
 0xfdb   : > { %v6360_v50 = vsel %vm1980_vm8, %v6344_v41, %v8656_v15  ;;  %v6361_v17 = vsel %vm1980_vm8, %v6345_v21, %v8657_v18 }
 0xfdc   : > { %v6376_v33 = vpack.c.bf16 %v6361_v17, %v6360_v50 }
 0xfde   : > { %8040 = vmatprep.mubr.msk.bf16.mxu0 %vm2034_vm9, %v6376_v33  ;;  %v6160_v33 = vmul.f32 %v13012_v56, %v12348_v12 }
 0xfe4   : > { %v8660_v62 = vpop.permute.xlu0 %8659 }
 0xfe5   : > { %v8662_v13 = vunpack.i.h.bf16 %v8660_v62  ;;  %v8661_v60 = vunpack.i.l.bf16 %v8660_v62 }
 0xfe6   : > { %v8665_v55 = vpop.permute.xlu1 %8664 }
 0xfe7   : > { %v8667_v34 = vunpack.i.h.bf16 %v8665_v55  ;;  %v8666_v23 = vunpack.i.l.bf16 %v8665_v55  ;;  %v6349_v40 = vsel %vm1556_vm6, %v12331_v57, %v8662_v13  ;;  %v6348_v30 = vsel %vm1556_vm6, %v6156_v3, %v8661_v60 }
 0xfe8   : > { %v8675_v51 = vpop.permute.xlu0 %8674  ;;  %v6162_v3 = vmul.f32 %v13013_v0, %v12358_v24 }
 0xfe9   : > { %v6363_v5 = vsel %vm1980_vm8, %v6347_v53, %v8667_v34  ;;  %v6362_v8 = vsel %vm1980_vm8, %v6346_v35, %v8666_v23  ;;  %v8677_v11 = vunpack.i.h.bf16 %v8675_v51  ;;  %v8676_v16 = vunpack.i.l.bf16 %v8675_v51 }
 0xfea   : > { %v6377_v26 = vpack.c.bf16 %v6363_v5, %v6362_v8  ;;  %v8670_v43 = vpop.permute.xlu1 %8669 }
 0xfeb   : > { %v6364_v61 = vsel %vm1980_vm8, %v6348_v30, %v8676_v16  ;;  %v6365_v25 = vsel %vm1980_vm8, %v6349_v40, %v8677_v11  ;;  %v8672_v36 = vunpack.i.h.bf16 %v8670_v43  ;;  %v8671_v10 = vunpack.i.l.bf16 %v8670_v43 }
 0xfec   : > { %v6378_v63 = vpack.c.bf16 %v6365_v25, %v6364_v61  ;;  %8041 = vmatmul.mubr.msk.bf16.vlgmr.msra.gmra.mrb[144].mxu0 %vm2034_vm9, %v6377_v26  ;;  %v6164_v30 = vmul.f32 %v9234_v6, %v12381_v14 }
 0xfed   : > { %v6351_v50 = vsel %vm1556_vm6, %v12338_v28, %v8672_v36  ;;  %v6350_v17 = vsel %vm1556_vm6, %v6158_v4, %v8671_v10 }
 0xfee   : > { %v8680_v42 = vpop.permute.xlu0 %8679  ;;  %8044 = vmatprep.mubr.msk.bf16.mxu0 %vm2034_vm9, %v6378_v63 }
 0xfef   : > { %v8682_v57 = vunpack.i.h.bf16 %v8680_v42  ;;  %v8681_v18 = vunpack.i.l.bf16 %v8680_v42 }
 0xff0   : > { %v8685_v15 = vpop.permute.xlu1 %8684 }
 0xff1   : > { %v8687_v41 = vunpack.i.h.bf16 %v8685_v15  ;;  %v8686_v21 = vunpack.i.l.bf16 %v8685_v15  ;;  %v6353_v47 = vsel %vm1556_vm6, %v12371_v29, %v8682_v57  ;;  %v6352_v13 = vsel %vm1556_vm6, %v6160_v33, %v8681_v18 }
 0xff2   : > { %v8695_v52 = vpop.permute.xlu0 %8694  ;;  %v6166_v15 = vmul.f32 %v9237_v7, %v12397_v31  ;;  %v7539_v31 = vld [vmem:[%s12819_s15 + $0xb] ss:$0 sm:$0xff] }
 0xff3   : > { %v6366_v22 = vsel %vm1980_vm8, %v6350_v17, %v8686_v21  ;;  %v6367_v48 = vsel %vm1980_vm8, %v6351_v50, %v8687_v41  ;;  %v8697_v62 = vunpack.i.h.bf16 %v8695_v52  ;;  %v8696_v59 = vunpack.i.l.bf16 %v8695_v52 }
 0xff4   : > { %v6379_v60 = vpack.c.bf16 %v6367_v48, %v6366_v22  ;;  %v8690_v55 = vpop.permute.xlu1 %8689 }
 0xff5   : > { %v6368_v28 = vsel %vm1980_vm8, %v6352_v13, %v8696_v59  ;;  %v6369_v34 = vsel %vm1980_vm8, %v6353_v47, %v8697_v62  ;;  %v8692_v12 = vunpack.i.h.bf16 %v8690_v55  ;;  %v8691_v35 = vunpack.i.l.bf16 %v8690_v55 }
 0xff6   : > { %v6380_v23 = vpack.c.bf16 %v6369_v34, %v6368_v28  ;;  %v8700_v53 = vpop.permute.xlu0 %8699  ;;  %8045 = vmatmul.mubr.msk.bf16.gmra.mrb[148].mxu0 %vm2034_vm9, %v6379_v60 }
 0xff7   : > { %v8702_v51 = vunpack.i.h.bf16 %v8700_v53  ;;  %v8701_v5 = vunpack.i.l.bf16 %v8700_v53  ;;  %v6355_v16 = vsel %vm1556_vm6, %v12376_v19, %v8692_v12  ;;  %v6354_v40 = vsel %vm1556_vm6, %v6162_v3, %v8691_v35 }
 0xff8   : > { %v8705_v29 = vpop.permute.xlu1 %8704  ;;  %8048 = vmatprep.mubr.msk.bf16.mxu0 %vm2034_vm9, %v6380_v23 }
 0xff9   : > { %v8707_v8 = vunpack.i.h.bf16 %v8705_v29  ;;  %v8706_v11 = vunpack.i.l.bf16 %v8705_v29  ;;  %v6357_v63 = vsel %vm1556_vm6, %v12410_v38, %v8702_v51  ;;  %v6356_v36 = vsel %vm1556_vm6, %v6164_v30, %v8701_v5 }
 0xffa   : > { %v8715_v26 = vpop.permute.xlu0 %8714 }
 0xffb   : > { %v6370_v61 = vsel %vm1980_vm8, %v6354_v40, %v8706_v11  ;;  %v6371_v24 = vsel %vm1980_vm8, %v6355_v16, %v8707_v8  ;;  %v8717_v25 = vunpack.i.h.bf16 %v8715_v26  ;;  %v8716_v43 = vunpack.i.l.bf16 %v8715_v26 }
 0xffc   : > { %v6381_v10 = vpack.c.bf16 %v6371_v24, %v6370_v61  ;;  %v8710_v42 = vpop.permute.xlu1 %8709 }
 0xffd   : > { %v6372_v19 = vsel %vm1980_vm8, %v6356_v36, %v8716_v43  ;;  %v6373_v4 = vsel %vm1980_vm8, %v6357_v63, %v8717_v25  ;;  %v8712_v14 = vunpack.i.h.bf16 %v8710_v42  ;;  %v8711_v18 = vunpack.i.l.bf16 %v8710_v42 }
 0xffe   : > { %v6382_v57 = vpack.c.bf16 %v6373_v4, %v6372_v19  ;;  %8049 = vmatmul.mubr.msk.bf16.gmra.mrb[152].mxu0 %vm2034_vm9, %v6381_v10 }
 0xfff   : > { %v6359_v50 = vsel %vm1556_vm6, %v12414_v44, %v8712_v14  ;;  %v6358_v17 = vsel %vm1556_vm6, %v6166_v15, %v8711_v18 }
0x1000   : > { %v8720_v41 = vpop.permute.xlu1 %8719  ;;  %8052 = vmatprep.mubr.msk.bf16.mxu0 %vm2034_vm9, %v6382_v57 }
0x1001   : > { %v8722_v38 = vunpack.i.h.bf16 %v8720_v41  ;;  %v8721_v21 = vunpack.i.l.bf16 %v8720_v41 }
0x1003   : > { %v6375_v33 = vsel %vm1980_vm8, %v6359_v50, %v8722_v38  ;;  %v6374_v52 = vsel %vm1980_vm8, %v6358_v17, %v8721_v21 }
0x1004   : > { %v6383_v22 = vpack.c.bf16 %v6375_v33, %v6374_v52 }
0x1006   : > { %8053 = vmatmul.mubr.msk.bf16.gmra.mrb[156].mxu0 %vm2034_vm9, %v6383_v22 }
0x10bf   : > { %v8042_v48 = vpop.f32.mrb[144].mxu0 }
0x10c0   : > { %v6480_v62 = vadd.f32 %v8042_v48, %v7539_v31  ;;  %v6471_v59 = vpop.f32.mrb[145].mxu0 }
0x10c1   : > { %v8043_v47 = vpop.f32.mrb[146].mxu0  ;;  %v6472_v34 = vadd.f32 %v7539_v31, %v6471_v59  ;;  %v8913_v59 = vld [vmem:[%s12817_s13] sm:$0xff]  }
0x10c2   : > { %v6536_v13 = vmax.f32 %v6480_v62, 0.0  ;;  %v6483_v60 = vadd.f32 %v8043_v47, %v7539_v31  ;;  %v6474_v44 = vpop.f32.mrb[147].mxu0  ;;  %v8914_v47 = vld [vmem:[%s12817_s13 + $0x8] sm:$0xff]   ;;  %8056 = vmatprep.subr.bf16.mxu1 %v8913_v59 }
0x10c3   : > { %v6475_v28 = vadd.f32 %v7539_v31, %v6474_v44  ;;  %v6534_v51 = vmax.f32 %v6472_v34, 0.0  ;;  %8057 = vmatpush3.bf16.msra.mxu1 %v8913_v59  ;;  %v8915_v34 = vld [vmem:[%s12817_s13 + $0x10] sm:$0xff]  }
0x10c4   : > { %v6537_v55 = vmax.f32 %v6483_v60, 0.0  ;;  %6570 = vrot.lane.b32.xlu1 %v6536_v13, %s13051_s28  ;;  %8058 = vmatprep.subr.bf16.mxu1 %v8914_v47  ;;  %v13052_v13 = vld [vmem:[#allocation10_spill] sm:$0xff] }
0x10c5   : > { %v6535_v23 = vmax.f32 %v6475_v28, 0.0 }
0x10c6   : > { %6572 = vrot.lane.b32.xlu0 %v6537_v55, %s13051_s28  ;;  %v13053_v55 = vld [vmem:[#allocation13_spill] sm:$0xff] }
0x10c7   : > { %8059 = vmatpush3.bf16.msra.mxu1 %v8914_v47 }
0x10c8   : > { %8060 = vmatprep.subr.bf16.mxu1 %v8915_v34 }
0x10c9   : > { %v8046_v12 = vpop.f32.mrb[148].mxu0 }
0x10ca   : > { %v6487_v35 = vpop.f32.mrb[149].mxu0  ;;  %6568 = vrot.lane.b32.xlu0 %v6535_v23, %s13051_s28  ;;  %v6496_v5 = vadd.f32 %v8046_v12, %v7539_v31 }
0x10cb   : > { %v6488_v53 = vadd.f32 %v7539_v31, %v6487_v35  ;;  %v8047_v3 = vpop.f32.mrb[150].mxu0  ;;  %8061 = vmatpush3.bf16.msra.mxu1 %v8915_v34 }
0x10cc   : > { %v6490_v29 = vpop.f32.mrb[151].mxu0  ;;  %v6540_v16 = vmax.f32 %v6496_v5, 0.0  ;;  %v6499_v40 = vadd.f32 %v8047_v3, %v7539_v31 }
0x10cd   : > { %v6538_v8 = vmax.f32 %v6488_v53, 0.0  ;;  %v6491_v11 = vadd.f32 %v7539_v31, %v6490_v29 }
0x10ce   : > { %6566 = vrot.lane.b32.xlu0 %v6534_v51, %s13051_s28  ;;  %v6541_v63 = vmax.f32 %v6499_v40, 0.0  ;;  %v13054_v51 = vld [vmem:[#allocation11_spill] sm:$0xff] }
0x10cf   : > { %6574 = vrot.lane.b32.xlu1 %v6538_v8, %s13051_s28  ;;  %v6539_v30 = vmax.f32 %v6491_v11, 0.0 }
0x10d1   : > { %v8050_v26 = vpop.f32.mrb[152].mxu0 }
0x10d2   : > { %v6503_v61 = vpop.f32.mrb[153].mxu0  ;;  %6578 = vrot.lane.b32.xlu0 %v6540_v16, %s13051_s28  ;;  %v6512_v36 = vadd.f32 %v8050_v26, %v7539_v31  ;;  %v13055_v26 = vld [vmem:[#allocation14_spill] sm:$0xff] }
0x10d3   : > { %v6504_v24 = vadd.f32 %v7539_v31, %v6503_v61  ;;  %v8051_v25 = vpop.f32.mrb[154].mxu0  ;;  %6576 = vrot.lane.b32.xlu1 %v6539_v30, %s13051_s28 }
0x10d4   : > { %v6506_v43 = vpop.f32.mrb[155].mxu0  ;;  %v6544_v19 = vmax.f32 %v6512_v36, 0.0  ;;  %v6515_v4 = vadd.f32 %v8051_v25, %v7539_v31  ;;  %v13056_v36 = vld [vmem:[#allocation12_spill] sm:$0xff] }
0x10d5   : > { %v6542_v10 = vmax.f32 %v6504_v24, 0.0  ;;  %v6507_v42 = vadd.f32 %v7539_v31, %v6506_v43 }
0x10d6   : > { %v6545_v21 = vmax.f32 %v6515_v4, 0.0 }
0x10d7   : > { %6580 = vrot.lane.b32.xlu1 %v6541_v63, %s13051_s28  ;;  %6582 = vrot.lane.b32.xlu0 %v6542_v10, %s13051_s28  ;;  %v6543_v57 = vmax.f32 %v6507_v42, 0.0 }
0x10d9   : > { %v8054_v14 = vpop.f32.mrb[156].mxu0 }
0x10da   : > { %v6519_v18 = vpop.f32.mrb[157].mxu0  ;;  %v6528_v50 = vadd.f32 %v8054_v14, %v7539_v31 }
0x10db   : > { %v6520_v15 = vadd.f32 %v7539_v31, %v6519_v18  ;;  %v8055_v41 = vpop.f32.mrb[158].mxu0  ;;  %6584 = vrot.lane.b32.xlu1 %v6543_v57, %s13051_s28  ;;  %6586 = vrot.lane.b32.xlu0 %v6544_v19, %s13051_s28 }
0x10dc   : > { %v6522_v38 = vpop.f32.mrb[159].mxu0  ;;  %v6548_v52 = vmax.f32 %v6528_v50, 0.0  ;;  %v6531_v22 = vadd.f32 %v8055_v41, %v7539_v31 }
0x10dd   : > { %v6546_v17 = vmax.f32 %v6520_v15, 0.0  ;;  %v6523_v33 = vadd.f32 %v7539_v31, %v6522_v38  ;;  %v13057_v38 = vld [vmem:[#allocation17_spill] sm:$0xff] }
0x10de   : > { %v6549_v62 = vmax.f32 %v6531_v22, 0.0  ;;  %v13058_v22 = vld [vmem:[#allocation15_spill] sm:$0xff] }
0x10df   : > { %6588 = vrot.lane.b32.xlu1 %v6545_v21, %s13051_s28  ;;  %6590 = vrot.lane.b32.xlu0 %v6546_v17, %s13051_s28  ;;  %v6547_v48 = vmax.f32 %v6523_v33, 0.0 }
0x10e3   : > { %6592 = vrot.lane.b32.xlu1 %v6547_v48, %s13051_s28  ;;  %6594 = vrot.lane.b32.xlu0 %v6548_v52, %s13051_s28 }
0x10e7   : > { %6596 = vrot.lane.b32.xlu1 %v6549_v62, %s13051_s28  ;;  %s13068_s28 = sshll.u32 %s13070_s23, 3 }
0x10e8   : > { %s12767_s17 = scalar_lea.vmem %s12820_s16, %s13068_s28 }
0x1136   : > { %v6571_v31 = vpop.permute.xlu1 %6570 }
0x1137   : > { %v6616_v60 = vsel %vm1539_vm5, %v13052_v13, %v6571_v31 }
0x1138   : > { %v6573_v44 = vpop.permute.xlu0 %6572  ;;  %v6632_v23 = vrot.slane %v6616_v60, 7  ;;  %v6680_v29 = vrot.slane %v6616_v60, 1 }
0x1139   : > { %v6617_v28 = vsel %vm1539_vm5, %v13053_v55, %v6573_v44 }
0x113a   : > { %v8723_v12 = vpack.i.bf16 %v6617_v28, %v6616_v60  ;;  %v6633_v35 = vrot.slane %v6617_v28, 7  ;;  %v6681_v42 = vrot.slane %v6617_v28, 1 }
0x113c   : > { %8724 = vrot.lane.b32.xlu1 %v8723_v12, %s8927_s26  ;;  %v6569_v53 = vpop.permute.xlu0 %6568  ;;  %v12518_v3 = vsel %vm864_vm0, %v6632_v23, %v6633_v35  ;;  %v6706_v31 = vsel %vm913_vm4, %v6680_v29, %v6681_v42 }
0x113d   : > { %v6615_v5 = vsel %vm1539_vm5, %v13054_v51, %v6569_v53 }
0x113e   : > { %v6631_v8 = vrot.slane %v6615_v5, 7  ;;  %v6679_v11 = vrot.slane %v6615_v5, 1 }
0x1140   : > { %v12524_v16 = vsel %vm864_vm0, %v6631_v8, %v6632_v23  ;;  %v6707_v40 = vsel %vm913_vm4, %v6679_v11, %v6680_v29  ;;  %v6567_v30 = vpop.permute.xlu0 %6566  ;;  %v13059_v23 = vld [vmem:[#allocation16_spill] sm:$0xff] }
0x1141   : > { %v12530_v61 = vsel %vm1539_vm5, %v13055_v26, %v6567_v30  ;;  %v6575_v24 = vpop.permute.xlu1 %6574  ;;  %v6711_v57 = vmul.f32 %v9104_v45, %v6707_v40 }
0x1142   : > { %v8728_v25 = vpack.i.bf16 %v6615_v5, %v12530_v61  ;;  %v6630_v43 = vrot.slane %v12530_v61, 7  ;;  %v6678_v63 = vrot.slane %v12530_v61, 1  ;;  %v6618_v10 = vsel %vm1539_vm5, %v13056_v36, %v6575_v24 }
0x1143   : > { %v6634_v19 = vrot.slane %v6618_v10, 7  ;;  %v6682_v4 = vrot.slane %v6618_v10, 1 }
0x1144   : > { %8729 = vrot.lane.b32.xlu0 %v8728_v25, %s8927_s26  ;;  %v6579_v14 = vpop.permute.xlu0 %6578  ;;  %v6708_v18 = vsel %vm913_vm4, %v6678_v63, %v6679_v11  ;;  %v12547_v15 = vsel %vm864_vm0, %v6630_v43, %v6631_v8 }
0x1145   : > { %v12551_v41 = vsel %vm864_vm0, %v6633_v35, %v6634_v19  ;;  %v6705_v45 = vsel %vm913_vm4, %v6681_v42, %v6682_v4  ;;  %v6620_v21 = vsel %vm1539_vm5, %v13057_v38, %v6579_v14  ;;  %v6577_v50 = vpop.permute.xlu1 %6576  ;;  %v8733_v17 = vpack.i.bf16 %v6711_v57, %v6708_v18 }
0x1146   : > { %v6636_v33 = vrot.slane %v6620_v21, 7  ;;  %v6684_v52 = vrot.slane %v6620_v21, 1  ;;  %v6619_v48 = vsel %vm1539_vm5, %v13058_v22, %v6577_v50  ;;  %v6713_v47 = vmul.f32 %v9124_v54, %v6705_v45  ;;  %v13060_v54 = vld [vmem:[#allocation18_spill] sm:$0xff] }
0x1147   : > { %v6635_v62 = vrot.slane %v6619_v48, 7  ;;  %v6683_v59 = vrot.slane %v6619_v48, 1  ;;  %v8738_v34 = vpack.i.bf16 %v6619_v48, %v6618_v10  ;;  %v13061_v10 = vld [vmem:[#allocation19_spill] sm:$0xff] }
0x1148   : > { %8734 = vrot.lane.b32.xlu0 %v8733_v17, %s8928_s0  ;;  %v8743_v28 = vpack.i.bf16 %v6713_v47, %v6706_v31  ;;  %v13064_v31 = vld [vmem:[#allocation22_spill] sm:$0xff] }
0x1149   : > { %v12565_v13 = vsel %vm864_vm0, %v6635_v62, %v6636_v33  ;;  %v6703_v60 = vsel %vm913_vm4, %v6683_v59, %v6684_v52  ;;  %v6581_v44 = vpop.permute.xlu1 %6580  ;;  %v6583_v55 = vpop.permute.xlu0 %6582  ;;  %v12578_v40 = vsel %vm864_vm0, %v6634_v19, %v6635_v62  ;;  %v13062_v19 = vld [vmem:[#allocation21_spill] sm:$0xff] }
0x114a   : > { %v6621_v12 = vsel %vm1539_vm5, %v13059_v23, %v6581_v44  ;;  %v6622_v35 = vsel %vm1539_vm5, %v13060_v54, %v6583_v55  ;;  %v6715_v53 = vmul.f32 %v13000_v1, %v6703_v60  ;;  %8744 = vrot.lane.b32.xlu1 %v8743_v28, %s8928_s0  ;;  %v6704_v1 = vsel %vm913_vm4, %v6682_v4, %v6683_v59  ;;  %v13063_v59 = vld [vmem:[#allocation20_spill] sm:$0xff] }
0x114b   : > { %v6637_v51 = vrot.slane %v6621_v12, 7  ;;  %v6685_v5 = vrot.slane %v6621_v12, 1  ;;  %v8748_v29 = vpack.i.bf16 %v6621_v12, %v6620_v21  ;;  %v6638_v8 = vrot.slane %v6622_v35, 7 }
0x114c   : > { %v6686_v11 = vrot.slane %v6622_v35, 1  ;;  %8739 = vrot.lane.b32.xlu0 %v8738_v34, %s8927_s26  ;;  %v8753_v14 = vpack.i.bf16 %v6715_v53, %v6704_v1 }
0x114d   : > { %v12582_v30 = vsel %vm864_vm0, %v6637_v51, %v6638_v8  ;;  %v6585_v26 = vpop.permute.xlu1 %6584  ;;  %v6587_v24 = vpop.permute.xlu0 %6586  ;;  %v12588_v25 = vsel %vm864_vm0, %v6636_v33, %v6637_v51  ;;  %v6702_v28 = vsel %vm913_vm4, %v6684_v52, %v6685_v5 }
0x114e   : > { %v6701_v36 = vsel %vm913_vm4, %v6685_v5, %v6686_v11  ;;  %v6623_v42 = vsel %vm1539_vm5, %v13061_v10, %v6585_v26  ;;  %v6624_v57 = vsel %vm1539_vm5, %v13062_v19, %v6587_v24  ;;  %8749 = vrot.lane.b32.xlu1 %v8748_v29, %s8927_s26  ;;  %v13065_v5 = vld [vmem:[#allocation23_spill] sm:$0xff] }
0x114f   : > { %v6639_v18 = vrot.slane %v6623_v42, 7  ;;  %v6687_v45 = vrot.slane %v6623_v42, 1  ;;  %v6640_v38 = vrot.slane %v6624_v57, 7  ;;  %v6688_v4 = vrot.slane %v6624_v57, 1 }
0x1150   : > { %8754 = vrot.lane.b32.xlu0 %v8753_v14, %s8928_s0  ;;  %v6717_v21 = vmul.f32 %v13004_v39, %v6701_v36  ;;  %v8758_v48 = vpack.i.bf16 %v6623_v42, %v6622_v35 }
0x1151   : > { %v12601_v50 = vsel %vm864_vm0, %v6639_v18, %v6640_v38  ;;  %v6589_v17 = vpop.permute.xlu1 %6588  ;;  %v6591_v33 = vpop.permute.xlu0 %6590  ;;  %v12605_v22 = vsel %vm864_vm0, %v6638_v8, %v6639_v18  ;;  %v6699_v62 = vsel %vm913_vm4, %v6687_v45, %v6688_v4  ;;  %v6700_v10 = vsel %vm913_vm4, %v6686_v11, %v6687_v45  ;;  %v13067_v11 = vld [vmem:[#allocation24_spill] sm:$0xff] }
0x1152   : > { %v6625_v47 = vsel %vm1539_vm5, %v13063_v59, %v6589_v17  ;;  %v6626_v39 = vsel %vm1539_vm5, %v13064_v31, %v6591_v33  ;;  %v8763_v23 = vpack.i.bf16 %v6717_v21, %v6702_v28  ;;  %v6719_v12 = vmul.f32 %v13007_v20, %v6699_v62  ;;  %v13066_v20 = vld [vmem:[#allocation25_spill] sm:$0xff] }
0x1153   : > { %v6641_v60 = vrot.slane %v6625_v47, 7  ;;  %v6689_v44 = vrot.slane %v6625_v47, 1  ;;  %v6642_v55 = vrot.slane %v6626_v39, 7  ;;  %v6690_v34 = vrot.slane %v6626_v39, 1 }
0x1154   : > { %8759 = vrot.lane.b32.xlu0 %v8758_v48, %s8927_s26  ;;  %v8768_v29 = vpack.i.bf16 %v6625_v47, %v6624_v57  ;;  %8764 = vrot.lane.b32.xlu1 %v8763_v23, %s8928_s0  ;;  %v8773_v19 = vpack.i.bf16 %v6719_v12, %v6700_v10 }
0x1155   : > { %v12619_v54 = vsel %vm864_vm0, %v6641_v60, %v6642_v55  ;;  %v6593_v35 = vpop.permute.xlu1 %6592  ;;  %v6595_v53 = vpop.permute.xlu0 %6594  ;;  %v12623_v51 = vsel %vm864_vm0, %v6640_v38, %v6641_v60  ;;  %v6697_v52 = vsel %vm913_vm4, %v6689_v44, %v6690_v34 }
0x1156   : > { %v6627_v8 = vsel %vm1539_vm5, %v13065_v5, %v6593_v35  ;;  %v6628_v26 = vsel %vm1539_vm5, %v13066_v20, %v6595_v53  ;;  %v6721_v57 = vmul.f32 %v13011_v58, %v6697_v52  ;;  %v6698_v58 = vsel %vm913_vm4, %v6688_v4, %v6689_v44 }
0x1157   : > { %v6643_v24 = vrot.slane %v6627_v8, 7  ;;  %v6691_v1 = vrot.slane %v6627_v8, 1  ;;  %v6644_v36 = vrot.slane %v6628_v26, 7  ;;  %v6692_v42 = vrot.slane %v6628_v26, 1 }
0x1158   : > { %8769 = vrot.lane.b32.xlu1 %v8768_v29, %s8927_s26  ;;  %8774 = vrot.lane.b32.xlu0 %v8773_v19, %s8928_s0  ;;  %v8783_v48 = vpack.i.bf16 %v6721_v57, %v6698_v58  ;;  %v8778_v62 = vpack.i.bf16 %v6627_v8, %v6626_v39  ;;  %v6664_v8 = vmul.f32 %v9078_v27, %v12524_v16 }
0x1159   : > { %v12637_v14 = vsel %vm864_vm0, %v6643_v24, %v6644_v36  ;;  %v6597_v18 = vpop.permute.xlu1 %6596  ;;  %v12641_v38 = vsel %vm864_vm0, %v6642_v55, %v6643_v24  ;;  %v6695_v21 = vsel %vm913_vm4, %v6691_v1, %v6692_v42  ;;  %v6696_v61 = vsel %vm913_vm4, %v6690_v34, %v6691_v1 }
0x115a   : > { %v6629_v45 = vsel %vm1539_vm5, %v13067_v11, %v6597_v18  ;;  %v6723_v59 = vmul.f32 %v9240_v9, %v6695_v21  ;;  %v6666_v21 = vmul.f32 %v13002_v46, %v12551_v41  ;;  %v6668_v41 = vmul.f32 %v13009_v49, %v12565_v13 }
0x115b   : > { %v6645_v17 = vrot.slane %v6629_v45, 7  ;;  %v6693_v33 = vrot.slane %v6629_v45, 1  ;;  %v8788_v4 = vpack.i.bf16 %v6629_v45, %v6628_v26 }
0x115c   : > { %8784 = vrot.lane.b32.xlu1 %v8783_v48, %s8928_s0  ;;  %8779 = vrot.lane.b32.xlu0 %v8778_v62, %s8927_s26 }
0x115d   : > { %v6661_v47 = vsel %vm864_vm0, %v6645_v17, %v6630_v43  ;;  %v6709_v31 = vsel %vm913_vm4, %v6693_v33, %v6678_v63  ;;  %v12662_v60 = vsel %vm864_vm0, %v6644_v36, %v6645_v17  ;;  %v7060_v43 = vld [vmem:[%s12818_s14] sm:$0xff]  ;;  %v8793_v63 = vpack.i.bf16 %v6723_v59, %v6696_v61 }
0x115e   : > { %v6725_v9 = vmul.f32 %v9260_v32, %v6709_v31  ;;  %8078 = vmatprep.subr.mxu0 %v7060_v43  ;;  %8104 = vmatprep.subr.mxu1 %v7060_v43  ;;  %v6694_v39 = vsel %vm913_vm4, %v6692_v42, %v6693_v33  ;;  %v6662_v34 = vmul.f32 %v9089_v37, %v6661_v47  ;;  %vm7259_vm0 = vcmask 15360  }
0x115f   : > { %8079 = vmatpush3.msra.mxu0 %v7060_v43 }
0x1160   : > { %8789 = vrot.lane.b32.xlu1 %v8788_v4, %s8927_s26  ;;  %8794 = vrot.lane.b32.xlu0 %v8793_v63, %s8928_s0  ;;  %v8798_v44 = vpack.i.bf16 %v6725_v9, %v6694_v39 }
0x1164   : > { %8799 = vrot.lane.b32.xlu1 %v8798_v44, %s8928_s0 }
0x11ae   : > { %v8725_v55 = vpop.permute.xlu1 %8724 }
0x11af   : > { %v8727_v35 = vunpack.i.h.bf16 %v8725_v55  ;;  %v8726_v53 = vunpack.i.l.bf16 %v8725_v55  ;;  %v6670_v55 = vmul.f32 %v13012_v56, %v12582_v30  ;;  %v6672_v56 = vmul.f32 %v13013_v0, %v12601_v50 }
0x11b0   : > { %v6674_v0 = vmul.f32 %v9234_v6, %v12619_v54  ;;  %v6676_v6 = vmul.f32 %v9237_v7, %v12637_v14  ;;  %v7551_v7 = vld [vmem:[%s12819_s15 + $0xc] ss:$0 sm:$0xff] }
0x11b1   : > { %v6857_v42 = vsel %vm1556_vm6, %v12518_v3, %v8727_v35  ;;  %v6856_v19 = vsel %vm1556_vm6, %v6664_v8, %v8726_v53 }
0x11b6   : > { %v8730_v32 = vpop.permute.xlu0 %8729 }
0x11b7   : > { %v8732_v28 = vunpack.i.h.bf16 %v8730_v32  ;;  %v8731_v23 = vunpack.i.l.bf16 %v8730_v32 }
0x11b9   : > { %v6855_v2 = vsel %vm1556_vm6, %v12547_v15, %v8732_v28  ;;  %v6854_v5 = vsel %vm1556_vm6, %v6662_v34, %v8731_v23 }
0x11ba   : > { %v8735_v12 = vpop.permute.xlu0 %8734 }
0x11bb   : > { %v8737_v29 = vunpack.i.h.bf16 %v8735_v12  ;;  %v8736_v52 = vunpack.i.l.bf16 %v8735_v12 }
0x11bc   : > { %v8745_v24 = vpop.permute.xlu1 %8744 }
0x11bd   : > { %v6870_v20 = vsel %vm1980_vm8, %v6854_v5, %v8736_v52  ;;  %v6871_v26 = vsel %vm1980_vm8, %v6855_v2, %v8737_v29  ;;  %v8747_v37 = vunpack.i.h.bf16 %v8745_v24  ;;  %v8746_v36 = vunpack.i.l.bf16 %v8745_v24 }
0x11be   : > { %v6886_v1 = vpack.c.bf16 %v6871_v26, %v6870_v20  ;;  %v8740_v10 = vpop.permute.xlu0 %8739 }
0x11bf   : > { %v6872_v15 = vsel %vm1980_vm8, %v6856_v19, %v8746_v36  ;;  %v6873_v57 = vsel %vm1980_vm8, %v6857_v42, %v8747_v37  ;;  %v8742_v18 = vunpack.i.h.bf16 %v8740_v10  ;;  %v8741_v27 = vunpack.i.l.bf16 %v8740_v10 }
0x11c0   : > { %8062 = vmatprep.mubr.msk.bf16.mxu1 %vm2034_vm9, %v6886_v1  ;;  %v6887_v16 = vpack.c.bf16 %v6873_v57, %v6872_v15  ;;  %v8750_v11 = vpop.permute.xlu1 %8749 }
0x11c1   : > { %v6859_v3 = vsel %vm1556_vm6, %v12578_v40, %v8742_v18  ;;  %v6858_v33 = vsel %vm1556_vm6, %v6666_v21, %v8741_v27  ;;  %v8752_v59 = vunpack.i.h.bf16 %v8750_v11  ;;  %v8751_v47 = vunpack.i.l.bf16 %v8750_v11 }
0x11c2   : > { %v8755_v45 = vpop.permute.xlu0 %8754  ;;  %8063 = vmatmul.mubr.msk.bf16.vlgmr.msra.gmra.mrb[128].mxu1 %vm2034_vm9, %v6887_v16 }
0x11c3   : > { %v8757_v58 = vunpack.i.h.bf16 %v8755_v45  ;;  %v8756_v17 = vunpack.i.l.bf16 %v8755_v45  ;;  %8105 = vmatpush3.msra.mxu1 %v7060_v43  ;;  %v6860_v40 = vsel %vm1556_vm6, %v6668_v41, %v8751_v47  ;;  %v6861_v43 = vsel %vm1556_vm6, %v12588_v25, %v8752_v59 }
0x11c5   : > { %v6874_v48 = vsel %vm1980_vm8, %v6858_v33, %v8756_v17  ;;  %v6875_v62 = vsel %vm1980_vm8, %v6859_v3, %v8757_v58 }
0x11c6   : > { %v6888_v31 = vpack.c.bf16 %v6875_v62, %v6874_v48  ;;  %v8760_v46 = vpop.permute.xlu0 %8759  ;;  %v8765_v4 = vpop.permute.xlu1 %8764 }
0x11c7   : > { %v8767_v9 = vunpack.i.h.bf16 %v8765_v4  ;;  %v8766_v61 = vunpack.i.l.bf16 %v8765_v4  ;;  %v8762_v63 = vunpack.i.h.bf16 %v8760_v46  ;;  %v8761_v39 = vunpack.i.l.bf16 %v8760_v46 }
0x11c8   : > { %8066 = vmatprep.mubr.msk.bf16.mxu1 %vm2034_vm9, %v6888_v31 }
0x11c9   : > { %v6877_v44 = vsel %vm1980_vm8, %v6861_v43, %v8767_v9  ;;  %v6876_v32 = vsel %vm1980_vm8, %v6860_v40, %v8766_v61  ;;  %v6863_v12 = vsel %vm1556_vm6, %v12605_v22, %v8762_v63  ;;  %v6862_v35 = vsel %vm1556_vm6, %v6670_v55, %v8761_v39 }
0x11ca   : > { %v6889_v49 = vpack.c.bf16 %v6877_v44, %v6876_v32  ;;  %v8770_v13 = vpop.permute.xlu1 %8769  ;;  %v8775_v28 = vpop.permute.xlu0 %8774 }
0x11cb   : > { %v8777_v23 = vunpack.i.h.bf16 %v8775_v28  ;;  %v8776_v34 = vunpack.i.l.bf16 %v8775_v28  ;;  %v8772_v25 = vunpack.i.h.bf16 %v8770_v13  ;;  %v8771_v53 = vunpack.i.l.bf16 %v8770_v13 }
0x11cc   : > { %8067 = vmatmul.mubr.msk.bf16.gmra.mrb[132].mxu1 %vm2034_vm9, %v6889_v49 }
0x11cd   : > { %v6878_v29 = vsel %vm1980_vm8, %v6862_v35, %v8776_v34  ;;  %v6879_v52 = vsel %vm1980_vm8, %v6863_v12, %v8777_v23  ;;  %v6864_v22 = vsel %vm1556_vm6, %v6672_v56, %v8771_v53  ;;  %v6865_v26 = vsel %vm1556_vm6, %v12623_v51, %v8772_v25 }
0x11ce   : > { %v6890_v30 = vpack.c.bf16 %v6879_v52, %v6878_v29  ;;  %v8785_v2 = vpop.permute.xlu1 %8784  ;;  %v8780_v5 = vpop.permute.xlu0 %8779 }
0x11cf   : > { %v8787_v8 = vunpack.i.h.bf16 %v8785_v2  ;;  %v8786_v20 = vunpack.i.l.bf16 %v8785_v2  ;;  %v8782_v24 = vunpack.i.h.bf16 %v8780_v5  ;;  %v8781_v1 = vunpack.i.l.bf16 %v8780_v5 }
0x11d0   : > { %8070 = vmatprep.mubr.msk.bf16.mxu1 %vm2034_vm9, %v6890_v30 }
0x11d1   : > { %v6881_v37 = vsel %vm1980_vm8, %v6865_v26, %v8787_v8  ;;  %v6880_v36 = vsel %vm1980_vm8, %v6864_v22, %v8786_v20  ;;  %v6867_v57 = vsel %vm1556_vm6, %v12641_v38, %v8782_v24  ;;  %v6866_v51 = vsel %vm1556_vm6, %v6674_v0, %v8781_v1 }
0x11d2   : > { %v6891_v50 = vpack.c.bf16 %v6881_v37, %v6880_v36  ;;  %v8790_v10 = vpop.permute.xlu1 %8789  ;;  %v8795_v42 = vpop.permute.xlu0 %8794 }
0x11d3   : > { %v8797_v19 = vunpack.i.h.bf16 %v8795_v42  ;;  %v8796_v15 = vunpack.i.l.bf16 %v8795_v42  ;;  %v8792_v18 = vunpack.i.h.bf16 %v8790_v10  ;;  %v8791_v27 = vunpack.i.l.bf16 %v8790_v10 }
0x11d4   : > { %8071 = vmatmul.mubr.msk.bf16.gmra.mrb[136].mxu1 %vm2034_vm9, %v6891_v50 }
0x11d5   : > { %v6882_v16 = vsel %vm1980_vm8, %v6866_v51, %v8796_v15  ;;  %v6883_v21 = vsel %vm1980_vm8, %v6867_v57, %v8797_v19  ;;  %v6868_v17 = vsel %vm1556_vm6, %v6676_v6, %v8791_v27  ;;  %v6869_v38 = vsel %vm1556_vm6, %v12662_v60, %v8792_v18  ;;  %v7563_v51 = vld [vmem:[%s12819_s15 + $0xd] ss:$0 sm:$0xff] }
0x11d6   : > { %v6892_v54 = vpack.c.bf16 %v6883_v21, %v6882_v16  ;;  %v8800_v11 = vpop.permute.xlu1 %8799 }
0x11d7   : > { %v8802_v45 = vunpack.i.h.bf16 %v8800_v11  ;;  %v8801_v58 = vunpack.i.l.bf16 %v8800_v11 }
0x11d8   : > { %8074 = vmatprep.mubr.msk.bf16.mxu1 %vm2034_vm9, %v6892_v54 }
0x11d9   : > { %v6884_v3 = vsel %vm1980_vm8, %v6868_v17, %v8801_v58  ;;  %v6885_v33 = vsel %vm1980_vm8, %v6869_v38, %v8802_v45 }
0x11da   : > { %v6893_v48 = vpack.c.bf16 %v6885_v33, %v6884_v3 }
0x11dc   : > { %8075 = vmatmul.mubr.msk.bf16.gmra.mrb[140].mxu1 %vm2034_vm9, %v6893_v48 }
0x1295   : > { %v8064_v14 = vpop.f32.mrb[128].mxu1 }
0x1296   : > { %v6981_v62 = vpop.f32.mrb[129].mxu1  ;;  %v6990_v31 = vadd.f32 %v8064_v14, %v7551_v7 }
0x1297   : > { %v6982_v59 = vadd.f32 %v7551_v7, %v6981_v62  ;;  %v8065_v47 = vpop.f32.mrb[130].mxu1 }
0x1298   : > { %v6984_v46 = vpop.f32.mrb[131].mxu1  ;;  %v6993_v4 = vadd.f32 %v8065_v47, %v7551_v7  ;;  %v7046_v61 = vmax.f32 %v6990_v31, 0.0 }
0x1299   : > { %v7044_v60 = vmax.f32 %v6982_v59, 0.0  ;;  %v6985_v41 = vadd.f32 %v7551_v7, %v6984_v46 }
0x129a   : > { %v7047_v40 = vmax.f32 %v6993_v4, 0.0 }
0x129b   : > { %v7045_v9 = vmax.f32 %v6985_v41, 0.0  ;;  %8080 = vmatprep.mubr.msk.f32.mxu0 %vm1539_vm5, %v7044_v60 }
0x129d   : > { %8081 = vmatmul.mubr.msk.f32.vlgmr.msra.gmra.mrb[160].mxu0 %vm1539_vm5, %v7045_v9 }
0x129e   : > { %8083 = vmatprep.mubr.msk.f32.mxu0 %vm1539_vm5, %v7046_v61 }
0x129f   : > { %v8068_v43 = vpop.f32.mrb[132].mxu1 }
0x12a0   : > { %v6997_v63 = vpop.f32.mrb[133].mxu1  ;;  %v7006_v32 = vadd.f32 %v8068_v43, %v7551_v7 }
0x12a1   : > { %8084 = vmatmul.mubr.msk.f32.gmra.mrb[162].mxu0 %vm1539_vm5, %v7047_v40  ;;  %v6998_v39 = vadd.f32 %v7551_v7, %v6997_v63  ;;  %v8069_v44 = vpop.f32.mrb[134].mxu1 }
0x12a2   : > { %v7000_v55 = vpop.f32.mrb[135].mxu1  ;;  %v7009_v28 = vadd.f32 %v8069_v44, %v7551_v7  ;;  %v7050_v34 = vmax.f32 %v7006_v32, 0.0 }
0x12a3   : > { %v7048_v49 = vmax.f32 %v6998_v39, 0.0  ;;  %v7001_v13 = vadd.f32 %v7551_v7, %v7000_v55 }
0x12a4   : > { %v7051_v53 = vmax.f32 %v7009_v28, 0.0 }
0x12a5   : > { %v7049_v23 = vmax.f32 %v7001_v13, 0.0  ;;  %8086 = vmatprep.mubr.msk.f32.mxu0 %vm1539_vm5, %v7048_v49 }
0x12a7   : > { %v8072_v12 = vpop.f32.mrb[136].mxu1  ;;  %8087 = vmatmul.mubr.msk.f32.gmra.mrb[164].mxu0 %vm1539_vm5, %v7049_v23 }
0x12a8   : > { %v7022_v35 = vadd.f32 %v8072_v12, %v7551_v7  ;;  %v7013_v25 = vpop.f32.mrb[137].mxu1  ;;  %8089 = vmatprep.mubr.msk.f32.mxu0 %vm1539_vm5, %v7050_v34 }
0x12a9   : > { %v7014_v29 = vadd.f32 %v7551_v7, %v7013_v25  ;;  %v8073_v52 = vpop.f32.mrb[138].mxu1 }
0x12aa   : > { %v7054_v56 = vmax.f32 %v7022_v35, 0.0  ;;  %v7025_v30 = vadd.f32 %v8073_v52, %v7551_v7  ;;  %v7016_v2 = vpop.f32.mrb[139].mxu1 }
0x12ab   : > { %v7052_v5 = vmax.f32 %v7014_v29, 0.0  ;;  %v7017_v8 = vadd.f32 %v7551_v7, %v7016_v2  ;;  %8090 = vmatmul.mubr.msk.f32.gmra.mrb[166].mxu0 %vm1539_vm5, %v7051_v53 }
0x12ac   : > { %v7055_v20 = vmax.f32 %v7025_v30, 0.0  ;;  %8095 = vmatprep.mubr.msk.f32.mxu1 %vm1539_vm5, %v7054_v56 }
0x12ad   : > { %v7053_v22 = vmax.f32 %v7017_v8, 0.0  ;;  %8092 = vmatprep.mubr.msk.f32.mxu0 %vm1539_vm5, %v7052_v5 }
0x12ae   : > { %8096 = vmatmul.mubr.msk.f32.vlgmr.msra.gmra.mrb[144].mxu1 %vm1539_vm5, %v7055_v20 }
0x12af   : > { %v8076_v26 = vpop.f32.mrb[140].mxu1  ;;  %8093 = vmatmul.mubr.msk.f32.gmra.mrb[168].mxu0 %vm1539_vm5, %v7053_v22 }
0x12b0   : > { %v7029_v24 = vpop.f32.mrb[141].mxu1  ;;  %v7038_v36 = vadd.f32 %v8076_v26, %v7551_v7 }
0x12b1   : > { %v7030_v1 = vadd.f32 %v7551_v7, %v7029_v24  ;;  %v8077_v37 = vpop.f32.mrb[142].mxu1 }
0x12b2   : > { %v7032_v0 = vpop.f32.mrb[143].mxu1  ;;  %v7041_v42 = vadd.f32 %v8077_v37, %v7551_v7  ;;  %v7058_v15 = vmax.f32 %v7038_v36, 0.0 }
0x12b3   : > { %v7056_v50 = vmax.f32 %v7030_v1, 0.0  ;;  %v7033_v10 = vadd.f32 %v7551_v7, %v7032_v0 }
0x12b4   : > { %v7059_v57 = vmax.f32 %v7041_v42, 0.0 }
0x12b5   : > { %v7057_v19 = vmax.f32 %v7033_v10, 0.0  ;;  %8098 = vmatprep.mubr.msk.f32.mxu1 %vm1539_vm5, %v7056_v50 }
0x12b7   : > { %8099 = vmatmul.mubr.msk.f32.gmra.mrb[146].mxu1 %vm1539_vm5, %v7057_v19 }
0x12b8   : > { %8101 = vmatprep.mubr.msk.f32.mxu1 %vm1539_vm5, %v7058_v15 }
0x12bb   : > { %8102 = vmatmul.mubr.msk.f32.gmra.mrb[148].mxu1 %vm1539_vm5, %v7059_v57 }
0x1370   : > { %v8082_v18 = vpop.f32.mrb[160].mxu0 }
0x1371   : > { %v7186_v27 = vadd.f32 %v8082_v18, %v7563_v51  ;;  %v7180_v16 = vpop.f32.mrb[161].mxu0 }
0x1372   : > { %v7181_v21 = vadd.f32 %v7563_v51, %v7180_v16 }
0x1373   : > { %7261 = vst.msk [vmem:[%s12767_s17 + $0x8] sm:$0xff] %vm7259_vm0, %v7186_v27 }
0x1374   : > { %7260 = vst.msk [vmem:[%s12767_s17] sm:$0xff] %vm7259_vm0, %v7181_v21  ;;  %v8085_v6 = vpop.f32.mrb[162].mxu0 }
0x1375   : > { %v7196_v54 = vadd.f32 %v8085_v6, %v7563_v51  ;;  %v7190_v11 = vpop.f32.mrb[163].mxu0 }
0x1376   : > { %v7191_v45 = vadd.f32 %v7563_v51, %v7190_v11 }
0x1377   : > { %7263 = vst.msk [vmem:[%s12767_s17 + $0x18] sm:$0xff] %vm7259_vm0, %v7196_v54 }
0x1378   : > { %7262 = vst.msk [vmem:[%s12767_s17 + $0x10] sm:$0xff] %vm7259_vm0, %v7191_v45 }
0x137a   : > { %v8088_v58 = vpop.f32.mrb[164].mxu0 }
0x137b   : > { %v7206_v17 = vadd.f32 %v8088_v58, %v7563_v51  ;;  %v7200_v38 = vpop.f32.mrb[165].mxu0 }
0x137c   : > { %v7201_v3 = vadd.f32 %v7563_v51, %v7200_v38 }
0x137d   : > { %7265 = vst.msk [vmem:[%s12767_s17 + $0x28] sm:$0xff] %vm7259_vm0, %v7206_v17 }
0x137e   : > { %7264 = vst.msk [vmem:[%s12767_s17 + $0x20] sm:$0xff] %vm7259_vm0, %v7201_v3  ;;  %v8091_v33 = vpop.f32.mrb[166].mxu0 }
0x137f   : > { %v7216_v48 = vadd.f32 %v8091_v33, %v7563_v51  ;;  %v7210_v7 = vpop.f32.mrb[167].mxu0 }
0x1380   : > { %v7211_v14 = vadd.f32 %v7563_v51, %v7210_v7 }
0x1381   : > { %7267 = vst.msk [vmem:[%s12767_s17 + $0x38] sm:$0xff] %vm7259_vm0, %v7216_v48  ;;  %v8097_v62 = vpop.f32.mrb[144].mxu1 }
0x1382   : > { %7266 = vst.msk [vmem:[%s12767_s17 + $0x30] sm:$0xff] %vm7259_vm0, %v7211_v14  ;;  %v7236_v59 = vadd.f32 %v8097_v62, %v7563_v51  ;;  %v8094_v47 = vpop.f32.mrb[168].mxu0  ;;  %v7230_v31 = vpop.f32.mrb[145].mxu1 }
0x1383   : > { %v7226_v46 = vadd.f32 %v8094_v47, %v7563_v51  ;;  %v7231_v60 = vadd.f32 %v7563_v51, %v7230_v31  ;;  %v7220_v41 = vpop.f32.mrb[169].mxu0 }
0x1384   : > { %7271 = vst.msk [vmem:[%s12767_s17 + $0x58] sm:$0xff] %vm7259_vm0, %v7236_v59  ;;  %v7221_v4 = vadd.f32 %v7563_v51, %v7220_v41 }
0x1385   : > { %7269 = vst.msk [vmem:[%s12767_s17 + $0x48] sm:$0xff] %vm7259_vm0, %v7226_v46  ;;  %7270 = vst.msk [vmem:[%s12767_s17 + $0x50] sm:$0xff] %vm7259_vm0, %v7231_v60 }
0x1386   : > { %7268 = vst.msk [vmem:[%s12767_s17 + $0x40] sm:$0xff] %vm7259_vm0, %v7221_v4 }
0x138a   : > { %v8100_v9 = vpop.f32.mrb[146].mxu1 }
0x138b   : > { %v7246_v61 = vadd.f32 %v8100_v9, %v7563_v51  ;;  %v7240_v40 = vpop.f32.mrb[147].mxu1 }
0x138c   : > { %v7241_v43 = vadd.f32 %v7563_v51, %v7240_v40 }
0x138d   : > { %7273 = vst.msk [vmem:[%s12767_s17 + $0x68] sm:$0xff] %vm7259_vm0, %v7246_v61 }
0x138e   : > { %7272 = vst.msk [vmem:[%s12767_s17 + $0x60] sm:$0xff] %vm7259_vm0, %v7241_v43  ;;  %v8103_v63 = vpop.f32.mrb[148].mxu1 }
0x138f   : > { %v7256_v39 = vadd.f32 %v8103_v63, %v7563_v51  ;;  %v7250_v44 = vpop.f32.mrb[149].mxu1 }
0x1390   : > { %v7251_v32 = vadd.f32 %v7563_v51, %v7250_v44 }
0x1391   : > { %7275 = vst.msk [vmem:[%s12767_s17 + $0x78] sm:$0xff] %vm7259_vm0, %v7256_v39 }
0x1392   : > { %7274 = vst.msk [vmem:[%s12767_s17 + $0x70] sm:$0xff] %vm7259_vm0, %v7251_v32 }
0x1393 PF: > { %s26_s21 = sadd.s32 1, %s8922_s21  }
0x1394   : > { %p23_p4 = scmp.ge.s32.totalorder %s26_s21, 4  }
0x1396   :  { %25 = sbr.rel (!%p23_p4) target bundleno = 2 (0x2), region = 114 }

</bundles_post_ra>
